<compile_context>
chip_gen: v6e
topology: v6e:2x2x1
jax: 0.10.0
libtpu: 0.0.40
codegen_flags: <defaults>
</compile_context>

<pallas_src>
import functools

import jax
import jax.numpy as jnp
from jax.experimental import pallas as pl
from jax.experimental.pallas import tpu as pltpu

# ------------------------------- configuration ------------------------------

N_HEADS = 4
N_POINTS = 4
D_MODEL = 32
D_FFN = 64
NUM_STAGES = 2

LN_EPS = 1e-5
MATMUL_DTYPE = jnp.bfloat16       # MXU operand dtype (f32 accumulation); VPU/EUP math stays f32.
ROW_TILE = 512                    # M-tile: sized for v7x's 64 MiB VMEM with double buffering.
VMEM_LIMIT_BYTES = 64 * 1024 * 1024


def _compiler_params():
    return pltpu.CompilerParams(
        dimension_semantics=("parallel",),          # row tiles are independent -> megacore
        vmem_limit_bytes=VMEM_LIMIT_BYTES,
    )


def _round_up(v, m):
    return (v + m - 1) // m * m


def _row_tiling(m):
    tm = min(ROW_TILE, _round_up(m, 8))
    mp = _round_up(m, tm)
    return tm, mp


def _pad_rows(x, mp):
    m = x.shape[0]
    return x if m == mp else jnp.pad(x, ((0, mp - m), (0, 0)))


def _mxu_dot(a, b):
    # bf16 operands, f32 accumulation (supported on v5e/v6e/v7x MXU).
    return jnp.dot(a.astype(MATMUL_DTYPE), b.astype(MATMUL_DTYPE),
                   preferred_element_type=jnp.float32)


# ------------------------------ Pallas kernels -------------------------------


def _add_linear_kernel(x_ref, a_ref, w_ref, b_ref, o_ref):
    """(x + a) @ w + b   -- fused (offsets|attn) projection of query = src + pos."""
    x = x_ref[...].astype(jnp.float32) + a_ref[...].astype(jnp.float32)
    y = _mxu_dot(x, w_ref[...]) + b_ref[...].astype(jnp.float32)
    o_ref[...] = y.astype(o_ref.dtype)


def _masked_linear_kernel(x_ref, m_ref, w_ref, b_ref, o_ref):
    """(x @ w + b) * row_mask -- value projection with padding-mask zeroing fused in."""
    y = _mxu_dot(x_ref[...], w_ref[...]) + b_ref[...].astype(jnp.float32)
    y = y * m_ref[...].astype(jnp.float32)
    o_ref[...] = y.astype(o_ref.dtype)


def _proj_add_ln_kernel(x_ref, w_ref, b_ref, r_ref, g_ref, beta_ref, o_ref, *, eps):
    """LayerNorm(residual + x @ w + b) -- output projection + residual + norm1 fused."""
    y = _mxu_dot(x_ref[...], w_ref[...]) + b_ref[...].astype(jnp.float32)
    y = y + r_ref[...].astype(jnp.float32)
    mu = jnp.mean(y, axis=-1, keepdims=True)
    var = jnp.mean((y - mu) ** 2, axis=-1, keepdims=True)
    y = (y - mu) * jax.lax.rsqrt(var + eps)
    y = y * g_ref[...].astype(jnp.float32) + beta_ref[...].astype(jnp.float32)
    o_ref[...] = y.astype(o_ref.dtype)


def _ffn_ln_kernel(x_ref, w1_ref, b1_ref, w2_ref, b2_ref, g_ref, beta_ref, o_ref, *, eps):
    """LayerNorm(x + ReLU(x @ w1 + b1) @ w2 + b2) -- whole FFN block fused."""
    x = x_ref[...].astype(jnp.float32)
    h = jnp.maximum(_mxu_dot(x, w1_ref[...]) + b1_ref[...].astype(jnp.float32), 0.0)
    y = x + _mxu_dot(h, w2_ref[...]) + b2_ref[...].astype(jnp.float32)
    mu = jnp.mean(y, axis=-1, keepdims=True)
    var = jnp.mean((y - mu) ** 2, axis=-1, keepdims=True)
    y = (y - mu) * jax.lax.rsqrt(var + eps)
    y = y * g_ref[...].astype(jnp.float32) + beta_ref[...].astype(jnp.float32)
    o_ref[...] = y.astype(o_ref.dtype)


# ------------------------------ kernel wrappers -------------------------------


def add_linear(x, x_add, w, b):
    m, k = x.shape
    n_out = w.shape[1]
    tm, mp = _row_tiling(m)
    out = pl.pallas_call(
        _add_linear_kernel,
        out_shape=jax.ShapeDtypeStruct((mp, n_out), x.dtype),
        grid=(mp // tm,),
        in_specs=[
            pl.BlockSpec((tm, k), lambda i: (i, 0)),
            pl.BlockSpec((tm, k), lambda i: (i, 0)),
            pl.BlockSpec((k, n_out), lambda i: (0, 0)),
            pl.BlockSpec((1, n_out), lambda i: (0, 0)),
        ],
        out_specs=pl.BlockSpec((tm, n_out), lambda i: (i, 0)),
        compiler_params=_compiler_params(),
    )(_pad_rows(x, mp), _pad_rows(x_add, mp), w, b.reshape(1, n_out))
    return out if mp == m else out[:m]


def masked_linear(x, row_mask, w, b, out_dtype=None):
    m, k = x.shape
    n_out = w.shape[1]
    out_dtype = out_dtype or x.dtype
    tm, mp = _row_tiling(m)
    out = pl.pallas_call(
        _masked_linear_kernel,
        out_shape=jax.ShapeDtypeStruct((mp, n_out), out_dtype),
        grid=(mp // tm,),
        in_specs=[
            pl.BlockSpec((tm, k), lambda i: (i, 0)),
            pl.BlockSpec((tm, 1), lambda i: (i, 0)),
            pl.BlockSpec((k, n_out), lambda i: (0, 0)),
            pl.BlockSpec((1, n_out), lambda i: (0, 0)),
        ],
        out_specs=pl.BlockSpec((tm, n_out), lambda i: (i, 0)),
        compiler_params=_compiler_params(),
    )(_pad_rows(x, mp), _pad_rows(row_mask, mp), w, b.reshape(1, n_out))
    return out if mp == m else out[:m]


def proj_add_ln(x, w, b, residual, gamma, beta, eps=LN_EPS):
    m, k = x.shape
    c = w.shape[1]
    tm, mp = _row_tiling(m)
    out = pl.pallas_call(
        functools.partial(_proj_add_ln_kernel, eps=eps),
        out_shape=jax.ShapeDtypeStruct((mp, c), residual.dtype),
        grid=(mp // tm,),
        in_specs=[
            pl.BlockSpec((tm, k), lambda i: (i, 0)),
            pl.BlockSpec((k, c), lambda i: (0, 0)),
            pl.BlockSpec((1, c), lambda i: (0, 0)),
            pl.BlockSpec((tm, c), lambda i: (i, 0)),
            pl.BlockSpec((1, c), lambda i: (0, 0)),
            pl.BlockSpec((1, c), lambda i: (0, 0)),
        ],
        out_specs=pl.BlockSpec((tm, c), lambda i: (i, 0)),
        input_output_aliases={3: 0},    # overwrite the residual activation in place
        compiler_params=_compiler_params(),
    )(_pad_rows(x, mp), w, b.reshape(1, c), _pad_rows(residual, mp),
      gamma.reshape(1, c), beta.reshape(1, c))
    return out if mp == m else out[:m]


def ffn_ln(x, w1, b1, w2, b2, gamma, beta, eps=LN_EPS):
    m, c = x.shape
    f = w1.shape[1]
    tm, mp = _row_tiling(m)
    out = pl.pallas_call(
        functools.partial(_ffn_ln_kernel, eps=eps),
        out_shape=jax.ShapeDtypeStruct((mp, c), x.dtype),
        grid=(mp // tm,),
        in_specs=[
            pl.BlockSpec((tm, c), lambda i: (i, 0)),
            pl.BlockSpec((c, f), lambda i: (0, 0)),
            pl.BlockSpec((1, f), lambda i: (0, 0)),
            pl.BlockSpec((f, c), lambda i: (0, 0)),
            pl.BlockSpec((1, c), lambda i: (0, 0)),
            pl.BlockSpec((1, c), lambda i: (0, 0)),
            pl.BlockSpec((1, c), lambda i: (0, 0)),
        ],
        out_specs=pl.BlockSpec((tm, c), lambda i: (i, 0)),
        input_output_aliases={0: 0},    # overwrite the src activation in place
        compiler_params=_compiler_params(),
    )(_pad_rows(x, mp), w1, b1.reshape(1, f), w2, b2.reshape(1, c),
      gamma.reshape(1, c), beta.reshape(1, c))
    return out if mp == m else out[:m]


# --------------------------- encoder forward (JAX glue) -----------------------


def get_reference_points(spatial_shapes, valid_ratios):
    """Mirror of the PyTorch staticmethod.  spatial_shapes: python list of (H, W)."""
    ref_list = []
    for lvl, (H_, W_) in enumerate(spatial_shapes):
        ref_y, ref_x = jnp.meshgrid(
            jnp.linspace(0.5, H_ - 0.5, H_, dtype=jnp.float32),
            jnp.linspace(0.5, W_ - 0.5, W_, dtype=jnp.float32),
            indexing="ij",
        )
        ref_y = ref_y.reshape(-1)[None] / (valid_ratios[:, None, lvl, 1] * H_)
        ref_x = ref_x.reshape(-1)[None] / (valid_ratios[:, None, lvl, 0] * W_)
        ref_list.append(jnp.stack((ref_x, ref_y), -1))
    reference_points = jnp.concatenate(ref_list, 1)
    reference_points = reference_points[:, :, None] * valid_ratios[:, None]
    return reference_points  # (N, Lq, n_levels, 2)


def ms_deform_attn_core(src, pos, reference_points, input_flatten, spatial_shapes,
                        padding_mask, p):
    """Multi-scale deformable attention up to (excluding) the output projection.
    query = src + pos is fused into the projection kernel.  Bilinear sampling is an exact
    re-expression of F.grid_sample(bilinear, align_corners=False, padding_mode='zeros')."""
    N, Lq, C = src.shape
    Lin = input_flatten.shape[1]
    H, L, P = N_HEADS, len(spatial_shapes), N_POINTS
    Dh = C // H

    # value projection with the padding mask fused in (masked rows -> 0, as masked_fill);
    # emitted directly in bf16 (halves HBM write + gather read traffic, f32 re-accumulation below)
    row_mask = (1.0 - padding_mask.astype(jnp.float32)).reshape(N * Lin, 1)
    value = masked_linear(input_flatten.reshape(-1, C), row_mask, p["wv"], p["bv"],
                          out_dtype=MATMUL_DTYPE)
    value = value.reshape(N, Lin, H, Dh)                              # natural layout, no copy

    # fused sampling-offset + attention-weight projection (single matmul over query = src + pos)
    qp = add_linear(src.reshape(-1, C), pos.reshape(-1, C), p["w_qproj"], p["b_qproj"])
    off_dim = H * L * P * 2
    off = qp[:, :off_dim].reshape(N, Lq, H, L, P, 2)
    attn = jax.nn.softmax(qp[:, off_dim:].reshape(N, Lq, H, L * P), axis=-1)
    attn = attn.reshape(N, Lq, H, L, P)

    shapes_arr = jnp.array(spatial_shapes, jnp.float32)               # (L, 2) = (H, W)
    offset_normalizer = jnp.stack([shapes_arr[:, 1], shapes_arr[:, 0]], -1)
    loc = reference_points[:, :, None, :, None, :] + off / offset_normalizer[
        None, None, None, :, None, :]                                 # (N, Lq, H, L, P, 2)

    # bilinear corner indices / weights (sparse: 4 corners per sampling point)
    idx_list, w_list = [], []
    start = 0
    for lvl, (H_, W_) in enumerate(spatial_shapes):
        x = loc[:, :, :, lvl, :, 0] * W_ - 0.5                        # pixel coords (N,Lq,H,P)
        y = loc[:, :, :, lvl, :, 1] * H_ - 0.5
        x0 = jnp.floor(x)
        y0 = jnp.floor(y)
        x1 = x0 + 1.0
        y1 = y0 + 1.0
        a = attn[:, :, :, lvl, :]
        for xi, yi, w in ((x0, y0, (x1 - x) * (y1 - y)),
                          (x1, y0, (x - x0) * (y1 - y)),
                          (x0, y1, (x1 - x) * (y - y0)),
                          (x1, y1, (x - x0) * (y - y0))):
            valid = (xi >= 0) & (xi <= W_ - 1) & (yi >= 0) & (yi <= H_ - 1)
            flat = (jnp.clip(yi, 0, H_ - 1) * W_
                    + jnp.clip(xi, 0, W_ - 1)).astype(jnp.int32) + start
            idx_list.append(flat)                                     # (N, Lq, H, P)
            w_list.append(jnp.where(valid, w, 0.0) * a)
        start += H_ * W_
    S = len(idx_list) * P                                             # 4 * L * P corners
    idx = jnp.stack(idx_list, axis=-1).reshape(N, Lq, H, S)
    wgt = jnp.stack(w_list, axis=-1).reshape(N, Lq, H, S)

    # sparse gather + weighted sum: O(Lq * 4*L*P) instead of a dense one-hot matmul; value stays
    # in (N, Lin, H, Dh) layout so no HBM transpose of the full value tensor is materialized.
    # TODO(synk): at production scale fuse this gather+reduce into a Pallas kernel using
    # scalar-prefetched corner indices and manual DMA gathers of the value rows.
    idx_g = idx.transpose(0, 1, 3, 2).reshape(N, Lq * S, H)           # (N, Lq*S, H)
    wgt_g = wgt.transpose(0, 1, 3, 2).reshape(N, Lq * S, H)
    gathered = jnp.take_along_axis(
        value, jnp.broadcast_to(idx_g[..., None], (N, Lq * S, H, Dh)), axis=1)
    agg = (gathered.astype(jnp.float32) * wgt_g[..., None]
           ).reshape(N, Lq, S, H, Dh).sum(axis=2)                     # (N, Lq, H, Dh)
    return agg.reshape(N, Lq, C)


def spatial_layer_forward(src, pos, reference_points, spatial_shapes,
                          level_start_index, padding_mask, p):
    N, Lq, C = src.shape
    # MSDeformAttn core (value / offset / attention projections + bilinear aggregation)
    agg = ms_deform_attn_core(src, pos, reference_points, src, spatial_shapes,
                              padding_mask, p)
    # output_proj + dropout1 (identity) + residual + norm1, fused in one kernel
    src = proj_add_ln(agg.reshape(-1, C), p["wout"], p["bout"], src.reshape(-1, C),
                      p["norm1_g"], p["norm1_b"]).reshape(N, Lq, C)
    # linear1 + ReLU + dropout2 + linear2 + dropout3 (identities) + residual + norm2, fused
    src = ffn_ln(src.reshape(-1, C), p["w1"], p["b1"], p["w2"], p["b2"],
                 p["norm2_g"], p["norm2_b"]).reshape(N, Lq, C)
    return src


def ms_deform_attn_transformer_encoder(src, spatial_shapes, level_start_index,
                                       valid_ratios, pos, padding_mask,
                                       layer_params, pos_3d=None):
    """Forward of MSDeformAttnTransformerEncoder with
    transformer_num_temporal_feature_levels = 0 (returns (output, None, None))."""
    output = src
    reference_points = get_reference_points(spatial_shapes, valid_ratios)
    for p in layer_params:
        output = spatial_layer_forward(output, pos, reference_points, spatial_shapes,
                                       level_start_index, padding_mask, p)
    height_traj_attn = None
    width_traj_attn = None
    return output, height_traj_attn, width_traj_attn


# -------------------------------- param init ---------------------------------


def init_layer_params(key, C, H, L, P, d_ffn):
    ks = jax.random.split(key, 6)

    def lin(k, fin, fout):
        kw, kb = jax.random.split(k)
        w = 0.02 * jax.random.normal(kw, (fin, fout), jnp.float32)
        b = 0.02 * jax.random.normal(kb, (fout,), jnp.float32)
        return w, b

    woff, boff = lin(ks[0], C, H * L * P * 2)     # sampling_offsets
    watt, batt = lin(ks[1], C, H * L * P)         # attention_weights
    wv, bv = lin(ks[2], C, C)
    wout, bout = lin(ks[3], C, C)
    w1, b1 = lin(ks[4], C, d_ffn)
    w2, b2 = lin(ks[5], d_ffn, C)
    return dict(
        # fused (offsets | attention-weights) projection -> single matmul over the query
        w_qproj=jnp.concatenate([woff, watt], axis=1),
        b_qproj=jnp.concatenate([boff, batt], axis=0),
        wv=wv, bv=bv, wout=wout, bout=bout,
        w1=w1, b1=b1, w2=w2, b2=b2,
        norm1_g=jnp.ones((C,), jnp.float32), norm1_b=jnp.zeros((C,), jnp.float32),
        norm2_g=jnp.ones((C,), jnp.float32), norm2_b=jnp.zeros((C,), jnp.float32),
    )


# ----------------------------------- main -------------------------------------

if __name__ == "__main__":
    key = jax.random.PRNGKey(0)
    N = 2
    spatial_shapes = [(8, 8), (4, 4)]              # 2 feature levels
    Lin = sum(h * w for h, w in spatial_shapes)    # 80
    C = D_MODEL

    k1, k2, k3 = jax.random.split(key, 3)
    src = jax.random.normal(k1, (N, Lin, C), jnp.float32)
    pos = jax.random.normal(k2, (N, Lin, C), jnp.float32)
    valid_ratios = jnp.ones((N, len(spatial_shapes), 2), jnp.float32)
    padding_mask = jnp.zeros((N, Lin), jnp.bool_)
    level_start_index = jnp.array([0, spatial_shapes[0][0] * spatial_shapes[0][1]],
                                  jnp.int32)

    layer_keys = jax.random.split(k3, NUM_STAGES)
    layer_params = [init_layer_params(layer_keys[i], C, N_HEADS, len(spatial_shapes),
                                      N_POINTS, D_FFN) for i in range(NUM_STAGES)]

    @jax.jit
    def run(src, level_start_index, valid_ratios, pos, padding_mask, layer_params):
        return ms_deform_attn_transformer_encoder(
            src, spatial_shapes, level_start_index, valid_ratios, pos,
            padding_mask, layer_params)

    out, h_attn, w_attn = run(src, level_start_index, valid_ratios, pos,
                              padding_mask, layer_params)
    out = jax.block_until_ready(out)

    assert out.shape == (N, Lin, C)
    assert h_attn is None and w_attn is None
    assert bool(jnp.all(jnp.isfinite(out)))
    print("KERNEL_OK")
</pallas_src>

<mosaic_0001>
module attributes {stable_mosaic.version = 11 : i64} {
  func.func @_add_linear_kernel(%arg0: i32, %arg1: memref<160x32xf32, #tpu.memory_space<vmem>>, %arg2: memref<160x32xf32, #tpu.memory_space<vmem>>, %arg3: memref<32x96xf32, #tpu.memory_space<vmem>>, %arg4: memref<1x96xf32, #tpu.memory_space<vmem>>, %arg5: memref<160x96xf32, #tpu.memory_space<vmem>>) attributes {dimension_semantics = [#tpu.dimension_semantics<parallel>], iteration_bounds = array<i64: 1>, scalar_prefetch = 0 : i64, scratch_operands = 0 : i64, tpu.core_type = #tpu.core_type<tc>, window_params = [{transform_indices = @transform_0, window_bounds = array<i64: 160, 32>}, {transform_indices = @transform_1, window_bounds = array<i64: 160, 32>}, {pipeline_mode = #tpu.pipeline_mode<synchronous>, transform_indices = @transform_2, window_bounds = array<i64: 32, 96>}, {pipeline_mode = #tpu.pipeline_mode<synchronous>, transform_indices = @transform_3, window_bounds = array<i64: 1, 96>}, {transform_indices = @transform_4, window_bounds = array<i64: 160, 96>}]} {
    %c0 = arith.constant 0 : index
    %c0_0 = arith.constant 0 : index
    %0 = vector.load %arg1[%c0, %c0_0] : memref<160x32xf32, #tpu.memory_space<vmem>>, vector<160x32xf32>
    %c0_1 = arith.constant 0 : index
    %c0_2 = arith.constant 0 : index
    %1 = vector.load %arg2[%c0_1, %c0_2] : memref<160x32xf32, #tpu.memory_space<vmem>>, vector<160x32xf32>
    %2 = arith.addf %0, %1 : vector<160x32xf32>
    %c0_3 = arith.constant 0 : index
    %c0_4 = arith.constant 0 : index
    %3 = vector.load %arg3[%c0_3, %c0_4] : memref<32x96xf32, #tpu.memory_space<vmem>>, vector<32x96xf32>
    %4 = arith.truncf %2 : vector<160x32xf32> to vector<160x32xbf16>
    %5 = arith.truncf %3 : vector<32x96xf32> to vector<32x96xbf16>
    %cst = arith.constant dense<0.000000e+00> : vector<160x96xf32>
    %6 = tpu.matmul %4, %5, %cst {dimension_numbers = #tpu.dot_dimension_numbers<[1], [0], [0], [1], [0, 0, 1, 1], [], []>} : vector<160x32xbf16>, vector<32x96xbf16>, vector<160x96xf32> -> vector<160x96xf32>
    %c0_5 = arith.constant 0 : index
    %c0_6 = arith.constant 0 : index
    %7 = vector.load %arg4[%c0_5, %c0_6] : memref<1x96xf32, #tpu.memory_space<vmem>>, vector<1x96xf32>
    %8 = vector.broadcast %7 : vector<1x96xf32> to vector<160x96xf32>
    %9 = arith.addf %6, %8 : vector<160x96xf32>
    %c0_7 = arith.constant 0 : index
    %c0_8 = arith.constant 0 : index
    %10 = vector.load %arg5[%c0_7, %c0_8] : memref<160x96xf32, #tpu.memory_space<vmem>>, vector<160x96xf32>
    tpu.vector_store %arg5[%c0_7, %c0_8], %9 {strides = array<i32>} : memref<160x96xf32, #tpu.memory_space<vmem>>, vector<160x96xf32>,
    return
  }
  func.func @transform_0(%arg0: i32) -> (i32, i32) {
    %c0_i32 = arith.constant 0 : i32
    %c0_i32_0 = arith.constant 0 : i32
    return %arg0, %c0_i32 : i32, i32
  }
  func.func @transform_1(%arg0: i32) -> (i32, i32) {
    %c0_i32 = arith.constant 0 : i32
    %c0_i32_0 = arith.constant 0 : i32
    return %arg0, %c0_i32 : i32, i32
  }
  func.func @transform_2(%arg0: i32) -> (i32, i32) {
    %c0_i32 = arith.constant 0 : i32
    %c0_i32_0 = arith.constant 0 : i32
    %c0_i32_1 = arith.constant 0 : i32
    return %c0_i32, %c0_i32_0 : i32, i32
  }
  func.func @transform_3(%arg0: i32) -> (i32, i32) {
    %c0_i32 = arith.constant 0 : i32
    %c0_i32_0 = arith.constant 0 : i32
    %c0_i32_1 = arith.constant 0 : i32
    return %c0_i32, %c0_i32_0 : i32, i32
  }
  func.func @transform_4(%arg0: i32) -> (i32, i32) {
    %c0_i32 = arith.constant 0 : i32
    %c0_i32_0 = arith.constant 0 : i32
    return %arg0, %c0_i32 : i32, i32
  }
}

module attributes {stable_mosaic.version = 11 : i64} {
  func.func @_masked_linear_kernel(%arg0: i32, %arg1: memref<160x32xf32, #tpu.memory_space<vmem>>, %arg2: memref<160x1xf32, #tpu.memory_space<vmem>>, %arg3: memref<32x32xf32, #tpu.memory_space<vmem>>, %arg4: memref<1x32xf32, #tpu.memory_space<vmem>>, %arg5: memref<160x32xbf16, #tpu.memory_space<vmem>>) attributes {dimension_semantics = [#tpu.dimension_semantics<parallel>], iteration_bounds = array<i64: 1>, scalar_prefetch = 0 : i64, scratch_operands = 0 : i64, tpu.core_type = #tpu.core_type<tc>, window_params = [{transform_indices = @transform_0, window_bounds = array<i64: 160, 32>}, {transform_indices = @transform_1, window_bounds = array<i64: 160, 1>}, {pipeline_mode = #tpu.pipeline_mode<synchronous>, transform_indices = @transform_2, window_bounds = array<i64: 32, 32>}, {pipeline_mode = #tpu.pipeline_mode<synchronous>, transform_indices = @transform_3, window_bounds = array<i64: 1, 32>}, {transform_indices = @transform_4, window_bounds = array<i64: 160, 32>}]} {
    %c0 = arith.constant 0 : index
    %c0_0 = arith.constant 0 : index
    %0 = vector.load %arg1[%c0, %c0_0] : memref<160x32xf32, #tpu.memory_space<vmem>>, vector<160x32xf32>
    %c0_1 = arith.constant 0 : index
    %c0_2 = arith.constant 0 : index
    %1 = vector.load %arg3[%c0_1, %c0_2] : memref<32x32xf32, #tpu.memory_space<vmem>>, vector<32x32xf32>
    %2 = arith.truncf %0 : vector<160x32xf32> to vector<160x32xbf16>
    %3 = arith.truncf %1 : vector<32x32xf32> to vector<32x32xbf16>
    %cst = arith.constant dense<0.000000e+00> : vector<160x32xf32>
    %4 = tpu.matmul %2, %3, %cst {dimension_numbers = #tpu.dot_dimension_numbers<[1], [0], [0], [1], [0, 0, 1, 1], [], []>} : vector<160x32xbf16>, vector<32x32xbf16>, vector<160x32xf32> -> vector<160x32xf32>
    %c0_3 = arith.constant 0 : index
    %c0_4 = arith.constant 0 : index
    %5 = vector.load %arg4[%c0_3, %c0_4] : memref<1x32xf32, #tpu.memory_space<vmem>>, vector<1x32xf32>
    %6 = vector.broadcast %5 : vector<1x32xf32> to vector<160x32xf32>
    %7 = arith.addf %4, %6 : vector<160x32xf32>
    %c0_5 = arith.constant 0 : index
    %c0_6 = arith.constant 0 : index
    %8 = vector.load %arg2[%c0_5, %c0_6] : memref<160x1xf32, #tpu.memory_space<vmem>>, vector<160x1xf32>
    %9 = vector.broadcast %8 : vector<160x1xf32> to vector<160x32xf32>
    %10 = arith.mulf %7, %9 : vector<160x32xf32>
    %11 = arith.truncf %10 : vector<160x32xf32> to vector<160x32xbf16>
    %c0_7 = arith.constant 0 : index
    %c0_8 = arith.constant 0 : index
    %12 = vector.load %arg5[%c0_7, %c0_8] : memref<160x32xbf16, #tpu.memory_space<vmem>>, vector<160x32xbf16>
    tpu.vector_store %arg5[%c0_7, %c0_8], %11 {strides = array<i32>} : memref<160x32xbf16, #tpu.memory_space<vmem>>, vector<160x32xbf16>,
    return
  }
  func.func @transform_0(%arg0: i32) -> (i32, i32) {
    %c0_i32 = arith.constant 0 : i32
    %c0_i32_0 = arith.constant 0 : i32
    return %arg0, %c0_i32 : i32, i32
  }
  func.func @transform_1(%arg0: i32) -> (i32, i32) {
    %c0_i32 = arith.constant 0 : i32
    %c0_i32_0 = arith.constant 0 : i32
    return %arg0, %c0_i32 : i32, i32
  }
  func.func @transform_2(%arg0: i32) -> (i32, i32) {
    %c0_i32 = arith.constant 0 : i32
    %c0_i32_0 = arith.constant 0 : i32
    %c0_i32_1 = arith.constant 0 : i32
    return %c0_i32, %c0_i32_0 : i32, i32
  }
  func.func @transform_3(%arg0: i32) -> (i32, i32) {
    %c0_i32 = arith.constant 0 : i32
    %c0_i32_0 = arith.constant 0 : i32
    %c0_i32_1 = arith.constant 0 : i32
    return %c0_i32, %c0_i32_0 : i32, i32
  }
  func.func @transform_4(%arg0: i32) -> (i32, i32) {
    %c0_i32 = arith.constant 0 : i32
    %c0_i32_0 = arith.constant 0 : i32
    return %arg0, %c0_i32 : i32, i32
  }
}

module attributes {stable_mosaic.version = 11 : i64} {
  func.func @_proj_add_ln_kernel(%arg0: i32, %arg1: memref<160x32xf32, #tpu.memory_space<vmem>>, %arg2: memref<32x32xf32, #tpu.memory_space<vmem>>, %arg3: memref<1x32xf32, #tpu.memory_space<vmem>>, %arg4: memref<160x32xf32, #tpu.memory_space<vmem>>, %arg5: memref<1x32xf32, #tpu.memory_space<vmem>>, %arg6: memref<1x32xf32, #tpu.memory_space<vmem>>, %arg7: memref<160x32xf32, #tpu.memory_space<vmem>>) attributes {dimension_semantics = [#tpu.dimension_semantics<parallel>], iteration_bounds = array<i64: 1>, scalar_prefetch = 0 : i64, scratch_operands = 0 : i64, tpu.core_type = #tpu.core_type<tc>, window_params = [{transform_indices = @transform_0, window_bounds = array<i64: 160, 32>}, {pipeline_mode = #tpu.pipeline_mode<synchronous>, transform_indices = @transform_1, window_bounds = array<i64: 32, 32>}, {pipeline_mode = #tpu.pipeline_mode<synchronous>, transform_indices = @transform_2, window_bounds = array<i64: 1, 32>}, {transform_indices = @transform_3, window_bounds = array<i64: 160, 32>}, {pipeline_mode = #tpu.pipeline_mode<synchronous>, transform_indices = @transform_4, window_bounds = array<i64: 1, 32>}, {pipeline_mode = #tpu.pipeline_mode<synchronous>, transform_indices = @transform_5, window_bounds = array<i64: 1, 32>}, {transform_indices = @transform_6, window_bounds = array<i64: 160, 32>}]} {
    %c0 = arith.constant 0 : index
    %c0_0 = arith.constant 0 : index
    %0 = vector.load %arg1[%c0, %c0_0] : memref<160x32xf32, #tpu.memory_space<vmem>>, vector<160x32xf32>
    %c0_1 = arith.constant 0 : index
    %c0_2 = arith.constant 0 : index
    %1 = vector.load %arg2[%c0_1, %c0_2] : memref<32x32xf32, #tpu.memory_space<vmem>>, vector<32x32xf32>
    %2 = arith.truncf %0 : vector<160x32xf32> to vector<160x32xbf16>
    %3 = arith.truncf %1 : vector<32x32xf32> to vector<32x32xbf16>
    %cst = arith.constant dense<0.000000e+00> : vector<160x32xf32>
    %4 = tpu.matmul %2, %3, %cst {dimension_numbers = #tpu.dot_dimension_numbers<[1], [0], [0], [1], [0, 0, 1, 1], [], []>} : vector<160x32xbf16>, vector<32x32xbf16>, vector<160x32xf32> -> vector<160x32xf32>
    %c0_3 = arith.constant 0 : index
    %c0_4 = arith.constant 0 : index
    %5 = vector.load %arg3[%c0_3, %c0_4] : memref<1x32xf32, #tpu.memory_space<vmem>>, vector<1x32xf32>
    %6 = vector.broadcast %5 : vector<1x32xf32> to vector<160x32xf32>
    %7 = arith.addf %4, %6 : vector<160x32xf32>
    %c0_5 = arith.constant 0 : index
    %c0_6 = arith.constant 0 : index
    %8 = vector.load %arg4[%c0_5, %c0_6] : memref<160x32xf32, #tpu.memory_space<vmem>>, vector<160x32xf32>
    %9 = arith.addf %7, %8 : vector<160x32xf32>
    %cst_7 = arith.constant dense<0.000000e+00> : vector<160xf32>
    %10 = vector.multi_reduction <add>, %9, %cst_7 [1] : vector<160x32xf32> to vector<160xf32>
    %11 = vector.shape_cast %10 : vector<160xf32> to vector<160x1xf32>
    %cst_8 = arith.constant 3.200000e+01 : f32
    %12 = vector.broadcast %cst_8 : f32 to vector<160x1xf32>
    %13 = arith.divf %11, %12 : vector<160x1xf32>
    %14 = vector.broadcast %13 : vector<160x1xf32> to vector<160x32xf32>
    %15 = arith.subf %9, %14 : vector<160x32xf32>
    %16 = arith.mulf %15, %15 : vector<160x32xf32>
    %cst_9 = arith.constant dense<0.000000e+00> : vector<160xf32>
    %17 = vector.multi_reduction <add>, %16, %cst_9 [1] : vector<160x32xf32> to vector<160xf32>
    %18 = vector.shape_cast %17 : vector<160xf32> to vector<160x1xf32>
    %cst_10 = arith.constant 3.200000e+01 : f32
    %19 = vector.broadcast %cst_10 : f32 to vector<160x1xf32>
    %20 = arith.divf %18, %19 : vector<160x1xf32>
    %21 = vector.broadcast %13 : vector<160x1xf32> to vector<160x32xf32>
    %22 = arith.subf %9, %21 : vector<160x32xf32>
    %cst_11 = arith.constant 9.99999974E-6 : f32
    %23 = vector.broadcast %cst_11 : f32 to vector<160x1xf32>
    %24 = arith.addf %20, %23 : vector<160x1xf32>
    %25 = math.rsqrt %24 : vector<160x1xf32>
    %26 = vector.broadcast %25 : vector<160x1xf32> to vector<160x32xf32>
    %27 = arith.mulf %22, %26 : vector<160x32xf32>
    %c0_12 = arith.constant 0 : index
    %c0_13 = arith.constant 0 : index
    %28 = vector.load %arg5[%c0_12, %c0_13] : memref<1x32xf32, #tpu.memory_space<vmem>>, vector<1x32xf32>
    %29 = vector.broadcast %28 : vector<1x32xf32> to vector<160x32xf32>
    %30 = arith.mulf %27, %29 : vector<160x32xf32>
    %c0_14 = arith.constant 0 : index
    %c0_15 = arith.constant 0 : index
    %31 = vector.load %arg6[%c0_14, %c0_15] : memref<1x32xf32, #tpu.memory_space<vmem>>, vector<1x32xf32>
    %32 = vector.broadcast %31 : vector<1x32xf32> to vector<160x32xf32>
    %33 = arith.addf %30, %32 : vector<160x32xf32>
    %c0_16 = arith.constant 0 : index
    %c0_17 = arith.constant 0 : index
    %34 = vector.load %arg7[%c0_16, %c0_17] : memref<160x32xf32, #tpu.memory_space<vmem>>, vector<160x32xf32>
    tpu.vector_store %arg7[%c0_16, %c0_17], %33 {strides = array<i32>} : memref<160x32xf32, #tpu.memory_space<vmem>>, vector<160x32xf32>,
    return
  }
  func.func @transform_0(%arg0: i32) -> (i32, i32) {
    %c0_i32 = arith.constant 0 : i32
    %c0_i32_0 = arith.constant 0 : i32
    return %arg0, %c0_i32 : i32, i32
  }
  func.func @transform_1(%arg0: i32) -> (i32, i32) {
    %c0_i32 = arith.constant 0 : i32
    %c0_i32_0 = arith.constant 0 : i32
    %c0_i32_1 = arith.constant 0 : i32
    return %c0_i32, %c0_i32_0 : i32, i32
  }
  func.func @transform_2(%arg0: i32) -> (i32, i32) {
    %c0_i32 = arith.constant 0 : i32
    %c0_i32_0 = arith.constant 0 : i32
    %c0_i32_1 = arith.constant 0 : i32
    return %c0_i32, %c0_i32_0 : i32, i32
  }
  func.func @transform_3(%arg0: i32) -> (i32, i32) {
    %c0_i32 = arith.constant 0 : i32
    %c0_i32_0 = arith.constant 0 : i32
    return %arg0, %c0_i32 : i32, i32
  }
  func.func @transform_4(%arg0: i32) -> (i32, i32) {
    %c0_i32 = arith.constant 0 : i32
    %c0_i32_0 = arith.constant 0 : i32
    %c0_i32_1 = arith.constant 0 : i32
    return %c0_i32, %c0_i32_0 : i32, i32
  }
  func.func @transform_5(%arg0: i32) -> (i32, i32) {
    %c0_i32 = arith.constant 0 : i32
    %c0_i32_0 = arith.constant 0 : i32
    %c0_i32_1 = arith.constant 0 : i32
    return %c0_i32, %c0_i32_0 : i32, i32
  }
  func.func @transform_6(%arg0: i32) -> (i32, i32) {
    %c0_i32 = arith.constant 0 : i32
    %c0_i32_0 = arith.constant 0 : i32
    return %arg0, %c0_i32 : i32, i32
  }
}

module attributes {stable_mosaic.version = 11 : i64} {
  func.func @_ffn_ln_kernel(%arg0: i32, %arg1: memref<160x32xf32, #tpu.memory_space<vmem>>, %arg2: memref<32x64xf32, #tpu.memory_space<vmem>>, %arg3: memref<1x64xf32, #tpu.memory_space<vmem>>, %arg4: memref<64x32xf32, #tpu.memory_space<vmem>>, %arg5: memref<1x32xf32, #tpu.memory_space<vmem>>, %arg6: memref<1x32xf32, #tpu.memory_space<vmem>>, %arg7: memref<1x32xf32, #tpu.memory_space<vmem>>, %arg8: memref<160x32xf32, #tpu.memory_space<vmem>>) attributes {dimension_semantics = [#tpu.dimension_semantics<parallel>], iteration_bounds = array<i64: 1>, scalar_prefetch = 0 : i64, scratch_operands = 0 : i64, tpu.core_type = #tpu.core_type<tc>, window_params = [{transform_indices = @transform_0, window_bounds = array<i64: 160, 32>}, {pipeline_mode = #tpu.pipeline_mode<synchronous>, transform_indices = @transform_1, window_bounds = array<i64: 32, 64>}, {pipeline_mode = #tpu.pipeline_mode<synchronous>, transform_indices = @transform_2, window_bounds = array<i64: 1, 64>}, {pipeline_mode = #tpu.pipeline_mode<synchronous>, transform_indices = @transform_3, window_bounds = array<i64: 64, 32>}, {pipeline_mode = #tpu.pipeline_mode<synchronous>, transform_indices = @transform_4, window_bounds = array<i64: 1, 32>}, {pipeline_mode = #tpu.pipeline_mode<synchronous>, transform_indices = @transform_5, window_bounds = array<i64: 1, 32>}, {pipeline_mode = #tpu.pipeline_mode<synchronous>, transform_indices = @transform_6, window_bounds = array<i64: 1, 32>}, {transform_indices = @transform_7, window_bounds = array<i64: 160, 32>}]} {
    %c0 = arith.constant 0 : index
    %c0_0 = arith.constant 0 : index
    %0 = vector.load %arg1[%c0, %c0_0] : memref<160x32xf32, #tpu.memory_space<vmem>>, vector<160x32xf32>
    %c0_1 = arith.constant 0 : index
    %c0_2 = arith.constant 0 : index
    %1 = vector.load %arg2[%c0_1, %c0_2] : memref<32x64xf32, #tpu.memory_space<vmem>>, vector<32x64xf32>
    %2 = arith.truncf %0 : vector<160x32xf32> to vector<160x32xbf16>
    %3 = arith.truncf %1 : vector<32x64xf32> to vector<32x64xbf16>
    %cst = arith.constant dense<0.000000e+00> : vector<160x64xf32>
    %4 = tpu.matmul %2, %3, %cst {dimension_numbers = #tpu.dot_dimension_numbers<[1], [0], [0], [1], [0, 0, 1, 1], [], []>} : vector<160x32xbf16>, vector<32x64xbf16>, vector<160x64xf32> -> vector<160x64xf32>
    %c0_3 = arith.constant 0 : index
    %c0_4 = arith.constant 0 : index
    %5 = vector.load %arg3[%c0_3, %c0_4] : memref<1x64xf32, #tpu.memory_space<vmem>>, vector<1x64xf32>
    %6 = vector.broadcast %5 : vector<1x64xf32> to vector<160x64xf32>
    %7 = arith.addf %4, %6 : vector<160x64xf32>
    %cst_5 = arith.constant 0.000000e+00 : f32
    %8 = vector.broadcast %cst_5 : f32 to vector<160x64xf32>
    %9 = arith.maximumf %7, %8 : vector<160x64xf32>
    %c0_6 = arith.constant 0 : index
    %c0_7 = arith.constant 0 : index
    %10 = vector.load %arg4[%c0_6, %c0_7] : memref<64x32xf32, #tpu.memory_space<vmem>>, vector<64x32xf32>
    %11 = arith.truncf %9 : vector<160x64xf32> to vector<160x64xbf16>
    %12 = arith.truncf %10 : vector<64x32xf32> to vector<64x32xbf16>
    %cst_8 = arith.constant dense<0.000000e+00> : vector<160x32xf32>
    %13 = tpu.matmul %11, %12, %cst_8 {dimension_numbers = #tpu.dot_dimension_numbers<[1], [0], [0], [1], [0, 0, 1, 1], [], []>} : vector<160x64xbf16>, vector<64x32xbf16>, vector<160x32xf32> -> vector<160x32xf32>
    %14 = arith.addf %0, %13 : vector<160x32xf32>
    %c0_9 = arith.constant 0 : index
    %c0_10 = arith.constant 0 : index
    %15 = vector.load %arg5[%c0_9, %c0_10] : memref<1x32xf32, #tpu.memory_space<vmem>>, vector<1x32xf32>
    %16 = vector.broadcast %15 : vector<1x32xf32> to vector<160x32xf32>
    %17 = arith.addf %14, %16 : vector<160x32xf32>
    %cst_11 = arith.constant dense<0.000000e+00> : vector<160xf32>
    %18 = vector.multi_reduction <add>, %17, %cst_11 [1] : vector<160x32xf32> to vector<160xf32>
    %19 = vector.shape_cast %18 : vector<160xf32> to vector<160x1xf32>
    %cst_12 = arith.constant 3.200000e+01 : f32
    %20 = vector.broadcast %cst_12 : f32 to vector<160x1xf32>
    %21 = arith.divf %19, %20 : vector<160x1xf32>
    %22 = vector.broadcast %21 : vector<160x1xf32> to vector<160x32xf32>
    %23 = arith.subf %17, %22 : vector<160x32xf32>
    %24 = arith.mulf %23, %23 : vector<160x32xf32>
    %cst_13 = arith.constant dense<0.000000e+00> : vector<160xf32>
    %25 = vector.multi_reduction <add>, %24, %cst_13 [1] : vector<160x32xf32> to vector<160xf32>
    %26 = vector.shape_cast %25 : vector<160xf32> to vector<160x1xf32>
    %cst_14 = arith.constant 3.200000e+01 : f32
    %27 = vector.broadcast %cst_14 : f32 to vector<160x1xf32>
    %28 = arith.divf %26, %27 : vector<160x1xf32>
    %29 = vector.broadcast %21 : vector<160x1xf32> to vector<160x32xf32>
    %30 = arith.subf %17, %29 : vector<160x32xf32>
    %cst_15 = arith.constant 9.99999974E-6 : f32
    %31 = vector.broadcast %cst_15 : f32 to vector<160x1xf32>
    %32 = arith.addf %28, %31 : vector<160x1xf32>
    %33 = math.rsqrt %32 : vector<160x1xf32>
    %34 = vector.broadcast %33 : vector<160x1xf32> to vector<160x32xf32>
    %35 = arith.mulf %30, %34 : vector<160x32xf32>
    %c0_16 = arith.constant 0 : index
    %c0_17 = arith.constant 0 : index
    %36 = vector.load %arg6[%c0_16, %c0_17] : memref<1x32xf32, #tpu.memory_space<vmem>>, vector<1x32xf32>
    %37 = vector.broadcast %36 : vector<1x32xf32> to vector<160x32xf32>
    %38 = arith.mulf %35, %37 : vector<160x32xf32>
    %c0_18 = arith.constant 0 : index
    %c0_19 = arith.constant 0 : index
    %39 = vector.load %arg7[%c0_18, %c0_19] : memref<1x32xf32, #tpu.memory_space<vmem>>, vector<1x32xf32>
    %40 = vector.broadcast %39 : vector<1x32xf32> to vector<160x32xf32>
    %41 = arith.addf %38, %40 : vector<160x32xf32>
    %c0_20 = arith.constant 0 : index
    %c0_21 = arith.constant 0 : index
    %42 = vector.load %arg8[%c0_20, %c0_21] : memref<160x32xf32, #tpu.memory_space<vmem>>, vector<160x32xf32>
    tpu.vector_store %arg8[%c0_20, %c0_21], %41 {strides = array<i32>} : memref<160x32xf32, #tpu.memory_space<vmem>>, vector<160x32xf32>,
    return
  }
  func.func @transform_0(%arg0: i32) -> (i32, i32) {
    %c0_i32 = arith.constant 0 : i32
    %c0_i32_0 = arith.constant 0 : i32
    return %arg0, %c0_i32 : i32, i32
  }
  func.func @transform_1(%arg0: i32) -> (i32, i32) {
    %c0_i32 = arith.constant 0 : i32
    %c0_i32_0 = arith.constant 0 : i32
    %c0_i32_1 = arith.constant 0 : i32
    return %c0_i32, %c0_i32_0 : i32, i32
  }
  func.func @transform_2(%arg0: i32) -> (i32, i32) {
    %c0_i32 = arith.constant 0 : i32
    %c0_i32_0 = arith.constant 0 : i32
    %c0_i32_1 = arith.constant 0 : i32
    return %c0_i32, %c0_i32_0 : i32, i32
  }
  func.func @transform_3(%arg0: i32) -> (i32, i32) {
    %c0_i32 = arith.constant 0 : i32
    %c0_i32_0 = arith.constant 0 : i32
    %c0_i32_1 = arith.constant 0 : i32
    return %c0_i32, %c0_i32_0 : i32, i32
  }
  func.func @transform_4(%arg0: i32) -> (i32, i32) {
    %c0_i32 = arith.constant 0 : i32
    %c0_i32_0 = arith.constant 0 : i32
    %c0_i32_1 = arith.constant 0 : i32
    return %c0_i32, %c0_i32_0 : i32, i32
  }
  func.func @transform_5(%arg0: i32) -> (i32, i32) {
    %c0_i32 = arith.constant 0 : i32
    %c0_i32_0 = arith.constant 0 : i32
    %c0_i32_1 = arith.constant 0 : i32
    return %c0_i32, %c0_i32_0 : i32, i32
  }
  func.func @transform_6(%arg0: i32) -> (i32, i32) {
    %c0_i32 = arith.constant 0 : i32
    %c0_i32_0 = arith.constant 0 : i32
    %c0_i32_1 = arith.constant 0 : i32
    return %c0_i32, %c0_i32_0 : i32, i32
  }
  func.func @transform_7(%arg0: i32) -> (i32, i32) {
    %c0_i32 = arith.constant 0 : i32
    %c0_i32_0 = arith.constant 0 : i32
    return %arg0, %c0_i32 : i32, i32
  }
}

module attributes {stable_mosaic.version = 11 : i64} {
  func.func @_add_linear_kernel(%arg0: i32, %arg1: memref<160x32xf32, #tpu.memory_space<vmem>>, %arg2: memref<160x32xf32, #tpu.memory_space<vmem>>, %arg3: memref<32x96xf32, #tpu.memory_space<vmem>>, %arg4: memref<1x96xf32, #tpu.memory_space<vmem>>, %arg5: memref<160x96xf32, #tpu.memory_space<vmem>>) attributes {dimension_semantics = [#tpu.dimension_semantics<parallel>], iteration_bounds = array<i64: 1>, scalar_prefetch = 0 : i64, scratch_operands = 0 : i64, tpu.core_type = #tpu.core_type<tc>, window_params = [{transform_indices = @transform_0, window_bounds = array<i64: 160, 32>}, {transform_indices = @transform_1, window_bounds = array<i64: 160, 32>}, {pipeline_mode = #tpu.pipeline_mode<synchronous>, transform_indices = @transform_2, window_bounds = array<i64: 32, 96>}, {pipeline_mode = #tpu.pipeline_mode<synchronous>, transform_indices = @transform_3, window_bounds = array<i64: 1, 96>}, {transform_indices = @transform_4, window_bounds = array<i64: 160, 96>}]} {
    %c0 = arith.constant 0 : index
    %c0_0 = arith.constant 0 : index
    %0 = vector.load %arg1[%c0, %c0_0] : memref<160x32xf32, #tpu.memory_space<vmem>>, vector<160x32xf32>
    %c0_1 = arith.constant 0 : index
    %c0_2 = arith.constant 0 : index
    %1 = vector.load %arg2[%c0_1, %c0_2] : memref<160x32xf32, #tpu.memory_space<vmem>>, vector<160x32xf32>
    %2 = arith.addf %0, %1 : vector<160x32xf32>
    %c0_3 = arith.constant 0 : index
    %c0_4 = arith.constant 0 : index
    %3 = vector.load %arg3[%c0_3, %c0_4] : memref<32x96xf32, #tpu.memory_space<vmem>>, vector<32x96xf32>
    %4 = arith.truncf %2 : vector<160x32xf32> to vector<160x32xbf16>
    %5 = arith.truncf %3 : vector<32x96xf32> to vector<32x96xbf16>
    %cst = arith.constant dense<0.000000e+00> : vector<160x96xf32>
    %6 = tpu.matmul %4, %5, %cst {dimension_numbers = #tpu.dot_dimension_numbers<[1], [0], [0], [1], [0, 0, 1, 1], [], []>} : vector<160x32xbf16>, vector<32x96xbf16>, vector<160x96xf32> -> vector<160x96xf32>
    %c0_5 = arith.constant 0 : index
    %c0_6 = arith.constant 0 : index
    %7 = vector.load %arg4[%c0_5, %c0_6] : memref<1x96xf32, #tpu.memory_space<vmem>>, vector<1x96xf32>
    %8 = vector.broadcast %7 : vector<1x96xf32> to vector<160x96xf32>
    %9 = arith.addf %6, %8 : vector<160x96xf32>
    %c0_7 = arith.constant 0 : index
    %c0_8 = arith.constant 0 : index
    %10 = vector.load %arg5[%c0_7, %c0_8] : memref<160x96xf32, #tpu.memory_space<vmem>>, vector<160x96xf32>
    tpu.vector_store %arg5[%c0_7, %c0_8], %9 {strides = array<i32>} : memref<160x96xf32, #tpu.memory_space<vmem>>, vector<160x96xf32>,
    return
  }
  func.func @transform_0(%arg0: i32) -> (i32, i32) {
    %c0_i32 = arith.constant 0 : i32
    %c0_i32_0 = arith.constant 0 : i32
    return %arg0, %c0_i32 : i32, i32
  }
  func.func @transform_1(%arg0: i32) -> (i32, i32) {
    %c0_i32 = arith.constant 0 : i32
    %c0_i32_0 = arith.constant 0 : i32
    return %arg0, %c0_i32 : i32, i32
  }
  func.func @transform_2(%arg0: i32) -> (i32, i32) {
    %c0_i32 = arith.constant 0 : i32
    %c0_i32_0 = arith.constant 0 : i32
    %c0_i32_1 = arith.constant 0 : i32
    return %c0_i32, %c0_i32_0 : i32, i32
  }
  func.func @transform_3(%arg0: i32) -> (i32, i32) {
    %c0_i32 = arith.constant 0 : i32
    %c0_i32_0 = arith.constant 0 : i32
    %c0_i32_1 = arith.constant 0 : i32
    return %c0_i32, %c0_i32_0 : i32, i32
  }
  func.func @transform_4(%arg0: i32) -> (i32, i32) {
    %c0_i32 = arith.constant 0 : i32
    %c0_i32_0 = arith.constant 0 : i32
    return %arg0, %c0_i32 : i32, i32
  }
}

</mosaic_0001>

<bundles_post_ra>
// kernel: run.9
= control target key start
LH: loop header
LB: loop body
LE: loop exit
PB: predicated region body
PF: predicated region fallthrough
CT: control target
= control target key end

     0   :  { %9 = vsyncpa [#allocation3], 0  ;;  %s642_s0 = inlined_call_operand.vmem [shape: f32[160,32], index: 0, kind: input, shape index: {}]   ;;  %s643_s1 = inlined_call_operand.vmem [shape: f32[160,32], index: 1, kind: input, shape index: {}]   ;;  %s644_s2 = inlined_call_operand.hbm [shape: f32[32,96], index: 2, kind: input, shape index: {}]   ;;  %s645_s3 = inlined_call_operand.hbm [shape: f32[1,96], index: 3, kind: input, shape index: {}]   ;;  %s646_s4 = inlined_call_operand.vmem [shape: f32[160,96], index: 4, kind: output, shape index: {}]  }
   0x1   :  { %10 = vsyncpa [#allocation5], 0  ;;  %s397_s15 = smov [#allocation2]  }
   0x2   :  { %s20_s16 = sshll.u32 %s397_s15, 4  ;;  %s21_s16 = int_to_ptr.vmem [resolvable:$true] %s20_s16 }
   0x3   :  { %s361_s17 = scalar_lea.vmem %s21_s16, 512  ;;  %p366_p1 = scmp.lt.s32.totalorder %s21_s16, %s21_s16 }
   0x4   :  { %p362_p0 = scmp.ne.s32.totalorder %s21_s16, %s361_s17  ;;  %p367_p2 = scmp.lt.s32.totalorder %s361_s17, %s361_s17 }
   0x6   :  { %p368_p3 = por %p367_p2, %p366_p1 }
   0x8   :  { %p369_p4 = pnand %p368_p3, %p362_p0 }
   0xa   :  { %372 = shalt.err (!%p369_p4)
}
   0xb   :  { %s398_s18 = smov 128   ;;  %s399_s19 = smov 8  }
   0xc   :  { %26 = dma.hbm_to_vmem [thread:$0]  %s644_s2, 512, %s21_s16, [#allocation3], %s398_s18, %s398_s18, %s399_s19  }
   0xd   :  { %s400_s22 = smov [#allocation4]  }
   0xe   :  { %s33_s23 = sshll.u32 %s400_s22, 4  ;;  %s34_s23 = int_to_ptr.vmem [resolvable:$true] %s33_s23 }
   0xf   :  { %s381_s24 = scalar_lea.vmem %s34_s23, 16  ;;  %s385_s25 = scalar_lea.vmem %s34_s23, 32 }
  0x10   :  { %p382_p5 = scmp.ne.s32.totalorder %s34_s23, %s381_s24  ;;  %p386_p6 = scmp.lt.s32.totalorder %s34_s23, %s34_s23 }
  0x11   :  { %p387_p7 = scmp.lt.s32.totalorder %s385_s25, %s381_s24 }
  0x13   :  { %p388_p8 = por %p387_p7, %p386_p6 }
  0x15   :  { %p389_p9 = pnand %p388_p8, %p382_p5 }
  0x17   :  { %392 = shalt.err (!%p389_p9)
}
  0x18   :  { %36 = dma.hbm_to_vmem [thread:$0]  %s645_s3, 16, %s34_s23, [#allocation5]  }
  0x19   :  { %393 = dma.done.wait [#allocation3], 512  }
  0x1a   :  { %394 = vsyncadd [#allocation3], 4294966784 }
  0x1b   :  { %395 = dma.done.wait [#allocation5], 16  }
  0x1c   :  { %396 = vsyncadd [#allocation5], 4294967280  ;;  %v106_v0 = vld [vmem:[#allocation2 + $0x10] sm:$0xff]  ;;  %v107_v1 = vld [vmem:[#allocation2 + $0x18] sm:$0xff]  ;;  %vm127_vm0 = vcmask 261120   ;;  %vm271_vm1 = vcmask 785408  }
  0x1d   :  { %v104_v2 = vld [vmem:[#allocation2] sm:$0xff]  ;;  %v119_v3 = vpack.c.bf16 %v107_v1, %v106_v0  ;;  %v105_v4 = vld [vmem:[#allocation2 + $0x8] sm:$0xff]  ;;  %v46_v10 = vld [vmem:[%s642_s0 + $0x10] sm:$0xff] }
  0x1e   :  { %v44_v5 = vld [vmem:[%s642_s0] sm:$0xff]  ;;  %v45_v6 = vld [vmem:[%s642_s0 + $0x8] sm:$0xff]  ;;  %v118_v7 = vpack.c.bf16 %v105_v4, %v104_v2  ;;  %v47_v13 = vld [vmem:[%s642_s0 + $0x18] sm:$0xff] }
  0x1f   :  { %v64_v8 = vld [vmem:[%s643_s1] sm:$0xff]  ;;  %v65_v9 = vld [vmem:[%s643_s1 + $0x8] sm:$0xff]  ;;  %321 = vmatprep.subr.bf16.mxu0 %v119_v3  ;;  %345 = vmatprep.subr.bf16.mxu1 %v119_v3  ;;  %v66_v14 = vld [vmem:[%s643_s1 + $0x10] sm:$0xff] }
  0x20   :  { %v84_v11 = vadd.f32 %v64_v8, %v44_v5  ;;  %v85_v12 = vadd.f32 %v65_v9, %v45_v6  ;;  %v67_v15 = vld [vmem:[%s643_s1 + $0x18] sm:$0xff]  ;;  %322 = vmatpush3.bf16.msra.mxu0 %v119_v3  ;;  %347 = vmatpush3.bf16.msra.mxu1 %v119_v3  ;;  %v86_v16 = vadd.f32 %v66_v14, %v46_v10  ;;  %v56_v18 = vld [vmem:[%s642_s0 + $0x60] sm:$0xff]  ;;  %v57_v19 = vld [vmem:[%s642_s0 + $0x68] sm:$0xff] }
  0x21   :  { %v87_v17 = vadd.f32 %v67_v15, %v47_v13  ;;  %v76_v20 = vld [vmem:[%s643_s1 + $0x60] sm:$0xff]  ;;  %323 = vmatprep.subr.bf16.mxu0 %v118_v7  ;;  %346 = vmatprep.subr.bf16.mxu1 %v118_v7  ;;  %v77_v22 = vld [vmem:[%s643_s1 + $0x68] sm:$0xff]  ;;  %v58_v24 = vld [vmem:[%s642_s0 + $0x70] sm:$0xff] }
  0x22   :  { %v108_v21 = vpack.c.bf16 %v85_v12, %v84_v11  ;;  %v96_v23 = vadd.f32 %v76_v20, %v56_v18  ;;  %v59_v25 = vld [vmem:[%s642_s0 + $0x78] sm:$0xff]  ;;  %v97_v26 = vadd.f32 %v77_v22, %v57_v19  ;;  %v78_v27 = vld [vmem:[%s643_s1 + $0x70] sm:$0xff]  ;;  %v48_v29 = vld [vmem:[%s642_s0 + $0x20] sm:$0xff] }
  0x23   :  { %v79_v28 = vld [vmem:[%s643_s1 + $0x78] sm:$0xff]  ;;  %v109_v30 = vpack.c.bf16 %v87_v17, %v86_v16  ;;  %v98_v31 = vadd.f32 %v78_v27, %v58_v24  ;;  %v49_v33 = vld [vmem:[%s642_s0 + $0x28] sm:$0xff]  ;;  %v68_v34 = vld [vmem:[%s643_s1 + $0x20] sm:$0xff] }
  0x24   :  { %325 = vmatprep.mubr.msk.bf16.mxu0 %vm127_vm0, %v108_v21  ;;  %v99_v32 = vadd.f32 %v79_v28, %v59_v25  ;;  %v69_v35 = vld [vmem:[%s643_s1 + $0x28] sm:$0xff]  ;;  %324 = vmatpush3.bf16.msra.mxu0 %v118_v7  ;;  %v114_v36 = vpack.c.bf16 %v97_v26, %v96_v23  ;;  %v88_v37 = vadd.f32 %v68_v34, %v48_v29  ;;  %v50_v39 = vld [vmem:[%s642_s0 + $0x30] sm:$0xff]  ;;  %v51_v40 = vld [vmem:[%s642_s0 + $0x38] sm:$0xff] }
  0x25   :  { %348 = vmatpush3.bf16.msra.mxu1 %v118_v7  ;;  %v89_v38 = vadd.f32 %v69_v35, %v49_v33  ;;  %v70_v41 = vld [vmem:[%s643_s1 + $0x30] sm:$0xff]  ;;  %v71_v43 = vld [vmem:[%s643_s1 + $0x38] sm:$0xff]  ;;  %v60_v44 = vld [vmem:[%s642_s0 + $0x80] sm:$0xff] }
  0x26   :  { %v115_v42 = vpack.c.bf16 %v99_v32, %v98_v31  ;;  %v61_v45 = vld [vmem:[%s642_s0 + $0x88] sm:$0xff]  ;;  %337 = vmatprep.mubr.msk.bf16.mxu1 %vm127_vm0, %v114_v36  ;;  %v90_v47 = vadd.f32 %v70_v41, %v50_v39  ;;  %v80_v48 = vld [vmem:[%s643_s1 + $0x80] sm:$0xff]  ;;  %v62_v50 = vld [vmem:[%s642_s0 + $0x90] sm:$0xff]  ;;  %v91_v51 = vadd.f32 %v71_v43, %v51_v40 }
  0x27   :  { %v110_v46 = vpack.c.bf16 %v89_v38, %v88_v37  ;;  %v81_v49 = vld [vmem:[%s643_s1 + $0x88] sm:$0xff]  ;;  %326 = vmatmul.mubr.msk.bf16.vlgmr.msra.gmra.mxu0 %vm127_vm0, %v109_v30  ;;  %v100_v52 = vadd.f32 %v80_v48, %v60_v44  ;;  %v63_v54 = vld [vmem:[%s642_s0 + $0x98] sm:$0xff]  ;;  %v82_v55 = vld [vmem:[%s643_s1 + $0x90] sm:$0xff] }
  0x28   :  { %338 = vmatmul.mubr.msk.bf16.vlgmr.msra.gmra.mxu1 %vm127_vm0, %v115_v42  ;;  %v101_v53 = vadd.f32 %v81_v49, %v61_v45  ;;  %v83_v56 = vld [vmem:[%s643_s1 + $0x98] sm:$0xff]  ;;  %v102_v57 = vadd.f32 %v82_v55, %v62_v50  ;;  %v52_v59 = vld [vmem:[%s642_s0 + $0x40] sm:$0xff]  ;;  %v53_v60 = vld [vmem:[%s642_s0 + $0x48] sm:$0xff]  ;;  %v111_v2 = vpack.c.bf16 %v91_v51, %v90_v47 }
  0x29   :  { %329 = vmatprep.mubr.msk.bf16.mxu0 %vm127_vm0, %v110_v46  ;;  %v103_v58 = vadd.f32 %v83_v56, %v63_v54  ;;  %v72_v61 = vld [vmem:[%s643_s1 + $0x40] sm:$0xff]  ;;  %v73_v63 = vld [vmem:[%s643_s1 + $0x48] sm:$0xff]  ;;  %v54_v4 = vld [vmem:[%s642_s0 + $0x50] sm:$0xff] }
  0x2a   :  { %v116_v62 = vpack.c.bf16 %v101_v53, %v100_v52  ;;  %v92_v0 = vadd.f32 %v72_v61, %v52_v59  ;;  %v93_v1 = vadd.f32 %v73_v63, %v53_v60  ;;  %v55_v6 = vld [vmem:[%s642_s0 + $0x58] sm:$0xff]  ;;  %v74_v7 = vld [vmem:[%s643_s1 + $0x50] sm:$0xff]  ;;  %v298_v12 = vld [vmem:[#allocation4] ss:$0 sm:$0xff] }
  0x2b   :  { %v117_v3 = vpack.c.bf16 %v103_v58, %v102_v57  ;;  %v75_v8 = vld [vmem:[%s643_s1 + $0x58] sm:$0xff]  ;;  %v94_v9 = vadd.f32 %v74_v7, %v54_v4 }
  0x2c   :  { %341 = vmatprep.mubr.msk.bf16.mxu1 %vm127_vm0, %v116_v62  ;;  %v112_v5 = vpack.c.bf16 %v93_v1, %v92_v0  ;;  %v95_v10 = vadd.f32 %v75_v8, %v55_v6 }
  0x2e   :  { %v113_v11 = vpack.c.bf16 %v95_v10, %v94_v9 }
  0x2f   :  { %330 = vmatmul.mubr.msk.bf16.gmra.mxu0 %vm127_vm0, %v111_v2 }
  0x30   :  { %342 = vmatmul.mubr.msk.bf16.gmra.mxu1 %vm127_vm0, %v117_v3  ;;  %333 = vmatprep.mubr.msk.bf16.mxu0 %vm127_vm0, %v112_v5 }
  0x37   :  { %334 = vmatmul.mubr.msk.bf16.gmra.mxu0 %vm127_vm0, %v113_v11 }
  0xe7   :  { %v327_v13 = vpop.f32.mrf.mxu0 }
  0xe8   :  { %v339_v14 = vpop.f32.mrf.mxu1  ;;  %v201_v15 = vadd.f32 %v327_v13, %v298_v12 }
  0xe9   :  { %v249_v16 = vadd.f32 %v339_v14, %v298_v12  ;;  %v192_v17 = vpop.f32.mrf.mxu0 }
  0xea   :  { %v240_v18 = vpop.f32.mrf.mxu1  ;;  %274 = vst.msk [vmem:[%s646_s4 + $0x10] sm:$0xff] %vm271_vm1, %v201_v15  ;;  %v193_v19 = vadd.f32 %v298_v12, %v192_v17 }
  0xeb   :  { %286 = vst.msk [vmem:[%s646_s4 + $0x70] sm:$0xff] %vm271_vm1, %v249_v16  ;;  %v241_v20 = vadd.f32 %v298_v12, %v240_v18  ;;  %v328_v21 = vpop.f32.mrf.mxu0 }
  0xec   :  { %v340_v22 = vpop.f32.mrf.mxu1  ;;  %272 = vst.msk [vmem:[%s646_s4] sm:$0xff] %vm271_vm1, %v193_v19  ;;  %v204_v23 = vadd.f32 %v328_v21, %v298_v12 }
  0xed   :  { %284 = vst.msk [vmem:[%s646_s4 + $0x60] sm:$0xff] %vm271_vm1, %v241_v20  ;;  %v252_v24 = vadd.f32 %v340_v22, %v298_v12  ;;  %v195_v25 = vpop.f32.mrf.mxu0 }
  0xee   :  { %v243_v26 = vpop.f32.mrf.mxu1  ;;  %275 = vst.msk [vmem:[%s646_s4 + $0x18] sm:$0xff] %vm271_vm1, %v204_v23  ;;  %v196_v27 = vadd.f32 %v298_v12, %v195_v25 }
  0xef   :  { %287 = vst.msk [vmem:[%s646_s4 + $0x78] sm:$0xff] %vm271_vm1, %v252_v24  ;;  %v244_v28 = vadd.f32 %v298_v12, %v243_v26  ;;  %v331_v29 = vpop.f32.mrf.mxu0 }
  0xf0   :  { %v343_v30 = vpop.f32.mrf.mxu1  ;;  %273 = vst.msk [vmem:[%s646_s4 + $0x8] sm:$0xff] %vm271_vm1, %v196_v27  ;;  %v217_v31 = vadd.f32 %v331_v29, %v298_v12 }
  0xf1   :  { %285 = vst.msk [vmem:[%s646_s4 + $0x68] sm:$0xff] %vm271_vm1, %v244_v28  ;;  %v265_v32 = vadd.f32 %v343_v30, %v298_v12  ;;  %v208_v33 = vpop.f32.mrf.mxu0 }
  0xf2   :  { %v256_v34 = vpop.f32.mrf.mxu1  ;;  %278 = vst.msk [vmem:[%s646_s4 + $0x30] sm:$0xff] %vm271_vm1, %v217_v31  ;;  %v209_v35 = vadd.f32 %v298_v12, %v208_v33 }
  0xf3   :  { %290 = vst.msk [vmem:[%s646_s4 + $0x90] sm:$0xff] %vm271_vm1, %v265_v32  ;;  %v257_v36 = vadd.f32 %v298_v12, %v256_v34  ;;  %v332_v37 = vpop.f32.mrf.mxu0 }
  0xf4   :  { %v344_v38 = vpop.f32.mrf.mxu1  ;;  %276 = vst.msk [vmem:[%s646_s4 + $0x20] sm:$0xff] %vm271_vm1, %v209_v35  ;;  %v220_v39 = vadd.f32 %v332_v37, %v298_v12 }
  0xf5   :  { %288 = vst.msk [vmem:[%s646_s4 + $0x80] sm:$0xff] %vm271_vm1, %v257_v36  ;;  %v268_v40 = vadd.f32 %v344_v38, %v298_v12  ;;  %v211_v41 = vpop.f32.mrf.mxu0 }
  0xf6   :  { %v259_v42 = vpop.f32.mrf.mxu1  ;;  %279 = vst.msk [vmem:[%s646_s4 + $0x38] sm:$0xff] %vm271_vm1, %v220_v39  ;;  %v212_v43 = vadd.f32 %v298_v12, %v211_v41 }
  0xf7   :  { %291 = vst.msk [vmem:[%s646_s4 + $0x98] sm:$0xff] %vm271_vm1, %v268_v40  ;;  %v260_v44 = vadd.f32 %v298_v12, %v259_v42  ;;  %v335_v45 = vpop.f32.mrf.mxu0 }
  0xf8   :  { %277 = vst.msk [vmem:[%s646_s4 + $0x28] sm:$0xff] %vm271_vm1, %v212_v43  ;;  %v233_v46 = vadd.f32 %v335_v45, %v298_v12 }
  0xf9   :  { %289 = vst.msk [vmem:[%s646_s4 + $0x88] sm:$0xff] %vm271_vm1, %v260_v44  ;;  %v224_v47 = vpop.f32.mrf.mxu0 }
  0xfa   :  { %282 = vst.msk [vmem:[%s646_s4 + $0x50] sm:$0xff] %vm271_vm1, %v233_v46  ;;  %v225_v48 = vadd.f32 %v298_v12, %v224_v47 }
  0xfb   :  { %v336_v49 = vpop.f32.mrf.mxu0 }
  0xfc   :  { %280 = vst.msk [vmem:[%s646_s4 + $0x40] sm:$0xff] %vm271_vm1, %v225_v48  ;;  %v236_v50 = vadd.f32 %v336_v49, %v298_v12 }
  0xfd   :  { %v227_v51 = vpop.f32.mrf.mxu0 }
  0xfe   :  { %283 = vst.msk [vmem:[%s646_s4 + $0x58] sm:$0xff] %vm271_vm1, %v236_v50  ;;  %v228_v52 = vadd.f32 %v298_v12, %v227_v51 }
 0x100   :  { %281 = vst.msk [vmem:[%s646_s4 + $0x48] sm:$0xff] %vm271_vm1, %v228_v52 }
 0x101   :  { %296 = vsyncpa [#allocation3], 1 }
 0x102   :  { %297 = vsyncpa [#allocation5], 1 }

// kernel: run.8
= control target key start
LH: loop header
LB: loop body
LE: loop exit
PB: predicated region body
PF: predicated region fallthrough
CT: control target
= control target key end

     0   :  { %v544_v3 = vmov 0   ;;  %vm61_vm0 = vcmask 261120   ;;  %vm425_vm1 = vcmask 257024   ;;  %s838_s2 = inlined_call_operand.vmem [shape: f32[32,32], index: 2, kind: input, shape index: {}]   ;;  %s839_s0 = inlined_call_operand.vmem [shape: f32[160,32], index: 0, kind: input, shape index: {}]   ;;  %s840_s1 = inlined_call_operand.vmem [shape: f32[160,1], index: 1, kind: input, shape index: {}]   ;;  %s841_s3 = inlined_call_operand.vmem [shape: f32[1,32], index: 3, kind: input, shape index: {}]   ;;  %s842_s4 = inlined_call_operand.vmem [shape: bf16[160,32], index: 4, kind: output, shape index: {}]  }
   0x1   :  { %v40_v0 = vld [vmem:[%s838_s2 + $0x10] sm:$0xff]  ;;  %v41_v1 = vld [vmem:[%s838_s2 + $0x18] sm:$0xff]  ;;  %v38_v2 = vld [vmem:[%s838_s2] sm:$0xff]  ;;  %543 = vset.pattern.permute.xlu1 %v544_v3  ;;  %542 = vset.pattern.permute.xlu0 %v544_v3 }
   0x2   :  { %v53_v4 = vpack.c.bf16 %v41_v1, %v40_v0  ;;  %v39_v5 = vld [vmem:[%s838_s2 + $0x8] sm:$0xff]  ;;  %v18_v6 = vld [vmem:[%s839_s0] sm:$0xff]  ;;  %v20_v13 = vld [vmem:[%s839_s0 + $0x10] sm:$0xff] }
   0x3   :  { %v19_v7 = vld [vmem:[%s839_s0 + $0x8] sm:$0xff]  ;;  %v52_v8 = vpack.c.bf16 %v39_v5, %v38_v2  ;;  %v30_v10 = vld [vmem:[%s839_s0 + $0x60] sm:$0xff]  ;;  %v21_v14 = vld [vmem:[%s839_s0 + $0x18] sm:$0xff] }
   0x4   :  { %v42_v9 = vpack.c.bf16 %v19_v7, %v18_v6  ;;  %v31_v11 = vld [vmem:[%s839_s0 + $0x68] sm:$0xff]  ;;  %513 = vmatprep.subr.bf16.mxu0 %v53_v4  ;;  %537 = vmatprep.subr.bf16.mxu1 %v53_v4  ;;  %v32_v15 = vld [vmem:[%s839_s0 + $0x70] sm:$0xff]  ;;  %v33_v16 = vld [vmem:[%s839_s0 + $0x78] sm:$0xff]  ;;  %v43_v21 = vpack.c.bf16 %v21_v14, %v20_v13 }
   0x5   :  { %v48_v12 = vpack.c.bf16 %v31_v11, %v30_v10  ;;  %514 = vmatpush3.bf16.msra.mxu0 %v53_v4  ;;  %539 = vmatpush3.bf16.msra.mxu1 %v53_v4  ;;  %v22_v17 = vld [vmem:[%s839_s0 + $0x20] sm:$0xff]  ;;  %v23_v18 = vld [vmem:[%s839_s0 + $0x28] sm:$0xff]  ;;  %v49_v22 = vpack.c.bf16 %v33_v16, %v32_v15  ;;  %v207_v25 = vld [vmem:[%s840_s1 + $0x10] sm:$0xff] }
   0x6   :  { %515 = vmatprep.subr.bf16.mxu0 %v52_v8  ;;  %538 = vmatprep.subr.bf16.mxu1 %v52_v8  ;;  %v34_v19 = vld [vmem:[%s839_s0 + $0x80] sm:$0xff]  ;;  %v35_v20 = vld [vmem:[%s839_s0 + $0x88] sm:$0xff]  ;;  %v44_v23 = vpack.c.bf16 %v23_v18, %v22_v17  ;;  %v208_v27 = vld [vmem:[%s840_s1 + $0x18] sm:$0xff] }
   0x7   :  { %517 = vmatprep.mubr.msk.bf16.mxu0 %vm61_vm0, %v42_v9  ;;  %529 = vmatprep.mubr.msk.bf16.mxu1 %vm61_vm0, %v48_v12  ;;  %v50_v24 = vpack.c.bf16 %v35_v20, %v34_v19  ;;  %v205_v26 = vld [vmem:[%s840_s1] sm:$0xff]  ;;  %v206_v28 = vld [vmem:[%s840_s1 + $0x8] sm:$0xff]  ;;  %v24_v29 = vld [vmem:[%s839_s0 + $0x30] sm:$0xff] }
   0x8   :  { %237 = vperm.xlu1 %543, %v207_v25   ;;  %227 = vperm.xlu0 %542, %v205_v26   ;;  %v25_v30 = vld [vmem:[%s839_s0 + $0x38] sm:$0xff]  ;;  %v36_v31 = vld [vmem:[%s839_s0 + $0x90] sm:$0xff]  ;;  %v26_v33 = vld [vmem:[%s839_s0 + $0x40] sm:$0xff] }
   0x9   :  { %516 = vmatpush3.bf16.msra.mxu0 %v52_v8  ;;  %540 = vmatpush3.bf16.msra.mxu1 %v52_v8  ;;  %v37_v32 = vld [vmem:[%s839_s0 + $0x98] sm:$0xff]  ;;  %v27_v34 = vld [vmem:[%s839_s0 + $0x48] sm:$0xff]  ;;  %v209_v36 = vld [vmem:[%s840_s1 + $0x20] sm:$0xff]  ;;  %v45_v37 = vpack.c.bf16 %v25_v30, %v24_v29 }
   0xa   :  { %v210_v35 = vld [vmem:[%s840_s1 + $0x28] sm:$0xff]  ;;  %v51_v38 = vpack.c.bf16 %v37_v32, %v36_v31  ;;  %v46_v39 = vpack.c.bf16 %v27_v34, %v26_v33  ;;  %v212_v40 = vld [vmem:[%s840_s1 + $0x38] sm:$0xff]  ;;  %v211_v41 = vld [vmem:[%s840_s1 + $0x30] sm:$0xff] }
   0xb   :  { %v28_v42 = vld [vmem:[%s839_s0 + $0x50] sm:$0xff]  ;;  %v29_v43 = vld [vmem:[%s839_s0 + $0x58] sm:$0xff]  ;;  %v214_v44 = vld [vmem:[%s840_s1 + $0x48] sm:$0xff] }
   0xc   :  { %518 = vmatmul.mubr.msk.bf16.vlgmr.msra.gmra.mxu0 %vm61_vm0, %v43_v21  ;;  %530 = vmatmul.mubr.msk.bf16.vlgmr.msra.gmra.mxu1 %vm61_vm0, %v49_v22  ;;  %v213_v45 = vld [vmem:[%s840_s1 + $0x40] sm:$0xff]  ;;  %v47_v46 = vpack.c.bf16 %v29_v43, %v28_v42  ;;  %v216_v47 = vld [vmem:[%s840_s1 + $0x58] sm:$0xff]  ;;  %v215_v48 = vld [vmem:[%s840_s1 + $0x50] sm:$0xff] }
   0xd   :  { %521 = vmatprep.mubr.msk.bf16.mxu0 %vm61_vm0, %v44_v23  ;;  %533 = vmatprep.mubr.msk.bf16.mxu1 %vm61_vm0, %v50_v24  ;;  %v218_v49 = vld [vmem:[%s840_s1 + $0x68] sm:$0xff]  ;;  %v217_v50 = vld [vmem:[%s840_s1 + $0x60] sm:$0xff]  ;;  %v220_v51 = vld [vmem:[%s840_s1 + $0x78] sm:$0xff] }
   0xe   :  { %242 = vperm.xlu1 %543, %v208_v27   ;;  %232 = vperm.xlu0 %542, %v206_v28   ;;  %v219_v52 = vld [vmem:[%s840_s1 + $0x70] sm:$0xff]  ;;  %v222_v53 = vld [vmem:[%s840_s1 + $0x88] sm:$0xff]  ;;  %v221_v54 = vld [vmem:[%s840_s1 + $0x80] sm:$0xff] }
   0xf   :  { %v224_v55 = vld [vmem:[%s840_s1 + $0x98] sm:$0xff]  ;;  %v223_v56 = vld [vmem:[%s840_s1 + $0x90] sm:$0xff]  ;;  %v729_v8 = vld [vmem:[%s841_s3] ss:$0 sm:$0xff] }
  0x12   :  { %252 = vperm.xlu1 %543, %v210_v35   ;;  %247 = vperm.xlu0 %542, %v209_v36  }
  0x14   :  { %522 = vmatmul.mubr.msk.bf16.gmra.mxu0 %vm61_vm0, %v45_v37  ;;  %534 = vmatmul.mubr.msk.bf16.gmra.mxu1 %vm61_vm0, %v51_v38 }
  0x15   :  { %525 = vmatprep.mubr.msk.bf16.mxu0 %vm61_vm0, %v46_v39 }
  0x16   :  { %262 = vperm.xlu1 %543, %v212_v40   ;;  %257 = vperm.xlu0 %542, %v211_v41  }
  0x1a   :  { %272 = vperm.xlu1 %543, %v214_v44   ;;  %267 = vperm.xlu0 %542, %v213_v45  }
  0x1c   :  { %526 = vmatmul.mubr.msk.bf16.gmra.mxu0 %vm61_vm0, %v47_v46 }
  0x1e   :  { %282 = vperm.xlu1 %543, %v216_v47   ;;  %277 = vperm.xlu0 %542, %v215_v48  }
  0x22   :  { %292 = vperm.xlu1 %543, %v218_v49   ;;  %287 = vperm.xlu0 %542, %v217_v50  }
  0x26   :  { %302 = vperm.xlu1 %543, %v220_v51   ;;  %297 = vperm.xlu0 %542, %v219_v52  }
  0x2a   :  { %312 = vperm.xlu1 %543, %v222_v53   ;;  %307 = vperm.xlu0 %542, %v221_v54  }
  0x2e   :  { %322 = vperm.xlu1 %543, %v224_v55   ;;  %317 = vperm.xlu0 %542, %v223_v56  }
  0x83   :  { %v228_v57 = vpop.permute.xlu0 %227  ;;  %v238_v58 = vpop.permute.xlu1 %237 }
  0x89   :  { %v233_v59 = vpop.permute.xlu0 %232  ;;  %v243_v60 = vpop.permute.xlu1 %242 }
  0x8d   :  { %v712_v61 = vpop.permute.xlu0 %247  ;;  %v714_v62 = vpop.permute.xlu1 %252 }
  0x91   :  { %v258_v63 = vpop.permute.xlu0 %257  ;;  %v716_v0 = vpop.permute.xlu1 %262 }
  0x95   :  { %v718_v1 = vpop.permute.xlu0 %267  ;;  %v720_v2 = vpop.permute.xlu1 %272 }
  0x99   :  { %v722_v3 = vpop.permute.xlu0 %277  ;;  %v724_v4 = vpop.permute.xlu1 %282 }
  0x9d   :  { %v288_v5 = vpop.permute.xlu0 %287  ;;  %v293_v6 = vpop.permute.xlu1 %292 }
  0xa1   :  { %v298_v7 = vpop.permute.xlu0 %297  ;;  %v303_v11 = vpop.permute.xlu1 %302 }
  0xa5   :  { %v308_v16 = vpop.permute.xlu0 %307  ;;  %v313_v31 = vpop.permute.xlu1 %312 }
  0xa9   :  { %v318_v40 = vpop.permute.xlu0 %317 }
  0xcc   :  { %v519_v9 = vpop.f32.mrf.mxu0  ;;  %v531_v10 = vpop.f32.mrf.mxu1 }
  0xcd   :  { %v135_v12 = vadd.f32 %v519_v9, %v729_v8  ;;  %v183_v13 = vadd.f32 %v531_v10, %v729_v8 }
  0xce   :  { %v126_v14 = vpop.f32.mrf.mxu0  ;;  %v174_v15 = vpop.f32.mrf.mxu1 }
  0xcf   :  { %v327_v17 = vmul.f32 %v238_v58, %v135_v12  ;;  %v339_v18 = vmul.f32 %v298_v7, %v183_v13  ;;  %v127_v19 = vadd.f32 %v729_v8, %v126_v14  ;;  %v175_v20 = vadd.f32 %v729_v8, %v174_v15 }
  0xd0   :  { %v520_v21 = vpop.f32.mrf.mxu0  ;;  %v532_v22 = vpop.f32.mrf.mxu1 }
  0xd1   :  { %v483_v23 = vpack.c.bf16 %v327_v17, %v327_v17  ;;  %v495_v24 = vpack.c.bf16 %v339_v18, %v339_v18  ;;  %v325_v25 = vmul.f32 %v228_v57, %v127_v19  ;;  %v337_v26 = vmul.f32 %v288_v5, %v175_v20  ;;  %v323_v57 = vpop.permute.xlu1 %322 }
  0xd2   :  { %v138_v27 = vadd.f32 %v520_v21, %v729_v8  ;;  %v186_v28 = vadd.f32 %v532_v22, %v729_v8  ;;  %v129_v29 = vpop.f32.mrf.mxu0  ;;  %v177_v30 = vpop.f32.mrf.mxu1 }
  0xd3   :  { %428 = vst.msk [vmem:[%s842_s4 + $0x8] sm:$0xf] %vm425_vm1, %v483_v23  ;;  %440 = vst.msk [vmem:[%s842_s4 + $0x38] sm:$0xf] %vm425_vm1, %v495_v24  ;;  %v481_v32 = vpack.c.bf16 %v325_v25, %v325_v25  ;;  %v493_v33 = vpack.c.bf16 %v337_v26, %v337_v26  ;;  %v130_v34 = vadd.f32 %v729_v8, %v129_v29 }
  0xd4   :  { %v178_v35 = vadd.f32 %v729_v8, %v177_v30  ;;  %v328_v36 = vmul.f32 %v243_v60, %v138_v27  ;;  %v340_v37 = vmul.f32 %v303_v11, %v186_v28  ;;  %v523_v38 = vpop.f32.mrf.mxu0  ;;  %v535_v39 = vpop.f32.mrf.mxu1 }
  0xd5   :  { %426 = vst.msk [vmem:[%s842_s4] sm:$0xf] %vm425_vm1, %v481_v32  ;;  %438 = vst.msk [vmem:[%s842_s4 + $0x30] sm:$0xf] %vm425_vm1, %v493_v33  ;;  %v326_v41 = vmul.f32 %v233_v59, %v130_v34  ;;  %v151_v43 = vadd.f32 %v523_v38, %v729_v8  ;;  %v199_v44 = vadd.f32 %v535_v39, %v729_v8 }
  0xd6   :  { %v338_v42 = vmul.f32 %v293_v6, %v178_v35  ;;  %v484_v45 = vpack.c.bf16 %v328_v36, %v328_v36  ;;  %v496_v46 = vpack.c.bf16 %v340_v37, %v340_v37  ;;  %v142_v47 = vpop.f32.mrf.mxu0  ;;  %v190_v48 = vpop.f32.mrf.mxu1 }
  0xd7   :  { %v482_v49 = vpack.c.bf16 %v326_v41, %v326_v41  ;;  %v331_v51 = vmul.f32 %v258_v63, %v151_v43  ;;  %v343_v52 = vmul.f32 %v318_v40, %v199_v44  ;;  %v143_v53 = vadd.f32 %v729_v8, %v142_v47 }
  0xd8   :  { %v494_v50 = vpack.c.bf16 %v338_v42, %v338_v42  ;;  %429 = vst.msk [vmem:[%s842_s4 + $0xc] sm:$0xf] %vm425_vm1, %v484_v45  ;;  %441 = vst.msk [vmem:[%s842_s4 + $0x3c] sm:$0xf] %vm425_vm1, %v496_v46  ;;  %v191_v54 = vadd.f32 %v729_v8, %v190_v48  ;;  %v524_v55 = vpop.f32.mrf.mxu0  ;;  %v536_v56 = vpop.f32.mrf.mxu1 }
  0xd9   :  { %427 = vst.msk [vmem:[%s842_s4 + $0x4] sm:$0xf] %vm425_vm1, %v482_v49  ;;  %v487_v58 = vpack.c.bf16 %v331_v51, %v331_v51  ;;  %v499_v59 = vpack.c.bf16 %v343_v52, %v343_v52  ;;  %v154_v60 = vadd.f32 %v524_v55, %v729_v8  ;;  %v202_v63 = vadd.f32 %v536_v56, %v729_v8 }
  0xda   :  { %439 = vst.msk [vmem:[%s842_s4 + $0x34] sm:$0xf] %vm425_vm1, %v494_v50  ;;  %v329_v5 = vmul.f32 %v712_v61, %v143_v53  ;;  %v341_v6 = vmul.f32 %v308_v16, %v191_v54  ;;  %v145_v7 = vpop.f32.mrf.mxu0  ;;  %v193_v9 = vpop.f32.mrf.mxu1 }
  0xdb   :  { %432 = vst.msk [vmem:[%s842_s4 + $0x18] sm:$0xf] %vm425_vm1, %v487_v58  ;;  %444 = vst.msk [vmem:[%s842_s4 + $0x48] sm:$0xf] %vm425_vm1, %v499_v59  ;;  %v332_v10 = vmul.f32 %v716_v0, %v154_v60  ;;  %v344_v11 = vmul.f32 %v323_v57, %v202_v63  ;;  %v146_v12 = vadd.f32 %v729_v8, %v145_v7 }
  0xdc   :  { %v194_v61 = vadd.f32 %v729_v8, %v193_v9  ;;  %v485_v13 = vpack.c.bf16 %v329_v5, %v329_v5  ;;  %v497_v14 = vpack.c.bf16 %v341_v6, %v341_v6  ;;  %v527_v15 = vpop.f32.mrf.mxu0 }
  0xdd   :  { %v488_v16 = vpack.c.bf16 %v332_v10, %v332_v10  ;;  %v500_v17 = vpack.c.bf16 %v344_v11, %v344_v11  ;;  %v330_v18 = vmul.f32 %v714_v62, %v146_v12  ;;  %v167_v0 = vadd.f32 %v527_v15, %v729_v8 }
  0xde   :  { %v342_v19 = vmul.f32 %v313_v31, %v194_v61  ;;  %430 = vst.msk [vmem:[%s842_s4 + $0x10] sm:$0xf] %vm425_vm1, %v485_v13  ;;  %442 = vst.msk [vmem:[%s842_s4 + $0x40] sm:$0xf] %vm425_vm1, %v497_v14  ;;  %v158_v20 = vpop.f32.mrf.mxu0 }
  0xdf   :  { %433 = vst.msk [vmem:[%s842_s4 + $0x1c] sm:$0xf] %vm425_vm1, %v488_v16  ;;  %445 = vst.msk [vmem:[%s842_s4 + $0x4c] sm:$0xf] %vm425_vm1, %v500_v17  ;;  %v486_v62 = vpack.c.bf16 %v330_v18, %v330_v18  ;;  %v159_v22 = vadd.f32 %v729_v8, %v158_v20  ;;  %v335_v23 = vmul.f32 %v722_v3, %v167_v0 }
  0xe0   :  { %v498_v21 = vpack.c.bf16 %v342_v19, %v342_v19  ;;  %v528_v24 = vpop.f32.mrf.mxu0 }
  0xe1   :  { %431 = vst.msk [vmem:[%s842_s4 + $0x14] sm:$0xf] %vm425_vm1, %v486_v62  ;;  %v333_v25 = vmul.f32 %v718_v1, %v159_v22  ;;  %v170_v26 = vadd.f32 %v528_v24, %v729_v8  ;;  %v491_v27 = vpack.c.bf16 %v335_v23, %v335_v23 }
  0xe2   :  { %443 = vst.msk [vmem:[%s842_s4 + $0x44] sm:$0xf] %vm425_vm1, %v498_v21  ;;  %v161_v28 = vpop.f32.mrf.mxu0 }
  0xe3   :  { %v489_v29 = vpack.c.bf16 %v333_v25, %v333_v25  ;;  %v336_v3 = vmul.f32 %v724_v4, %v170_v26  ;;  %v162_v30 = vadd.f32 %v729_v8, %v161_v28  ;;  %436 = vst.msk [vmem:[%s842_s4 + $0x28] sm:$0xf] %vm425_vm1, %v491_v27 }
  0xe5   :  { %434 = vst.msk [vmem:[%s842_s4 + $0x20] sm:$0xf] %vm425_vm1, %v489_v29  ;;  %v492_v1 = vpack.c.bf16 %v336_v3, %v336_v3  ;;  %v334_v31 = vmul.f32 %v720_v2, %v162_v30 }
  0xe7   :  { %437 = vst.msk [vmem:[%s842_s4 + $0x2c] sm:$0xf] %vm425_vm1, %v492_v1  ;;  %v490_v4 = vpack.c.bf16 %v334_v31, %v334_v31 }
  0xe9   :  { %435 = vst.msk [vmem:[%s842_s4 + $0x24] sm:$0xf] %vm425_vm1, %v490_v4 }

// kernel: mul.147
= control target key start
LH: loop header
LB: loop body
LE: loop exit
PB: predicated region body
PF: predicated region fallthrough
CT: control target
= control target key end

     0   :  { %vm145_vm0 = vcmask 1043458   ;;  %s189_s6 = smov 3  ;;  %vm150_vm1 = vcmask 1045508   ;;  %vm155_vm2 = vcmask 1047558   ;;  %s192_s9 = smov 12  ;;  %vm3_vm3 = vcmask 261120   ;;  %s3568_s0 = inlined_call_operand.vmem [shape: f32[2,80,32,4], index: 0, kind: input, shape index: {}]   ;;  %s3569_s1 = inlined_call_operand.vmem [shape: f32[2,2560,4], index: 1, kind: output, shape index: {}]  }
   0x1   :  { %v1981_v0 = vld [vmem:[%s3568_s0 + $0x23] ss:$80 sm:%s189_s6]   ;;  %s197_s10 = smov 48  ;;  %s202_s15 = smov 192  ;;  %vm159_vm4 = vcmask 1048320   ;;  %vm658_vm5 = vcmask 785920  }
   0x2   :  { %v1982_v1 = vld [vmem:[%s3568_s0 + $0x23] ss:$80 sm:%s192_s9]   ;;  %v1983_v2 = vld [vmem:[%s3568_s0 - $0x119] ss:$80 sm:%s197_s10]   ;;  %s140_s16 = smov 3  ;;  %s143_s21 = smov 12 }
   0x3   :  { %v195_v3 = vsel %vm145_vm0, %v1982_v1, %v1981_v0  ;;  %v1984_v4 = vld [vmem:[%s3568_s0 - $0x119] ss:$80 sm:%s202_s15]   ;;  %v1973_v5 = vld [vmem:[%s3568_s0 + $0x3] ss:$80 sm:%s140_s16]   ;;  %s148_s22 = smov 48  ;;  %s153_s27 = smov 192 }
   0x4   :  { %v200_v6 = vsel %vm150_vm1, %v1983_v2, %v195_v3  ;;  %v1974_v7 = vld [vmem:[%s3568_s0 + $0x3] ss:$80 sm:%s143_s21]   ;;  %v1975_v8 = vld [vmem:[%s3568_s0 - $0x139] ss:$80 sm:%s148_s22]   ;;  %s214_s28 = smov 3  ;;  %s217_s4 = smov 12 }
   0x5   :  { %v205_v9 = vsel %vm155_vm2, %v1984_v4, %v200_v6  ;;  %v146_v10 = vsel %vm145_vm0, %v1974_v7, %v1973_v5  ;;  %v1976_v11 = vld [vmem:[%s3568_s0 - $0x139] ss:$80 sm:%s153_s27]   ;;  %v1985_v12 = vld [vmem:[%s3568_s0 + $0x33] ss:$80 sm:%s214_s28]   ;;  %s222_s5 = smov 48  ;;  %s2255_s6 = smov 96  }
   0x6   :  { %206 = vrot.lane.b32.xlu1 %v205_v9, %s2255_s6  ;;  %v151_v13 = vsel %vm150_vm1, %v1975_v8, %v146_v10  ;;  %v1986_v14 = vld [vmem:[%s3568_s0 + $0x33] ss:$80 sm:%s217_s4]   ;;  %s227_s9 = smov 192  ;;  %s164_s10 = smov 3  ;;  %v2_v4 = vld [vmem:[%s3568_s0] ss:$4 sm:$0xff]  }
   0x7   :  { %v156_v15 = vsel %vm155_vm2, %v1976_v11, %v151_v13  ;;  %v220_v16 = vsel %vm145_vm0, %v1986_v14, %v1985_v12  ;;  %v1987_v17 = vld [vmem:[%s3568_s0 - $0x109] ss:$80 sm:%s222_s5]   ;;  %s167_s15 = smov 12  ;;  %s172_s16 = smov 48  ;;  %v1977_v20 = vld [vmem:[%s3568_s0 + $0x13] ss:$80 sm:%s164_s10]  }
   0x8   :  { %v1988_v18 = vld [vmem:[%s3568_s0 - $0x109] ss:$80 sm:%s227_s9]   ;;  %157 = vrot.lane.b32.xlu0 %v156_v15, %s2255_s6  ;;  %v225_v19 = vsel %vm150_vm1, %v1987_v17, %v220_v16  ;;  %s177_s19 = smov 192  ;;  %s264_s20 = smov 3  ;;  %v1956_v14 = vld [vmem:[%s3568_s0 + $0x60] ss:$4 sm:$0xff]  }
   0x9   :  { %v230_v21 = vsel %vm155_vm2, %v1988_v18, %v225_v19  ;;  %v1978_v22 = vld [vmem:[%s3568_s0 + $0x13] ss:$80 sm:%s167_s15]   ;;  %v1979_v23 = vld [vmem:[%s3568_s0 - $0x129] ss:$80 sm:%s172_s16]   ;;  %s267_s25 = smov 12  ;;  %s272_s26 = smov 48 }
   0xa   :  { %231 = vrot.lane.b32.xlu1 %v230_v21, %s2255_s6  ;;  %v170_v24 = vsel %vm145_vm0, %v1978_v22, %v1977_v20  ;;  %v1980_v25 = vld [vmem:[%s3568_s0 - $0x129] ss:$80 sm:%s177_s19]   ;;  %s277_s29 = smov 192  ;;  %s239_s30 = smov 3  ;;  %v1958_v20 = vld [vmem:[%s3568_s0 + $0xa0] ss:$4 sm:$0xff]  }
   0xb   :  { %v175_v26 = vsel %vm150_vm1, %v1979_v23, %v170_v24  ;;  %v1993_v27 = vld [vmem:[%s3568_s0 + $0x143] ss:$80 sm:%s264_s20]   ;;  %s242_s7 = smov 12  ;;  %s247_s8 = smov 48  ;;  %v1995_v31 = vld [vmem:[%s3568_s0 + $0x7] ss:$80 sm:%s272_s26]  }
   0xc   :  { %v1994_v28 = vld [vmem:[%s3568_s0 + $0x143] ss:$80 sm:%s267_s25]   ;;  %v180_v29 = vsel %vm155_vm2, %v1980_v25, %v175_v26  ;;  %v1996_v32 = vld [vmem:[%s3568_s0 + $0x7] ss:$80 sm:%s277_s29]   ;;  %s252_s13 = smov 192  ;;  %s314_s16 = smov 3 }
   0xd   :  { %v270_v30 = vsel %vm145_vm0, %v1994_v28, %v1993_v27  ;;  %181 = vrot.lane.b32.xlu0 %v180_v29, %s2255_s6  ;;  %v1989_v34 = vld [vmem:[%s3568_s0 + $0x43] ss:$80 sm:%s239_s30]   ;;  %s317_s17 = smov 12  ;;  %s322_s22 = smov 48  ;;  %vm1157_vm6 = vcmask 523520  }
   0xe   :  { %v275_v33 = vsel %vm150_vm1, %v1995_v31, %v270_v30  ;;  %v1990_v36 = vld [vmem:[%s3568_s0 + $0x43] ss:$80 sm:%s242_s7]   ;;  %v1991_v37 = vld [vmem:[%s3568_s0 - $0xf9] ss:$80 sm:%s247_s8]   ;;  %s327_s23 = smov 192  ;;  %s289_s26 = smov 3 }
   0xf   :  { %v280_v35 = vsel %vm155_vm2, %v1996_v32, %v275_v33  ;;  %v245_v38 = vsel %vm145_vm0, %v1990_v36, %v1989_v34  ;;  %v1992_v39 = vld [vmem:[%s3568_s0 - $0xf9] ss:$80 sm:%s252_s13]   ;;  %v2001_v41 = vld [vmem:[%s3568_s0 + $0x163] ss:$80 sm:%s314_s16]   ;;  %s292_s2 = smov 12  ;;  %s297_s3 = smov 48 }
  0x10   :  { %281 = vrot.lane.b32.xlu1 %v280_v35, %s2255_s6  ;;  %v250_v40 = vsel %vm150_vm1, %v1991_v37, %v245_v38  ;;  %v2002_v42 = vld [vmem:[%s3568_s0 + $0x163] ss:$80 sm:%s317_s17]   ;;  %s302_s9 = smov 192  ;;  %s364_s12 = smov 3  ;;  %v1961_v30 = vld [vmem:[%s3568_s0 + $0x100] ss:$4 sm:$0xff]  }
  0x11   :  { %v255_v43 = vsel %vm155_vm2, %v1992_v39, %v250_v40  ;;  %v320_v44 = vsel %vm145_vm0, %v2002_v42, %v2001_v41  ;;  %v2003_v45 = vld [vmem:[%s3568_s0 + $0x27] ss:$80 sm:%s322_s22]   ;;  %v1997_v48 = vld [vmem:[%s3568_s0 + $0x153] ss:$80 sm:%s289_s26]   ;;  %s367_s13 = smov 12  ;;  %s372_s18 = smov 48 }
  0x12   :  { %v2004_v46 = vld [vmem:[%s3568_s0 + $0x27] ss:$80 sm:%s327_s23]   ;;  %256 = vrot.lane.b32.xlu0 %v255_v43, %s2255_s6  ;;  %v325_v47 = vsel %vm150_vm1, %v2003_v45, %v320_v44  ;;  %s377_s19 = smov 192  ;;  %s339_s22 = smov 3  ;;  %v1955_v36 = vld [vmem:[%s3568_s0 + $0x40] ss:$4 sm:$0xff]  }
  0x13   :  { %v330_v49 = vsel %vm155_vm2, %v2004_v46, %v325_v47  ;;  %v1998_v50 = vld [vmem:[%s3568_s0 + $0x153] ss:$80 sm:%s292_s2]   ;;  %v1999_v51 = vld [vmem:[%s3568_s0 + $0x17] ss:$80 sm:%s297_s3]   ;;  %s342_s27 = smov 12  ;;  %s347_s28 = smov 48 }
  0x14   :  { %331 = vrot.lane.b32.xlu1 %v330_v49, %s2255_s6  ;;  %v295_v52 = vsel %vm145_vm0, %v1998_v50, %v1997_v48  ;;  %v2000_v53 = vld [vmem:[%s3568_s0 + $0x17] ss:$80 sm:%s302_s9]   ;;  %s352_s4 = smov 192  ;;  %s414_s8 = smov 3  ;;  %v1960_v46 = vld [vmem:[%s3568_s0 + $0xe0] ss:$4 sm:$0xff]  }
  0x15   :  { %v300_v54 = vsel %vm150_vm1, %v1999_v51, %v295_v52  ;;  %v2009_v55 = vld [vmem:[%s3568_s0 + $0x183] ss:$80 sm:%s364_s12]   ;;  %v2011_v59 = vld [vmem:[%s3568_s0 + $0x47] ss:$80 sm:%s372_s18]   ;;  %s417_s9 = smov 12  ;;  %s422_s14 = smov 48 }
  0x16   :  { %v2010_v56 = vld [vmem:[%s3568_s0 + $0x183] ss:$80 sm:%s367_s13]   ;;  %v305_v57 = vsel %vm155_vm2, %v2000_v53, %v300_v54  ;;  %v2012_v60 = vld [vmem:[%s3568_s0 + $0x47] ss:$80 sm:%s377_s19]   ;;  %s427_s15 = smov 192  ;;  %s389_s18 = smov 3 }
  0x17   :  { %v370_v58 = vsel %vm145_vm0, %v2010_v56, %v2009_v55  ;;  %306 = vrot.lane.b32.xlu0 %v305_v57, %s2255_s6  ;;  %v2005_v62 = vld [vmem:[%s3568_s0 + $0x173] ss:$80 sm:%s339_s22]   ;;  %s392_s25 = smov 12  ;;  %s397_s26 = smov 48 }
  0x18   :  { %v375_v61 = vsel %vm150_vm1, %v2011_v59, %v370_v58  ;;  %v2006_v0 = vld [vmem:[%s3568_s0 + $0x173] ss:$80 sm:%s342_s27]   ;;  %v2007_v1 = vld [vmem:[%s3568_s0 + $0x37] ss:$80 sm:%s347_s28]   ;;  %s402_s2 = smov 192  ;;  %s464_s5 = smov 3 }
  0x19   :  { %v380_v63 = vsel %vm155_vm2, %v2012_v60, %v375_v61  ;;  %v345_v2 = vsel %vm145_vm0, %v2006_v0, %v2005_v62  ;;  %v2008_v3 = vld [vmem:[%s3568_s0 + $0x37] ss:$80 sm:%s352_s4]   ;;  %v2017_v6 = vld [vmem:[%s3568_s0 + $0x1b] ss:$80 sm:%s414_s8]   ;;  %s467_s7 = smov 12  ;;  %s542_s23 = smov 12 }
  0x1a   :  { %381 = vrot.lane.b32.xlu1 %v380_v63, %s2255_s6  ;;  %v350_v5 = vsel %vm150_vm1, %v2007_v1, %v345_v2  ;;  %v2018_v7 = vld [vmem:[%s3568_s0 + $0x1b] ss:$80 sm:%s417_s9]   ;;  %5 = vst.msk [vmem:[#allocation0] ss:$8 sm:$0xf0] %vm3_vm3, %v2_v4   ;;  %s547_s24 = smov 48 }
  0x1b   :  { %4 = vst.msk [vmem:[#allocation0] ss:$8 sm:$0xf] %vm3_vm3, %v2_v4   ;;  %v355_v8 = vsel %vm155_vm2, %v2008_v3, %v350_v5  ;;  %v420_v9 = vsel %vm145_vm0, %v2018_v7, %v2017_v6  ;;  %v2019_v10 = vld [vmem:[%s3568_s0 - $0x121] ss:$80 sm:%s422_s14]   ;;  %s472_s14 = smov 48 }
  0x1c   :  { %v2020_v11 = vld [vmem:[%s3568_s0 - $0x121] ss:$80 sm:%s427_s15]   ;;  %356 = vrot.lane.b32.xlu0 %v355_v8, %s2255_s6  ;;  %v425_v12 = vsel %vm150_vm1, %v2019_v10, %v420_v9  ;;  %s477_s15 = smov 192  ;;  %24 = vst.msk [vmem:[#allocation0 + $0x21] ss:$8 sm:$0xf] %vm3_vm3, %v1956_v14  }
  0x1d   :  { %v2013_v13 = vld [vmem:[%s3568_s0 + $0xb] ss:$80 sm:%s389_s18]   ;;  %v430_v15 = vsel %vm155_vm2, %v2020_v11, %v425_v12  ;;  %v2015_v17 = vld [vmem:[%s3568_s0 - $0x131] ss:$80 sm:%s397_s26]   ;;  %s439_s18 = smov 3  ;;  %s447_s26 = smov 48 }
  0x1e   :  { %v2014_v16 = vld [vmem:[%s3568_s0 + $0xb] ss:$80 sm:%s392_s25]   ;;  %26 = vst.msk [vmem:[#allocation0 + $0x21] ss:$8 sm:$0xf0] %vm3_vm3, %v1956_v14   ;;  %431 = vrot.lane.b32.xlu1 %v430_v15, %s2255_s6  ;;  %s442_s25 = smov 12 }
  0x1f   :  { %v395_v18 = vsel %vm145_vm0, %v2014_v16, %v2013_v13  ;;  %v2016_v19 = vld [vmem:[%s3568_s0 - $0x131] ss:$80 sm:%s402_s2]   ;;  %v2025_v22 = vld [vmem:[%s3568_s0 + $0x3b] ss:$80 sm:%s464_s5]   ;;  %s452_s2 = smov 192  ;;  %s514_s5 = smov 3 }
  0x20   :  { %v400_v21 = vsel %vm150_vm1, %v2015_v17, %v395_v18  ;;  %v2026_v23 = vld [vmem:[%s3568_s0 + $0x3b] ss:$80 sm:%s467_s7]   ;;  %40 = vst.msk [vmem:[#allocation0 + $0x2] ss:$8 sm:$0xf0] %vm3_vm3, %v1958_v20   ;;  %s517_s7 = smov 12 }
  0x21   :  { %38 = vst.msk [vmem:[#allocation0 + $0x2] ss:$8 sm:$0xf] %vm3_vm3, %v1958_v20   ;;  %v405_v24 = vsel %vm155_vm2, %v2016_v19, %v400_v21  ;;  %v470_v25 = vsel %vm145_vm0, %v2026_v23, %v2025_v22  ;;  %v2027_v26 = vld [vmem:[%s3568_s0 - $0x101] ss:$80 sm:%s472_s14]   ;;  %s522_s14 = smov 48 }
  0x22   :  { %v2028_v27 = vld [vmem:[%s3568_s0 - $0x101] ss:$80 sm:%s477_s15]   ;;  %406 = vrot.lane.b32.xlu0 %v405_v24, %s2255_s6  ;;  %v475_v28 = vsel %vm150_vm1, %v2027_v26, %v470_v25  ;;  %s527_s15 = smov 192  ;;  %59 = vst.msk [vmem:[#allocation0 + $0x23] ss:$8 sm:$0xf] %vm3_vm3, %v1961_v30  }
  0x23   :  { %v2021_v29 = vld [vmem:[%s3568_s0 + $0x2b] ss:$80 sm:%s439_s18]   ;;  %v480_v31 = vsel %vm155_vm2, %v2028_v27, %v475_v28  ;;  %v2023_v33 = vld [vmem:[%s3568_s0 - $0x111] ss:$80 sm:%s447_s26]   ;;  %s489_s18 = smov 3  ;;  %s497_s26 = smov 48 }
  0x24   :  { %v2022_v32 = vld [vmem:[%s3568_s0 + $0x2b] ss:$80 sm:%s442_s25]   ;;  %61 = vst.msk [vmem:[#allocation0 + $0x23] ss:$8 sm:$0xf0] %vm3_vm3, %v1961_v30   ;;  %481 = vrot.lane.b32.xlu1 %v480_v31, %s2255_s6  ;;  %s492_s25 = smov 12 }
  0x25   :  { %v445_v34 = vsel %vm145_vm0, %v2022_v32, %v2021_v29  ;;  %v2024_v35 = vld [vmem:[%s3568_s0 - $0x111] ss:$80 sm:%s452_s2]   ;;  %v2033_v38 = vld [vmem:[%s3568_s0 + $0x14b] ss:$80 sm:%s514_s5]   ;;  %s502_s2 = smov 192  ;;  %s564_s5 = smov 3 }
  0x26   :  { %v450_v37 = vsel %vm150_vm1, %v2023_v33, %v445_v34  ;;  %v2034_v39 = vld [vmem:[%s3568_s0 + $0x14b] ss:$80 sm:%s517_s7]   ;;  %19 = vst.msk [vmem:[#allocation0 - $0x1f] ss:$8 sm:$0xf0] %vm3_vm3, %v1955_v36   ;;  %s567_s7 = smov 12 }
  0x27   :  { %17 = vst.msk [vmem:[#allocation0 + $0x80] ss:$8 sm:$0xf] %vm3_vm3, %v1955_v36   ;;  %v455_v40 = vsel %vm155_vm2, %v2024_v35, %v450_v37  ;;  %v520_v41 = vsel %vm145_vm0, %v2034_v39, %v2033_v38  ;;  %v2035_v42 = vld [vmem:[%s3568_s0 + $0xf] ss:$80 sm:%s522_s14]   ;;  %s572_s14 = smov 48 }
  0x28   :  { %v2036_v43 = vld [vmem:[%s3568_s0 + $0xf] ss:$80 sm:%s527_s15]   ;;  %456 = vrot.lane.b32.xlu0 %v455_v40, %s2255_s6  ;;  %v525_v44 = vsel %vm150_vm1, %v2035_v42, %v520_v41  ;;  %s577_s15 = smov 192  ;;  %54 = vst.msk [vmem:[#allocation0 - $0x1d] ss:$8 sm:$0xf0] %vm3_vm3, %v1960_v46  }
  0x29   :  { %v2029_v45 = vld [vmem:[%s3568_s0 + $0x4b] ss:$80 sm:%s489_s18]   ;;  %v530_v47 = vsel %vm155_vm2, %v2036_v43, %v525_v44  ;;  %v2031_v49 = vld [vmem:[%s3568_s0 - $0xf1] ss:$80 sm:%s497_s26]   ;;  %s539_s18 = smov 3  ;;  %s552_s29 = smov 192 }
  0x2a   :  { %v2030_v48 = vld [vmem:[%s3568_s0 + $0x4b] ss:$80 sm:%s492_s25]   ;;  %52 = vst.msk [vmem:[#allocation0 + $0x82] ss:$8 sm:$0xf] %vm3_vm3, %v1960_v46   ;;  %531 = vrot.lane.b32.xlu1 %v530_v47, %s2255_s6  ;;  %s614_s3 = smov 3 }
  0x2b   :  { %v495_v50 = vsel %vm145_vm0, %v2030_v48, %v2029_v45  ;;  %v2032_v51 = vld [vmem:[%s3568_s0 - $0xf1] ss:$80 sm:%s502_s2]   ;;  %v2041_v53 = vld [vmem:[%s3568_s0 + $0x16b] ss:$80 sm:%s564_s5]   ;;  %s617_s4 = smov 12  ;;  %s622_s12 = smov 48 }
  0x2c   :  { %v500_v52 = vsel %vm150_vm1, %v2031_v49, %v495_v50  ;;  %v2042_v54 = vld [vmem:[%s3568_s0 + $0x16b] ss:$80 sm:%s567_s7]   ;;  %v2043_v57 = vld [vmem:[%s3568_s0 + $0x2f] ss:$80 sm:%s572_s14]   ;;  %s627_s13 = smov 192  ;;  %s589_s16 = smov 3 }
  0x2d   :  { %v505_v55 = vsel %vm155_vm2, %v2032_v51, %v500_v52  ;;  %v570_v56 = vsel %vm145_vm0, %v2042_v54, %v2041_v53  ;;  %v2044_v58 = vld [vmem:[%s3568_s0 + $0x2f] ss:$80 sm:%s577_s15]   ;;  %v2037_v60 = vld [vmem:[%s3568_s0 + $0x15b] ss:$80 sm:%s539_s18]   ;;  %s713_s2 = smov 3  ;;  %s721_s11 = smov 48 }
  0x2e   :  { %506 = vrot.lane.b32.xlu0 %v505_v55, %s2255_s6  ;;  %v575_v59 = vsel %vm150_vm1, %v2043_v57, %v570_v56  ;;  %v1954_v61 = vld [vmem:[%s3568_s0 + $0x20] ss:$4 sm:$0xff]   ;;  %v2038_v63 = vld [vmem:[%s3568_s0 + $0x15b] ss:$80 sm:%s542_s23]   ;;  %s592_s23 = smov 12  ;;  %s971_s9 = smov 48 }
  0x2f   :  { %v580_v62 = vsel %vm155_vm2, %v2044_v58, %v575_v59  ;;  %v2039_v0 = vld [vmem:[%s3568_s0 + $0x1f] ss:$80 sm:%s547_s24]   ;;  %12 = vst.msk [vmem:[#allocation0 + $0x40] ss:$8 sm:$0xf0] %vm3_vm3, %v1954_v61   ;;  %v545_v1 = vsel %vm145_vm0, %v2038_v63, %v2037_v60  ;;  %s597_s24 = smov 48 }
  0x30   :  { %10 = vst.msk [vmem:[#allocation0 + $0x40] ss:$8 sm:$0xf] %vm3_vm3, %v1954_v61   ;;  %581 = vrot.lane.b32.xlu1 %v580_v62, %s2255_s6  ;;  %v2040_v2 = vld [vmem:[%s3568_s0 + $0x1f] ss:$80 sm:%s552_s29]   ;;  %v550_v4 = vsel %vm150_vm1, %v2039_v0, %v545_v1  ;;  %s602_s29 = smov 192 }
  0x31   :  { %v1957_v3 = vld [vmem:[%s3568_s0 + $0x80] ss:$4 sm:$0xff]   ;;  %v2049_v5 = vld [vmem:[%s3568_s0 + $0x18b] ss:$80 sm:%s614_s3]   ;;  %v555_v7 = vsel %vm155_vm2, %v2040_v2, %v550_v4  ;;  %s663_s3 = smov 3  ;;  %s976_s10 = smov 192 }
  0x32   :  { %v2050_v6 = vld [vmem:[%s3568_s0 + $0x18b] ss:$80 sm:%s617_s4]   ;;  %31 = vst.msk [vmem:[#allocation0 + $0x61] ss:$8 sm:$0xf] %vm3_vm3, %v1957_v3   ;;  %556 = vrot.lane.b32.xlu0 %v555_v7, %s2255_s6  ;;  %s666_s4 = smov 12 }
  0x33   :  { %33 = vst.msk [vmem:[#allocation0 + $0x61] ss:$8 sm:$0xf0] %vm3_vm3, %v1957_v3   ;;  %v620_v8 = vsel %vm145_vm0, %v2050_v6, %v2049_v5  ;;  %v2051_v9 = vld [vmem:[%s3568_s0 + $0x4f] ss:$80 sm:%s622_s12]   ;;  %s671_s12 = smov 48 }
  0x34   :  { %v2052_v10 = vld [vmem:[%s3568_s0 + $0x4f] ss:$80 sm:%s627_s13]   ;;  %v625_v11 = vsel %vm150_vm1, %v2051_v9, %v620_v8  ;;  %v2045_v12 = vld [vmem:[%s3568_s0 + $0x17b] ss:$80 sm:%s589_s16]   ;;  %s676_s13 = smov 192  ;;  %s639_s16 = smov 3 }
  0x35   :  { %v1959_v13 = vld [vmem:[%s3568_s0 + $0xc0] ss:$4 sm:$0xff]   ;;  %v630_v14 = vsel %vm155_vm2, %v2052_v10, %v625_v11  ;;  %v2046_v15 = vld [vmem:[%s3568_s0 + $0x17b] ss:$80 sm:%s592_s23]   ;;  %s642_s23 = smov 12  ;;  %s938_s14 = smov 3 }
  0x36   :  { %v2047_v16 = vld [vmem:[%s3568_s0 + $0x3f] ss:$80 sm:%s597_s24]   ;;  %47 = vst.msk [vmem:[#allocation0 + $0x42] ss:$8 sm:$0xf0] %vm3_vm3, %v1959_v13   ;;  %631 = vrot.lane.b32.xlu1 %v630_v14, %s2255_s6  ;;  %v595_v17 = vsel %vm145_vm0, %v2046_v15, %v2045_v12  ;;  %s647_s24 = smov 48 }
  0x37   :  { %45 = vst.msk [vmem:[#allocation0 + $0x42] ss:$8 sm:$0xf] %vm3_vm3, %v1959_v13   ;;  %v2048_v18 = vld [vmem:[%s3568_s0 + $0x3f] ss:$80 sm:%s602_s29]   ;;  %v600_v20 = vsel %vm150_vm1, %v2047_v16, %v595_v17  ;;  %s652_s29 = smov 192 }
  0x38   :  { %v1962_v19 = vld [vmem:[%s3568_s0 + $0x120] ss:$4 sm:$0xff]   ;;  %v2057_v21 = vld [vmem:[%s3568_s0 + $0x12] ss:$80 sm:%s663_s3]   ;;  %v605_v23 = vsel %vm155_vm2, %v2048_v18, %v600_v20  ;;  %s716_s3 = smov 12  ;;  %s941_s19 = smov 12 }
  0x39   :  { %v2058_v22 = vld [vmem:[%s3568_s0 + $0x12] ss:$80 sm:%s666_s4]   ;;  %66 = vst.msk [vmem:[#allocation0 + $0x63] ss:$8 sm:$0xf] %vm3_vm3, %v1962_v19   ;;  %606 = vrot.lane.b32.xlu0 %v605_v23, %s2255_s6  ;;  %s946_s20 = smov 48 }
  0x3a   :  { %68 = vst.msk [vmem:[#allocation0 + $0x63] ss:$8 sm:$0xf0] %vm3_vm3, %v1962_v19   ;;  %v669_v24 = vsel %vm145_vm0, %v2058_v22, %v2057_v21  ;;  %v2059_v25 = vld [vmem:[%s3568_s0 - $0x12a] ss:$80 sm:%s671_s12]   ;;  %s726_s12 = smov 192 }
  0x3b   :  { %v2060_v26 = vld [vmem:[%s3568_s0 - $0x12a] ss:$80 sm:%s676_s13]   ;;  %v674_v27 = vsel %vm150_vm1, %v2059_v25, %v669_v24  ;;  %v2053_v28 = vld [vmem:[%s3568_s0 + $0x2] ss:$80 sm:%s639_s16]   ;;  %s2256_s13 = smov 64   ;;  %s688_s16 = smov 3 }
  0x3c   :  { %v1963_v29 = vld [vmem:[%s3568_s0 + $0x140] ss:$4 sm:$0xff]   ;;  %v679_v30 = vsel %vm155_vm2, %v2060_v26, %v674_v27  ;;  %v2054_v31 = vld [vmem:[%s3568_s0 + $0x2] ss:$80 sm:%s642_s23]   ;;  %s691_s23 = smov 12  ;;  %s951_s25 = smov 192 }
  0x3d   :  { %v2055_v32 = vld [vmem:[%s3568_s0 - $0x13a] ss:$80 sm:%s647_s24]   ;;  %73 = vst.msk [vmem:[#allocation0 + $0xa0] ss:$8 sm:$0xf] %vm3_vm3, %v1963_v29   ;;  %680 = vrot.lane.b32.xlu1 %v679_v30, %s2256_s13  ;;  %v645_v33 = vsel %vm145_vm0, %v2054_v31, %v2053_v28  ;;  %s696_s24 = smov 48 }
  0x3e   :  { %75 = vst.msk [vmem:[#allocation0 + $0xa0] ss:$8 sm:$0xf0] %vm3_vm3, %v1963_v29   ;;  %v2056_v34 = vld [vmem:[%s3568_s0 - $0x13a] ss:$80 sm:%s652_s29]   ;;  %v650_v36 = vsel %vm150_vm1, %v2055_v32, %v645_v33  ;;  %s701_s29 = smov 192 }
  0x3f   :  { %v1965_v35 = vld [vmem:[%s3568_s0 + $0x180] ss:$4 sm:$0xff]   ;;  %v2065_v37 = vld [vmem:[%s3568_s0 + $0x32] ss:$80 sm:%s713_s2]   ;;  %v655_v39 = vsel %vm155_vm2, %v2056_v34, %v650_v36  ;;  %s763_s2 = smov 3  ;;  %s1013_s28 = smov 3 }
  0x40   :  { %v2066_v38 = vld [vmem:[%s3568_s0 + $0x32] ss:$80 sm:%s716_s3]   ;;  %89 = vst.msk [vmem:[#allocation0 + $0x81] ss:$8 sm:$0xf0] %vm3_vm3, %v1965_v35   ;;  %656 = vrot.lane.b32.xlu0 %v655_v39, %s2256_s13  ;;  %s766_s3 = smov 12 }
  0x41   :  { %87 = vst.msk [vmem:[#allocation0 + $0x120] ss:$8 sm:$0xf] %vm3_vm3, %v1965_v35   ;;  %v719_v40 = vsel %vm145_vm0, %v2066_v38, %v2065_v37  ;;  %v2067_v41 = vld [vmem:[%s3568_s0 - $0x10a] ss:$80 sm:%s721_s11]   ;;  %s771_s11 = smov 48 }
  0x42   :  { %v2068_v42 = vld [vmem:[%s3568_s0 - $0x10a] ss:$80 sm:%s726_s12]   ;;  %v724_v43 = vsel %vm150_vm1, %v2067_v41, %v719_v40  ;;  %v2061_v44 = vld [vmem:[%s3568_s0 + $0x22] ss:$80 sm:%s688_s16]   ;;  %s776_s12 = smov 192  ;;  %s738_s16 = smov 3 }
  0x43   :  { %v1968_v45 = vld [vmem:[%s3568_s0 + $0x1e0] ss:$4 sm:$0xff]   ;;  %v729_v46 = vsel %vm155_vm2, %v2068_v42, %v724_v43  ;;  %v2062_v47 = vld [vmem:[%s3568_s0 + $0x22] ss:$80 sm:%s691_s23]   ;;  %s741_s23 = smov 12  ;;  %s1021_s4 = smov 48 }
  0x44   :  { %v2063_v48 = vld [vmem:[%s3568_s0 - $0x11a] ss:$80 sm:%s696_s24]   ;;  %108 = vst.msk [vmem:[#allocation0 + $0xa2] ss:$8 sm:$0xf] %vm3_vm3, %v1968_v45   ;;  %730 = vrot.lane.b32.xlu1 %v729_v46, %s2256_s13  ;;  %v694_v49 = vsel %vm145_vm0, %v2062_v47, %v2061_v44  ;;  %s746_s24 = smov 48 }
  0x45   :  { %110 = vst.msk [vmem:[#allocation0 + $0xa2] ss:$8 sm:$0xf0] %vm3_vm3, %v1968_v45   ;;  %v2064_v50 = vld [vmem:[%s3568_s0 - $0x11a] ss:$80 sm:%s701_s29]   ;;  %v699_v52 = vsel %vm150_vm1, %v2063_v48, %v694_v49  ;;  %s751_s29 = smov 192 }
  0x46   :  { %v1970_v51 = vld [vmem:[%s3568_s0 + $0x220] ss:$4 sm:$0xff]   ;;  %v2073_v53 = vld [vmem:[%s3568_s0 + $0x142] ss:$80 sm:%s763_s2]   ;;  %v704_v55 = vsel %vm155_vm2, %v2064_v50, %v699_v52  ;;  %s813_s2 = smov 3  ;;  %s1026_s5 = smov 192 }
  0x47   :  { %v2074_v54 = vld [vmem:[%s3568_s0 + $0x142] ss:$80 sm:%s766_s3]   ;;  %124 = vst.msk [vmem:[#allocation0 + $0x83] ss:$8 sm:$0xf0] %vm3_vm3, %v1970_v51   ;;  %705 = vrot.lane.b32.xlu0 %v704_v55, %s2256_s13  ;;  %s816_s3 = smov 12 }
  0x48   :  { %122 = vst.msk [vmem:[#allocation0 + $0x122] ss:$8 sm:$0xf] %vm3_vm3, %v1970_v51   ;;  %v769_v56 = vsel %vm145_vm0, %v2074_v54, %v2073_v53  ;;  %v2075_v57 = vld [vmem:[%s3568_s0 + $0x6] ss:$80 sm:%s771_s11]   ;;  %s821_s11 = smov 48 }
  0x49   :  { %v2076_v58 = vld [vmem:[%s3568_s0 + $0x6] ss:$80 sm:%s776_s12]   ;;  %v774_v59 = vsel %vm150_vm1, %v2075_v57, %v769_v56  ;;  %v2069_v60 = vld [vmem:[%s3568_s0 + $0x42] ss:$80 sm:%s738_s16]   ;;  %s826_s12 = smov 192  ;;  %s788_s16 = smov 3 }
  0x4a   :  { %v1964_v61 = vld [vmem:[%s3568_s0 + $0x160] ss:$4 sm:$0xff]   ;;  %v779_v62 = vsel %vm155_vm2, %v2076_v58, %v774_v59  ;;  %v2070_v63 = vld [vmem:[%s3568_s0 + $0x42] ss:$80 sm:%s741_s23]   ;;  %s791_s23 = smov 12  ;;  %s991_s15 = smov 12 }
  0x4b   :  { %v2071_v0 = vld [vmem:[%s3568_s0 - $0xfa] ss:$80 sm:%s746_s24]   ;;  %80 = vst.msk [vmem:[#allocation0 + $0xe0] ss:$8 sm:$0xf] %vm3_vm3, %v1964_v61   ;;  %780 = vrot.lane.b32.xlu1 %v779_v62, %s2256_s13  ;;  %v744_v1 = vsel %vm145_vm0, %v2070_v63, %v2069_v60  ;;  %s796_s24 = smov 48 }
  0x4c   :  { %82 = vst.msk [vmem:[#allocation0 + $0xe0] ss:$8 sm:$0xf0] %vm3_vm3, %v1964_v61   ;;  %v2072_v2 = vld [vmem:[%s3568_s0 - $0xfa] ss:$80 sm:%s751_s29]   ;;  %v749_v4 = vsel %vm150_vm1, %v2071_v0, %v744_v1  ;;  %s801_s29 = smov 192 }
  0x4d   :  { %v1966_v3 = vld [vmem:[%s3568_s0 + $0x1a0] ss:$4 sm:$0xff]   ;;  %v2081_v5 = vld [vmem:[%s3568_s0 + $0x162] ss:$80 sm:%s813_s2]   ;;  %v754_v7 = vsel %vm155_vm2, %v2072_v2, %v749_v4  ;;  %s863_s2 = smov 3  ;;  %s1001_s21 = smov 192 }
  0x4e   :  { %v2082_v6 = vld [vmem:[%s3568_s0 + $0x162] ss:$80 sm:%s816_s3]   ;;  %96 = vst.msk [vmem:[#allocation0 + $0xc1] ss:$8 sm:$0xf0] %vm3_vm3, %v1966_v3   ;;  %755 = vrot.lane.b32.xlu0 %v754_v7, %s2256_s13  ;;  %s866_s3 = smov 12 }
  0x4f   :  { %94 = vst.msk [vmem:[#allocation0 + $0xc1] ss:$8 sm:$0xf] %vm3_vm3, %v1966_v3   ;;  %v819_v8 = vsel %vm145_vm0, %v2082_v6, %v2081_v5  ;;  %v2083_v9 = vld [vmem:[%s3568_s0 + $0x26] ss:$80 sm:%s821_s11]   ;;  %s871_s11 = smov 48 }
  0x50   :  { %v2084_v10 = vld [vmem:[%s3568_s0 + $0x26] ss:$80 sm:%s826_s12]   ;;  %v824_v11 = vsel %vm150_vm1, %v2083_v9, %v819_v8  ;;  %v2077_v12 = vld [vmem:[%s3568_s0 + $0x152] ss:$80 sm:%s788_s16]   ;;  %s876_s12 = smov 192  ;;  %s838_s16 = smov 3 }
  0x51   :  { %v1969_v13 = vld [vmem:[%s3568_s0 + $0x200] ss:$4 sm:$0xff]   ;;  %v829_v14 = vsel %vm155_vm2, %v2084_v10, %v824_v11  ;;  %v2078_v15 = vld [vmem:[%s3568_s0 + $0x152] ss:$80 sm:%s791_s23]   ;;  %s841_s23 = smov 12  ;;  %s1071_s6 = smov 48 }
  0x52   :  { %v2079_v16 = vld [vmem:[%s3568_s0 + $0x16] ss:$80 sm:%s796_s24]   ;;  %115 = vst.msk [vmem:[#allocation0 + $0xe2] ss:$8 sm:$0xf] %vm3_vm3, %v1969_v13   ;;  %830 = vrot.lane.b32.xlu1 %v829_v14, %s2256_s13  ;;  %v794_v17 = vsel %vm145_vm0, %v2078_v15, %v2077_v12  ;;  %s846_s24 = smov 48 }
  0x53   :  { %117 = vst.msk [vmem:[#allocation0 + $0xe2] ss:$8 sm:$0xf0] %vm3_vm3, %v1969_v13   ;;  %v2080_v18 = vld [vmem:[%s3568_s0 + $0x16] ss:$80 sm:%s801_s29]   ;;  %v799_v20 = vsel %vm150_vm1, %v2079_v16, %v794_v17  ;;  %s851_s29 = smov 192 }
  0x54   :  { %v1971_v19 = vld [vmem:[%s3568_s0 + $0x240] ss:$4 sm:$0xff]   ;;  %v2089_v21 = vld [vmem:[%s3568_s0 + $0x182] ss:$80 sm:%s863_s2]   ;;  %v804_v23 = vsel %vm155_vm2, %v2080_v18, %v799_v20  ;;  %s913_s2 = smov 3  ;;  %s1076_s30 = smov 192 }
  0x55   :  { %v2090_v22 = vld [vmem:[%s3568_s0 + $0x182] ss:$80 sm:%s866_s3]   ;;  %131 = vst.msk [vmem:[#allocation0 + $0xc3] ss:$8 sm:$0xf0] %vm3_vm3, %v1971_v19   ;;  %805 = vrot.lane.b32.xlu0 %v804_v23, %s2256_s13  ;;  %s916_s3 = smov 12 }
  0x56   :  { %129 = vst.msk [vmem:[#allocation0 + $0xc3] ss:$8 sm:$0xf] %vm3_vm3, %v1971_v19   ;;  %v869_v24 = vsel %vm145_vm0, %v2090_v22, %v2089_v21  ;;  %v2091_v25 = vld [vmem:[%s3568_s0 + $0x46] ss:$80 sm:%s871_s11]   ;;  %s921_s11 = smov 48 }
  0x57   :  { %v2092_v26 = vld [vmem:[%s3568_s0 + $0x46] ss:$80 sm:%s876_s12]   ;;  %v874_v27 = vsel %vm150_vm1, %v2091_v25, %v869_v24  ;;  %v2085_v28 = vld [vmem:[%s3568_s0 + $0x172] ss:$80 sm:%s838_s16]   ;;  %s926_s12 = smov 192  ;;  %s888_s16 = smov 3 }
  0x58   :  { %v1967_v29 = vld [vmem:[%s3568_s0 + $0x1c0] ss:$4 sm:$0xff]   ;;  %v879_v30 = vsel %vm155_vm2, %v2092_v26, %v874_v27  ;;  %v2086_v31 = vld [vmem:[%s3568_s0 + $0x172] ss:$80 sm:%s841_s23]   ;;  %s891_s23 = smov 12  ;;  %s1051_s17 = smov 192 }
  0x59   :  { %v2087_v32 = vld [vmem:[%s3568_s0 + $0x36] ss:$80 sm:%s846_s24]   ;;  %103 = vst.msk [vmem:[#allocation0 + $0x101] ss:$8 sm:$0xf0] %vm3_vm3, %v1967_v29   ;;  %880 = vrot.lane.b32.xlu1 %v879_v30, %s2256_s13  ;;  %v844_v33 = vsel %vm145_vm0, %v2086_v31, %v2085_v28  ;;  %s896_s24 = smov 48 }
  0x5a   :  { %101 = vst.msk [vmem:[#allocation0 + $0x101] ss:$8 sm:$0xf] %vm3_vm3, %v1967_v29   ;;  %v2088_v34 = vld [vmem:[%s3568_s0 + $0x36] ss:$80 sm:%s851_s29]   ;;  %v849_v36 = vsel %vm150_vm1, %v2087_v32, %v844_v33  ;;  %s901_s29 = smov 192 }
  0x5b   :  { %v1972_v35 = vld [vmem:[%s3568_s0 + $0x260] ss:$4 sm:$0xff]   ;;  %v2097_v37 = vld [vmem:[%s3568_s0 + $0x1a] ss:$80 sm:%s913_s2]   ;;  %v854_v39 = vsel %vm155_vm2, %v2088_v34, %v849_v36  ;;  %s963_s2 = smov 3  ;;  %s1121_s26 = smov 48 }
  0x5c   :  { %v2098_v38 = vld [vmem:[%s3568_s0 + $0x1a] ss:$80 sm:%s916_s3]   ;;  %138 = vst.msk [vmem:[#allocation0 + $0x103] ss:$8 sm:$0xf0] %vm3_vm3, %v1972_v35   ;;  %855 = vrot.lane.b32.xlu0 %v854_v39, %s2256_s13  ;;  %s966_s3 = smov 12 }
  0x5d   :  { %136 = vst.msk [vmem:[#allocation0 + $0x103] ss:$8 sm:$0xf] %vm3_vm3, %v1972_v35   ;;  %v919_v40 = vsel %vm145_vm0, %v2098_v38, %v2097_v37  ;;  %v2099_v41 = vld [vmem:[%s3568_s0 - $0x122] ss:$80 sm:%s921_s11]   ;;  %s1046_s11 = smov 48 }
  0x5e   :  { %v2100_v42 = vld [vmem:[%s3568_s0 - $0x122] ss:$80 sm:%s926_s12]   ;;  %v924_v43 = vsel %vm150_vm1, %v2099_v41, %v919_v40  ;;  %v2093_v44 = vld [vmem:[%s3568_s0 + $0xa] ss:$80 sm:%s888_s16]   ;;  %s996_s16 = smov 48  ;;  %s1126_s27 = smov 192 }
  0x5f   :  { %v929_v45 = vsel %vm155_vm2, %v2100_v42, %v924_v43  ;;  %v2094_v46 = vld [vmem:[%s3568_s0 + $0xa] ss:$80 sm:%s891_s23]   ;;  %v2095_v47 = vld [vmem:[%s3568_s0 - $0x132] ss:$80 sm:%s896_s24]   ;;  %s1063_s24 = smov 3  ;;  %s1096_s7 = smov 48 }
  0x60   :  { %930 = vrot.lane.b32.xlu1 %v929_v45, %s2256_s13  ;;  %v894_v48 = vsel %vm145_vm0, %v2094_v46, %v2093_v44  ;;  %v2096_v49 = vld [vmem:[%s3568_s0 - $0x132] ss:$80 sm:%s901_s29]   ;;  %s1016_s29 = smov 12  ;;  %s1101_s12 = smov 192 }
  0x61   :  { %v899_v50 = vsel %vm150_vm1, %v2095_v47, %v894_v48  ;;  %v2105_v51 = vld [vmem:[%s3568_s0 + $0x3a] ss:$80 sm:%s963_s2]   ;;  %v2107_v55 = vld [vmem:[%s3568_s0 - $0x102] ss:$80 sm:%s971_s9]   ;;  %s988_s9 = smov 3  ;;  %s1170_s22 = smov 48 }
  0x62   :  { %v2106_v52 = vld [vmem:[%s3568_s0 + $0x3a] ss:$80 sm:%s966_s3]   ;;  %v904_v53 = vsel %vm155_vm2, %v2096_v49, %v899_v50  ;;  %v2108_v56 = vld [vmem:[%s3568_s0 - $0x102] ss:$80 sm:%s976_s10]   ;;  %s1041_s10 = smov 12  ;;  %s1175_s23 = smov 192 }
  0x63   :  { %v969_v54 = vsel %vm145_vm0, %v2106_v52, %v2105_v51  ;;  %905 = vrot.lane.b32.xlu0 %v904_v53, %s2256_s13  ;;  %v2101_v58 = vld [vmem:[%s3568_s0 + $0x2a] ss:$80 sm:%s938_s14]   ;;  %s1146_s2 = smov 48  ;;  %s1151_s8 = smov 192 }
  0x64   :  { %v974_v57 = vsel %vm150_vm1, %v2107_v55, %v969_v54  ;;  %v2102_v60 = vld [vmem:[%s3568_s0 + $0x2a] ss:$80 sm:%s941_s19]   ;;  %v2103_v61 = vld [vmem:[%s3568_s0 - $0x112] ss:$80 sm:%s946_s20]   ;;  %s1113_s20 = smov 3  ;;  %s1225_s18 = smov 192 }
  0x65   :  { %v979_v59 = vsel %vm155_vm2, %v2108_v56, %v974_v57  ;;  %v944_v62 = vsel %vm145_vm0, %v2102_v60, %v2101_v58  ;;  %v2104_v63 = vld [vmem:[%s3568_s0 - $0x112] ss:$80 sm:%s951_s25]   ;;  %v2113_v1 = vld [vmem:[%s3568_s0 + $0x14a] ss:$80 sm:%s1013_s28]   ;;  %s1066_s25 = smov 12  ;;  %s2257_s19 = smov 32  }
  0x66   :  { %980 = vrot.lane.b32.xlu1 %v979_v59, %s2256_s13  ;;  %v949_v0 = vsel %vm150_vm1, %v2103_v61, %v944_v62  ;;  %v2114_v2 = vld [vmem:[%s3568_s0 + $0x14a] ss:$80 sm:%s1016_s29]   ;;  %s1195_s28 = smov 48  ;;  %s1200_s3 = smov 192 }
  0x67   :  { %v954_v3 = vsel %vm155_vm2, %v2104_v63, %v949_v0  ;;  %v1019_v4 = vsel %vm145_vm0, %v2114_v2, %v2113_v1  ;;  %v2115_v5 = vld [vmem:[%s3568_s0 + $0xe] ss:$80 sm:%s1021_s4]   ;;  %v2109_v8 = vld [vmem:[%s3568_s0 + $0x4a] ss:$80 sm:%s988_s9]   ;;  %s1038_s4 = smov 3  ;;  %s1275_s14 = smov 192 }
  0x68   :  { %v2116_v6 = vld [vmem:[%s3568_s0 + $0xe] ss:$80 sm:%s1026_s5]   ;;  %955 = vrot.lane.b32.xlu0 %v954_v3, %s2256_s13  ;;  %v1024_v7 = vsel %vm150_vm1, %v2115_v5, %v1019_v4  ;;  %s1091_s5 = smov 12  ;;  %s1250_s29 = smov 192 }
  0x69   :  { %v1029_v9 = vsel %vm155_vm2, %v2116_v6, %v1024_v7  ;;  %v2110_v10 = vld [vmem:[%s3568_s0 + $0x4a] ss:$80 sm:%s991_s15]   ;;  %v2111_v11 = vld [vmem:[%s3568_s0 - $0xf2] ss:$80 sm:%s996_s16]   ;;  %s1162_s16 = smov 3  ;;  %s1325_s9 = smov 192 }
  0x6a   :  { %1030 = vrot.lane.b32.xlu1 %v1029_v9, %s2256_s13  ;;  %v994_v12 = vsel %vm145_vm0, %v2110_v10, %v2109_v8  ;;  %v2112_v13 = vld [vmem:[%s3568_s0 - $0xf2] ss:$80 sm:%s1001_s21]   ;;  %s1116_s21 = smov 12  ;;  %s1345_s15 = smov 48 }
  0x6b   :  { %v999_v14 = vsel %vm150_vm1, %v2111_v11, %v994_v12  ;;  %v2121_v15 = vld [vmem:[%s3568_s0 + $0x16a] ss:$80 sm:%s1063_s24]   ;;  %v2123_v19 = vld [vmem:[%s3568_s0 + $0x2e] ss:$80 sm:%s1071_s6]   ;;  %s1088_s6 = smov 3  ;;  %s1245_s24 = smov 48 }
  0x6c   :  { %v2122_v16 = vld [vmem:[%s3568_s0 + $0x16a] ss:$80 sm:%s1066_s25]   ;;  %v1004_v17 = vsel %vm155_vm2, %v2112_v13, %v999_v14  ;;  %v2124_v20 = vld [vmem:[%s3568_s0 + $0x2e] ss:$80 sm:%s1076_s30]   ;;  %s1141_s30 = smov 12  ;;  %s1300_s25 = smov 192 }
  0x6d   :  { %v1069_v18 = vsel %vm145_vm0, %v2122_v16, %v2121_v15  ;;  %1005 = vrot.lane.b32.xlu0 %v1004_v17, %s2256_s13  ;;  %v2117_v22 = vld [vmem:[%s3568_s0 + $0x15a] ss:$80 sm:%s1038_s4]   ;;  %s1370_s4 = smov 48 }
  0x6e   :  { %v1074_v21 = vsel %vm150_vm1, %v2123_v19, %v1069_v18  ;;  %v2118_v24 = vld [vmem:[%s3568_s0 + $0x15a] ss:$80 sm:%s1041_s10]   ;;  %v2119_v25 = vld [vmem:[%s3568_s0 + $0x1e] ss:$80 sm:%s1046_s11]   ;;  %s1212_s10 = smov 3  ;;  %s1215_s11 = smov 12 }
  0x6f   :  { %v1079_v23 = vsel %vm155_vm2, %v2124_v20, %v1074_v21  ;;  %v1044_v26 = vsel %vm145_vm0, %v2118_v24, %v2117_v22  ;;  %v2120_v27 = vld [vmem:[%s3568_s0 + $0x1e] ss:$80 sm:%s1051_s17]   ;;  %v2129_v29 = vld [vmem:[%s3568_s0 + $0x18a] ss:$80 sm:%s1113_s20]   ;;  %s1165_s17 = smov 12  ;;  %s1295_s20 = smov 48 }
  0x70   :  { %1080 = vrot.lane.b32.xlu1 %v1079_v23, %s2256_s13  ;;  %v1049_v28 = vsel %vm150_vm1, %v2119_v25, %v1044_v26  ;;  %v2130_v30 = vld [vmem:[%s3568_s0 + $0x18a] ss:$80 sm:%s1116_s21]   ;;  %s1350_s21 = smov 192 }
  0x71   :  { %v1054_v31 = vsel %vm155_vm2, %v2120_v27, %v1049_v28  ;;  %v1119_v32 = vsel %vm145_vm0, %v2130_v30, %v2129_v29  ;;  %v2131_v33 = vld [vmem:[%s3568_s0 + $0x4e] ss:$80 sm:%s1121_s26]   ;;  %v2125_v36 = vld [vmem:[%s3568_s0 + $0x17a] ss:$80 sm:%s1088_s6]   ;;  %s1138_s26 = smov 3  ;;  %s1420_s6 = smov 48 }
  0x72   :  { %v2132_v34 = vld [vmem:[%s3568_s0 + $0x4e] ss:$80 sm:%s1126_s27]   ;;  %1055 = vrot.lane.b32.xlu0 %v1054_v31, %s2256_s13  ;;  %v1124_v35 = vsel %vm150_vm1, %v2131_v33, %v1119_v32  ;;  %s1190_s27 = smov 12 }
  0x73   :  { %v1129_v37 = vsel %vm155_vm2, %v2132_v34, %v1124_v35  ;;  %v2126_v38 = vld [vmem:[%s3568_s0 + $0x17a] ss:$80 sm:%s1091_s5]   ;;  %v2127_v39 = vld [vmem:[%s3568_s0 + $0x3e] ss:$80 sm:%s1096_s7]   ;;  %s1262_s7 = smov 3  ;;  %s1375_s5 = smov 192 }
  0x74   :  { %1130 = vrot.lane.b32.xlu1 %v1129_v37, %s2256_s13  ;;  %v1094_v40 = vsel %vm145_vm0, %v2126_v38, %v2125_v36  ;;  %v2128_v41 = vld [vmem:[%s3568_s0 + $0x3e] ss:$80 sm:%s1101_s12]   ;;  %s1270_s12 = smov 48 }
  0x75   :  { %v1099_v42 = vsel %vm150_vm1, %v2127_v39, %v1094_v40  ;;  %v2137_v43 = vld [vmem:[%s3568_s0 + $0x11] ss:$80 sm:%s1162_s16]   ;;  %v2139_v47 = vld [vmem:[%s3568_s0 - $0x12b] ss:$80 sm:%s1170_s22]   ;;  %s1187_s22 = smov 3  ;;  %s1400_s16 = smov 192 }
  0x76   :  { %v2138_v44 = vld [vmem:[%s3568_s0 + $0x11] ss:$80 sm:%s1165_s17]   ;;  %v1104_v45 = vsel %vm155_vm2, %v2128_v41, %v1099_v42  ;;  %v2140_v48 = vld [vmem:[%s3568_s0 - $0x12b] ss:$80 sm:%s1175_s23]   ;;  %s1220_s17 = smov 48  ;;  %s1240_s23 = smov 12 }
  0x77   :  { %v1168_v46 = vsel %vm145_vm0, %v2138_v44, %v2137_v43  ;;  %1105 = vrot.lane.b32.xlu0 %v1104_v45, %s2256_s13  ;;  %v2133_v50 = vld [vmem:[%s3568_s0 + $0x1] ss:$80 sm:%s1138_s26]   ;;  %s1320_s13 = smov 48  ;;  %s1470_s26 = smov 48 }
  0x78   :  { %v1173_v49 = vsel %vm150_vm1, %v2139_v47, %v1168_v46  ;;  %v2134_v52 = vld [vmem:[%s3568_s0 + $0x1] ss:$80 sm:%s1141_s30]   ;;  %v2135_v53 = vld [vmem:[%s3568_s0 - $0x13b] ss:$80 sm:%s1146_s2]   ;;  %s1312_s2 = smov 3  ;;  %v207_v34 = vpop.permute.xlu1 %206   ;;  %s1425_s30 = smov 192 }
  0x79   :  { %v1178_v51 = vsel %vm155_vm2, %v2140_v48, %v1173_v49  ;;  %v1144_v54 = vsel %vm145_vm0, %v2134_v52, %v2133_v50  ;;  %v2136_v55 = vld [vmem:[%s3568_s0 - $0x13b] ss:$80 sm:%s1151_s8]   ;;  %v2145_v57 = vld [vmem:[%s3568_s0 + $0x31] ss:$80 sm:%s1212_s10]   ;;  %s1265_s8 = smov 12  ;;  %s1395_s10 = smov 48 }
  0x7a   :  { %1179 = vrot.lane.b32.xlu1 %v1178_v51, %s2257_s19  ;;  %v1149_v56 = vsel %vm150_vm1, %v2135_v53, %v1144_v54  ;;  %v2146_v58 = vld [vmem:[%s3568_s0 + $0x31] ss:$80 sm:%s1215_s11]   ;;  %210 = vst.msk [vmem:[#allocation0 + $0x40] sm:$0xf] %vm159_vm4, %v207_v34   ;;  %212 = vst.msk [vmem:[#allocation0 + $0x44] sm:$0xf0] %vm159_vm4, %v207_v34   ;;  %v158_v42 = vpop.permute.xlu0 %157  }
  0x7b   :  { %v1154_v59 = vsel %vm155_vm2, %v2136_v55, %v1149_v56  ;;  %v1218_v60 = vsel %vm145_vm0, %v2146_v58, %v2145_v57  ;;  %v2147_v61 = vld [vmem:[%s3568_s0 - $0x10b] ss:$80 sm:%s1220_s17]   ;;  %v2141_v0 = vld [vmem:[%s3568_s0 + $0x21] ss:$80 sm:%s1187_s22]   ;;  %s1237_s17 = smov 3  ;;  %s1450_s11 = smov 192 }
  0x7c   :  { %v2148_v62 = vld [vmem:[%s3568_s0 - $0x10b] ss:$80 sm:%s1225_s18]   ;;  %1155 = vrot.lane.b32.xlu0 %v1154_v59, %s2257_s19  ;;  %v1223_v63 = vsel %vm150_vm1, %v2147_v61, %v1218_v60  ;;  %s1290_s18 = smov 12  ;;  %160 = vst.msk [vmem:[#allocation0] sm:$0xf] %vm159_vm4, %v158_v42   ;;  %v232_v48 = vpop.permute.xlu1 %231   ;;  %s1520_s22 = smov 48 }
  0x7d   :  { %v1228_v1 = vsel %vm155_vm2, %v2148_v62, %v1223_v63  ;;  %v2142_v2 = vld [vmem:[%s3568_s0 + $0x21] ss:$80 sm:%s1190_s27]   ;;  %v2143_v3 = vld [vmem:[%s3568_s0 - $0x11b] ss:$80 sm:%s1195_s28]   ;;  %s1362_s28 = smov 3  ;;  %s1475_s27 = smov 192 }
  0x7e   :  { %1229 = vrot.lane.b32.xlu1 %v1228_v1, %s2257_s19  ;;  %v1193_v4 = vsel %vm145_vm0, %v2142_v2, %v2141_v0  ;;  %v2144_v5 = vld [vmem:[%s3568_s0 - $0x11b] ss:$80 sm:%s1200_s3]   ;;  %s1315_s3 = smov 12  ;;  %162 = vst.msk [vmem:[#allocation0 + $0x4] sm:$0xf0] %vm159_vm4, %v158_v42  }
  0x7f   :  { %v1198_v6 = vsel %vm150_vm1, %v2143_v3, %v1193_v4  ;;  %v2153_v7 = vld [vmem:[%s3568_s0 + $0x141] ss:$80 sm:%s1262_s7]   ;;  %v2155_v11 = vld [vmem:[%s3568_s0 + $0x5] ss:$80 sm:%s1270_s12]   ;;  %s1287_s12 = smov 3  ;;  %v182_v58 = vpop.permute.xlu0 %181   ;;  %s1445_s7 = smov 48 }
  0x80   :  { %v2154_v8 = vld [vmem:[%s3568_s0 + $0x141] ss:$80 sm:%s1265_s8]   ;;  %v1203_v9 = vsel %vm155_vm2, %v2144_v5, %v1198_v6  ;;  %v2156_v12 = vld [vmem:[%s3568_s0 + $0x5] ss:$80 sm:%s1275_s14]   ;;  %s1340_s14 = smov 12  ;;  %s1500_s8 = smov 192 }
  0x81   :  { %v1268_v10 = vsel %vm145_vm0, %v2154_v8, %v2153_v7  ;;  %1204 = vrot.lane.b32.xlu0 %v1203_v9, %s2257_s19  ;;  %v2149_v14 = vld [vmem:[%s3568_s0 + $0x41] ss:$80 sm:%s1237_s17]   ;;  %235 = vst.msk [vmem:[#allocation0 + $0x60] sm:$0xf] %vm159_vm4, %v232_v48   ;;  %237 = vst.msk [vmem:[#allocation0 + $0x64] sm:$0xf0] %vm159_vm4, %v232_v48  }
  0x82   :  { %v1273_v13 = vsel %vm150_vm1, %v2155_v11, %v1268_v10  ;;  %v2150_v16 = vld [vmem:[%s3568_s0 + $0x41] ss:$80 sm:%s1240_s23]   ;;  %v2151_v17 = vld [vmem:[%s3568_s0 - $0xfb] ss:$80 sm:%s1245_s24]   ;;  %s1412_s24 = smov 3  ;;  %v282_v0 = vpop.permute.xlu1 %281   ;;  %s1525_s23 = smov 192 }
  0x83   :  { %v1278_v15 = vsel %vm155_vm2, %v2156_v12, %v1273_v13  ;;  %v1243_v18 = vsel %vm145_vm0, %v2150_v16, %v2149_v14  ;;  %v2152_v19 = vld [vmem:[%s3568_s0 - $0xfb] ss:$80 sm:%s1250_s29]   ;;  %v2161_v21 = vld [vmem:[%s3568_s0 + $0x161] ss:$80 sm:%s1312_s2]   ;;  %s1365_s29 = smov 12  ;;  %s1495_s2 = smov 48 }
  0x84   :  { %1279 = vrot.lane.b32.xlu1 %v1278_v15, %s2257_s19  ;;  %v1248_v20 = vsel %vm150_vm1, %v2151_v17, %v1243_v18  ;;  %v2162_v22 = vld [vmem:[%s3568_s0 + $0x161] ss:$80 sm:%s1315_s3]   ;;  %185 = vst.msk [vmem:[#allocation0 + $0x20] sm:$0xf] %vm159_vm4, %v182_v58   ;;  %187 = vst.msk [vmem:[#allocation0 + $0x24] sm:$0xf0] %vm159_vm4, %v182_v58   ;;  %v257_v10 = vpop.permute.xlu0 %256  }
  0x85   :  { %v1253_v23 = vsel %vm155_vm2, %v2152_v19, %v1248_v20  ;;  %v1318_v24 = vsel %vm145_vm0, %v2162_v22, %v2161_v21  ;;  %v2163_v25 = vld [vmem:[%s3568_s0 + $0x25] ss:$80 sm:%s1320_s13]   ;;  %v2157_v28 = vld [vmem:[%s3568_s0 + $0x151] ss:$80 sm:%s1287_s12]   ;;  %s1337_s13 = smov 3  ;;  %s1570_s17 = smov 48 }
  0x86   :  { %v2164_v26 = vld [vmem:[%s3568_s0 + $0x25] ss:$80 sm:%s1325_s9]   ;;  %1254 = vrot.lane.b32.xlu0 %v1253_v23, %s2257_s19  ;;  %v1323_v27 = vsel %vm150_vm1, %v2163_v25, %v1318_v24  ;;  %s1390_s9 = smov 12  ;;  %285 = vst.msk [vmem:[#allocation0 + $0xa0] sm:$0xf] %vm159_vm4, %v282_v0   ;;  %v332_v16 = vpop.permute.xlu1 %331   ;;  %s1550_s3 = smov 192 }
  0x87   :  { %v1328_v29 = vsel %vm155_vm2, %v2164_v26, %v1323_v27  ;;  %v2158_v30 = vld [vmem:[%s3568_s0 + $0x151] ss:$80 sm:%s1290_s18]   ;;  %v2159_v31 = vld [vmem:[%s3568_s0 + $0x15] ss:$80 sm:%s1295_s20]   ;;  %s1462_s20 = smov 3  ;;  %s1575_s18 = smov 192 }
  0x88   :  { %1329 = vrot.lane.b32.xlu1 %v1328_v29, %s2257_s19  ;;  %v1293_v32 = vsel %vm145_vm0, %v2158_v30, %v2157_v28  ;;  %v2160_v33 = vld [vmem:[%s3568_s0 + $0x15] ss:$80 sm:%s1300_s25]   ;;  %s1415_s25 = smov 12  ;;  %287 = vst.msk [vmem:[#allocation0 + $0xa4] sm:$0xf0] %vm159_vm4, %v282_v0   ;;  %s1620_s12 = smov 48 }
  0x89   :  { %v1298_v35 = vsel %vm150_vm1, %v2159_v31, %v1293_v32  ;;  %v2169_v36 = vld [vmem:[%s3568_s0 + $0x181] ss:$80 sm:%s1362_s28]   ;;  %v2171_v40 = vld [vmem:[%s3568_s0 + $0x45] ss:$80 sm:%s1370_s4]   ;;  %s1387_s4 = smov 3  ;;  %v307_v26 = vpop.permute.xlu0 %306   ;;  %s1545_s28 = smov 48 }
  0x8a   :  { %v2170_v37 = vld [vmem:[%s3568_s0 + $0x181] ss:$80 sm:%s1365_s29]   ;;  %v1303_v38 = vsel %vm155_vm2, %v2160_v33, %v1298_v35  ;;  %v2172_v41 = vld [vmem:[%s3568_s0 + $0x45] ss:$80 sm:%s1375_s5]   ;;  %s1440_s5 = smov 12  ;;  %s1600_s29 = smov 192 }
  0x8b   :  { %v1368_v39 = vsel %vm145_vm0, %v2170_v37, %v2169_v36  ;;  %1304 = vrot.lane.b32.xlu0 %v1303_v38, %s2257_s19  ;;  %v2165_v44 = vld [vmem:[%s3568_s0 + $0x171] ss:$80 sm:%s1337_s13]   ;;  %260 = vst.msk [vmem:[#allocation0 + $0x80] sm:$0xf] %vm159_vm4, %v257_v10   ;;  %262 = vst.msk [vmem:[#allocation0 + $0x84] sm:$0xf0] %vm159_vm4, %v257_v10  }
  0x8c   :  { %v1373_v43 = vsel %vm150_vm1, %v2171_v40, %v1368_v39  ;;  %v2166_v46 = vld [vmem:[%s3568_s0 + $0x171] ss:$80 sm:%s1340_s14]   ;;  %v2167_v47 = vld [vmem:[%s3568_s0 + $0x35] ss:$80 sm:%s1345_s15]   ;;  %s1512_s15 = smov 3  ;;  %v382_v32 = vpop.permute.xlu1 %381   ;;  %s1625_s14 = smov 192 }
  0x8d   :  { %v1378_v45 = vsel %vm155_vm2, %v2172_v41, %v1373_v43  ;;  %v1343_v49 = vsel %vm145_vm0, %v2166_v46, %v2165_v44  ;;  %v2168_v50 = vld [vmem:[%s3568_s0 + $0x35] ss:$80 sm:%s1350_s21]   ;;  %v2177_v52 = vld [vmem:[%s3568_s0 + $0x19] ss:$80 sm:%s1412_s24]   ;;  %s1465_s21 = smov 12  ;;  %s1595_s24 = smov 48 }
  0x8e   :  { %1379 = vrot.lane.b32.xlu1 %v1378_v45, %s2257_s19  ;;  %v1348_v51 = vsel %vm150_vm1, %v2167_v47, %v1343_v49  ;;  %v2178_v53 = vld [vmem:[%s3568_s0 + $0x19] ss:$80 sm:%s1415_s25]   ;;  %335 = vst.msk [vmem:[#allocation0 + $0xe0] sm:$0xf] %vm159_vm4, %v332_v16   ;;  %337 = vst.msk [vmem:[#allocation0 + $0xe4] sm:$0xf0] %vm159_vm4, %v332_v16   ;;  %v357_v42 = vpop.permute.xlu0 %356  }
  0x8f   :  { %v1353_v54 = vsel %vm155_vm2, %v2168_v50, %v1348_v51  ;;  %v1418_v55 = vsel %vm145_vm0, %v2178_v53, %v2177_v52  ;;  %v2179_v56 = vld [vmem:[%s3568_s0 - $0x123] ss:$80 sm:%s1420_s6]   ;;  %v2173_v60 = vld [vmem:[%s3568_s0 + $0x9] ss:$80 sm:%s1387_s4]   ;;  %s1437_s6 = smov 3 }
  0x90   :  { %v2180_v57 = vld [vmem:[%s3568_s0 - $0x123] ss:$80 sm:%s1425_s30]   ;;  %1354 = vrot.lane.b32.xlu0 %v1353_v54, %s2257_s19  ;;  %v1423_v59 = vsel %vm150_vm1, %v2179_v56, %v1418_v55  ;;  %s1490_s30 = smov 12  ;;  %310 = vst.msk [vmem:[#allocation0 + $0xc0] sm:$0xf] %vm159_vm4, %v307_v26   ;;  %v432_v48 = vpop.permute.xlu1 %431  }
  0x91   :  { %v1428_v61 = vsel %vm155_vm2, %v2180_v57, %v1423_v59  ;;  %v2174_v62 = vld [vmem:[%s3568_s0 + $0x9] ss:$80 sm:%s1390_s9]   ;;  %v2175_v63 = vld [vmem:[%s3568_s0 - $0x133] ss:$80 sm:%s1395_s10]   ;;  %s1562_s10 = smov 3 }
  0x92   :  { %1429 = vrot.lane.b32.xlu1 %v1428_v61, %s2257_s19  ;;  %v1393_v1 = vsel %vm145_vm0, %v2174_v62, %v2173_v60  ;;  %v2176_v2 = vld [vmem:[%s3568_s0 - $0x133] ss:$80 sm:%s1400_s16]   ;;  %s1515_s16 = smov 12  ;;  %312 = vst.msk [vmem:[#allocation0 + $0xc4] sm:$0xf0] %vm159_vm4, %v307_v26  }
  0x93   :  { %v1398_v3 = vsel %vm150_vm1, %v2175_v63, %v1393_v1  ;;  %v2185_v4 = vld [vmem:[%s3568_s0 + $0x39] ss:$80 sm:%s1462_s20]   ;;  %v2187_v8 = vld [vmem:[%s3568_s0 - $0x103] ss:$80 sm:%s1470_s26]   ;;  %s1487_s26 = smov 3 }
  0x94   :  { %v2186_v5 = vld [vmem:[%s3568_s0 + $0x39] ss:$80 sm:%s1465_s21]   ;;  %v1403_v6 = vsel %vm155_vm2, %v2176_v2, %v1398_v3  ;;  %v2188_v9 = vld [vmem:[%s3568_s0 - $0x103] ss:$80 sm:%s1475_s27]   ;;  %385 = vst.msk [vmem:[#allocation0 + $0x120] sm:$0xf] %vm159_vm4, %v382_v32   ;;  %v407_v58 = vpop.permute.xlu0 %406  }
  0x95   :  { %v1468_v7 = vsel %vm145_vm0, %v2186_v5, %v2185_v4  ;;  %1404 = vrot.lane.b32.xlu0 %v1403_v6, %s2257_s19  ;;  %v2181_v12 = vld [vmem:[%s3568_s0 + $0x29] ss:$80 sm:%s1437_s6]   ;;  %387 = vst.msk [vmem:[#allocation0 + $0x124] sm:$0xf0] %vm159_vm4, %v382_v32   ;;  %s1540_s27 = smov 12 }
  0x96   :  { %v1473_v11 = vsel %vm150_vm1, %v2187_v8, %v1468_v7  ;;  %v2182_v14 = vld [vmem:[%s3568_s0 + $0x29] ss:$80 sm:%s1440_s5]   ;;  %v2183_v15 = vld [vmem:[%s3568_s0 - $0x113] ss:$80 sm:%s1445_s7]   ;;  %s1612_s7 = smov 3  ;;  %v482_v0 = vpop.permute.xlu1 %481  }
  0x97   :  { %v1478_v13 = vsel %vm155_vm2, %v2188_v9, %v1473_v11  ;;  %v1443_v17 = vsel %vm145_vm0, %v2182_v14, %v2181_v12  ;;  %v2184_v18 = vld [vmem:[%s3568_s0 - $0x113] ss:$80 sm:%s1450_s11]   ;;  %v2193_v20 = vld [vmem:[%s3568_s0 + $0x149] ss:$80 sm:%s1512_s15]   ;;  %s1565_s11 = smov 12 }
  0x98   :  { %1479 = vrot.lane.b32.xlu1 %v1478_v13, %s2257_s19  ;;  %v1448_v19 = vsel %vm150_vm1, %v2183_v15, %v1443_v17  ;;  %v2194_v21 = vld [vmem:[%s3568_s0 + $0x149] ss:$80 sm:%s1515_s16]   ;;  %360 = vst.msk [vmem:[#allocation0 + $0x100] sm:$0xf] %vm159_vm4, %v357_v42   ;;  %362 = vst.msk [vmem:[#allocation0 + $0x104] sm:$0xf0] %vm159_vm4, %v357_v42  }
  0x99   :  { %v1453_v22 = vsel %vm155_vm2, %v2184_v18, %v1448_v19  ;;  %v1518_v23 = vsel %vm145_vm0, %v2194_v21, %v2193_v20  ;;  %v2195_v24 = vld [vmem:[%s3568_s0 + $0xd] ss:$80 sm:%s1520_s22]   ;;  %v2189_v28 = vld [vmem:[%s3568_s0 + $0x49] ss:$80 sm:%s1487_s26]   ;;  %s1537_s22 = smov 3 }
  0x9a   :  { %v2196_v25 = vld [vmem:[%s3568_s0 + $0xd] ss:$80 sm:%s1525_s23]   ;;  %1454 = vrot.lane.b32.xlu0 %v1453_v22, %s2257_s19  ;;  %v1523_v27 = vsel %vm150_vm1, %v2195_v24, %v1518_v23  ;;  %435 = vst.msk [vmem:[#allocation0 + $0x30] sm:$0xf] %vm159_vm4, %v432_v48   ;;  %437 = vst.msk [vmem:[#allocation0 + $0x34] sm:$0xf0] %vm159_vm4, %v432_v48   ;;  %v457_v5 = vpop.permute.xlu0 %456  }
  0x9b   :  { %v1528_v29 = vsel %vm155_vm2, %v2196_v25, %v1523_v27  ;;  %v2190_v30 = vld [vmem:[%s3568_s0 + $0x49] ss:$80 sm:%s1490_s30]   ;;  %v2191_v31 = vld [vmem:[%s3568_s0 - $0xf3] ss:$80 sm:%s1495_s2]   ;;  %s1590_s23 = smov 12 }
  0x9c   :  { %1529 = vrot.lane.b32.xlu1 %v1528_v29, %s2257_s19  ;;  %v1493_v33 = vsel %vm145_vm0, %v2190_v30, %v2189_v28  ;;  %v2192_v34 = vld [vmem:[%s3568_s0 - $0xf3] ss:$80 sm:%s1500_s8]   ;;  %s1615_s8 = smov 12  ;;  %410 = vst.msk [vmem:[#allocation0 + $0x10] sm:$0xf] %vm159_vm4, %v407_v58   ;;  %v532_v6 = vpop.permute.xlu1 %531  }
  0x9d   :  { %v1498_v35 = vsel %vm150_vm1, %v2191_v31, %v1493_v33  ;;  %v2201_v36 = vld [vmem:[%s3568_s0 + $0x169] ss:$80 sm:%s1562_s10]   ;;  %v2203_v40 = vld [vmem:[%s3568_s0 + $0x2d] ss:$80 sm:%s1570_s17]   ;;  %s1587_s17 = smov 3 }
  0x9e   :  { %v2202_v37 = vld [vmem:[%s3568_s0 + $0x169] ss:$80 sm:%s1565_s11]   ;;  %v1503_v38 = vsel %vm155_vm2, %v2192_v34, %v1498_v35  ;;  %v2204_v41 = vld [vmem:[%s3568_s0 + $0x2d] ss:$80 sm:%s1575_s18]   ;;  %412 = vst.msk [vmem:[#allocation0 + $0x14] sm:$0xf0] %vm159_vm4, %v407_v58  }
  0x9f   :  { %v1568_v39 = vsel %vm145_vm0, %v2202_v37, %v2201_v36  ;;  %1504 = vrot.lane.b32.xlu0 %v1503_v38, %s2257_s19  ;;  %v2197_v44 = vld [vmem:[%s3568_s0 + $0x159] ss:$80 sm:%s1537_s22]   ;;  %485 = vst.msk [vmem:[#allocation0 + $0x70] sm:$0xf] %vm159_vm4, %v482_v0   ;;  %487 = vst.msk [vmem:[#allocation0 + $0x74] sm:$0xf0] %vm159_vm4, %v482_v0  }
  0xa0   :  { %v1573_v43 = vsel %vm150_vm1, %v2203_v40, %v1568_v39  ;;  %v2198_v46 = vld [vmem:[%s3568_s0 + $0x159] ss:$80 sm:%s1540_s27]   ;;  %v2199_v47 = vld [vmem:[%s3568_s0 + $0x1d] ss:$80 sm:%s1545_s28]   ;;  %460 = vst.msk [vmem:[#allocation0 + $0x50] sm:$0xf] %vm159_vm4, %v457_v5   ;;  %v507_v7 = vpop.permute.xlu0 %506  }
  0xa1   :  { %v1578_v45 = vsel %vm155_vm2, %v2204_v41, %v1573_v43  ;;  %v1543_v49 = vsel %vm145_vm0, %v2198_v46, %v2197_v44  ;;  %v2200_v50 = vld [vmem:[%s3568_s0 + $0x1d] ss:$80 sm:%s1550_s3]   ;;  %v2209_v52 = vld [vmem:[%s3568_s0 + $0x189] ss:$80 sm:%s1612_s7]   ;;  %462 = vst.msk [vmem:[#allocation0 + $0x54] sm:$0xf0] %vm159_vm4, %v457_v5  }
  0xa2   :  { %1579 = vrot.lane.b32.xlu1 %v1578_v45, %s2257_s19  ;;  %v1548_v51 = vsel %vm150_vm1, %v2199_v47, %v1543_v49  ;;  %v2210_v53 = vld [vmem:[%s3568_s0 + $0x189] ss:$80 sm:%s1615_s8]   ;;  %535 = vst.msk [vmem:[#allocation0 + $0xb0] sm:$0xf] %vm159_vm4, %v532_v6   ;;  %537 = vst.msk [vmem:[#allocation0 + $0xb4] sm:$0xf0] %vm159_vm4, %v532_v6   ;;  %v582_v8 = vpop.permute.xlu1 %581  }
  0xa3   :  { %v1553_v54 = vsel %vm155_vm2, %v2200_v50, %v1548_v51  ;;  %v1618_v55 = vsel %vm145_vm0, %v2210_v53, %v2209_v52  ;;  %v2211_v56 = vld [vmem:[%s3568_s0 + $0x4d] ss:$80 sm:%s1620_s12]   ;;  %v2205_v60 = vld [vmem:[%s3568_s0 + $0x179] ss:$80 sm:%s1587_s17]   ;;  %510 = vst.msk [vmem:[#allocation0 + $0x90] sm:$0xf] %vm159_vm4, %v507_v7  }
  0xa4   :  { %v2212_v57 = vld [vmem:[%s3568_s0 + $0x4d] ss:$80 sm:%s1625_s14]   ;;  %1554 = vrot.lane.b32.xlu0 %v1553_v54, %s2257_s19  ;;  %v1623_v59 = vsel %vm150_vm1, %v2211_v56, %v1618_v55  ;;  %512 = vst.msk [vmem:[#allocation0 + $0x94] sm:$0xf0] %vm159_vm4, %v507_v7   ;;  %585 = vst.msk [vmem:[#allocation0 + $0xf0] sm:$0xf] %vm159_vm4, %v582_v8   ;;  %v557_v9 = vpop.permute.xlu0 %556  }
  0xa5   :  { %v1628_v61 = vsel %vm155_vm2, %v2212_v57, %v1623_v59  ;;  %v2206_v62 = vld [vmem:[%s3568_s0 + $0x179] ss:$80 sm:%s1590_s23]   ;;  %v2207_v63 = vld [vmem:[%s3568_s0 + $0x3d] ss:$80 sm:%s1595_s24]   ;;  %587 = vst.msk [vmem:[#allocation0 + $0xf4] sm:$0xf0] %vm159_vm4, %v582_v8  }
  0xa6   :  { %1629 = vrot.lane.b32.xlu1 %v1628_v61, %s2257_s19  ;;  %v1593_v1 = vsel %vm145_vm0, %v2206_v62, %v2205_v60  ;;  %v2208_v2 = vld [vmem:[%s3568_s0 + $0x3d] ss:$80 sm:%s1600_s29]   ;;  %560 = vst.msk [vmem:[#allocation0 + $0xd0] sm:$0xf] %vm159_vm4, %v557_v9   ;;  %562 = vst.msk [vmem:[#allocation0 + $0xd4] sm:$0xf0] %vm159_vm4, %v557_v9  }
  0xa7   :  { %v1598_v3 = vsel %vm150_vm1, %v2207_v63, %v1593_v1 }
  0xa8   :  { %v1603_v4 = vsel %vm155_vm2, %v2208_v2, %v1598_v3  ;;  %v632_v10 = vpop.permute.xlu1 %631  }
  0xa9   :  { %1604 = vrot.lane.b32.xlu0 %v1603_v4, %s2257_s19  ;;  %635 = vst.msk [vmem:[#allocation0 + $0x130] sm:$0xf] %vm159_vm4, %v632_v10   ;;  %637 = vst.msk [vmem:[#allocation0 + $0x134] sm:$0xf0] %vm159_vm4, %v632_v10  }
  0xab   :  { %v607_v11 = vpop.permute.xlu0 %606  }
  0xac   :  { %610 = vst.msk [vmem:[#allocation0 + $0x110] sm:$0xf] %vm159_vm4, %v607_v11   ;;  %612 = vst.msk [vmem:[#allocation0 + $0x114] sm:$0xf0] %vm159_vm4, %v607_v11  }
  0xaf   :  { %v681_v12 = vpop.permute.xlu1 %680  }
  0xb0   :  { %684 = vst.msk [vmem:[#allocation0 + $0x20] sm:$0xf] %vm658_vm5, %v681_v12   ;;  %686 = vst.msk [vmem:[#allocation0 + $0x24] sm:$0xf0] %vm658_vm5, %v681_v12  }
  0xb2   :  { %v657_v13 = vpop.permute.xlu0 %656  }
  0xb3   :  { %659 = vst.msk [vmem:[#allocation0] sm:$0xf] %vm658_vm5, %v657_v13   ;;  %661 = vst.msk [vmem:[#allocation0 + $0x4] sm:$0xf0] %vm658_vm5, %v657_v13  }
  0xb6   :  { %v731_v14 = vpop.permute.xlu1 %730  }
  0xb7   :  { %734 = vst.msk [vmem:[#allocation0 + $0x60] sm:$0xf] %vm658_vm5, %v731_v14   ;;  %736 = vst.msk [vmem:[#allocation0 + $0x64] sm:$0xf0] %vm658_vm5, %v731_v14  }
  0xb9   :  { %v706_v15 = vpop.permute.xlu0 %705  }
  0xba   :  { %709 = vst.msk [vmem:[#allocation0 + $0x40] sm:$0xf] %vm658_vm5, %v706_v15   ;;  %711 = vst.msk [vmem:[#allocation0 + $0x44] sm:$0xf0] %vm658_vm5, %v706_v15  }
  0xbd   :  { %v781_v16 = vpop.permute.xlu1 %780  }
  0xbe   :  { %784 = vst.msk [vmem:[#allocation0 + $0xa0] sm:$0xf] %vm658_vm5, %v781_v16   ;;  %786 = vst.msk [vmem:[#allocation0 + $0xa4] sm:$0xf0] %vm658_vm5, %v781_v16  }
  0xc0   :  { %v756_v17 = vpop.permute.xlu0 %755  }
  0xc1   :  { %759 = vst.msk [vmem:[#allocation0 + $0x80] sm:$0xf] %vm658_vm5, %v756_v17   ;;  %761 = vst.msk [vmem:[#allocation0 + $0x84] sm:$0xf0] %vm658_vm5, %v756_v17  }
  0xc4   :  { %v831_v18 = vpop.permute.xlu1 %830  }
  0xc5   :  { %834 = vst.msk [vmem:[#allocation0 + $0xe0] sm:$0xf] %vm658_vm5, %v831_v18   ;;  %836 = vst.msk [vmem:[#allocation0 + $0xe4] sm:$0xf0] %vm658_vm5, %v831_v18  }
  0xc7   :  { %v806_v19 = vpop.permute.xlu0 %805  }
  0xc8   :  { %809 = vst.msk [vmem:[#allocation0 + $0xc0] sm:$0xf] %vm658_vm5, %v806_v19   ;;  %811 = vst.msk [vmem:[#allocation0 + $0xc4] sm:$0xf0] %vm658_vm5, %v806_v19  }
  0xcb   :  { %v881_v20 = vpop.permute.xlu1 %880  }
  0xcc   :  { %884 = vst.msk [vmem:[#allocation0 + $0x120] sm:$0xf] %vm658_vm5, %v881_v20   ;;  %886 = vst.msk [vmem:[#allocation0 + $0x124] sm:$0xf0] %vm658_vm5, %v881_v20  }
  0xce   :  { %v856_v21 = vpop.permute.xlu0 %855  }
  0xcf   :  { %859 = vst.msk [vmem:[#allocation0 + $0x100] sm:$0xf] %vm658_vm5, %v856_v21   ;;  %861 = vst.msk [vmem:[#allocation0 + $0x104] sm:$0xf0] %vm658_vm5, %v856_v21  }
  0xd2   :  { %v931_v22 = vpop.permute.xlu1 %930  }
  0xd3   :  { %934 = vst.msk [vmem:[#allocation0 + $0x30] sm:$0xf] %vm658_vm5, %v931_v22   ;;  %936 = vst.msk [vmem:[#allocation0 + $0x34] sm:$0xf0] %vm658_vm5, %v931_v22  }
  0xd5   :  { %v906_v23 = vpop.permute.xlu0 %905  }
  0xd6   :  { %909 = vst.msk [vmem:[#allocation0 + $0x10] sm:$0xf] %vm658_vm5, %v906_v23   ;;  %911 = vst.msk [vmem:[#allocation0 + $0x14] sm:$0xf0] %vm658_vm5, %v906_v23  }
  0xd8   :  { %v981_v24 = vpop.permute.xlu1 %980  }
  0xd9   :  { %984 = vst.msk [vmem:[#allocation0 + $0x70] sm:$0xf] %vm658_vm5, %v981_v24   ;;  %986 = vst.msk [vmem:[#allocation0 + $0x74] sm:$0xf0] %vm658_vm5, %v981_v24  }
  0xda   :  { %v956_v25 = vpop.permute.xlu0 %955  }
  0xdb   :  { %959 = vst.msk [vmem:[#allocation0 + $0x50] sm:$0xf] %vm658_vm5, %v956_v25   ;;  %961 = vst.msk [vmem:[#allocation0 + $0x54] sm:$0xf0] %vm658_vm5, %v956_v25  }
  0xdc   :  { %v1031_v26 = vpop.permute.xlu1 %1030  }
  0xdd   :  { %1034 = vst.msk [vmem:[#allocation0 + $0xb0] sm:$0xf] %vm658_vm5, %v1031_v26   ;;  %1036 = vst.msk [vmem:[#allocation0 + $0xb4] sm:$0xf0] %vm658_vm5, %v1031_v26  }
  0xdf   :  { %v1006_v27 = vpop.permute.xlu0 %1005  }
  0xe0   :  { %1009 = vst.msk [vmem:[#allocation0 + $0x90] sm:$0xf] %vm658_vm5, %v1006_v27   ;;  %1011 = vst.msk [vmem:[#allocation0 + $0x94] sm:$0xf0] %vm658_vm5, %v1006_v27  }
  0xe2   :  { %v1081_v28 = vpop.permute.xlu1 %1080  }
  0xe3   :  { %1084 = vst.msk [vmem:[#allocation0 + $0xf0] sm:$0xf] %vm658_vm5, %v1081_v28   ;;  %1086 = vst.msk [vmem:[#allocation0 + $0xf4] sm:$0xf0] %vm658_vm5, %v1081_v28  }
  0xe4   :  { %v1056_v29 = vpop.permute.xlu0 %1055  }
  0xe5   :  { %1059 = vst.msk [vmem:[#allocation0 + $0xd0] sm:$0xf] %vm658_vm5, %v1056_v29   ;;  %1061 = vst.msk [vmem:[#allocation0 + $0xd4] sm:$0xf0] %vm658_vm5, %v1056_v29  }
  0xe6   :  { %v1131_v30 = vpop.permute.xlu1 %1130  }
  0xe7   :  { %1134 = vst.msk [vmem:[#allocation0 + $0x130] sm:$0xf] %vm658_vm5, %v1131_v30   ;;  %1136 = vst.msk [vmem:[#allocation0 + $0x134] sm:$0xf0] %vm658_vm5, %v1131_v30  }
  0xe9   :  { %v1106_v31 = vpop.permute.xlu0 %1105  }
  0xea   :  { %1109 = vst.msk [vmem:[#allocation0 + $0x110] sm:$0xf] %vm658_vm5, %v1106_v31   ;;  %1111 = vst.msk [vmem:[#allocation0 + $0x114] sm:$0xf0] %vm658_vm5, %v1106_v31  }
  0xec   :  { %v1180_v32 = vpop.permute.xlu1 %1179  }
  0xed   :  { %1183 = vst.msk [vmem:[#allocation0 + $0x20] sm:$0xf] %vm1157_vm6, %v1180_v32   ;;  %1185 = vst.msk [vmem:[#allocation0 + $0x24] sm:$0xf0] %vm1157_vm6, %v1180_v32  }
  0xee   :  { %v1156_v33 = vpop.permute.xlu0 %1155  }
  0xef   :  { %1158 = vst.msk [vmem:[#allocation0] sm:$0xf] %vm1157_vm6, %v1156_v33   ;;  %1160 = vst.msk [vmem:[#allocation0 + $0x4] sm:$0xf0] %vm1157_vm6, %v1156_v33  }
  0xf0   :  { %v1230_v34 = vpop.permute.xlu1 %1229  }
  0xf1   :  { %1233 = vst.msk [vmem:[#allocation0 + $0x60] sm:$0xf] %vm1157_vm6, %v1230_v34   ;;  %1235 = vst.msk [vmem:[#allocation0 + $0x64] sm:$0xf0] %vm1157_vm6, %v1230_v34  }
  0xf3   :  { %v1205_v37 = vpop.permute.xlu0 %1204  }
  0xf4   :  { %v1665_v35 = vld [vmem:[#allocation0 + $0x20] sm:$0xf]  ;;  %v1672_v36 = vld [vmem:[#allocation0 + $0x28] sm:$0xf]  ;;  %1208 = vst.msk [vmem:[#allocation0 + $0x40] sm:$0xf] %vm1157_vm6, %v1205_v37  }
  0xf5   :  { %2216 = vst [vmem:[%s3569_s1 + $0x10] sm:$0xf] %v1665_v35  ;;  %2217 = vst [vmem:[%s3569_s1 + $0x14] sm:$0xf] %v1672_v36 }
  0xf6   :  { %1210 = vst.msk [vmem:[#allocation0 + $0x44] sm:$0xf0] %vm1157_vm6, %v1205_v37   ;;  %v1280_v38 = vpop.permute.xlu1 %1279   ;;  %v1640_v39 = vld [vmem:[#allocation0] sm:$0xf]  ;;  %v1645_v40 = vld [vmem:[#allocation0 + $0x8] sm:$0xf] }
  0xf7   :  { %1283 = vst.msk [vmem:[#allocation0 + $0xa0] sm:$0xf] %vm1157_vm6, %v1280_v38   ;;  %1285 = vst.msk [vmem:[#allocation0 + $0xa4] sm:$0xf0] %vm1157_vm6, %v1280_v38  }
  0xf8   :  { %1643 = vst [vmem:[%s3569_s1] sm:$0xf] %v1640_v39  ;;  %2213 = vst [vmem:[%s3569_s1 + $0x4] sm:$0xf] %v1645_v40  ;;  %v1721_v41 = vld [vmem:[#allocation0 + $0x60] sm:$0xf]  ;;  %v1255_v43 = vpop.permute.xlu0 %1254  }
  0xf9   :  { %v1728_v42 = vld [vmem:[#allocation0 + $0x68] sm:$0xf]  ;;  %2224 = vst [vmem:[%s3569_s1 + $0x30] sm:$0xf] %v1721_v41  ;;  %1258 = vst.msk [vmem:[#allocation0 + $0x80] sm:$0xf] %vm1157_vm6, %v1255_v43  }
  0xfa   :  { %2225 = vst [vmem:[%s3569_s1 + $0x34] sm:$0xf] %v1728_v42  ;;  %1260 = vst.msk [vmem:[#allocation0 + $0x84] sm:$0xf0] %vm1157_vm6, %v1255_v43   ;;  %v1330_v44 = vpop.permute.xlu1 %1329  }
  0xfb   :  { %v1693_v45 = vld [vmem:[#allocation0 + $0x40] sm:$0xf]  ;;  %1333 = vst.msk [vmem:[#allocation0 + $0xe0] sm:$0xf] %vm1157_vm6, %v1330_v44   ;;  %1335 = vst.msk [vmem:[#allocation0 + $0xe4] sm:$0xf0] %vm1157_vm6, %v1330_v44  }
  0xfc   :  { %2220 = vst [vmem:[%s3569_s1 + $0x20] sm:$0xf] %v1693_v45 }
  0xfd   :  { %v1700_v46 = vld [vmem:[#allocation0 + $0x48] sm:$0xf]  ;;  %v1305_v49 = vpop.permute.xlu0 %1304  }
  0xfe   :  { %2221 = vst [vmem:[%s3569_s1 + $0x24] sm:$0xf] %v1700_v46  ;;  %v1777_v47 = vld [vmem:[#allocation0 + $0xa0] sm:$0xf]  ;;  %v1784_v48 = vld [vmem:[#allocation0 + $0xa8] sm:$0xf] }
  0xff   :  { %2232 = vst [vmem:[%s3569_s1 + $0x50] sm:$0xf] %v1777_v47  ;;  %2233 = vst [vmem:[%s3569_s1 + $0x54] sm:$0xf] %v1784_v48 }
 0x100   :  { %1308 = vst.msk [vmem:[#allocation0 + $0xc0] sm:$0xf] %vm1157_vm6, %v1305_v49   ;;  %1310 = vst.msk [vmem:[#allocation0 + $0xc4] sm:$0xf0] %vm1157_vm6, %v1305_v49   ;;  %v1380_v50 = vpop.permute.xlu1 %1379   ;;  %v1749_v51 = vld [vmem:[#allocation0 + $0x80] sm:$0xf] }
 0x101   :  { %v1756_v52 = vld [vmem:[#allocation0 + $0x88] sm:$0xf]  ;;  %1383 = vst.msk [vmem:[#allocation0 + $0x120] sm:$0xf] %vm1157_vm6, %v1380_v50   ;;  %1385 = vst.msk [vmem:[#allocation0 + $0x124] sm:$0xf0] %vm1157_vm6, %v1380_v50  }
 0x102   :  { %2228 = vst [vmem:[%s3569_s1 + $0x40] sm:$0xf] %v1749_v51  ;;  %2229 = vst [vmem:[%s3569_s1 + $0x44] sm:$0xf] %v1756_v52  ;;  %v1833_v53 = vld [vmem:[#allocation0 + $0xe0] sm:$0xf]  ;;  %v1355_v55 = vpop.permute.xlu0 %1354  }
 0x103   :  { %v1840_v54 = vld [vmem:[#allocation0 + $0xe8] sm:$0xf]  ;;  %2240 = vst [vmem:[%s3569_s1 + $0x70] sm:$0xf] %v1833_v53  ;;  %1358 = vst.msk [vmem:[#allocation0 + $0x100] sm:$0xf] %vm1157_vm6, %v1355_v55  }
 0x104   :  { %2241 = vst [vmem:[%s3569_s1 + $0x74] sm:$0xf] %v1840_v54  ;;  %1360 = vst.msk [vmem:[#allocation0 + $0x104] sm:$0xf0] %vm1157_vm6, %v1355_v55   ;;  %v1430_v56 = vpop.permute.xlu1 %1429  }
 0x105   :  { %1433 = vst.msk [vmem:[#allocation0 + $0x30] sm:$0xf] %vm1157_vm6, %v1430_v56   ;;  %1435 = vst.msk [vmem:[#allocation0 + $0x34] sm:$0xf0] %vm1157_vm6, %v1430_v56  }
 0x107   :  { %v1805_v57 = vld [vmem:[#allocation0 + $0xc0] sm:$0xf]  ;;  %v1812_v58 = vld [vmem:[#allocation0 + $0xc8] sm:$0xf]  ;;  %v1405_v61 = vpop.permute.xlu0 %1404  }
 0x108   :  { %2236 = vst [vmem:[%s3569_s1 + $0x60] sm:$0xf] %v1805_v57  ;;  %2237 = vst [vmem:[%s3569_s1 + $0x64] sm:$0xf] %v1812_v58  ;;  %v1889_v59 = vld [vmem:[#allocation0 + $0x120] sm:$0xf] }
 0x109   :  { %v1896_v60 = vld [vmem:[#allocation0 + $0x128] sm:$0xf]  ;;  %2248 = vst [vmem:[%s3569_s1 + $0x90] sm:$0xf] %v1889_v59  ;;  %1408 = vst.msk [vmem:[#allocation0 + $0x10] sm:$0xf] %vm1157_vm6, %v1405_v61  }
 0x10a   :  { %2249 = vst [vmem:[%s3569_s1 + $0x94] sm:$0xf] %v1896_v60  ;;  %1410 = vst.msk [vmem:[#allocation0 + $0x14] sm:$0xf0] %vm1157_vm6, %v1405_v61   ;;  %v1480_v62 = vpop.permute.xlu1 %1479   ;;  %v1861_v63 = vld [vmem:[#allocation0 + $0x100] sm:$0xf] }
 0x10b   :  { %v1868_v0 = vld [vmem:[#allocation0 + $0x108] sm:$0xf]  ;;  %1483 = vst.msk [vmem:[#allocation0 + $0x70] sm:$0xf] %vm1157_vm6, %v1480_v62   ;;  %1485 = vst.msk [vmem:[#allocation0 + $0x74] sm:$0xf0] %vm1157_vm6, %v1480_v62  }
 0x10c   :  { %2244 = vst [vmem:[%s3569_s1 + $0x80] sm:$0xf] %v1861_v63  ;;  %2245 = vst [vmem:[%s3569_s1 + $0x84] sm:$0xf] %v1868_v0  ;;  %v1679_v1 = vld [vmem:[#allocation0 + $0x30] sm:$0xf]  ;;  %v1455_v3 = vpop.permute.xlu0 %1454  }
 0x10d   :  { %v1686_v2 = vld [vmem:[#allocation0 + $0x38] sm:$0xf]  ;;  %2218 = vst [vmem:[%s3569_s1 + $0x18] sm:$0xf] %v1679_v1  ;;  %1458 = vst.msk [vmem:[#allocation0 + $0x50] sm:$0xf] %vm1157_vm6, %v1455_v3  }
 0x10e   :  { %2219 = vst [vmem:[%s3569_s1 + $0x1c] sm:$0xf] %v1686_v2  ;;  %1460 = vst.msk [vmem:[#allocation0 + $0x54] sm:$0xf0] %vm1157_vm6, %v1455_v3   ;;  %v1530_v4 = vpop.permute.xlu1 %1529  }
 0x10f   :  { %1533 = vst.msk [vmem:[#allocation0 + $0xb0] sm:$0xf] %vm1157_vm6, %v1530_v4   ;;  %1535 = vst.msk [vmem:[#allocation0 + $0xb4] sm:$0xf0] %vm1157_vm6, %v1530_v4  }
 0x110   :  { %v1651_v5 = vld [vmem:[#allocation0 + $0x10] sm:$0xf] }
 0x111   :  { %v1658_v6 = vld [vmem:[#allocation0 + $0x18] sm:$0xf]  ;;  %2214 = vst [vmem:[%s3569_s1 + $0x8] sm:$0xf] %v1651_v5  ;;  %v1505_v9 = vpop.permute.xlu0 %1504  }
 0x112   :  { %2215 = vst [vmem:[%s3569_s1 + $0xc] sm:$0xf] %v1658_v6  ;;  %v1735_v7 = vld [vmem:[#allocation0 + $0x70] sm:$0xf]  ;;  %v1742_v8 = vld [vmem:[#allocation0 + $0x78] sm:$0xf] }
 0x113   :  { %2226 = vst [vmem:[%s3569_s1 + $0x38] sm:$0xf] %v1735_v7  ;;  %2227 = vst [vmem:[%s3569_s1 + $0x3c] sm:$0xf] %v1742_v8 }
 0x114   :  { %1508 = vst.msk [vmem:[#allocation0 + $0x90] sm:$0xf] %vm1157_vm6, %v1505_v9   ;;  %1510 = vst.msk [vmem:[#allocation0 + $0x94] sm:$0xf0] %vm1157_vm6, %v1505_v9   ;;  %v1580_v10 = vpop.permute.xlu1 %1579   ;;  %v1707_v11 = vld [vmem:[#allocation0 + $0x50] sm:$0xf] }
 0x115   :  { %v1714_v12 = vld [vmem:[#allocation0 + $0x58] sm:$0xf]  ;;  %1583 = vst.msk [vmem:[#allocation0 + $0xf0] sm:$0xf] %vm1157_vm6, %v1580_v10   ;;  %1585 = vst.msk [vmem:[#allocation0 + $0xf4] sm:$0xf0] %vm1157_vm6, %v1580_v10  }
 0x116   :  { %2222 = vst [vmem:[%s3569_s1 + $0x28] sm:$0xf] %v1707_v11  ;;  %2223 = vst [vmem:[%s3569_s1 + $0x2c] sm:$0xf] %v1714_v12  ;;  %v1791_v13 = vld [vmem:[#allocation0 + $0xb0] sm:$0xf]  ;;  %v1555_v15 = vpop.permute.xlu0 %1554  }
 0x117   :  { %v1798_v14 = vld [vmem:[#allocation0 + $0xb8] sm:$0xf]  ;;  %2234 = vst [vmem:[%s3569_s1 + $0x58] sm:$0xf] %v1791_v13  ;;  %1558 = vst.msk [vmem:[#allocation0 + $0xd0] sm:$0xf] %vm1157_vm6, %v1555_v15  }
 0x118   :  { %2235 = vst [vmem:[%s3569_s1 + $0x5c] sm:$0xf] %v1798_v14  ;;  %1560 = vst.msk [vmem:[#allocation0 + $0xd4] sm:$0xf0] %vm1157_vm6, %v1555_v15   ;;  %v1630_v16 = vpop.permute.xlu1 %1629  }
 0x119   :  { %1633 = vst.msk [vmem:[#allocation0 + $0x130] sm:$0xf] %vm1157_vm6, %v1630_v16   ;;  %1635 = vst.msk [vmem:[#allocation0 + $0x134] sm:$0xf0] %vm1157_vm6, %v1630_v16  }
 0x11b   :  { %v1763_v17 = vld [vmem:[#allocation0 + $0x90] sm:$0xf]  ;;  %v1770_v18 = vld [vmem:[#allocation0 + $0x98] sm:$0xf]  ;;  %v1605_v21 = vpop.permute.xlu0 %1604  }
 0x11c   :  { %2230 = vst [vmem:[%s3569_s1 + $0x48] sm:$0xf] %v1763_v17  ;;  %2231 = vst [vmem:[%s3569_s1 + $0x4c] sm:$0xf] %v1770_v18  ;;  %v1847_v19 = vld [vmem:[#allocation0 + $0xf0] sm:$0xf] }
 0x11d   :  { %v1854_v20 = vld [vmem:[#allocation0 + $0xf8] sm:$0xf]  ;;  %2242 = vst [vmem:[%s3569_s1 + $0x78] sm:$0xf] %v1847_v19  ;;  %1608 = vst.msk [vmem:[#allocation0 + $0x110] sm:$0xf] %vm1157_vm6, %v1605_v21  }
 0x11e   :  { %2243 = vst [vmem:[%s3569_s1 + $0x7c] sm:$0xf] %v1854_v20  ;;  %1610 = vst.msk [vmem:[#allocation0 + $0x114] sm:$0xf0] %vm1157_vm6, %v1605_v21   ;;  %v1819_v22 = vld [vmem:[#allocation0 + $0xd0] sm:$0xf] }
 0x11f   :  { %v1826_v23 = vld [vmem:[#allocation0 + $0xd8] sm:$0xf]  ;;  %2238 = vst [vmem:[%s3569_s1 + $0x68] sm:$0xf] %v1819_v22 }
 0x120   :  { %2239 = vst [vmem:[%s3569_s1 + $0x6c] sm:$0xf] %v1826_v23  ;;  %v1903_v24 = vld [vmem:[#allocation0 + $0x130] sm:$0xf]  ;;  %v1910_v25 = vld [vmem:[#allocation0 + $0x138] sm:$0xf] }
 0x121   :  { %2250 = vst [vmem:[%s3569_s1 + $0x98] sm:$0xf] %v1903_v24  ;;  %2251 = vst [vmem:[%s3569_s1 + $0x9c] sm:$0xf] %v1910_v25 }
 0x124   :  { %v1875_v26 = vld [vmem:[#allocation0 + $0x110] sm:$0xf] }
 0x125   :  { %v1882_v27 = vld [vmem:[#allocation0 + $0x118] sm:$0xf]  ;;  %2246 = vst [vmem:[%s3569_s1 + $0x88] sm:$0xf] %v1875_v26 }
 0x126   :  { %2247 = vst [vmem:[%s3569_s1 + $0x8c] sm:$0xf] %v1882_v27 }

// kernel: run.10
= control target key start
LH: loop header
LB: loop body
LE: loop exit
PB: predicated region body
PF: predicated region fallthrough
CT: control target
= control target key end

     0   :  { %vm67_vm0 = vcmask 261120   ;;  %s1238_s1 = inlined_call_operand.vmem [shape: f32[32,32], index: 1, kind: input, shape index: {}]   ;;  %s1239_s0 = inlined_call_operand.vmem [shape: f32[160,32], index: 0, kind: input, shape index: {}]   ;;  %s1240_s2 = inlined_call_operand.vmem [shape: f32[1,32], index: 2, kind: input, shape index: {}]   ;;  %s1241_s3 = inlined_call_operand.vmem [shape: f32[160,32], index: 3, kind: input, shape index: {}, may-alias: {3,6}]   ;;  %s1242_s4 = inlined_call_operand.vmem [shape: f32[1,32], index: 4, kind: input, shape index: {}]   ;;  %s1243_s5 = inlined_call_operand.vmem [shape: f32[1,32], index: 5, kind: input, shape index: {}]   ;;  %s1244_s6 = inlined_call_operand.vmem [shape: f32[160,32], index: 6, kind: output, shape index: {}, may-alias: {3,6}]  }
   0x1   :  { %v46_v0 = vld [vmem:[%s1238_s1 + $0x10] sm:$0xff]  ;;  %v47_v1 = vld [vmem:[%s1238_s1 + $0x18] sm:$0xff]  ;;  %v44_v2 = vld [vmem:[%s1238_s1] sm:$0xff] }
   0x2   :  { %v59_v3 = vpack.c.bf16 %v47_v1, %v46_v0  ;;  %v45_v4 = vld [vmem:[%s1238_s1 + $0x8] sm:$0xff]  ;;  %v24_v5 = vld [vmem:[%s1239_s0] sm:$0xff]  ;;  %v26_v12 = vld [vmem:[%s1239_s0 + $0x10] sm:$0xff] }
   0x3   :  { %v25_v6 = vld [vmem:[%s1239_s0 + $0x8] sm:$0xff]  ;;  %v58_v7 = vpack.c.bf16 %v45_v4, %v44_v2  ;;  %v36_v9 = vld [vmem:[%s1239_s0 + $0x60] sm:$0xff]  ;;  %v27_v13 = vld [vmem:[%s1239_s0 + $0x18] sm:$0xff] }
   0x4   :  { %v48_v8 = vpack.c.bf16 %v25_v6, %v24_v5  ;;  %v37_v10 = vld [vmem:[%s1239_s0 + $0x68] sm:$0xff]  ;;  %615 = vmatprep.subr.bf16.mxu0 %v59_v3  ;;  %639 = vmatprep.subr.bf16.mxu1 %v59_v3  ;;  %v38_v14 = vld [vmem:[%s1239_s0 + $0x70] sm:$0xff]  ;;  %v39_v15 = vld [vmem:[%s1239_s0 + $0x78] sm:$0xff]  ;;  %v49_v20 = vpack.c.bf16 %v27_v13, %v26_v12 }
   0x5   :  { %v54_v11 = vpack.c.bf16 %v37_v10, %v36_v9  ;;  %616 = vmatpush3.bf16.msra.mxu0 %v59_v3  ;;  %641 = vmatpush3.bf16.msra.mxu1 %v59_v3  ;;  %v28_v16 = vld [vmem:[%s1239_s0 + $0x20] sm:$0xff]  ;;  %v29_v17 = vld [vmem:[%s1239_s0 + $0x28] sm:$0xff]  ;;  %v55_v21 = vpack.c.bf16 %v39_v15, %v38_v14  ;;  %v30_v24 = vld [vmem:[%s1239_s0 + $0x30] sm:$0xff] }
   0x6   :  { %617 = vmatprep.subr.bf16.mxu0 %v58_v7  ;;  %640 = vmatprep.subr.bf16.mxu1 %v58_v7  ;;  %v40_v18 = vld [vmem:[%s1239_s0 + $0x80] sm:$0xff]  ;;  %v41_v19 = vld [vmem:[%s1239_s0 + $0x88] sm:$0xff]  ;;  %v50_v22 = vpack.c.bf16 %v29_v17, %v28_v16  ;;  %v31_v25 = vld [vmem:[%s1239_s0 + $0x38] sm:$0xff] }
   0x7   :  { %619 = vmatprep.mubr.msk.bf16.mxu0 %vm67_vm0, %v48_v8  ;;  %631 = vmatprep.mubr.msk.bf16.mxu1 %vm67_vm0, %v54_v11  ;;  %v56_v23 = vpack.c.bf16 %v41_v19, %v40_v18  ;;  %v42_v26 = vld [vmem:[%s1239_s0 + $0x90] sm:$0xff]  ;;  %v43_v27 = vld [vmem:[%s1239_s0 + $0x98] sm:$0xff]  ;;  %v32_v28 = vld [vmem:[%s1239_s0 + $0x40] sm:$0xff]  ;;  %v51_v30 = vpack.c.bf16 %v31_v25, %v30_v24 }
   0x8   :  { %v33_v29 = vld [vmem:[%s1239_s0 + $0x48] sm:$0xff]  ;;  %v57_v31 = vpack.c.bf16 %v43_v27, %v42_v26  ;;  %v34_v33 = vld [vmem:[%s1239_s0 + $0x50] sm:$0xff]  ;;  %v35_v34 = vld [vmem:[%s1239_s0 + $0x58] sm:$0xff] }
   0x9   :  { %618 = vmatpush3.bf16.msra.mxu0 %v58_v7  ;;  %642 = vmatpush3.bf16.msra.mxu1 %v58_v7  ;;  %v52_v32 = vpack.c.bf16 %v33_v29, %v32_v28  ;;  %v53_v35 = vpack.c.bf16 %v35_v34, %v34_v33  ;;  %v803_v36 = vld [vmem:[%s1240_s2] ss:$0 sm:$0xff]  ;;  %v225_v39 = vld [vmem:[%s1241_s3 + $0x70] sm:$0xff]  ;;  %v214_v52 = vld [vmem:[%s1241_s3 + $0x18] sm:$0xff] }
   0xa   :  { %v213_v40 = vld [vmem:[%s1241_s3 + $0x10] sm:$0xff]  ;;  %v211_v48 = vld [vmem:[%s1241_s3] sm:$0xff]  ;;  %v226_v61 = vld [vmem:[%s1241_s3 + $0x78] sm:$0xff] }
   0xb   :  { %v223_v57 = vld [vmem:[%s1241_s3 + $0x60] sm:$0xff]  ;;  %v224_v9 = vld [vmem:[%s1241_s3 + $0x68] sm:$0xff]  ;;  %v218_v14 = vld [vmem:[%s1241_s3 + $0x38] sm:$0xff] }
   0xc   :  { %620 = vmatmul.mubr.msk.bf16.vlgmr.msra.gmra.mxu0 %vm67_vm0, %v49_v20  ;;  %632 = vmatmul.mubr.msk.bf16.vlgmr.msra.gmra.mxu1 %vm67_vm0, %v55_v21  ;;  %v212_v10 = vld [vmem:[%s1241_s3 + $0x8] sm:$0xff]  ;;  %v217_v15 = vld [vmem:[%s1241_s3 + $0x30] sm:$0xff] }
   0xd   :  { %623 = vmatprep.mubr.msk.bf16.mxu0 %vm67_vm0, %v50_v22  ;;  %635 = vmatprep.mubr.msk.bf16.mxu1 %vm67_vm0, %v56_v23 }
  0x14   :  { %624 = vmatmul.mubr.msk.bf16.gmra.mxu0 %vm67_vm0, %v51_v30  ;;  %636 = vmatmul.mubr.msk.bf16.gmra.mxu1 %vm67_vm0, %v57_v31  ;;  %v216_v31 = vld [vmem:[%s1241_s3 + $0x28] sm:$0xff] }
  0x15   :  { %627 = vmatprep.mubr.msk.bf16.mxu0 %vm67_vm0, %v52_v32  ;;  %v215_v32 = vld [vmem:[%s1241_s3 + $0x20] sm:$0xff] }
  0x1c   :  { %628 = vmatmul.mubr.msk.bf16.gmra.mxu0 %vm67_vm0, %v53_v35 }
  0xcc   :  { %v621_v37 = vpop.f32.mrf.mxu0  ;;  %v633_v38 = vpop.f32.mrf.mxu1 }
  0xcd   :  { %v141_v41 = vadd.f32 %v621_v37, %v803_v36  ;;  %v189_v42 = vadd.f32 %v633_v38, %v803_v36 }
  0xce   :  { %v132_v43 = vpop.f32.mrf.mxu0  ;;  %v180_v44 = vpop.f32.mrf.mxu1 }
  0xcf   :  { %v133_v45 = vadd.f32 %v803_v36, %v132_v43  ;;  %v814_v46 = vadd.f32 %v225_v39, %v189_v42  ;;  %v816_v47 = vadd.f32 %v213_v40, %v141_v41  ;;  %v181_v49 = vadd.f32 %v803_v36, %v180_v44  ;;  %v228_v41 = vld [vmem:[%s1241_s3 + $0x88] sm:$0xff]  ;;  %v227_v42 = vld [vmem:[%s1241_s3 + $0x80] sm:$0xff] }
  0xd0   :  { %v622_v50 = vpop.f32.mrf.mxu0  ;;  %v634_v51 = vpop.f32.mrf.mxu1 }
  0xd1   :  { %v144_v53 = vadd.f32 %v622_v50, %v803_v36  ;;  %v192_v54 = vadd.f32 %v634_v51, %v803_v36  ;;  %v293_v55 = vsel %vm67_vm0, %v814_v46, 0.0  ;;  %v257_v56 = vsel %vm67_vm0, %v816_v47, 0.0 }
  0xd2   :  { %294 = vadd.xlane.f32.xlu0 %v293_v55  ;;  %v183_v58 = vpop.f32.mrf.mxu1  ;;  %258 = vadd.xlane.f32.xlu1 %v257_v56  ;;  %v135_v59 = vpop.f32.mrf.mxu0  ;;  %v834_v60 = vadd.f32 %v211_v48, %v133_v45  ;;  %v842_v1 = vadd.f32 %v223_v57, %v181_v49  ;;  %v222_v45 = vld [vmem:[%s1241_s3 + $0x58] sm:$0xff]  ;;  %v221_v48 = vld [vmem:[%s1241_s3 + $0x50] sm:$0xff] }
  0xd3   :  { %v839_v62 = vadd.f32 %v214_v52, %v144_v53  ;;  %v184_v63 = vadd.f32 %v803_v36, %v183_v58  ;;  %v136_v3 = vadd.f32 %v803_v36, %v135_v59  ;;  %v851_v6 = vadd.f32 %v226_v61, %v192_v54  ;;  %v220_v61 = vld [vmem:[%s1241_s3 + $0x48] sm:$0xff] }
  0xd4   :  { %v625_v0 = vpop.f32.mrf.mxu0  ;;  %v844_v2 = vpop.f32.mrf.mxu1  ;;  %v251_v5 = vsel %vm67_vm0, %v834_v60, 0.0  ;;  %v287_v13 = vsel %vm67_vm0, %v842_v1, 0.0 }
  0xd5   :  { %v260_v4 = vsel %vm67_vm0, %v839_v62, 0.0  ;;  %v157_v11 = vadd.f32 %v625_v0, %v803_v36  ;;  %v296_v16 = vsel %vm67_vm0, %v851_v6, 0.0  ;;  %v871_v18 = vadd.f32 %v224_v9, %v184_v63  ;;  %v219_v63 = vld [vmem:[%s1241_s3 + $0x40] sm:$0xff]  ;;  %v230_v9 = vld [vmem:[%s1241_s3 + $0x98] sm:$0xff] }
  0xd6   :  { %261 = vadd.xlane.f32.xlu1 %v260_v4  ;;  %252 = vadd.xlane.f32.xlu0 %v251_v5  ;;  %v148_v7 = vpop.f32.mrf.mxu0  ;;  %v196_v8 = vpop.f32.mrf.mxu1  ;;  %v873_v19 = vadd.f32 %v212_v10, %v136_v3  ;;  %v205_v4 = vadd.f32 %v844_v2, %v803_v36  ;;  %v229_v10 = vld [vmem:[%s1241_s3 + $0x90] sm:$0xff] }
  0xd7   :  { %v877_v23 = vadd.f32 %v217_v15, %v157_v11  ;;  %v149_v25 = vadd.f32 %v803_v36, %v148_v7  ;;  %v290_v27 = vsel %vm67_vm0, %v871_v18, 0.0  ;;  %v197_v35 = vadd.f32 %v803_v36, %v196_v8 }
  0xd8   :  { %v626_v12 = vpop.f32.mrf.mxu0  ;;  %v638_v21 = vpop.f32.mrf.mxu1  ;;  %v254_v28 = vsel %vm67_vm0, %v873_v19, 0.0 }
  0xd9   :  { %v160_v17 = vadd.f32 %v626_v12, %v803_v36  ;;  %v269_v34 = vsel %vm67_vm0, %v877_v23, 0.0  ;;  %v899_v39 = vadd.f32 %v215_v32, %v149_v25  ;;  %v921_v52 = vadd.f32 %v227_v42, %v197_v35 }
  0xda   :  { %297 = vadd.xlane.f32.xlu1 %v296_v16  ;;  %288 = vadd.xlane.f32.xlu0 %v287_v13  ;;  %v151_v20 = vpop.f32.mrf.mxu0  ;;  %v199_v29 = vpop.f32.mrf.mxu1  ;;  %v208_v5 = vadd.f32 %v638_v21, %v803_v36  ;;  %v962_v12 = vadd.f32 %v229_v10, %v205_v4 }
  0xdb   :  { %v875_v22 = vadd.f32 %v218_v14, %v160_v17  ;;  %v152_v26 = vadd.f32 %v803_v36, %v151_v20  ;;  %v200_v37 = vadd.f32 %v803_v36, %v199_v29  ;;  %v263_v50 = vsel %vm67_vm0, %v899_v39, 0.0 }
  0xdc   :  { %v629_v24 = vpop.f32.mrf.mxu0  ;;  %v299_v59 = vsel %vm67_vm0, %v921_v52, 0.0  ;;  %v960_v2 = vadd.f32 %v230_v9, %v208_v5  ;;  %v305_v14 = vsel %vm67_vm0, %v962_v12, 0.0 }
  0xdd   :  { %v272_v33 = vsel %vm67_vm0, %v875_v22, 0.0  ;;  %v897_v38 = vadd.f32 %v216_v31, %v152_v26  ;;  %v173_v43 = vadd.f32 %v629_v24, %v803_v36  ;;  %v919_v51 = vadd.f32 %v228_v41, %v200_v37 }
  0xde   :  { %291 = vadd.xlane.f32.xlu1 %v290_v27  ;;  %255 = vadd.xlane.f32.xlu0 %v254_v28  ;;  %v164_v30 = vpop.f32.mrf.mxu0  ;;  %v308_v13 = vsel %vm67_vm0, %v960_v2, 0.0 }
  0xdf   :  { %v266_v49 = vsel %vm67_vm0, %v897_v38, 0.0  ;;  %v925_v55 = vadd.f32 %v221_v48, %v173_v43  ;;  %v165_v56 = vadd.f32 %v803_v36, %v164_v30  ;;  %v302_v58 = vsel %vm67_vm0, %v919_v51, 0.0 }
  0xe0   :  { %v630_v40 = vpop.f32.mrf.mxu0 }
  0xe1   :  { %v176_v44 = vadd.f32 %v630_v40, %v803_v36  ;;  %v281_v3 = vsel %vm67_vm0, %v925_v55, 0.0  ;;  %v948_v8 = vadd.f32 %v219_v63, %v165_v56 }
  0xe2   :  { %273 = vadd.xlane.f32.xlu1 %v272_v33  ;;  %270 = vadd.xlane.f32.xlu0 %v269_v34  ;;  %v167_v53 = vpop.f32.mrf.mxu0 }
  0xe3   :  { %v923_v54 = vadd.f32 %v222_v45, %v176_v44  ;;  %v168_v57 = vadd.f32 %v803_v36, %v167_v53  ;;  %v275_v36 = vsel %vm67_vm0, %v948_v8, 0.0 }
  0xe5   :  { %v284_v0 = vsel %vm67_vm0, %v923_v54, 0.0  ;;  %v946_v7 = vadd.f32 %v220_v61, %v168_v57 }
  0xe6   :  { %267 = vadd.xlane.f32.xlu1 %v266_v49  ;;  %264 = vadd.xlane.f32.xlu0 %v263_v50 }
  0xe7   :  { %v278_v11 = vsel %vm67_vm0, %v946_v7, 0.0 }
  0xea   :  { %303 = vadd.xlane.f32.xlu1 %v302_v58  ;;  %300 = vadd.xlane.f32.xlu0 %v299_v59 }
  0xee   :  { %285 = vadd.xlane.f32.xlu1 %v284_v0  ;;  %282 = vadd.xlane.f32.xlu0 %v281_v3 }
  0xf2   :  { %279 = vadd.xlane.f32.xlu1 %v278_v11  ;;  %276 = vadd.xlane.f32.xlu0 %v275_v36 }
  0xf6   :  { %309 = vadd.xlane.f32.xlu1 %v308_v13  ;;  %306 = vadd.xlane.f32.xlu0 %v305_v14 }
 0x15b   :  { %v295_v15 = vpop.xlane.xlu0 %294  ;;  %v259_v16 = vpop.xlane.xlu1 %258 }
 0x15c   :  { %v326_v17 = vmul.f32 0.03125, %v295_v15  ;;  %v314_v20 = vmul.f32 0.03125, %v259_v16 }
 0x15e   :  { %v969_v21 = vsub.f32 %v814_v46, %v326_v17  ;;  %v972_v24 = vsub.f32 %v816_v47, %v314_v20 }
 0x15f   :  { %v262_v25 = vpop.xlane.xlu1 %261  ;;  %v253_v26 = vpop.xlane.xlu0 %252 }
 0x160   :  { %v315_v27 = vmul.f32 0.03125, %v262_v25  ;;  %v312_v28 = vmul.f32 0.03125, %v253_v26  ;;  %v354_v29 = vmul.f32 %v972_v24, %v972_v24  ;;  %v366_v46 = vmul.f32 %v969_v21, %v969_v21 }
 0x162   :  { %v977_v30 = vsub.f32 %v839_v62, %v315_v27  ;;  %v980_v31 = vsub.f32 %v834_v60, %v312_v28  ;;  %v378_v32 = vsel %vm67_vm0, %v354_v29, 0.0  ;;  %v414_v42 = vsel %vm67_vm0, %v366_v46, 0.0 }
 0x163   :  { %v298_v47 = vpop.xlane.xlu1 %297  ;;  %379 = vadd.xlane.f32.xlu0 %v378_v32  ;;  %v289_v33 = vpop.xlane.xlu0 %288 }
 0x164   :  { %v327_v34 = vmul.f32 0.03125, %v298_v47  ;;  %v324_v35 = vmul.f32 0.03125, %v289_v33  ;;  %v355_v37 = vmul.f32 %v977_v30, %v977_v30  ;;  %v352_v62 = vmul.f32 %v980_v31, %v980_v31 }
 0x166   :  { %v990_v40 = vsub.f32 %v851_v6, %v327_v34  ;;  %v993_v60 = vsub.f32 %v842_v1, %v324_v35  ;;  %v381_v41 = vsel %vm67_vm0, %v355_v37, 0.0  ;;  %v372_v50 = vsel %vm67_vm0, %v352_v62, 0.0 }
 0x167   :  { %v292_v43 = vpop.xlane.xlu1 %291  ;;  %382 = vadd.xlane.f32.xlu1 %v381_v41  ;;  %415 = vadd.xlane.f32.xlu0 %v414_v42  ;;  %v256_v44 = vpop.xlane.xlu0 %255 }
 0x168   :  { %v325_v45 = vmul.f32 0.03125, %v292_v43  ;;  %v313_v48 = vmul.f32 0.03125, %v256_v44  ;;  %v367_v49 = vmul.f32 %v990_v40, %v990_v40  ;;  %v364_v56 = vmul.f32 %v993_v60, %v993_v60 }
 0x16a   :  { %v1001_v6 = vsub.f32 %v871_v18, %v325_v45  ;;  %v1004_v1 = vsub.f32 %v873_v19, %v313_v48  ;;  %v417_v53 = vsel %vm67_vm0, %v367_v49, 0.0  ;;  %v408_v3 = vsel %vm67_vm0, %v364_v56, 0.0 }
 0x16b   :  { %v274_v57 = vpop.xlane.xlu1 %273  ;;  %418 = vadd.xlane.f32.xlu1 %v417_v53  ;;  %373 = vadd.xlane.f32.xlu0 %v372_v50  ;;  %v271_v58 = vpop.xlane.xlu0 %270 }
 0x16c   :  { %v319_v59 = vmul.f32 0.03125, %v274_v57  ;;  %v318_v61 = vmul.f32 0.03125, %v271_v58  ;;  %v353_v63 = vmul.f32 %v1004_v1, %v1004_v1  ;;  %v365_v18 = vmul.f32 %v1001_v6, %v1001_v6 }
 0x16e   :  { %v1014_v19 = vsub.f32 %v875_v22, %v319_v59  ;;  %v1017_v0 = vsub.f32 %v877_v23, %v318_v61  ;;  %v375_v4 = vsel %vm67_vm0, %v353_v63, 0.0  ;;  %v411_v13 = vsel %vm67_vm0, %v365_v18, 0.0 }
 0x16f   :  { %v268_v5 = vpop.xlane.xlu1 %267  ;;  %409 = vadd.xlane.f32.xlu0 %v408_v3  ;;  %376 = vadd.xlane.f32.xlu1 %v375_v4  ;;  %v265_v9 = vpop.xlane.xlu0 %264 }
 0x170   :  { %v317_v10 = vmul.f32 0.03125, %v268_v5  ;;  %v316_v11 = vmul.f32 0.03125, %v265_v9  ;;  %v358_v36 = vmul.f32 %v1017_v0, %v1017_v0  ;;  %v359_v15 = vmul.f32 %v1014_v19, %v1014_v19 }
 0x172   :  { %v1025_v22 = vsub.f32 %v897_v38, %v317_v10  ;;  %v1028_v23 = vsub.f32 %v899_v39, %v316_v11  ;;  %v390_v14 = vsel %vm67_vm0, %v358_v36, 0.0  ;;  %v393_v28 = vsel %vm67_vm0, %v359_v15, 0.0 }
 0x173   :  { %v304_v16 = vpop.xlane.xlu1 %303  ;;  %412 = vadd.xlane.f32.xlu1 %v411_v13  ;;  %391 = vadd.xlane.f32.xlu0 %v390_v14  ;;  %v301_v17 = vpop.xlane.xlu0 %300 }
 0x174   :  { %v329_v20 = vmul.f32 0.03125, %v304_v16  ;;  %v328_v25 = vmul.f32 0.03125, %v301_v17  ;;  %v356_v26 = vmul.f32 %v1028_v23, %v1028_v23  ;;  %v357_v38 = vmul.f32 %v1025_v22, %v1025_v22 }
 0x176   :  { %v1038_v39 = vsub.f32 %v919_v51, %v329_v20  ;;  %v1041_v27 = vsub.f32 %v921_v52, %v328_v25  ;;  %v384_v29 = vsel %vm67_vm0, %v356_v26, 0.0  ;;  %v387_v35 = vsel %vm67_vm0, %v357_v38, 0.0 }
 0x177   :  { %v286_v32 = vpop.xlane.xlu1 %285  ;;  %394 = vadd.xlane.f32.xlu1 %v393_v28  ;;  %385 = vadd.xlane.f32.xlu0 %v384_v29  ;;  %v283_v46 = vpop.xlane.xlu0 %282 }
 0x178   :  { %v323_v47 = vmul.f32 0.03125, %v286_v32  ;;  %v322_v33 = vmul.f32 0.03125, %v283_v46  ;;  %v368_v34 = vmul.f32 %v1041_v27, %v1041_v27  ;;  %v369_v62 = vmul.f32 %v1038_v39, %v1038_v39 }
 0x17a   :  { %v1049_v51 = vsub.f32 %v923_v54, %v323_v47  ;;  %v1052_v52 = vsub.f32 %v925_v55, %v322_v33  ;;  %v420_v37 = vsel %vm67_vm0, %v368_v34, 0.0  ;;  %v423_v49 = vsel %vm67_vm0, %v369_v62, 0.0 }
 0x17b   :  { %v280_v41 = vpop.xlane.xlu1 %279  ;;  %388 = vadd.xlane.f32.xlu1 %v387_v35  ;;  %421 = vadd.xlane.f32.xlu0 %v420_v37  ;;  %v277_v42 = vpop.xlane.xlu0 %276 }
 0x17c   :  { %v321_v43 = vmul.f32 0.03125, %v280_v41  ;;  %v320_v44 = vmul.f32 0.03125, %v277_v42  ;;  %v362_v45 = vmul.f32 %v1052_v52, %v1052_v52  ;;  %v363_v54 = vmul.f32 %v1049_v51, %v1049_v51 }
 0x17e   :  { %v1062_v55 = vsub.f32 %v946_v7, %v321_v43  ;;  %v1065_v48 = vsub.f32 %v948_v8, %v320_v44  ;;  %v402_v50 = vsel %vm67_vm0, %v362_v45, 0.0  ;;  %v405_v61 = vsel %vm67_vm0, %v363_v54, 0.0  ;;  %v1091_v44 = vld [vmem:[%s1242_s4] ss:$0 sm:$0xff] }
 0x17f   :  { %v310_v53 = vpop.xlane.xlu1 %309  ;;  %424 = vadd.xlane.f32.xlu1 %v423_v49  ;;  %403 = vadd.xlane.f32.xlu0 %v402_v50  ;;  %v307_v56 = vpop.xlane.xlu0 %306  ;;  %v1097_v50 = vld [vmem:[%s1243_s5] ss:$0 sm:$0xff] }
 0x180   :  { %v331_v57 = vmul.f32 0.03125, %v310_v53  ;;  %v330_v58 = vmul.f32 0.03125, %v307_v56  ;;  %v360_v59 = vmul.f32 %v1065_v48, %v1065_v48  ;;  %v361_v18 = vmul.f32 %v1062_v55, %v1062_v55 }
 0x182   :  { %v1073_v7 = vsub.f32 %v960_v2, %v331_v57  ;;  %v1076_v8 = vsub.f32 %v962_v12, %v330_v58  ;;  %v396_v63 = vsel %vm67_vm0, %v360_v59, 0.0  ;;  %v399_v4 = vsel %vm67_vm0, %v361_v18, 0.0 }
 0x183   :  { %406 = vadd.xlane.f32.xlu1 %v405_v61  ;;  %397 = vadd.xlane.f32.xlu0 %v396_v63 }
 0x184   :  { %v370_v3 = vmul.f32 %v1076_v8, %v1076_v8  ;;  %v371_v2 = vmul.f32 %v1073_v7, %v1073_v7 }
 0x186   :  { %v426_v5 = vsel %vm67_vm0, %v370_v3, 0.0  ;;  %v429_v12 = vsel %vm67_vm0, %v371_v2, 0.0 }
 0x187   :  { %400 = vadd.xlane.f32.xlu1 %v399_v4  ;;  %427 = vadd.xlane.f32.xlu0 %v426_v5 }
 0x18b   :  { %430 = vadd.xlane.f32.xlu1 %v429_v12 }
 0x1ec   :  { %v380_v9 = vpop.xlane.xlu0 %379 }
 0x1ed   :  { %v434_v10 = vmul.f32 0.03125, %v380_v9 }
 0x1ef   :  { %v454_v11 = vadd.f32 1e-05, %v434_v10 }
 0x1f0   :  { %v383_v36 = vpop.xlane.xlu1 %382  ;;  %v416_v13 = vpop.xlane.xlu0 %415 }
 0x1f1   :  { %643 = vrsqrt.f32 %v454_v11  ;;  %v435_v14 = vmul.f32 0.03125, %v383_v36  ;;  %v446_v15 = vmul.f32 0.03125, %v416_v13 }
 0x1f3   :  { %v455_v16 = vadd.f32 1e-05, %v435_v14  ;;  %v466_v17 = vadd.f32 1e-05, %v446_v15 }
 0x1f4   :  { %v419_v20 = vpop.xlane.xlu1 %418  ;;  %v374_v25 = vpop.xlane.xlu0 %373 }
 0x1f5   :  { %645 = vrsqrt.f32 %v455_v16  ;;  %v447_v26 = vmul.f32 0.03125, %v419_v20  ;;  %v432_v38 = vmul.f32 0.03125, %v374_v25 }
 0x1f6   :  { %647 = vrsqrt.f32 %v466_v17 }
 0x1f7   :  { %v467_v28 = vadd.f32 1e-05, %v447_v26  ;;  %v452_v29 = vadd.f32 1e-05, %v432_v38 }
 0x1f8   :  { %v377_v32 = vpop.xlane.xlu1 %376  ;;  %v410_v46 = vpop.xlane.xlu0 %409 }
 0x1f9   :  { %649 = vrsqrt.f32 %v467_v28  ;;  %v433_v47 = vmul.f32 0.03125, %v377_v32  ;;  %v444_v33 = vmul.f32 0.03125, %v410_v46 }
 0x1fa   :  { %651 = vrsqrt.f32 %v452_v29 }
 0x1fb   :  { %v453_v34 = vadd.f32 1e-05, %v433_v47  ;;  %v464_v35 = vadd.f32 1e-05, %v444_v33 }
 0x1fc   :  { %v413_v37 = vpop.xlane.xlu1 %412  ;;  %v392_v62 = vpop.xlane.xlu0 %391 }
 0x1fd   :  { %653 = vrsqrt.f32 %v453_v34  ;;  %v445_v41 = vmul.f32 0.03125, %v413_v37  ;;  %v438_v42 = vmul.f32 0.03125, %v392_v62 }
 0x1fe   :  { %v644_v43 = vpop.eup %643  ;;  %655 = vrsqrt.f32 %v464_v35 }
 0x1ff   :  { %v494_v45 = vmul.f32 %v644_v43, %v972_v24  ;;  %v465_v54 = vadd.f32 1e-05, %v445_v41  ;;  %v458_v49 = vadd.f32 1e-05, %v438_v42 }
 0x200   :  { %v395_v53 = vpop.xlane.xlu1 %394  ;;  %v386_v56 = vpop.xlane.xlu0 %385 }
 0x201   :  { %v521_v57 = vmul.f32 %v1091_v44, %v494_v45  ;;  %657 = vrsqrt.f32 %v465_v54  ;;  %v439_v58 = vmul.f32 0.03125, %v395_v53  ;;  %v436_v59 = vmul.f32 0.03125, %v386_v56 }
 0x202   :  { %v646_v61 = vpop.eup %645  ;;  %659 = vrsqrt.f32 %v458_v49 }
 0x203   :  { %v648_v63 = vpop.eup %647  ;;  %v548_v18 = vadd.f32 %v1097_v50, %v521_v57  ;;  %v495_v24 = vmul.f32 %v646_v61, %v977_v30  ;;  %v459_v3 = vadd.f32 1e-05, %v439_v58  ;;  %v456_v4 = vadd.f32 1e-05, %v436_v59 }
 0x204   :  { %v506_v5 = vmul.f32 %v648_v63, %v969_v21  ;;  %v389_v2 = vpop.xlane.xlu1 %388  ;;  %v422_v12 = vpop.xlane.xlu0 %421 }
 0x205   :  { %568 = vst.msk [vmem:[%s1244_s6 + $0x10] sm:$0xff] %vm67_vm0, %v548_v18  ;;  %v522_v9 = vmul.f32 %v1091_v44, %v495_v24  ;;  %661 = vrsqrt.f32 %v459_v3  ;;  %v437_v10 = vmul.f32 0.03125, %v389_v2  ;;  %v448_v11 = vmul.f32 0.03125, %v422_v12 }
 0x206   :  { %v650_v36 = vpop.eup %649  ;;  %v533_v13 = vmul.f32 %v1091_v44, %v506_v5  ;;  %663 = vrsqrt.f32 %v456_v4 }
 0x207   :  { %v652_v30 = vpop.eup %651  ;;  %v549_v14 = vadd.f32 %v1097_v50, %v522_v9  ;;  %v507_v21 = vmul.f32 %v650_v36, %v990_v40  ;;  %v457_v15 = vadd.f32 1e-05, %v437_v10  ;;  %v468_v16 = vadd.f32 1e-05, %v448_v11 }
 0x208   :  { %v560_v17 = vadd.f32 %v1097_v50, %v533_v13  ;;  %v492_v20 = vmul.f32 %v652_v30, %v980_v31  ;;  %v425_v25 = vpop.xlane.xlu1 %424  ;;  %v404_v26 = vpop.xlane.xlu0 %403 }
 0x209   :  { %569 = vst.msk [vmem:[%s1244_s6 + $0x18] sm:$0xff] %vm67_vm0, %v549_v14  ;;  %v534_v38 = vmul.f32 %v1091_v44, %v507_v21  ;;  %665 = vrsqrt.f32 %v457_v15  ;;  %v449_v28 = vmul.f32 0.03125, %v425_v25  ;;  %v442_v29 = vmul.f32 0.03125, %v404_v26 }
 0x20a   :  { %v654_v32 = vpop.eup %653  ;;  %580 = vst.msk [vmem:[%s1244_s6 + $0x70] sm:$0xff] %vm67_vm0, %v560_v17  ;;  %v519_v31 = vmul.f32 %v1091_v44, %v492_v20  ;;  %667 = vrsqrt.f32 %v468_v16 }
 0x20b   :  { %v656_v40 = vpop.eup %655  ;;  %v561_v46 = vadd.f32 %v1097_v50, %v534_v38  ;;  %v493_v47 = vmul.f32 %v654_v32, %v1004_v1  ;;  %v469_v33 = vadd.f32 1e-05, %v449_v28  ;;  %v462_v34 = vadd.f32 1e-05, %v442_v29 }
 0x20c   :  { %v546_v35 = vadd.f32 %v1097_v50, %v519_v31  ;;  %v504_v37 = vmul.f32 %v656_v40, %v993_v60  ;;  %v407_v62 = vpop.xlane.xlu1 %406  ;;  %v398_v41 = vpop.xlane.xlu0 %397 }
 0x20d   :  { %581 = vst.msk [vmem:[%s1244_s6 + $0x78] sm:$0xff] %vm67_vm0, %v561_v46  ;;  %v520_v42 = vmul.f32 %v1091_v44, %v493_v47  ;;  %669 = vrsqrt.f32 %v469_v33  ;;  %v443_v43 = vmul.f32 0.03125, %v407_v62  ;;  %v440_v45 = vmul.f32 0.03125, %v398_v41 }
 0x20e   :  { %v658_v54 = vpop.eup %657  ;;  %566 = vst.msk [vmem:[%s1244_s6] sm:$0xff] %vm67_vm0, %v546_v35  ;;  %v531_v60 = vmul.f32 %v1091_v44, %v504_v37  ;;  %671 = vrsqrt.f32 %v462_v34 }
 0x20f   :  { %v660_v1 = vpop.eup %659  ;;  %v547_v49 = vadd.f32 %v1097_v50, %v520_v42  ;;  %v505_v53 = vmul.f32 %v658_v54, %v1001_v6  ;;  %v463_v56 = vadd.f32 1e-05, %v443_v43  ;;  %v460_v57 = vadd.f32 1e-05, %v440_v45 }
 0x210   :  { %v558_v58 = vadd.f32 %v1097_v50, %v531_v60  ;;  %v498_v59 = vmul.f32 %v660_v1, %v1017_v0  ;;  %v401_v61 = vpop.xlane.xlu1 %400  ;;  %v428_v63 = vpop.xlane.xlu0 %427 }
 0x211   :  { %567 = vst.msk [vmem:[%s1244_s6 + $0x8] sm:$0xff] %vm67_vm0, %v547_v49  ;;  %v532_v18 = vmul.f32 %v1091_v44, %v505_v53  ;;  %673 = vrsqrt.f32 %v463_v56  ;;  %v441_v24 = vmul.f32 0.03125, %v401_v61  ;;  %v450_v3 = vmul.f32 0.03125, %v428_v63 }
 0x212   :  { %v662_v4 = vpop.eup %661  ;;  %578 = vst.msk [vmem:[%s1244_s6 + $0x60] sm:$0xff] %vm67_vm0, %v558_v58  ;;  %v525_v6 = vmul.f32 %v1091_v44, %v498_v59  ;;  %675 = vrsqrt.f32 %v460_v57 }
 0x213   :  { %v664_v0 = vpop.eup %663  ;;  %v559_v5 = vadd.f32 %v1097_v50, %v532_v18  ;;  %v499_v2 = vmul.f32 %v662_v4, %v1014_v19  ;;  %v461_v12 = vadd.f32 1e-05, %v441_v24  ;;  %v470_v9 = vadd.f32 1e-05, %v450_v3 }
 0x214   :  { %v552_v10 = vadd.f32 %v1097_v50, %v525_v6  ;;  %v496_v11 = vmul.f32 %v664_v0, %v1028_v23  ;;  %v431_v36 = vpop.xlane.xlu1 %430 }
 0x215   :  { %579 = vst.msk [vmem:[%s1244_s6 + $0x68] sm:$0xff] %vm67_vm0, %v559_v5  ;;  %v526_v13 = vmul.f32 %v1091_v44, %v499_v2  ;;  %677 = vrsqrt.f32 %v461_v12  ;;  %v451_v30 = vmul.f32 0.03125, %v431_v36 }
 0x216   :  { %v666_v14 = vpop.eup %665  ;;  %572 = vst.msk [vmem:[%s1244_s6 + $0x30] sm:$0xff] %vm67_vm0, %v552_v10  ;;  %v523_v19 = vmul.f32 %v1091_v44, %v496_v11  ;;  %679 = vrsqrt.f32 %v470_v9 }
 0x217   :  { %v668_v23 = vpop.eup %667  ;;  %v553_v21 = vadd.f32 %v1097_v50, %v526_v13  ;;  %v497_v15 = vmul.f32 %v666_v14, %v1025_v22  ;;  %v471_v16 = vadd.f32 1e-05, %v451_v30 }
 0x218   :  { %v550_v17 = vadd.f32 %v1097_v50, %v523_v19  ;;  %v508_v20 = vmul.f32 %v668_v23, %v1041_v27 }
 0x219   :  { %573 = vst.msk [vmem:[%s1244_s6 + $0x38] sm:$0xff] %vm67_vm0, %v553_v21  ;;  %v524_v25 = vmul.f32 %v1091_v44, %v497_v15  ;;  %681 = vrsqrt.f32 %v471_v16 }
 0x21a   :  { %v670_v26 = vpop.eup %669  ;;  %570 = vst.msk [vmem:[%s1244_s6 + $0x20] sm:$0xff] %vm67_vm0, %v550_v17  ;;  %v535_v22 = vmul.f32 %v1091_v44, %v508_v20 }
 0x21b   :  { %v672_v38 = vpop.eup %671  ;;  %v551_v28 = vadd.f32 %v1097_v50, %v524_v25  ;;  %v509_v27 = vmul.f32 %v670_v26, %v1038_v39 }
 0x21c   :  { %v562_v29 = vadd.f32 %v1097_v50, %v535_v22  ;;  %v502_v32 = vmul.f32 %v672_v38, %v1052_v52 }
 0x21d   :  { %571 = vst.msk [vmem:[%s1244_s6 + $0x28] sm:$0xff] %vm67_vm0, %v551_v28  ;;  %v536_v31 = vmul.f32 %v1091_v44, %v509_v27 }
 0x21e   :  { %v674_v40 = vpop.eup %673  ;;  %582 = vst.msk [vmem:[%s1244_s6 + $0x80] sm:$0xff] %vm67_vm0, %v562_v29  ;;  %v529_v46 = vmul.f32 %v1091_v44, %v502_v32 }
 0x21f   :  { %v676_v39 = vpop.eup %675  ;;  %v563_v47 = vadd.f32 %v1097_v50, %v536_v31  ;;  %v503_v52 = vmul.f32 %v674_v40, %v1049_v51 }
 0x220   :  { %v556_v33 = vadd.f32 %v1097_v50, %v529_v46  ;;  %v500_v34 = vmul.f32 %v676_v39, %v1065_v48 }
 0x221   :  { %583 = vst.msk [vmem:[%s1244_s6 + $0x88] sm:$0xff] %vm67_vm0, %v563_v47  ;;  %v530_v35 = vmul.f32 %v1091_v44, %v503_v52 }
 0x222   :  { %v678_v37 = vpop.eup %677  ;;  %576 = vst.msk [vmem:[%s1244_s6 + $0x50] sm:$0xff] %vm67_vm0, %v556_v33  ;;  %v527_v62 = vmul.f32 %v1091_v44, %v500_v34 }
 0x223   :  { %v680_v51 = vpop.eup %679  ;;  %v557_v41 = vadd.f32 %v1097_v50, %v530_v35  ;;  %v501_v48 = vmul.f32 %v678_v37, %v1062_v55 }
 0x224   :  { %v554_v42 = vadd.f32 %v1097_v50, %v527_v62  ;;  %v510_v43 = vmul.f32 %v680_v51, %v1076_v8 }
 0x225   :  { %577 = vst.msk [vmem:[%s1244_s6 + $0x58] sm:$0xff] %vm67_vm0, %v557_v41  ;;  %v528_v45 = vmul.f32 %v1091_v44, %v501_v48 }
 0x226   :  { %v682_v54 = vpop.eup %681  ;;  %574 = vst.msk [vmem:[%s1244_s6 + $0x40] sm:$0xff] %vm67_vm0, %v554_v42  ;;  %v537_v60 = vmul.f32 %v1091_v44, %v510_v43 }
 0x227   :  { %v555_v55 = vadd.f32 %v1097_v50, %v528_v45  ;;  %v511_v1 = vmul.f32 %v682_v54, %v1073_v7 }
 0x228   :  { %v564_v8 = vadd.f32 %v1097_v50, %v537_v60 }
 0x229   :  { %575 = vst.msk [vmem:[%s1244_s6 + $0x48] sm:$0xff] %vm67_vm0, %v555_v55  ;;  %v538_v49 = vmul.f32 %v1091_v44, %v511_v1 }
 0x22a   :  { %584 = vst.msk [vmem:[%s1244_s6 + $0x90] sm:$0xff] %vm67_vm0, %v564_v8 }
 0x22b   :  { %v565_v53 = vadd.f32 %v1097_v50, %v538_v49 }
 0x22d   :  { %585 = vst.msk [vmem:[%s1244_s6 + $0x98] sm:$0xff] %vm67_vm0, %v565_v53 }

// kernel: run.11
= control target key start
LH: loop header
LB: loop body
LE: loop exit
PB: predicated region body
PF: predicated region fallthrough
CT: control target
= control target key end

     0   :  { %vm70_vm0 = vcmask 261120   ;;  %vm256_vm1 = vcmask 523264   ;;  %s1564_s1 = inlined_call_operand.vmem [shape: f32[32,64], index: 1, kind: input, shape index: {}]   ;;  %s1565_s0 = inlined_call_operand.vmem [shape: f32[160,32], index: 0, kind: input, shape index: {}, may-alias: {0,7}]   ;;  %s1566_s3 = inlined_call_operand.vmem [shape: f32[64,32], index: 3, kind: input, shape index: {}]   ;;  %s1567_s2 = inlined_call_operand.vmem [shape: f32[1,64], index: 2, kind: input, shape index: {}]   ;;  %s1568_s4 = inlined_call_operand.vmem [shape: f32[1,32], index: 4, kind: input, shape index: {}]   ;;  %s1569_s5 = inlined_call_operand.vmem [shape: f32[1,32], index: 5, kind: input, shape index: {}]   ;;  %s1570_s6 = inlined_call_operand.vmem [shape: f32[1,32], index: 6, kind: input, shape index: {}]   ;;  %s1571_s7 = inlined_call_operand.vmem [shape: f32[160,32], index: 7, kind: output, shape index: {}, may-alias: {0,7}]  }
   0x1   :  { %v49_v0 = vld [vmem:[%s1564_s1 + $0x10] sm:$0xff]  ;;  %v50_v1 = vld [vmem:[%s1564_s1 + $0x18] sm:$0xff]  ;;  %v47_v2 = vld [vmem:[%s1564_s1] sm:$0xff] }
   0x2   :  { %v62_v3 = vpack.c.bf16 %v50_v1, %v49_v0  ;;  %v48_v4 = vld [vmem:[%s1564_s1 + $0x8] sm:$0xff]  ;;  %v983_v5 = vld [vmem:[%s1565_s0] sm:$0xff]  ;;  %v996_v9 = vld [vmem:[%s1565_s0 + $0x10] sm:$0xff] }
   0x3   :  { %v988_v6 = vld [vmem:[%s1565_s0 + $0x8] sm:$0xff]  ;;  %v61_v7 = vpack.c.bf16 %v48_v4, %v47_v2  ;;  %v1001_v10 = vld [vmem:[%s1565_s0 + $0x18] sm:$0xff]  ;;  %v1006_v11 = vld [vmem:[%s1565_s0 + $0x20] sm:$0xff] }
   0x4   :  { %v51_v8 = vpack.c.bf16 %v988_v6, %v983_v5  ;;  %836 = vmatprep.subr.bf16.mxu0 %v62_v3  ;;  %v1011_v12 = vld [vmem:[%s1565_s0 + $0x28] sm:$0xff]  ;;  %v52_v13 = vpack.c.bf16 %v1001_v10, %v996_v9  ;;  %v240_v15 = vld [vmem:[%s1566_s3 + $0x30] sm:$0xff]  ;;  %v241_v16 = vld [vmem:[%s1566_s3 + $0x38] sm:$0xff] }
   0x5   :  { %837 = vmatpush3.bf16.msra.mxu0 %v62_v3  ;;  %v53_v14 = vpack.c.bf16 %v1011_v12, %v1006_v11  ;;  %v255_v17 = vpack.c.bf16 %v241_v16, %v240_v15  ;;  %v1028_v18 = vld [vmem:[%s1565_s0 + $0x30] sm:$0xff]  ;;  %v1033_v19 = vld [vmem:[%s1565_s0 + $0x38] sm:$0xff]  ;;  %v1038_v20 = vld [vmem:[%s1565_s0 + $0x40] sm:$0xff] }
   0x6   :  { %840 = vmatprep.mubr.msk.bf16.mxu0 %vm70_vm0, %v51_v8  ;;  %838 = vmatprep.subr.bf16.mxu0 %v61_v7  ;;  %v1043_v21 = vld [vmem:[%s1565_s0 + $0x48] sm:$0xff]  ;;  %v54_v22 = vpack.c.bf16 %v1033_v19, %v1028_v18  ;;  %v1054_v24 = vld [vmem:[%s1565_s0 + $0x50] sm:$0xff]  ;;  %v1059_v25 = vld [vmem:[%s1565_s0 + $0x58] sm:$0xff] }
   0x7   :  { %860 = vmatprep.subr.bf16.mxu1 %v255_v17  ;;  %v55_v23 = vpack.c.bf16 %v1043_v21, %v1038_v20  ;;  %v1064_v26 = vld [vmem:[%s1565_s0 + $0x60] sm:$0xff]  ;;  %v1069_v27 = vld [vmem:[%s1565_s0 + $0x68] sm:$0xff]  ;;  %v56_v28 = vpack.c.bf16 %v1059_v25, %v1054_v24  ;;  %v1080_v30 = vld [vmem:[%s1565_s0 + $0x70] sm:$0xff] }
   0x8   :  { %861 = vmatpush3.bf16.msra.mxu1 %v255_v17  ;;  %v57_v29 = vpack.c.bf16 %v1069_v27, %v1064_v26  ;;  %v1085_v31 = vld [vmem:[%s1565_s0 + $0x78] sm:$0xff]  ;;  %v1090_v32 = vld [vmem:[%s1565_s0 + $0x80] sm:$0xff]  ;;  %v1095_v33 = vld [vmem:[%s1565_s0 + $0x88] sm:$0xff] }
   0x9   :  { %839 = vmatpush3.bf16.msra.mxu0 %v61_v7  ;;  %v58_v34 = vpack.c.bf16 %v1085_v31, %v1080_v30  ;;  %v59_v35 = vpack.c.bf16 %v1095_v33, %v1090_v32  ;;  %v1106_v36 = vld [vmem:[%s1565_s0 + $0x90] sm:$0xff]  ;;  %v1111_v37 = vld [vmem:[%s1565_s0 + $0x98] sm:$0xff]  ;;  %v238_v39 = vld [vmem:[%s1566_s3 + $0x20] sm:$0xff] }
   0xa   :  { %v60_v38 = vpack.c.bf16 %v1111_v37, %v1106_v36  ;;  %v239_v40 = vld [vmem:[%s1566_s3 + $0x28] sm:$0xff]  ;;  %v236_v42 = vld [vmem:[%s1566_s3 + $0x10] sm:$0xff]  ;;  %v237_v43 = vld [vmem:[%s1566_s3 + $0x18] sm:$0xff] }
   0xb   :  { %v254_v41 = vpack.c.bf16 %v239_v40, %v238_v39  ;;  %v253_v44 = vpack.c.bf16 %v237_v43, %v236_v42  ;;  %v234_v45 = vld [vmem:[%s1566_s3] sm:$0xff]  ;;  %v235_v46 = vld [vmem:[%s1566_s3 + $0x8] sm:$0xff] }
   0xc   :  { %841 = vmatmul.mubr.msk.bf16.vlgmr.msra.gmra.mxu0 %vm70_vm0, %v52_v13  ;;  %v252_v47 = vpack.c.bf16 %v235_v46, %v234_v45  ;;  %v1137_v50 = vld [vmem:[%s1567_s2] ss:$0 sm:$0xff] }
   0xd   :  { %844 = vmatprep.mubr.msk.bf16.mxu0 %vm70_vm0, %v53_v14  ;;  %862 = vmatprep.subr.bf16.mxu1 %v254_v41 }
   0xe   :  { %863 = vmatpush3.bf16.msra.mxu1 %v254_v41 }
   0xf   :  { %864 = vmatprep.subr.bf16.mxu1 %v253_v44 }
  0x12   :  { %865 = vmatpush3.bf16.msra.mxu1 %v253_v44 }
  0x13   :  { %866 = vmatprep.subr.bf16.mxu1 %v252_v47 }
  0x14   :  { %845 = vmatmul.mubr.msk.bf16.gmra.mxu0 %vm70_vm0, %v54_v22 }
  0x15   :  { %848 = vmatprep.mubr.msk.bf16.mxu0 %vm70_vm0, %v55_v23 }
  0x16   :  { %867 = vmatpush3.bf16.msra.mxu1 %v252_v47 }
  0x1c   :  { %849 = vmatmul.mubr.msk.bf16.gmra.mxu0 %vm70_vm0, %v56_v28 }
  0x1d   :  { %852 = vmatprep.mubr.msk.bf16.mxu0 %vm70_vm0, %v57_v29 }
  0x24   :  { %853 = vmatmul.mubr.msk.bf16.gmra.mxu0 %vm70_vm0, %v58_v34 }
  0x25   :  { %856 = vmatprep.mubr.msk.bf16.mxu0 %vm70_vm0, %v59_v35 }
  0x2c   :  { %857 = vmatmul.mubr.msk.bf16.gmra.mxu0 %vm70_vm0, %v60_v38 }
  0xcc   :  { %v842_v48 = vpop.f32.mrf.mxu0 }
  0xcd   :  { %v144_v54 = vadd.f32 %v842_v48, %v1137_v50 }
  0xce   :  { %v135_v49 = vpop.f32.mrf.mxu0 }
  0xcf   :  { %v136_v52 = vadd.f32 %v1137_v50, %v135_v49  ;;  %v216_v61 = vmax.f32 %v144_v54, 0.0 }
  0xd0   :  { %v843_v51 = vpop.f32.mrf.mxu0 }
  0xd1   :  { %v147_v53 = vadd.f32 %v843_v51, %v1137_v50  ;;  %v214_v59 = vmax.f32 %v136_v52, 0.0 }
  0xd2   :  { %v138_v55 = vpop.f32.mrf.mxu0 }
  0xd3   :  { %v139_v56 = vadd.f32 %v1137_v50, %v138_v55  ;;  %v217_v57 = vmax.f32 %v147_v53, 0.0 }
  0xd4   :  { %v846_v58 = vpop.f32.mrf.mxu0 }
  0xd5   :  { %v215_v60 = vmax.f32 %v139_v56, 0.0  ;;  %v243_v0 = vpack.c.bf16 %v217_v57, %v216_v61  ;;  %v160_v4 = vadd.f32 %v846_v58, %v1137_v50 }
  0xd6   :  { %v151_v62 = vpop.f32.mrf.mxu0 }
  0xd7   :  { %v242_v63 = vpack.c.bf16 %v215_v60, %v214_v59  ;;  %v152_v2 = vadd.f32 %v1137_v50, %v151_v62  ;;  %v220_v17 = vmax.f32 %v160_v4, 0.0 }
  0xd8   :  { %v847_v1 = vpop.f32.mrf.mxu0 }
  0xd9   :  { %v163_v3 = vadd.f32 %v847_v1, %v1137_v50  ;;  %868 = vmatprep.mubr.msk.bf16.mxu1 %vm256_vm1, %v242_v63  ;;  %v218_v15 = vmax.f32 %v152_v2, 0.0 }
  0xda   :  { %v154_v7 = vpop.f32.mrf.mxu0  ;;  %869 = vmatmul.mubr.msk.bf16.vlgmr.msra.gmra.mxu1 %vm256_vm1, %v243_v0 }
  0xdb   :  { %v155_v8 = vadd.f32 %v1137_v50, %v154_v7  ;;  %v221_v13 = vmax.f32 %v163_v3, 0.0 }
  0xdc   :  { %v850_v14 = vpop.f32.mrf.mxu0 }
  0xdd   :  { %v219_v16 = vmax.f32 %v155_v8, 0.0  ;;  %v245_v28 = vpack.c.bf16 %v221_v13, %v220_v17  ;;  %v176_v38 = vadd.f32 %v850_v14, %v1137_v50 }
  0xde   :  { %v167_v22 = vpop.f32.mrf.mxu0 }
  0xdf   :  { %v244_v23 = vpack.c.bf16 %v219_v16, %v218_v15  ;;  %v168_v34 = vadd.f32 %v1137_v50, %v167_v22  ;;  %v224_v45 = vmax.f32 %v176_v38, 0.0 }
  0xe0   :  { %v851_v29 = vpop.f32.mrf.mxu0 }
  0xe1   :  { %v179_v35 = vadd.f32 %v851_v29, %v1137_v50  ;;  %872 = vmatprep.mubr.msk.bf16.mxu1 %vm256_vm1, %v244_v23  ;;  %v222_v43 = vmax.f32 %v168_v34, 0.0  ;;  %v1172_v23 = vld [vmem:[%s1568_s4] ss:$0 sm:$0xff] }
  0xe2   :  { %v170_v39 = vpop.f32.mrf.mxu0  ;;  %873 = vmatmul.mubr.msk.bf16.gmra.mxu1 %vm256_vm1, %v245_v28 }
  0xe3   :  { %v171_v40 = vadd.f32 %v1137_v50, %v170_v39  ;;  %v225_v41 = vmax.f32 %v179_v35, 0.0 }
  0xe4   :  { %v854_v42 = vpop.f32.mrf.mxu0 }
  0xe5   :  { %v223_v44 = vmax.f32 %v171_v40, 0.0  ;;  %v247_v48 = vpack.c.bf16 %v225_v41, %v224_v45  ;;  %v192_v53 = vadd.f32 %v854_v42, %v1137_v50 }
  0xe6   :  { %v183_v46 = vpop.f32.mrf.mxu0 }
  0xe7   :  { %v246_v47 = vpack.c.bf16 %v223_v44, %v222_v43  ;;  %v184_v51 = vadd.f32 %v1137_v50, %v183_v46  ;;  %v228_v60 = vmax.f32 %v192_v53, 0.0 }
  0xe8   :  { %v855_v49 = vpop.f32.mrf.mxu0 }
  0xe9   :  { %v195_v52 = vadd.f32 %v855_v49, %v1137_v50  ;;  %876 = vmatprep.mubr.msk.bf16.mxu1 %vm256_vm1, %v246_v47  ;;  %v226_v58 = vmax.f32 %v184_v51, 0.0 }
  0xea   :  { %v186_v54 = vpop.f32.mrf.mxu0  ;;  %877 = vmatmul.mubr.msk.bf16.gmra.mxu1 %vm256_vm1, %v247_v48 }
  0xeb   :  { %v187_v55 = vadd.f32 %v1137_v50, %v186_v54  ;;  %v229_v56 = vmax.f32 %v195_v52, 0.0 }
  0xec   :  { %v858_v57 = vpop.f32.mrf.mxu0 }
  0xed   :  { %v227_v59 = vmax.f32 %v187_v55, 0.0  ;;  %v249_v63 = vpack.c.bf16 %v229_v56, %v228_v60  ;;  %v208_v3 = vadd.f32 %v858_v57, %v1137_v50 }
  0xee   :  { %v199_v61 = vpop.f32.mrf.mxu0 }
  0xef   :  { %v248_v62 = vpack.c.bf16 %v227_v59, %v226_v58  ;;  %v200_v1 = vadd.f32 %v1137_v50, %v199_v61  ;;  %v232_v15 = vmax.f32 %v208_v3, 0.0 }
  0xf0   :  { %v859_v0 = vpop.f32.mrf.mxu0 }
  0xf1   :  { %v211_v2 = vadd.f32 %v859_v0, %v1137_v50  ;;  %880 = vmatprep.mubr.msk.bf16.mxu1 %vm256_vm1, %v248_v62  ;;  %v230_v13 = vmax.f32 %v200_v1, 0.0 }
  0xf2   :  { %v202_v4 = vpop.f32.mrf.mxu0  ;;  %881 = vmatmul.mubr.msk.bf16.gmra.mxu1 %vm256_vm1, %v249_v63 }
  0xf3   :  { %v203_v7 = vadd.f32 %v1137_v50, %v202_v4  ;;  %v233_v8 = vmax.f32 %v211_v2, 0.0 }
  0xf5   :  { %v231_v14 = vmax.f32 %v203_v7, 0.0  ;;  %v251_v17 = vpack.c.bf16 %v233_v8, %v232_v15 }
  0xf7   :  { %v250_v16 = vpack.c.bf16 %v231_v14, %v230_v13 }
  0xf9   :  { %884 = vmatprep.mubr.msk.bf16.mxu1 %vm256_vm1, %v250_v16 }
  0xfa   :  { %885 = vmatmul.mubr.msk.bf16.gmra.mxu1 %vm256_vm1, %v251_v17 }
 0x19a   :  { %v870_v22 = vpop.f32.mrf.mxu1 }
 0x19b   :  { %v402_v28 = vadd.f32 %v870_v22, %v996_v9 }
 0x19c   :  { %v321_v29 = vpop.f32.mrf.mxu1 }
 0x19d   :  { %v400_v50 = vadd.f32 %v321_v29, %v983_v5  ;;  %v1177_v34 = vadd.f32 %v1172_v23, %v402_v28 }
 0x19e   :  { %v871_v35 = vpop.f32.mrf.mxu1 }
 0x19f   :  { %v403_v38 = vadd.f32 %v871_v35, %v1001_v10  ;;  %v453_v39 = vsel %vm70_vm0, %v1177_v34, 0.0  ;;  %v1183_v40 = vadd.f32 %v1172_v23, %v400_v50 }
 0x1a0   :  { %454 = vadd.xlane.f32.xlu1 %v453_v39  ;;  %v324_v41 = vpop.f32.mrf.mxu1 }
 0x1a1   :  { %v401_v42 = vadd.f32 %v324_v41, %v988_v6  ;;  %v447_v9 = vsel %vm70_vm0, %v1183_v40, 0.0  ;;  %v1189_v5 = vadd.f32 %v1172_v23, %v403_v38 }
 0x1a2   :  { %448 = vadd.xlane.f32.xlu0 %v447_v9  ;;  %v874_v43 = vpop.f32.mrf.mxu1 }
 0x1a3   :  { %v406_v10 = vadd.f32 %v874_v43, %v1028_v18  ;;  %v456_v44 = vsel %vm70_vm0, %v1189_v5, 0.0  ;;  %v1195_v45 = vadd.f32 %v1172_v23, %v401_v42 }
 0x1a4   :  { %457 = vadd.xlane.f32.xlu1 %v456_v44  ;;  %v337_v46 = vpop.f32.mrf.mxu1 }
 0x1a5   :  { %v404_v6 = vadd.f32 %v337_v46, %v1006_v11  ;;  %v450_v47 = vsel %vm70_vm0, %v1195_v45, 0.0  ;;  %v1201_v48 = vadd.f32 %v1172_v23, %v406_v10 }
 0x1a6   :  { %451 = vadd.xlane.f32.xlu0 %v450_v47  ;;  %v875_v49 = vpop.f32.mrf.mxu1 }
 0x1a7   :  { %v407_v18 = vadd.f32 %v875_v49, %v1033_v19  ;;  %v465_v53 = vsel %vm70_vm0, %v1201_v48, 0.0  ;;  %v1211_v11 = vadd.f32 %v1172_v23, %v404_v6 }
 0x1a8   :  { %v340_v51 = vpop.f32.mrf.mxu1 }
 0x1a9   :  { %v405_v52 = vadd.f32 %v340_v51, %v1011_v12  ;;  %v1208_v54 = vadd.f32 %v1172_v23, %v407_v18  ;;  %v459_v59 = vsel %vm70_vm0, %v1211_v11, 0.0 }
 0x1aa   :  { %466 = vadd.xlane.f32.xlu0 %v465_v53  ;;  %v878_v55 = vpop.f32.mrf.mxu1 }
 0x1ab   :  { %v410_v56 = vadd.f32 %v878_v55, %v1054_v24  ;;  %v468_v57 = vsel %vm70_vm0, %v1208_v54, 0.0  ;;  %v1217_v19 = vadd.f32 %v1172_v23, %v405_v52 }
 0x1ac   :  { %469 = vadd.xlane.f32.xlu1 %v468_v57  ;;  %v353_v12 = vpop.f32.mrf.mxu1 }
 0x1ad   :  { %v408_v58 = vadd.f32 %v353_v12, %v1038_v20  ;;  %v1223_v60 = vadd.f32 %v1172_v23, %v410_v56  ;;  %v462_v62 = vsel %vm70_vm0, %v1217_v19, 0.0 }
 0x1ae   :  { %460 = vadd.xlane.f32.xlu0 %v459_v59  ;;  %v879_v61 = vpop.f32.mrf.mxu1 }
 0x1af   :  { %v411_v24 = vadd.f32 %v879_v61, %v1059_v25  ;;  %v477_v20 = vsel %vm70_vm0, %v1223_v60, 0.0  ;;  %v1235_v2 = vadd.f32 %v1172_v23, %v408_v58 }
 0x1b0   :  { %463 = vadd.xlane.f32.xlu1 %v462_v62  ;;  %v356_v63 = vpop.f32.mrf.mxu1 }
 0x1b1   :  { %v409_v0 = vadd.f32 %v356_v63, %v1043_v21  ;;  %v1232_v1 = vadd.f32 %v1172_v23, %v411_v24  ;;  %v471_v13 = vsel %vm70_vm0, %v1235_v2, 0.0 }
 0x1b2   :  { %478 = vadd.xlane.f32.xlu0 %v477_v20  ;;  %v882_v3 = vpop.f32.mrf.mxu1 }
 0x1b3   :  { %v414_v25 = vadd.f32 %v882_v3, %v1080_v30  ;;  %v480_v4 = vsel %vm70_vm0, %v1232_v1, 0.0  ;;  %v1241_v7 = vadd.f32 %v1172_v23, %v409_v0 }
 0x1b4   :  { %481 = vadd.xlane.f32.xlu1 %v480_v4  ;;  %v369_v21 = vpop.f32.mrf.mxu1 }
 0x1b5   :  { %v412_v8 = vadd.f32 %v369_v21, %v1064_v26  ;;  %v1247_v14 = vadd.f32 %v1172_v23, %v414_v25  ;;  %v474_v16 = vsel %vm70_vm0, %v1241_v7, 0.0 }
 0x1b6   :  { %472 = vadd.xlane.f32.xlu0 %v471_v13  ;;  %v883_v15 = vpop.f32.mrf.mxu1 }
 0x1b7   :  { %v415_v30 = vadd.f32 %v883_v15, %v1085_v31  ;;  %v489_v26 = vsel %vm70_vm0, %v1247_v14, 0.0  ;;  %v1259_v29 = vadd.f32 %v1172_v23, %v412_v8 }
 0x1b8   :  { %475 = vadd.xlane.f32.xlu1 %v474_v16  ;;  %v372_v17 = vpop.f32.mrf.mxu1 }
 0x1b9   :  { %v413_v22 = vadd.f32 %v372_v17, %v1069_v27  ;;  %v1256_v28 = vadd.f32 %v1172_v23, %v415_v30  ;;  %v483_v41 = vsel %vm70_vm0, %v1259_v29, 0.0 }
 0x1ba   :  { %490 = vadd.xlane.f32.xlu0 %v489_v26  ;;  %v886_v50 = vpop.f32.mrf.mxu1 }
 0x1bb   :  { %v492_v31 = vsel %vm70_vm0, %v1256_v28, 0.0  ;;  %v1264_v35 = vadd.f32 %v1172_v23, %v413_v22  ;;  %v418_v27 = vadd.f32 %v886_v50, %v1106_v36 }
 0x1bc   :  { %493 = vadd.xlane.f32.xlu1 %v492_v31  ;;  %v385_v38 = vpop.f32.mrf.mxu1 }
 0x1bd   :  { %v416_v39 = vadd.f32 %v385_v38, %v1090_v32  ;;  %v486_v9 = vsel %vm70_vm0, %v1264_v35, 0.0  ;;  %v1280_v36 = vadd.f32 %v1172_v23, %v418_v27 }
 0x1be   :  { %484 = vadd.xlane.f32.xlu0 %v483_v41  ;;  %v887_v42 = vpop.f32.mrf.mxu1 }
 0x1bf   :  { %v1273_v43 = vadd.f32 %v1172_v23, %v416_v39  ;;  %v419_v44 = vadd.f32 %v887_v42, %v1111_v37  ;;  %v501_v47 = vsel %vm70_vm0, %v1280_v36, 0.0 }
 0x1c0   :  { %487 = vadd.xlane.f32.xlu1 %v486_v9  ;;  %v388_v10 = vpop.f32.mrf.mxu1 }
 0x1c1   :  { %v417_v46 = vadd.f32 %v388_v10, %v1095_v33  ;;  %v495_v32 = vsel %vm70_vm0, %v1273_v43, 0.0  ;;  %v1290_v37 = vadd.f32 %v1172_v23, %v419_v44 }
 0x1c2   :  { %496 = vadd.xlane.f32.xlu0 %v495_v32 }
 0x1c3   :  { %v1283_v6 = vadd.f32 %v1172_v23, %v417_v46  ;;  %v504_v33 = vsel %vm70_vm0, %v1290_v37, 0.0 }
 0x1c5   :  { %v498_v49 = vsel %vm70_vm0, %v1283_v6, 0.0 }
 0x1c6   :  { %502 = vadd.xlane.f32.xlu0 %v501_v47  ;;  %499 = vadd.xlane.f32.xlu1 %v498_v49 }
 0x1ca   :  { %505 = vadd.xlane.f32.xlu1 %v504_v33 }
 0x229   :  { %v455_v18 = vpop.xlane.xlu1 %454 }
 0x22a   :  { %v510_v51 = vmul.f32 0.03125, %v455_v18 }
 0x22b   :  { %v449_v52 = vpop.xlane.xlu0 %448 }
 0x22c   :  { %v1295_v53 = vsub.f32 %v1177_v34, %v510_v51  ;;  %v508_v55 = vmul.f32 0.03125, %v449_v52 }
 0x22d   :  { %v458_v56 = vpop.xlane.xlu1 %457 }
 0x22e   :  { %v1298_v57 = vsub.f32 %v1183_v40, %v508_v55  ;;  %v511_v12 = vmul.f32 0.03125, %v458_v56  ;;  %v550_v23 = vmul.f32 %v1295_v53, %v1295_v53 }
 0x22f   :  { %v452_v58 = vpop.xlane.xlu0 %451 }
 0x230   :  { %v1303_v59 = vsub.f32 %v1189_v5, %v511_v12  ;;  %v509_v61 = vmul.f32 0.03125, %v452_v58  ;;  %v574_v24 = vsel %vm70_vm0, %v550_v23, 0.0  ;;  %v548_v34 = vmul.f32 %v1298_v57, %v1298_v57 }
 0x231   :  { %575 = vadd.xlane.f32.xlu0 %v574_v24 }
 0x232   :  { %v1309_v62 = vsub.f32 %v1195_v45, %v509_v61  ;;  %v551_v40 = vmul.f32 %v1303_v59, %v1303_v59  ;;  %v568_v20 = vsel %vm70_vm0, %v548_v34, 0.0 }
 0x233   :  { %v467_v63 = vpop.xlane.xlu0 %466 }
 0x234   :  { %v514_v0 = vmul.f32 0.03125, %v467_v63  ;;  %v577_v5 = vsel %vm70_vm0, %v551_v40, 0.0  ;;  %v549_v3 = vmul.f32 %v1309_v62, %v1309_v62 }
 0x235   :  { %v470_v25 = vpop.xlane.xlu1 %469  ;;  %569 = vadd.xlane.f32.xlu0 %v568_v20  ;;  %578 = vadd.xlane.f32.xlu1 %v577_v5 }
 0x236   :  { %v1318_v4 = vsub.f32 %v1201_v48, %v514_v0  ;;  %v515_v45 = vmul.f32 0.03125, %v470_v25  ;;  %v571_v15 = vsel %vm70_vm0, %v549_v3, 0.0 }
 0x237   :  { %v461_v21 = vpop.xlane.xlu0 %460 }
 0x238   :  { %v1321_v8 = vsub.f32 %v1208_v54, %v515_v45  ;;  %v512_v13 = vmul.f32 0.03125, %v461_v21  ;;  %v554_v30 = vmul.f32 %v1318_v4, %v1318_v4 }
 0x239   :  { %v464_v16 = vpop.xlane.xlu1 %463  ;;  %572 = vadd.xlane.f32.xlu1 %v571_v15 }
 0x23a   :  { %v1327_v17 = vsub.f32 %v1211_v11, %v512_v13  ;;  %v513_v22 = vmul.f32 0.03125, %v464_v16  ;;  %v586_v48 = vsel %vm70_vm0, %v554_v30, 0.0  ;;  %v555_v26 = vmul.f32 %v1321_v8, %v1321_v8 }
 0x23b   :  { %v479_v50 = vpop.xlane.xlu0 %478  ;;  %587 = vadd.xlane.f32.xlu0 %v586_v48 }
 0x23c   :  { %v1333_v54 = vsub.f32 %v1217_v19, %v513_v22  ;;  %v518_v31 = vmul.f32 0.03125, %v479_v50  ;;  %v589_v38 = vsel %vm70_vm0, %v555_v26, 0.0  ;;  %v552_v27 = vmul.f32 %v1327_v17, %v1327_v17 }
 0x23d   :  { %v482_v39 = vpop.xlane.xlu1 %481  ;;  %590 = vadd.xlane.f32.xlu1 %v589_v38 }
 0x23e   :  { %v1339_v11 = vsub.f32 %v1223_v60, %v518_v31  ;;  %v519_v41 = vmul.f32 0.03125, %v482_v39  ;;  %v580_v42 = vsel %vm70_vm0, %v552_v27, 0.0  ;;  %v553_v9 = vmul.f32 %v1333_v54, %v1333_v54 }
 0x23f   :  { %v473_v10 = vpop.xlane.xlu0 %472  ;;  %581 = vadd.xlane.f32.xlu0 %v580_v42 }
 0x240   :  { %v1345_v19 = vsub.f32 %v1232_v1, %v519_v41  ;;  %v516_v44 = vmul.f32 0.03125, %v473_v10  ;;  %v583_v46 = vsel %vm70_vm0, %v553_v9, 0.0  ;;  %v558_v32 = vmul.f32 %v1339_v11, %v1339_v11 }
 0x241   :  { %v476_v47 = vpop.xlane.xlu1 %475  ;;  %584 = vadd.xlane.f32.xlu1 %v583_v46 }
 0x242   :  { %v1351_v60 = vsub.f32 %v1235_v2, %v516_v44  ;;  %v517_v49 = vmul.f32 0.03125, %v476_v47  ;;  %v598_v33 = vsel %vm70_vm0, %v558_v32, 0.0  ;;  %v559_v18 = vmul.f32 %v1345_v19, %v1345_v19 }
 0x243   :  { %v491_v51 = vpop.xlane.xlu0 %490  ;;  %599 = vadd.xlane.f32.xlu0 %v598_v33 }
 0x244   :  { %v1357_v1 = vsub.f32 %v1241_v7, %v517_v49  ;;  %v522_v52 = vmul.f32 0.03125, %v491_v51  ;;  %v601_v55 = vsel %vm70_vm0, %v559_v18, 0.0  ;;  %v556_v56 = vmul.f32 %v1351_v60, %v1351_v60 }
 0x245   :  { %v494_v12 = vpop.xlane.xlu1 %493  ;;  %602 = vadd.xlane.f32.xlu1 %v601_v55 }
 0x246   :  { %v1363_v2 = vsub.f32 %v1247_v14, %v522_v52  ;;  %v523_v23 = vmul.f32 0.03125, %v494_v12  ;;  %v592_v58 = vsel %vm70_vm0, %v556_v56, 0.0  ;;  %v557_v61 = vmul.f32 %v1357_v1, %v1357_v1 }
 0x247   :  { %v485_v24 = vpop.xlane.xlu0 %484  ;;  %593 = vadd.xlane.f32.xlu0 %v592_v58 }
 0x248   :  { %v1369_v7 = vsub.f32 %v1256_v28, %v523_v23  ;;  %v520_v34 = vmul.f32 0.03125, %v485_v24  ;;  %v595_v40 = vsel %vm70_vm0, %v557_v61, 0.0  ;;  %v562_v63 = vmul.f32 %v1363_v2, %v1363_v2 }
 0x249   :  { %v488_v0 = vpop.xlane.xlu1 %487  ;;  %596 = vadd.xlane.f32.xlu1 %v595_v40 }
 0x24a   :  { %v1375_v14 = vsub.f32 %v1259_v29, %v520_v34  ;;  %v521_v20 = vmul.f32 0.03125, %v488_v0  ;;  %v610_v5 = vsel %vm70_vm0, %v562_v63, 0.0  ;;  %v563_v3 = vmul.f32 %v1369_v7, %v1369_v7 }
 0x24b   :  { %611 = vadd.xlane.f32.xlu0 %v610_v5  ;;  %v497_v28 = vpop.xlane.xlu0 %496 }
 0x24c   :  { %v1381_v25 = vsub.f32 %v1264_v35, %v521_v20  ;;  %v524_v45 = vmul.f32 0.03125, %v497_v28  ;;  %v613_v21 = vsel %vm70_vm0, %v563_v3, 0.0  ;;  %v560_v13 = vmul.f32 %v1375_v14, %v1375_v14 }
 0x24d   :  { %614 = vadd.xlane.f32.xlu1 %v613_v21 }
 0x24e   :  { %v1387_v29 = vsub.f32 %v1273_v43, %v524_v45  ;;  %v604_v15 = vsel %vm70_vm0, %v560_v13, 0.0  ;;  %v561_v30 = vmul.f32 %v1381_v25, %v1381_v25  ;;  %v1417_v45 = vld [vmem:[%s1569_s5] ss:$0 sm:$0xff] }
 0x24f   :  { %605 = vadd.xlane.f32.xlu0 %v604_v15  ;;  %v503_v16 = vpop.xlane.xlu0 %502  ;;  %v500_v22 = vpop.xlane.xlu1 %499 }
 0x250   :  { %v526_v35 = vmul.f32 0.03125, %v503_v16  ;;  %v525_v48 = vmul.f32 0.03125, %v500_v22  ;;  %v607_v26 = vsel %vm70_vm0, %v561_v30, 0.0  ;;  %v564_v50 = vmul.f32 %v1387_v29, %v1387_v29  ;;  %v1423_v16 = vld [vmem:[%s1570_s6] ss:$0 sm:$0xff] }
 0x251   :  { %608 = vadd.xlane.f32.xlu1 %v607_v26 }
 0x252   :  { %v1396_v31 = vsub.f32 %v1280_v36, %v526_v35  ;;  %v1399_v43 = vsub.f32 %v1283_v6, %v525_v48  ;;  %v616_v38 = vsel %vm70_vm0, %v564_v50, 0.0 }
 0x253   :  { %617 = vadd.xlane.f32.xlu0 %v616_v38  ;;  %v506_v27 = vpop.xlane.xlu1 %505 }
 0x254   :  { %v527_v39 = vmul.f32 0.03125, %v506_v27  ;;  %v566_v41 = vmul.f32 %v1396_v31, %v1396_v31  ;;  %v565_v42 = vmul.f32 %v1399_v43, %v1399_v43 }
 0x256   :  { %v1407_v9 = vsub.f32 %v1290_v37, %v527_v39  ;;  %v622_v36 = vsel %vm70_vm0, %v566_v41, 0.0  ;;  %v619_v10 = vsel %vm70_vm0, %v565_v42, 0.0 }
 0x257   :  { %623 = vadd.xlane.f32.xlu0 %v622_v36  ;;  %620 = vadd.xlane.f32.xlu1 %v619_v10 }
 0x258   :  { %v567_v6 = vmul.f32 %v1407_v9, %v1407_v9 }
 0x25a   :  { %v625_v44 = vsel %vm70_vm0, %v567_v6, 0.0 }
 0x25b   :  { %626 = vadd.xlane.f32.xlu1 %v625_v44 }
 0x2ba   :  { %v576_v46 = vpop.xlane.xlu0 %575 }
 0x2bb   :  { %v630_v32 = vmul.f32 0.03125, %v576_v46 }
 0x2bd   :  { %v650_v47 = vadd.f32 1e-05, %v630_v32 }
 0x2be   :  { %v570_v49 = vpop.xlane.xlu0 %569  ;;  %v579_v33 = vpop.xlane.xlu1 %578 }
 0x2bf   :  { %888 = vrsqrt.f32 %v650_v47  ;;  %v628_v37 = vmul.f32 0.03125, %v570_v49  ;;  %v631_v18 = vmul.f32 0.03125, %v579_v33 }
 0x2c1   :  { %v648_v51 = vadd.f32 1e-05, %v628_v37  ;;  %v651_v52 = vadd.f32 1e-05, %v631_v18 }
 0x2c2   :  { %v573_v55 = vpop.xlane.xlu1 %572 }
 0x2c3   :  { %890 = vrsqrt.f32 %v648_v51  ;;  %v629_v56 = vmul.f32 0.03125, %v573_v55 }
 0x2c4   :  { %892 = vrsqrt.f32 %v651_v52  ;;  %v588_v12 = vpop.xlane.xlu0 %587 }
 0x2c5   :  { %v649_v23 = vadd.f32 1e-05, %v629_v56  ;;  %v634_v58 = vmul.f32 0.03125, %v588_v12 }
 0x2c6   :  { %v591_v61 = vpop.xlane.xlu1 %590 }
 0x2c7   :  { %894 = vrsqrt.f32 %v649_v23  ;;  %v654_v24 = vadd.f32 1e-05, %v634_v58  ;;  %v635_v34 = vmul.f32 0.03125, %v591_v61 }
 0x2c8   :  { %v582_v40 = vpop.xlane.xlu0 %581 }
 0x2c9   :  { %896 = vrsqrt.f32 %v654_v24  ;;  %v655_v63 = vadd.f32 1e-05, %v635_v34  ;;  %v632_v0 = vmul.f32 0.03125, %v582_v40 }
 0x2ca   :  { %v585_v20 = vpop.xlane.xlu1 %584 }
 0x2cb   :  { %898 = vrsqrt.f32 %v655_v63  ;;  %v652_v5 = vadd.f32 1e-05, %v632_v0  ;;  %v633_v3 = vmul.f32 0.03125, %v585_v20 }
 0x2cc   :  { %v889_v28 = vpop.eup %888  ;;  %v600_v21 = vpop.xlane.xlu0 %599 }
 0x2cd   :  { %v690_v13 = vmul.f32 %v889_v28, %v1295_v53  ;;  %900 = vrsqrt.f32 %v652_v5  ;;  %v653_v15 = vadd.f32 1e-05, %v633_v3  ;;  %v638_v30 = vmul.f32 0.03125, %v600_v21 }
 0x2ce   :  { %v603_v22 = vpop.xlane.xlu1 %602 }
 0x2cf   :  { %v717_v35 = vmul.f32 %v1417_v45, %v690_v13  ;;  %902 = vrsqrt.f32 %v653_v15  ;;  %v658_v48 = vadd.f32 1e-05, %v638_v30  ;;  %v639_v26 = vmul.f32 0.03125, %v603_v22 }
 0x2d0   :  { %v891_v50 = vpop.eup %890  ;;  %v594_v38 = vpop.xlane.xlu0 %593 }
 0x2d1   :  { %v893_v27 = vpop.eup %892  ;;  %v744_v39 = vadd.f32 %v1423_v16, %v717_v35  ;;  %v688_v53 = vmul.f32 %v891_v50, %v1298_v57  ;;  %904 = vrsqrt.f32 %v658_v48  ;;  %v659_v41 = vadd.f32 1e-05, %v639_v26 }
 0x2d2   :  { %v691_v42 = vmul.f32 %v893_v27, %v1303_v59  ;;  %v636_v36 = vmul.f32 0.03125, %v594_v38  ;;  %v597_v10 = vpop.xlane.xlu1 %596 }
 0x2d3   :  { %764 = vst.msk [vmem:[%s1571_s7 + $0x10] sm:$0xff] %vm70_vm0, %v744_v39  ;;  %v715_v6 = vmul.f32 %v1417_v45, %v688_v53  ;;  %906 = vrsqrt.f32 %v659_v41  ;;  %v637_v44 = vmul.f32 0.03125, %v597_v10 }
 0x2d4   :  { %v895_v46 = vpop.eup %894  ;;  %v718_v32 = vmul.f32 %v1417_v45, %v691_v42  ;;  %v656_v47 = vadd.f32 1e-05, %v636_v36  ;;  %v612_v57 = vpop.xlane.xlu0 %611 }
 0x2d5   :  { %v742_v49 = vadd.f32 %v1423_v16, %v715_v6  ;;  %v689_v59 = vmul.f32 %v895_v46, %v1309_v62  ;;  %v657_v33 = vadd.f32 1e-05, %v637_v44  ;;  %v642_v37 = vmul.f32 0.03125, %v612_v57 }
 0x2d6   :  { %v897_v18 = vpop.eup %896  ;;  %v745_v51 = vadd.f32 %v1423_v16, %v718_v32  ;;  %908 = vrsqrt.f32 %v656_v47  ;;  %v615_v52 = vpop.xlane.xlu1 %614 }
 0x2d7   :  { %762 = vst.msk [vmem:[%s1571_s7] sm:$0xff] %vm70_vm0, %v742_v49  ;;  %v716_v55 = vmul.f32 %v1417_v45, %v689_v59  ;;  %v694_v56 = vmul.f32 %v897_v18, %v1318_v4  ;;  %910 = vrsqrt.f32 %v657_v33  ;;  %v662_v12 = vadd.f32 1e-05, %v642_v37 }
 0x2d8   :  { %v899_v23 = vpop.eup %898  ;;  %765 = vst.msk [vmem:[%s1571_s7 + $0x18] sm:$0xff] %vm70_vm0, %v745_v51  ;;  %v643_v62 = vmul.f32 0.03125, %v615_v52  ;;  %v606_v58 = vpop.xlane.xlu0 %605 }
 0x2d9   :  { %v743_v61 = vadd.f32 %v1423_v16, %v716_v55  ;;  %v721_v24 = vmul.f32 %v1417_v45, %v694_v56  ;;  %v695_v34 = vmul.f32 %v899_v23, %v1321_v8  ;;  %912 = vrsqrt.f32 %v662_v12 }
 0x2da   :  { %v901_v40 = vpop.eup %900  ;;  %v663_v63 = vadd.f32 1e-05, %v643_v62  ;;  %v640_v4 = vmul.f32 0.03125, %v606_v58  ;;  %v609_v0 = vpop.xlane.xlu1 %608 }
 0x2db   :  { %763 = vst.msk [vmem:[%s1571_s7 + $0x8] sm:$0xff] %vm70_vm0, %v743_v61  ;;  %v748_v20 = vadd.f32 %v1423_v16, %v721_v24  ;;  %v722_v5 = vmul.f32 %v1417_v45, %v695_v34  ;;  %v692_v3 = vmul.f32 %v901_v40, %v1327_v17  ;;  %v641_v28 = vmul.f32 0.03125, %v609_v0 }
 0x2dc   :  { %v903_v21 = vpop.eup %902  ;;  %914 = vrsqrt.f32 %v663_v63  ;;  %v660_v8 = vadd.f32 1e-05, %v640_v4  ;;  %v618_v13 = vpop.xlane.xlu0 %617 }
 0x2dd   :  { %768 = vst.msk [vmem:[%s1571_s7 + $0x30] sm:$0xff] %vm70_vm0, %v748_v20  ;;  %v749_v15 = vadd.f32 %v1423_v16, %v722_v5  ;;  %v719_v30 = vmul.f32 %v1417_v45, %v692_v3  ;;  %v693_v22 = vmul.f32 %v903_v21, %v1333_v54  ;;  %v661_v35 = vadd.f32 1e-05, %v641_v28 }
 0x2de   :  { %v905_v48 = vpop.eup %904  ;;  %916 = vrsqrt.f32 %v660_v8  ;;  %v644_v17 = vmul.f32 0.03125, %v618_v13 }
 0x2df   :  { %769 = vst.msk [vmem:[%s1571_s7 + $0x38] sm:$0xff] %vm70_vm0, %v749_v15  ;;  %v746_v26 = vadd.f32 %v1423_v16, %v719_v30  ;;  %v720_v50 = vmul.f32 %v1417_v45, %v693_v22  ;;  %v698_v38 = vmul.f32 %v905_v48, %v1339_v11  ;;  %918 = vrsqrt.f32 %v661_v35 }
 0x2e0   :  { %v907_v27 = vpop.eup %906  ;;  %v664_v39 = vadd.f32 1e-05, %v644_v17  ;;  %v624_v53 = vpop.xlane.xlu0 %623 }
 0x2e1   :  { %v621_v54 = vpop.xlane.xlu1 %620  ;;  %766 = vst.msk [vmem:[%s1571_s7 + $0x20] sm:$0xff] %vm70_vm0, %v746_v26  ;;  %v747_v41 = vadd.f32 %v1423_v16, %v720_v50  ;;  %v725_v42 = vmul.f32 %v1417_v45, %v698_v38  ;;  %v699_v36 = vmul.f32 %v907_v27, %v1345_v19  ;;  %v646_v10 = vmul.f32 0.03125, %v624_v53 }
 0x2e2   :  { %920 = vrsqrt.f32 %v664_v39  ;;  %v645_v6 = vmul.f32 0.03125, %v621_v54 }
 0x2e3   :  { %v909_v11 = vpop.eup %908  ;;  %767 = vst.msk [vmem:[%s1571_s7 + $0x28] sm:$0xff] %vm70_vm0, %v747_v41  ;;  %v752_v44 = vadd.f32 %v1423_v16, %v725_v42  ;;  %v726_v46 = vmul.f32 %v1417_v45, %v699_v36  ;;  %v666_v32 = vadd.f32 1e-05, %v646_v10 }
 0x2e4   :  { %v911_v47 = vpop.eup %910  ;;  %v696_v57 = vmul.f32 %v909_v11, %v1351_v60  ;;  %v665_v49 = vadd.f32 1e-05, %v645_v6 }
 0x2e5   :  { %v627_v59 = vpop.xlane.xlu1 %626  ;;  %772 = vst.msk [vmem:[%s1571_s7 + $0x50] sm:$0xff] %vm70_vm0, %v752_v44  ;;  %v753_v19 = vadd.f32 %v1423_v16, %v726_v46  ;;  %v697_v33 = vmul.f32 %v911_v47, %v1357_v1  ;;  %922 = vrsqrt.f32 %v666_v32 }
 0x2e6   :  { %v647_v37 = vmul.f32 0.03125, %v627_v59  ;;  %v913_v18 = vpop.eup %912  ;;  %v723_v51 = vmul.f32 %v1417_v45, %v696_v57  ;;  %924 = vrsqrt.f32 %v665_v49 }
 0x2e7   :  { %773 = vst.msk [vmem:[%s1571_s7 + $0x58] sm:$0xff] %vm70_vm0, %v753_v19  ;;  %v724_v60 = vmul.f32 %v1417_v45, %v697_v33  ;;  %v702_v52 = vmul.f32 %v913_v18, %v1363_v2 }
 0x2e8   :  { %v667_v55 = vadd.f32 1e-05, %v647_v37  ;;  %v750_v56 = vadd.f32 %v1423_v16, %v723_v51 }
 0x2e9   :  { %v915_v12 = vpop.eup %914  ;;  %v751_v1 = vadd.f32 %v1423_v16, %v724_v60  ;;  %v729_v23 = vmul.f32 %v1417_v45, %v702_v52 }
 0x2ea   :  { %926 = vrsqrt.f32 %v667_v55  ;;  %770 = vst.msk [vmem:[%s1571_s7 + $0x40] sm:$0xff] %vm70_vm0, %v750_v56  ;;  %v703_v62 = vmul.f32 %v915_v12, %v1369_v7 }
 0x2eb   :  { %v917_v58 = vpop.eup %916  ;;  %771 = vst.msk [vmem:[%s1571_s7 + $0x48] sm:$0xff] %vm70_vm0, %v751_v1  ;;  %v756_v2 = vadd.f32 %v1423_v16, %v729_v23 }
 0x2ec   :  { %v919_v61 = vpop.eup %918  ;;  %v730_v24 = vmul.f32 %v1417_v45, %v703_v62  ;;  %v700_v34 = vmul.f32 %v917_v58, %v1375_v14 }
 0x2ed   :  { %776 = vst.msk [vmem:[%s1571_s7 + $0x70] sm:$0xff] %vm70_vm0, %v756_v2  ;;  %v701_v7 = vmul.f32 %v919_v61, %v1381_v25 }
 0x2ee   :  { %v757_v40 = vadd.f32 %v1423_v16, %v730_v24  ;;  %v727_v63 = vmul.f32 %v1417_v45, %v700_v34 }
 0x2ef   :  { %v921_v4 = vpop.eup %920  ;;  %v728_v0 = vmul.f32 %v1417_v45, %v701_v7 }
 0x2f0   :  { %777 = vst.msk [vmem:[%s1571_s7 + $0x78] sm:$0xff] %vm70_vm0, %v757_v40  ;;  %v754_v14 = vadd.f32 %v1423_v16, %v727_v63  ;;  %v704_v20 = vmul.f32 %v921_v4, %v1387_v29 }
 0x2f1   :  { %v755_v5 = vadd.f32 %v1423_v16, %v728_v0 }
 0x2f2   :  { %v923_v3 = vpop.eup %922  ;;  %774 = vst.msk [vmem:[%s1571_s7 + $0x60] sm:$0xff] %vm70_vm0, %v754_v14  ;;  %v731_v25 = vmul.f32 %v1417_v45, %v704_v20 }
 0x2f3   :  { %v925_v28 = vpop.eup %924  ;;  %775 = vst.msk [vmem:[%s1571_s7 + $0x68] sm:$0xff] %vm70_vm0, %v755_v5  ;;  %v706_v21 = vmul.f32 %v923_v3, %v1396_v31 }
 0x2f4   :  { %v758_v29 = vadd.f32 %v1423_v16, %v731_v25  ;;  %v705_v8 = vmul.f32 %v925_v28, %v1399_v43 }
 0x2f5   :  { %v733_v13 = vmul.f32 %v1417_v45, %v706_v21 }
 0x2f6   :  { %778 = vst.msk [vmem:[%s1571_s7 + $0x80] sm:$0xff] %vm70_vm0, %v758_v29  ;;  %v732_v30 = vmul.f32 %v1417_v45, %v705_v8 }
 0x2f7   :  { %v927_v15 = vpop.eup %926  ;;  %v760_v22 = vadd.f32 %v1423_v16, %v733_v13 }
 0x2f8   :  { %v707_v35 = vmul.f32 %v927_v15, %v1407_v9  ;;  %v759_v31 = vadd.f32 %v1423_v16, %v732_v30 }
 0x2f9   :  { %780 = vst.msk [vmem:[%s1571_s7 + $0x90] sm:$0xff] %vm70_vm0, %v760_v22 }
 0x2fa   :  { %v734_v43 = vmul.f32 %v1417_v45, %v707_v35  ;;  %779 = vst.msk [vmem:[%s1571_s7 + $0x88] sm:$0xff] %vm70_vm0, %v759_v31 }
 0x2fc   :  { %v761_v48 = vadd.f32 %v1423_v16, %v734_v43 }
 0x2fe   :  { %781 = vst.msk [vmem:[%s1571_s7 + $0x98] sm:$0xff] %vm70_vm0, %v761_v48 }

// kernel: run.13
= control target key start
LH: loop header
LB: loop body
LE: loop exit
PB: predicated region body
PF: predicated region fallthrough
CT: control target
= control target key end

     0   :  { %vm101_vm0 = vcmask 261120   ;;  %vm245_vm1 = vcmask 785408   ;;  %s571_s2 = inlined_call_operand.vmem [shape: f32[32,96], index: 2, kind: input, shape index: {}]   ;;  %s572_s0 = inlined_call_operand.vmem [shape: f32[160,32], index: 0, kind: input, shape index: {}]   ;;  %s573_s1 = inlined_call_operand.vmem [shape: f32[160,32], index: 1, kind: input, shape index: {}]   ;;  %s574_s3 = inlined_call_operand.vmem [shape: f32[1,96], index: 3, kind: input, shape index: {}]   ;;  %s575_s4 = inlined_call_operand.vmem [shape: f32[160,96], index: 4, kind: output, shape index: {}]  }
   0x1   :  { %v80_v0 = vld [vmem:[%s571_s2 + $0x10] sm:$0xff]  ;;  %v81_v1 = vld [vmem:[%s571_s2 + $0x18] sm:$0xff]  ;;  %v78_v2 = vld [vmem:[%s571_s2] sm:$0xff] }
   0x2   :  { %v93_v3 = vpack.c.bf16 %v81_v1, %v80_v0  ;;  %v79_v4 = vld [vmem:[%s571_s2 + $0x8] sm:$0xff]  ;;  %v18_v5 = vld [vmem:[%s572_s0] sm:$0xff]  ;;  %v20_v10 = vld [vmem:[%s572_s0 + $0x10] sm:$0xff] }
   0x3   :  { %v19_v6 = vld [vmem:[%s572_s0 + $0x8] sm:$0xff]  ;;  %v92_v7 = vpack.c.bf16 %v79_v4, %v78_v2  ;;  %v38_v8 = vld [vmem:[%s573_s1] sm:$0xff]  ;;  %v21_v13 = vld [vmem:[%s572_s0 + $0x18] sm:$0xff] }
   0x4   :  { %v39_v9 = vld [vmem:[%s573_s1 + $0x8] sm:$0xff]  ;;  %293 = vmatprep.subr.bf16.mxu0 %v93_v3  ;;  %317 = vmatprep.subr.bf16.mxu1 %v93_v3  ;;  %v58_v11 = vadd.f32 %v38_v8, %v18_v5  ;;  %v40_v14 = vld [vmem:[%s573_s1 + $0x10] sm:$0xff]  ;;  %v41_v15 = vld [vmem:[%s573_s1 + $0x18] sm:$0xff] }
   0x5   :  { %v59_v12 = vadd.f32 %v39_v9, %v19_v6  ;;  %294 = vmatpush3.bf16.msra.mxu0 %v93_v3  ;;  %319 = vmatpush3.bf16.msra.mxu1 %v93_v3  ;;  %v60_v16 = vadd.f32 %v40_v14, %v20_v10  ;;  %v61_v17 = vadd.f32 %v41_v15, %v21_v13  ;;  %v30_v18 = vld [vmem:[%s572_s0 + $0x60] sm:$0xff]  ;;  %v31_v19 = vld [vmem:[%s572_s0 + $0x68] sm:$0xff]  ;;  %v32_v24 = vld [vmem:[%s572_s0 + $0x70] sm:$0xff] }
   0x6   :  { %v50_v20 = vld [vmem:[%s573_s1 + $0x60] sm:$0xff]  ;;  %295 = vmatprep.subr.bf16.mxu0 %v92_v7  ;;  %318 = vmatprep.subr.bf16.mxu1 %v92_v7  ;;  %v51_v22 = vld [vmem:[%s573_s1 + $0x68] sm:$0xff]  ;;  %v33_v25 = vld [vmem:[%s572_s0 + $0x78] sm:$0xff] }
   0x7   :  { %v82_v21 = vpack.c.bf16 %v59_v12, %v58_v11  ;;  %v70_v23 = vadd.f32 %v50_v20, %v30_v18  ;;  %v71_v26 = vadd.f32 %v51_v22, %v31_v19  ;;  %v52_v27 = vld [vmem:[%s573_s1 + $0x70] sm:$0xff]  ;;  %v53_v28 = vld [vmem:[%s573_s1 + $0x78] sm:$0xff]  ;;  %v22_v29 = vld [vmem:[%s572_s0 + $0x20] sm:$0xff]  ;;  %v83_v30 = vpack.c.bf16 %v61_v17, %v60_v16 }
   0x8   :  { %v72_v31 = vadd.f32 %v52_v27, %v32_v24  ;;  %v73_v32 = vadd.f32 %v53_v28, %v33_v25  ;;  %v23_v33 = vld [vmem:[%s572_s0 + $0x28] sm:$0xff]  ;;  %v42_v34 = vld [vmem:[%s573_s1 + $0x20] sm:$0xff]  ;;  %v24_v39 = vld [vmem:[%s572_s0 + $0x30] sm:$0xff] }
   0x9   :  { %297 = vmatprep.mubr.msk.bf16.mxu0 %vm101_vm0, %v82_v21  ;;  %v43_v35 = vld [vmem:[%s573_s1 + $0x28] sm:$0xff]  ;;  %296 = vmatpush3.bf16.msra.mxu0 %v92_v7  ;;  %v88_v36 = vpack.c.bf16 %v71_v26, %v70_v23  ;;  %v62_v37 = vadd.f32 %v42_v34, %v22_v29  ;;  %v25_v40 = vld [vmem:[%s572_s0 + $0x38] sm:$0xff]  ;;  %v44_v41 = vld [vmem:[%s573_s1 + $0x30] sm:$0xff] }
   0xa   :  { %320 = vmatpush3.bf16.msra.mxu1 %v92_v7  ;;  %v63_v38 = vadd.f32 %v43_v35, %v23_v33  ;;  %v89_v42 = vpack.c.bf16 %v73_v32, %v72_v31  ;;  %v45_v43 = vld [vmem:[%s573_s1 + $0x38] sm:$0xff]  ;;  %v34_v44 = vld [vmem:[%s572_s0 + $0x80] sm:$0xff]  ;;  %v35_v45 = vld [vmem:[%s572_s0 + $0x88] sm:$0xff]  ;;  %v64_v47 = vadd.f32 %v44_v41, %v24_v39 }
   0xb   :  { %309 = vmatprep.mubr.msk.bf16.mxu1 %vm101_vm0, %v88_v36  ;;  %v54_v48 = vld [vmem:[%s573_s1 + $0x80] sm:$0xff]  ;;  %v55_v49 = vld [vmem:[%s573_s1 + $0x88] sm:$0xff]  ;;  %v36_v50 = vld [vmem:[%s572_s0 + $0x90] sm:$0xff]  ;;  %v65_v51 = vadd.f32 %v45_v43, %v25_v40 }
   0xc   :  { %v84_v46 = vpack.c.bf16 %v63_v38, %v62_v37  ;;  %298 = vmatmul.mubr.msk.bf16.vlgmr.msra.gmra.mxu0 %vm101_vm0, %v83_v30  ;;  %v74_v52 = vadd.f32 %v54_v48, %v34_v44  ;;  %v75_v53 = vadd.f32 %v55_v49, %v35_v45  ;;  %v37_v54 = vld [vmem:[%s572_s0 + $0x98] sm:$0xff]  ;;  %v56_v55 = vld [vmem:[%s573_s1 + $0x90] sm:$0xff]  ;;  %v26_v59 = vld [vmem:[%s572_s0 + $0x40] sm:$0xff] }
   0xd   :  { %310 = vmatmul.mubr.msk.bf16.vlgmr.msra.gmra.mxu1 %vm101_vm0, %v89_v42  ;;  %v57_v56 = vld [vmem:[%s573_s1 + $0x98] sm:$0xff]  ;;  %v76_v57 = vadd.f32 %v56_v55, %v36_v50  ;;  %v27_v60 = vld [vmem:[%s572_s0 + $0x48] sm:$0xff]  ;;  %v46_v61 = vld [vmem:[%s573_s1 + $0x40] sm:$0xff]  ;;  %v85_v2 = vpack.c.bf16 %v65_v51, %v64_v47 }
   0xe   :  { %301 = vmatprep.mubr.msk.bf16.mxu0 %vm101_vm0, %v84_v46  ;;  %v77_v58 = vadd.f32 %v57_v56, %v37_v54  ;;  %v90_v62 = vpack.c.bf16 %v75_v53, %v74_v52  ;;  %v47_v63 = vld [vmem:[%s573_s1 + $0x48] sm:$0xff]  ;;  %v66_v0 = vadd.f32 %v46_v61, %v26_v59  ;;  %v28_v4 = vld [vmem:[%s572_s0 + $0x50] sm:$0xff]  ;;  %v29_v6 = vld [vmem:[%s572_s0 + $0x58] sm:$0xff] }
   0xf   :  { %v67_v1 = vadd.f32 %v47_v63, %v27_v60  ;;  %v48_v7 = vld [vmem:[%s573_s1 + $0x50] sm:$0xff]  ;;  %v49_v8 = vld [vmem:[%s573_s1 + $0x58] sm:$0xff]  ;;  %v270_v12 = vld [vmem:[%s574_s3] ss:$0 sm:$0xff] }
  0x10   :  { %313 = vmatprep.mubr.msk.bf16.mxu1 %vm101_vm0, %v90_v62  ;;  %v91_v3 = vpack.c.bf16 %v77_v58, %v76_v57  ;;  %v68_v9 = vadd.f32 %v48_v7, %v28_v4  ;;  %v69_v10 = vadd.f32 %v49_v8, %v29_v6 }
  0x11   :  { %v86_v5 = vpack.c.bf16 %v67_v1, %v66_v0 }
  0x12   :  { %v87_v11 = vpack.c.bf16 %v69_v10, %v68_v9 }
  0x14   :  { %302 = vmatmul.mubr.msk.bf16.gmra.mxu0 %vm101_vm0, %v85_v2 }
  0x15   :  { %314 = vmatmul.mubr.msk.bf16.gmra.mxu1 %vm101_vm0, %v91_v3  ;;  %305 = vmatprep.mubr.msk.bf16.mxu0 %vm101_vm0, %v86_v5 }
  0x1c   :  { %306 = vmatmul.mubr.msk.bf16.gmra.mxu0 %vm101_vm0, %v87_v11 }
  0xcc   :  { %v299_v13 = vpop.f32.mrf.mxu0 }
  0xcd   :  { %v311_v14 = vpop.f32.mrf.mxu1  ;;  %v175_v15 = vadd.f32 %v299_v13, %v270_v12 }
  0xce   :  { %v223_v16 = vadd.f32 %v311_v14, %v270_v12  ;;  %v166_v17 = vpop.f32.mrf.mxu0 }
  0xcf   :  { %v214_v18 = vpop.f32.mrf.mxu1  ;;  %248 = vst.msk [vmem:[%s575_s4 + $0x10] sm:$0xff] %vm245_vm1, %v175_v15  ;;  %v167_v19 = vadd.f32 %v270_v12, %v166_v17 }
  0xd0   :  { %260 = vst.msk [vmem:[%s575_s4 + $0x70] sm:$0xff] %vm245_vm1, %v223_v16  ;;  %v215_v20 = vadd.f32 %v270_v12, %v214_v18  ;;  %v300_v21 = vpop.f32.mrf.mxu0 }
  0xd1   :  { %v312_v22 = vpop.f32.mrf.mxu1  ;;  %246 = vst.msk [vmem:[%s575_s4] sm:$0xff] %vm245_vm1, %v167_v19  ;;  %v178_v23 = vadd.f32 %v300_v21, %v270_v12 }
  0xd2   :  { %258 = vst.msk [vmem:[%s575_s4 + $0x60] sm:$0xff] %vm245_vm1, %v215_v20  ;;  %v226_v24 = vadd.f32 %v312_v22, %v270_v12  ;;  %v169_v25 = vpop.f32.mrf.mxu0 }
  0xd3   :  { %v217_v26 = vpop.f32.mrf.mxu1  ;;  %249 = vst.msk [vmem:[%s575_s4 + $0x18] sm:$0xff] %vm245_vm1, %v178_v23  ;;  %v170_v27 = vadd.f32 %v270_v12, %v169_v25 }
  0xd4   :  { %261 = vst.msk [vmem:[%s575_s4 + $0x78] sm:$0xff] %vm245_vm1, %v226_v24  ;;  %v218_v28 = vadd.f32 %v270_v12, %v217_v26  ;;  %v303_v29 = vpop.f32.mrf.mxu0 }
  0xd5   :  { %v315_v30 = vpop.f32.mrf.mxu1  ;;  %247 = vst.msk [vmem:[%s575_s4 + $0x8] sm:$0xff] %vm245_vm1, %v170_v27  ;;  %v191_v31 = vadd.f32 %v303_v29, %v270_v12 }
  0xd6   :  { %259 = vst.msk [vmem:[%s575_s4 + $0x68] sm:$0xff] %vm245_vm1, %v218_v28  ;;  %v239_v32 = vadd.f32 %v315_v30, %v270_v12  ;;  %v182_v33 = vpop.f32.mrf.mxu0 }
  0xd7   :  { %v230_v34 = vpop.f32.mrf.mxu1  ;;  %252 = vst.msk [vmem:[%s575_s4 + $0x30] sm:$0xff] %vm245_vm1, %v191_v31  ;;  %v183_v35 = vadd.f32 %v270_v12, %v182_v33 }
  0xd8   :  { %264 = vst.msk [vmem:[%s575_s4 + $0x90] sm:$0xff] %vm245_vm1, %v239_v32  ;;  %v231_v36 = vadd.f32 %v270_v12, %v230_v34  ;;  %v304_v37 = vpop.f32.mrf.mxu0 }
  0xd9   :  { %v316_v38 = vpop.f32.mrf.mxu1  ;;  %250 = vst.msk [vmem:[%s575_s4 + $0x20] sm:$0xff] %vm245_vm1, %v183_v35  ;;  %v194_v39 = vadd.f32 %v304_v37, %v270_v12 }
  0xda   :  { %262 = vst.msk [vmem:[%s575_s4 + $0x80] sm:$0xff] %vm245_vm1, %v231_v36  ;;  %v242_v40 = vadd.f32 %v316_v38, %v270_v12  ;;  %v185_v41 = vpop.f32.mrf.mxu0 }
  0xdb   :  { %v233_v42 = vpop.f32.mrf.mxu1  ;;  %253 = vst.msk [vmem:[%s575_s4 + $0x38] sm:$0xff] %vm245_vm1, %v194_v39  ;;  %v186_v43 = vadd.f32 %v270_v12, %v185_v41 }
  0xdc   :  { %265 = vst.msk [vmem:[%s575_s4 + $0x98] sm:$0xff] %vm245_vm1, %v242_v40  ;;  %v234_v44 = vadd.f32 %v270_v12, %v233_v42  ;;  %v307_v45 = vpop.f32.mrf.mxu0 }
  0xdd   :  { %251 = vst.msk [vmem:[%s575_s4 + $0x28] sm:$0xff] %vm245_vm1, %v186_v43  ;;  %v207_v46 = vadd.f32 %v307_v45, %v270_v12 }
  0xde   :  { %263 = vst.msk [vmem:[%s575_s4 + $0x88] sm:$0xff] %vm245_vm1, %v234_v44  ;;  %v198_v47 = vpop.f32.mrf.mxu0 }
  0xdf   :  { %256 = vst.msk [vmem:[%s575_s4 + $0x50] sm:$0xff] %vm245_vm1, %v207_v46  ;;  %v199_v48 = vadd.f32 %v270_v12, %v198_v47 }
  0xe0   :  { %v308_v49 = vpop.f32.mrf.mxu0 }
  0xe1   :  { %254 = vst.msk [vmem:[%s575_s4 + $0x40] sm:$0xff] %vm245_vm1, %v199_v48  ;;  %v210_v50 = vadd.f32 %v308_v49, %v270_v12 }
  0xe2   :  { %v201_v51 = vpop.f32.mrf.mxu0 }
  0xe3   :  { %257 = vst.msk [vmem:[%s575_s4 + $0x58] sm:$0xff] %vm245_vm1, %v210_v50  ;;  %v202_v52 = vadd.f32 %v270_v12, %v201_v51 }
  0xe5   :  { %255 = vst.msk [vmem:[%s575_s4 + $0x48] sm:$0xff] %vm245_vm1, %v202_v52 }

// kernel: mul.179
= control target key start
LH: loop header
LB: loop body
LE: loop exit
PB: predicated region body
PF: predicated region fallthrough
CT: control target
= control target key end

     0   :  { %vm146_vm0 = vcmask 1043458   ;;  %vm151_vm1 = vcmask 1045508   ;;  %vm156_vm2 = vcmask 1047558   ;;  %s190_s6 = smov 3  ;;  %s193_s9 = smov 12  ;;  %s3447_s0 = inlined_call_operand.vmem [shape: f32[2,80,32,4], index: 0, kind: input, shape index: {}]   ;;  %s3448_s1 = inlined_call_operand.hbm [shape: f32[2,2560,4], index: 1, kind: output, shape index: {}]  }
   0x1   :  { %v1992_v0 = vld [vmem:[%s3447_s0 + $0x23] ss:$80 sm:%s190_s6]   ;;  %s198_s10 = smov 48 }
   0x2   :  { %2 = vsyncpa [#allocation1], 0  ;;  %v1993_v1 = vld [vmem:[%s3447_s0 + $0x23] ss:$80 sm:%s193_s9]   ;;  %v1994_v2 = vld [vmem:[%s3447_s0 - $0x119] ss:$80 sm:%s198_s10]  }
   0x3   :  { %s203_s15 = smov 192  ;;  %s141_s16 = smov 3  ;;  %v196_v3 = vsel %vm146_vm0, %v1993_v1, %v1992_v0  ;;  %vm4_vm3 = vcmask 261120   ;;  %vm160_vm4 = vcmask 1048320   ;;  %vm659_vm5 = vcmask 785920  }
   0x4   :  { %v1995_v4 = vld [vmem:[%s3447_s0 - $0x119] ss:$80 sm:%s203_s15]   ;;  %v1984_v5 = vld [vmem:[%s3447_s0 + $0x3] ss:$80 sm:%s141_s16]   ;;  %s144_s21 = smov 12  ;;  %s149_s22 = smov 48  ;;  %v201_v6 = vsel %vm151_vm1, %v1994_v2, %v196_v3 }
   0x5   :  { %v1985_v7 = vld [vmem:[%s3447_s0 + $0x3] ss:$80 sm:%s144_s21]   ;;  %v1986_v8 = vld [vmem:[%s3447_s0 - $0x139] ss:$80 sm:%s149_s22]   ;;  %s154_s27 = smov 192  ;;  %s215_s28 = smov 3  ;;  %v206_v9 = vsel %vm156_vm2, %v1995_v4, %v201_v6 }
   0x6   :  { %v147_v10 = vsel %vm146_vm0, %v1985_v7, %v1984_v5  ;;  %v1987_v11 = vld [vmem:[%s3447_s0 - $0x139] ss:$80 sm:%s154_s27]   ;;  %v1996_v12 = vld [vmem:[%s3447_s0 + $0x33] ss:$80 sm:%s215_s28]   ;;  %s218_s4 = smov 12  ;;  %s223_s5 = smov 48 }
   0x7   :  { %s2250_s6 = smov 96   ;;  %v152_v13 = vsel %vm151_vm1, %v1986_v8, %v147_v10  ;;  %v1997_v14 = vld [vmem:[%s3447_s0 + $0x33] ss:$80 sm:%s218_s4]   ;;  %s228_s9 = smov 192  ;;  %v1998_v17 = vld [vmem:[%s3447_s0 - $0x109] ss:$80 sm:%s223_s5]  }
   0x8   :  { %207 = vrot.lane.b32.xlu1 %v206_v9, %s2250_s6  ;;  %s165_s10 = smov 3  ;;  %v157_v15 = vsel %vm156_vm2, %v1987_v11, %v152_v13  ;;  %v221_v16 = vsel %vm146_vm0, %v1997_v14, %v1996_v12  ;;  %v1999_v18 = vld [vmem:[%s3447_s0 - $0x109] ss:$80 sm:%s228_s9]   ;;  %s168_s15 = smov 12  ;;  %v3_v4 = vld [vmem:[%s3447_s0] ss:$4 sm:$0xff]  }
   0x9   :  { %s173_s16 = smov 48  ;;  %158 = vrot.lane.b32.xlu0 %v157_v15, %s2250_s6  ;;  %v226_v19 = vsel %vm151_vm1, %v1998_v17, %v221_v16  ;;  %v1988_v20 = vld [vmem:[%s3447_s0 + $0x13] ss:$80 sm:%s165_s10]   ;;  %s178_s19 = smov 192  ;;  %v1967_v14 = vld [vmem:[%s3447_s0 + $0x60] ss:$4 sm:$0xff]  }
   0xa   :  { %s265_s20 = smov 3  ;;  %v231_v21 = vsel %vm156_vm2, %v1999_v18, %v226_v19  ;;  %v1989_v22 = vld [vmem:[%s3447_s0 + $0x13] ss:$80 sm:%s168_s15]   ;;  %v1990_v23 = vld [vmem:[%s3447_s0 - $0x129] ss:$80 sm:%s173_s16]   ;;  %s268_s25 = smov 12 }
   0xb   :  { %s273_s26 = smov 48  ;;  %v171_v24 = vsel %vm146_vm0, %v1989_v22, %v1988_v20  ;;  %v1991_v25 = vld [vmem:[%s3447_s0 - $0x129] ss:$80 sm:%s178_s19]   ;;  %s278_s29 = smov 192  ;;  %v2004_v27 = vld [vmem:[%s3447_s0 + $0x143] ss:$80 sm:%s265_s20]  }
   0xc   :  { %232 = vrot.lane.b32.xlu1 %v231_v21, %s2250_s6  ;;  %s240_s30 = smov 3  ;;  %v176_v26 = vsel %vm151_vm1, %v1990_v23, %v171_v24  ;;  %v2005_v28 = vld [vmem:[%s3447_s0 + $0x143] ss:$80 sm:%s268_s25]   ;;  %s243_s7 = smov 12  ;;  %v1969_v20 = vld [vmem:[%s3447_s0 + $0xa0] ss:$4 sm:$0xff]  }
   0xd   :  { %s248_s8 = smov 48  ;;  %v181_v29 = vsel %vm156_vm2, %v1991_v25, %v176_v26  ;;  %v271_v30 = vsel %vm146_vm0, %v2005_v28, %v2004_v27  ;;  %v2006_v31 = vld [vmem:[%s3447_s0 + $0x7] ss:$80 sm:%s273_s26]   ;;  %s253_s13 = smov 192  ;;  %v2000_v34 = vld [vmem:[%s3447_s0 + $0x43] ss:$80 sm:%s240_s30]  }
   0xe   :  { %v2007_v32 = vld [vmem:[%s3447_s0 + $0x7] ss:$80 sm:%s278_s29]   ;;  %182 = vrot.lane.b32.xlu0 %v181_v29, %s2250_s6  ;;  %v276_v33 = vsel %vm151_vm1, %v2006_v31, %v271_v30  ;;  %s315_s16 = smov 3  ;;  %s318_s17 = smov 12  ;;  %v1972_v30 = vld [vmem:[%s3447_s0 + $0x100] ss:$4 sm:$0xff]  }
   0xf   :  { %v281_v35 = vsel %vm156_vm2, %v2007_v32, %v276_v33  ;;  %v2001_v36 = vld [vmem:[%s3447_s0 + $0x43] ss:$80 sm:%s243_s7]   ;;  %v2002_v37 = vld [vmem:[%s3447_s0 - $0xf9] ss:$80 sm:%s248_s8]   ;;  %s323_s22 = smov 48  ;;  %s328_s23 = smov 192 }
  0x10   :  { %282 = vrot.lane.b32.xlu1 %v281_v35, %s2250_s6  ;;  %v246_v38 = vsel %vm146_vm0, %v2001_v36, %v2000_v34  ;;  %v2003_v39 = vld [vmem:[%s3447_s0 - $0xf9] ss:$80 sm:%s253_s13]   ;;  %s290_s26 = smov 3  ;;  %s293_s2 = smov 12  ;;  %v1966_v36 = vld [vmem:[%s3447_s0 + $0x40] ss:$4 sm:$0xff]  }
  0x11   :  { %v251_v40 = vsel %vm151_vm1, %v2002_v37, %v246_v38  ;;  %v2012_v41 = vld [vmem:[%s3447_s0 + $0x163] ss:$80 sm:%s315_s16]   ;;  %s298_s3 = smov 48  ;;  %v2014_v45 = vld [vmem:[%s3447_s0 + $0x27] ss:$80 sm:%s323_s22]   ;;  %s303_s9 = smov 192 }
  0x12   :  { %v2013_v42 = vld [vmem:[%s3447_s0 + $0x163] ss:$80 sm:%s318_s17]   ;;  %v256_v43 = vsel %vm156_vm2, %v2003_v39, %v251_v40  ;;  %v2015_v46 = vld [vmem:[%s3447_s0 + $0x27] ss:$80 sm:%s328_s23]   ;;  %s365_s12 = smov 3  ;;  %s368_s13 = smov 12 }
  0x13   :  { %v321_v44 = vsel %vm146_vm0, %v2013_v42, %v2012_v41  ;;  %257 = vrot.lane.b32.xlu0 %v256_v43, %s2250_s6  ;;  %v2008_v48 = vld [vmem:[%s3447_s0 + $0x153] ss:$80 sm:%s290_s26]   ;;  %s373_s18 = smov 48  ;;  %s378_s19 = smov 192  ;;  %vm1158_vm6 = vcmask 523520  }
  0x14   :  { %v326_v47 = vsel %vm151_vm1, %v2014_v45, %v321_v44  ;;  %v2009_v50 = vld [vmem:[%s3447_s0 + $0x153] ss:$80 sm:%s293_s2]   ;;  %v2010_v51 = vld [vmem:[%s3447_s0 + $0x17] ss:$80 sm:%s298_s3]   ;;  %s340_s22 = smov 3  ;;  %s343_s27 = smov 12 }
  0x15   :  { %v331_v49 = vsel %vm156_vm2, %v2015_v46, %v326_v47  ;;  %v296_v52 = vsel %vm146_vm0, %v2009_v50, %v2008_v48  ;;  %v2011_v53 = vld [vmem:[%s3447_s0 + $0x17] ss:$80 sm:%s303_s9]   ;;  %v2020_v55 = vld [vmem:[%s3447_s0 + $0x183] ss:$80 sm:%s365_s12]   ;;  %s348_s28 = smov 48  ;;  %s353_s4 = smov 192 }
  0x16   :  { %332 = vrot.lane.b32.xlu1 %v331_v49, %s2250_s6  ;;  %v301_v54 = vsel %vm151_vm1, %v2010_v51, %v296_v52  ;;  %v2021_v56 = vld [vmem:[%s3447_s0 + $0x183] ss:$80 sm:%s368_s13]   ;;  %s415_s8 = smov 3  ;;  %s418_s9 = smov 12  ;;  %v1971_v46 = vld [vmem:[%s3447_s0 + $0xe0] ss:$4 sm:$0xff]  }
  0x17   :  { %v306_v57 = vsel %vm156_vm2, %v2011_v53, %v301_v54  ;;  %v371_v58 = vsel %vm146_vm0, %v2021_v56, %v2020_v55  ;;  %v2022_v59 = vld [vmem:[%s3447_s0 + $0x47] ss:$80 sm:%s373_s18]   ;;  %v2016_v62 = vld [vmem:[%s3447_s0 + $0x173] ss:$80 sm:%s340_s22]   ;;  %s423_s14 = smov 48  ;;  %s428_s15 = smov 192 }
  0x18   :  { %v2023_v60 = vld [vmem:[%s3447_s0 + $0x47] ss:$80 sm:%s378_s19]   ;;  %307 = vrot.lane.b32.xlu0 %v306_v57, %s2250_s6  ;;  %v376_v61 = vsel %vm151_vm1, %v2022_v59, %v371_v58  ;;  %s390_s18 = smov 3  ;;  %s393_s25 = smov 12 }
  0x19   :  { %v381_v63 = vsel %vm156_vm2, %v2023_v60, %v376_v61  ;;  %v2017_v0 = vld [vmem:[%s3447_s0 + $0x173] ss:$80 sm:%s343_s27]   ;;  %v2018_v1 = vld [vmem:[%s3447_s0 + $0x37] ss:$80 sm:%s348_s28]   ;;  %s398_s26 = smov 48  ;;  %s403_s2 = smov 192 }
  0x1a   :  { %382 = vrot.lane.b32.xlu1 %v381_v63, %s2250_s6  ;;  %v346_v2 = vsel %vm146_vm0, %v2017_v0, %v2016_v62  ;;  %v2019_v3 = vld [vmem:[%s3447_s0 + $0x37] ss:$80 sm:%s353_s4]   ;;  %6 = vst.msk [vmem:[#allocation2] ss:$8 sm:$0xf0] %vm4_vm3, %v3_v4   ;;  %s465_s5 = smov 3 }
  0x1b   :  { %v351_v5 = vsel %vm151_vm1, %v2018_v1, %v346_v2  ;;  %v2028_v6 = vld [vmem:[%s3447_s0 + $0x1b] ss:$80 sm:%s415_s8]   ;;  %5 = vst.msk [vmem:[#allocation2] ss:$8 sm:$0xf] %vm4_vm3, %v3_v4   ;;  %s468_s7 = smov 12 }
  0x1c   :  { %v2029_v7 = vld [vmem:[%s3447_s0 + $0x1b] ss:$80 sm:%s418_s9]   ;;  %v356_v8 = vsel %vm156_vm2, %v2019_v3, %v351_v5  ;;  %v2030_v10 = vld [vmem:[%s3447_s0 - $0x121] ss:$80 sm:%s423_s14]   ;;  %s473_s14 = smov 48  ;;  %s543_s23 = smov 12 }
  0x1d   :  { %v421_v9 = vsel %vm146_vm0, %v2029_v7, %v2028_v6  ;;  %v2031_v11 = vld [vmem:[%s3447_s0 - $0x121] ss:$80 sm:%s428_s15]   ;;  %357 = vrot.lane.b32.xlu0 %v356_v8, %s2250_s6  ;;  %s478_s15 = smov 192  ;;  %25 = vst.msk [vmem:[#allocation2 + $0x21] ss:$8 sm:$0xf] %vm4_vm3, %v1967_v14  }
  0x1e   :  { %v426_v12 = vsel %vm151_vm1, %v2030_v10, %v421_v9  ;;  %v2024_v13 = vld [vmem:[%s3447_s0 + $0xb] ss:$80 sm:%s390_s18]   ;;  %v2026_v17 = vld [vmem:[%s3447_s0 - $0x131] ss:$80 sm:%s398_s26]   ;;  %s440_s18 = smov 3  ;;  %s448_s26 = smov 48 }
  0x1f   :  { %v431_v15 = vsel %vm156_vm2, %v2031_v11, %v426_v12  ;;  %v2025_v16 = vld [vmem:[%s3447_s0 + $0xb] ss:$80 sm:%s393_s25]   ;;  %27 = vst.msk [vmem:[#allocation2 + $0x21] ss:$8 sm:$0xf0] %vm4_vm3, %v1967_v14   ;;  %s443_s25 = smov 12 }
  0x20   :  { %432 = vrot.lane.b32.xlu1 %v431_v15, %s2250_s6  ;;  %v396_v18 = vsel %vm146_vm0, %v2025_v16, %v2024_v13  ;;  %v2027_v19 = vld [vmem:[%s3447_s0 - $0x131] ss:$80 sm:%s403_s2]   ;;  %41 = vst.msk [vmem:[#allocation2 + $0x2] ss:$8 sm:$0xf0] %vm4_vm3, %v1969_v20   ;;  %s453_s2 = smov 192 }
  0x21   :  { %v401_v21 = vsel %vm151_vm1, %v2026_v17, %v396_v18  ;;  %v2036_v22 = vld [vmem:[%s3447_s0 + $0x3b] ss:$80 sm:%s465_s5]   ;;  %39 = vst.msk [vmem:[#allocation2 + $0x2] ss:$8 sm:$0xf] %vm4_vm3, %v1969_v20   ;;  %s515_s5 = smov 3 }
  0x22   :  { %v2037_v23 = vld [vmem:[%s3447_s0 + $0x3b] ss:$80 sm:%s468_s7]   ;;  %v406_v24 = vsel %vm156_vm2, %v2027_v19, %v401_v21  ;;  %v2038_v26 = vld [vmem:[%s3447_s0 - $0x101] ss:$80 sm:%s473_s14]   ;;  %s518_s7 = smov 12  ;;  %s523_s14 = smov 48 }
  0x23   :  { %v471_v25 = vsel %vm146_vm0, %v2037_v23, %v2036_v22  ;;  %v2039_v27 = vld [vmem:[%s3447_s0 - $0x101] ss:$80 sm:%s478_s15]   ;;  %407 = vrot.lane.b32.xlu0 %v406_v24, %s2250_s6  ;;  %s528_s15 = smov 192  ;;  %60 = vst.msk [vmem:[#allocation2 + $0x23] ss:$8 sm:$0xf] %vm4_vm3, %v1972_v30  }
  0x24   :  { %v476_v28 = vsel %vm151_vm1, %v2038_v26, %v471_v25  ;;  %v2032_v29 = vld [vmem:[%s3447_s0 + $0x2b] ss:$80 sm:%s440_s18]   ;;  %v2034_v33 = vld [vmem:[%s3447_s0 - $0x111] ss:$80 sm:%s448_s26]   ;;  %s490_s18 = smov 3  ;;  %s498_s26 = smov 48 }
  0x25   :  { %v481_v31 = vsel %vm156_vm2, %v2039_v27, %v476_v28  ;;  %v2033_v32 = vld [vmem:[%s3447_s0 + $0x2b] ss:$80 sm:%s443_s25]   ;;  %62 = vst.msk [vmem:[#allocation2 + $0x23] ss:$8 sm:$0xf0] %vm4_vm3, %v1972_v30   ;;  %s493_s25 = smov 12 }
  0x26   :  { %482 = vrot.lane.b32.xlu1 %v481_v31, %s2250_s6  ;;  %v446_v34 = vsel %vm146_vm0, %v2033_v32, %v2032_v29  ;;  %v2035_v35 = vld [vmem:[%s3447_s0 - $0x111] ss:$80 sm:%s453_s2]   ;;  %20 = vst.msk [vmem:[#allocation2 - $0x1f] ss:$8 sm:$0xf0] %vm4_vm3, %v1966_v36   ;;  %s503_s2 = smov 192 }
  0x27   :  { %v451_v37 = vsel %vm151_vm1, %v2034_v33, %v446_v34  ;;  %v2044_v38 = vld [vmem:[%s3447_s0 + $0x14b] ss:$80 sm:%s515_s5]   ;;  %18 = vst.msk [vmem:[#allocation2 + $0x80] ss:$8 sm:$0xf] %vm4_vm3, %v1966_v36   ;;  %s565_s5 = smov 3 }
  0x28   :  { %v2045_v39 = vld [vmem:[%s3447_s0 + $0x14b] ss:$80 sm:%s518_s7]   ;;  %v456_v40 = vsel %vm156_vm2, %v2035_v35, %v451_v37  ;;  %v2046_v42 = vld [vmem:[%s3447_s0 + $0xf] ss:$80 sm:%s523_s14]   ;;  %s568_s7 = smov 12  ;;  %s573_s14 = smov 48 }
  0x29   :  { %v521_v41 = vsel %vm146_vm0, %v2045_v39, %v2044_v38  ;;  %v2047_v43 = vld [vmem:[%s3447_s0 + $0xf] ss:$80 sm:%s528_s15]   ;;  %457 = vrot.lane.b32.xlu0 %v456_v40, %s2250_s6  ;;  %s578_s15 = smov 192  ;;  %55 = vst.msk [vmem:[#allocation2 - $0x1d] ss:$8 sm:$0xf0] %vm4_vm3, %v1971_v46  }
  0x2a   :  { %v526_v44 = vsel %vm151_vm1, %v2046_v42, %v521_v41  ;;  %v2040_v45 = vld [vmem:[%s3447_s0 + $0x4b] ss:$80 sm:%s490_s18]   ;;  %v2042_v49 = vld [vmem:[%s3447_s0 - $0xf1] ss:$80 sm:%s498_s26]   ;;  %s540_s18 = smov 3  ;;  %s548_s24 = smov 48 }
  0x2b   :  { %v531_v47 = vsel %vm156_vm2, %v2047_v43, %v526_v44  ;;  %v2041_v48 = vld [vmem:[%s3447_s0 + $0x4b] ss:$80 sm:%s493_s25]   ;;  %53 = vst.msk [vmem:[#allocation2 + $0x82] ss:$8 sm:$0xf] %vm4_vm3, %v1971_v46   ;;  %s553_s29 = smov 192 }
  0x2c   :  { %532 = vrot.lane.b32.xlu1 %v531_v47, %s2250_s6  ;;  %v496_v50 = vsel %vm146_vm0, %v2041_v48, %v2040_v45  ;;  %v2043_v51 = vld [vmem:[%s3447_s0 - $0xf1] ss:$80 sm:%s503_s2]   ;;  %s615_s3 = smov 3  ;;  %s618_s4 = smov 12  ;;  %v1965_v61 = vld [vmem:[%s3447_s0 + $0x20] ss:$4 sm:$0xff]  }
  0x2d   :  { %v501_v52 = vsel %vm151_vm1, %v2042_v49, %v496_v50  ;;  %v2052_v53 = vld [vmem:[%s3447_s0 + $0x16b] ss:$80 sm:%s565_s5]   ;;  %v2054_v57 = vld [vmem:[%s3447_s0 + $0x2f] ss:$80 sm:%s573_s14]   ;;  %s623_s12 = smov 48  ;;  %s628_s13 = smov 192 }
  0x2e   :  { %v2053_v54 = vld [vmem:[%s3447_s0 + $0x16b] ss:$80 sm:%s568_s7]   ;;  %v506_v55 = vsel %vm156_vm2, %v2043_v51, %v501_v52  ;;  %v2055_v58 = vld [vmem:[%s3447_s0 + $0x2f] ss:$80 sm:%s578_s15]   ;;  %s590_s16 = smov 3  ;;  %s714_s2 = smov 3 }
  0x2f   :  { %v571_v56 = vsel %vm146_vm0, %v2053_v54, %v2052_v53  ;;  %507 = vrot.lane.b32.xlu0 %v506_v55, %s2250_s6  ;;  %v2048_v60 = vld [vmem:[%s3447_s0 + $0x15b] ss:$80 sm:%s540_s18]   ;;  %13 = vst.msk [vmem:[#allocation2 + $0x40] ss:$8 sm:$0xf0] %vm4_vm3, %v1965_v61   ;;  %s722_s11 = smov 48 }
  0x30   :  { %v576_v59 = vsel %vm151_vm1, %v2054_v57, %v571_v56  ;;  %v2049_v63 = vld [vmem:[%s3447_s0 + $0x15b] ss:$80 sm:%s543_s23]   ;;  %v2050_v0 = vld [vmem:[%s3447_s0 + $0x1f] ss:$80 sm:%s548_s24]   ;;  %s593_s23 = smov 12  ;;  %s598_s24 = smov 48 }
  0x31   :  { %v581_v62 = vsel %vm156_vm2, %v2055_v58, %v576_v59  ;;  %11 = vst.msk [vmem:[#allocation2 + $0x40] ss:$8 sm:$0xf] %vm4_vm3, %v1965_v61   ;;  %v546_v1 = vsel %vm146_vm0, %v2049_v63, %v2048_v60  ;;  %v2051_v2 = vld [vmem:[%s3447_s0 + $0x1f] ss:$80 sm:%s553_s29]   ;;  %s603_s29 = smov 192 }
  0x32   :  { %582 = vrot.lane.b32.xlu1 %v581_v62, %s2250_s6  ;;  %v1968_v3 = vld [vmem:[%s3447_s0 + $0x80] ss:$4 sm:$0xff]   ;;  %v551_v4 = vsel %vm151_vm1, %v2050_v0, %v546_v1  ;;  %v2060_v5 = vld [vmem:[%s3447_s0 + $0x18b] ss:$80 sm:%s615_s3]   ;;  %s664_s3 = smov 3  ;;  %s972_s9 = smov 48 }
  0x33   :  { %v2061_v6 = vld [vmem:[%s3447_s0 + $0x18b] ss:$80 sm:%s618_s4]   ;;  %32 = vst.msk [vmem:[#allocation2 + $0x61] ss:$8 sm:$0xf] %vm4_vm3, %v1968_v3   ;;  %v556_v7 = vsel %vm156_vm2, %v2051_v2, %v551_v4  ;;  %s667_s4 = smov 12 }
  0x34   :  { %34 = vst.msk [vmem:[#allocation2 + $0x61] ss:$8 sm:$0xf0] %vm4_vm3, %v1968_v3   ;;  %v621_v8 = vsel %vm146_vm0, %v2061_v6, %v2060_v5  ;;  %v2062_v9 = vld [vmem:[%s3447_s0 + $0x4f] ss:$80 sm:%s623_s12]   ;;  %557 = vrot.lane.b32.xlu0 %v556_v7, %s2250_s6  ;;  %s672_s12 = smov 48 }
  0x35   :  { %v2063_v10 = vld [vmem:[%s3447_s0 + $0x4f] ss:$80 sm:%s628_s13]   ;;  %v626_v11 = vsel %vm151_vm1, %v2062_v9, %v621_v8  ;;  %v2056_v12 = vld [vmem:[%s3447_s0 + $0x17b] ss:$80 sm:%s590_s16]   ;;  %s677_s13 = smov 192  ;;  %s640_s16 = smov 3 }
  0x36   :  { %v1970_v13 = vld [vmem:[%s3447_s0 + $0xc0] ss:$4 sm:$0xff]   ;;  %v631_v14 = vsel %vm156_vm2, %v2063_v10, %v626_v11  ;;  %v2057_v15 = vld [vmem:[%s3447_s0 + $0x17b] ss:$80 sm:%s593_s23]   ;;  %s643_s23 = smov 12  ;;  %s977_s10 = smov 192 }
  0x37   :  { %v2058_v16 = vld [vmem:[%s3447_s0 + $0x3f] ss:$80 sm:%s598_s24]   ;;  %48 = vst.msk [vmem:[#allocation2 + $0x42] ss:$8 sm:$0xf0] %vm4_vm3, %v1970_v13   ;;  %632 = vrot.lane.b32.xlu1 %v631_v14, %s2250_s6  ;;  %v596_v17 = vsel %vm146_vm0, %v2057_v15, %v2056_v12  ;;  %s648_s24 = smov 48 }
  0x38   :  { %46 = vst.msk [vmem:[#allocation2 + $0x42] ss:$8 sm:$0xf] %vm4_vm3, %v1970_v13   ;;  %v2059_v18 = vld [vmem:[%s3447_s0 + $0x3f] ss:$80 sm:%s603_s29]   ;;  %v601_v20 = vsel %vm151_vm1, %v2058_v16, %v596_v17  ;;  %s653_s29 = smov 192 }
  0x39   :  { %v1973_v19 = vld [vmem:[%s3447_s0 + $0x120] ss:$4 sm:$0xff]   ;;  %v2068_v21 = vld [vmem:[%s3447_s0 + $0x12] ss:$80 sm:%s664_s3]   ;;  %v606_v23 = vsel %vm156_vm2, %v2059_v18, %v601_v20  ;;  %s717_s3 = smov 12  ;;  %s939_s14 = smov 3 }
  0x3a   :  { %v2069_v22 = vld [vmem:[%s3447_s0 + $0x12] ss:$80 sm:%s667_s4]   ;;  %67 = vst.msk [vmem:[#allocation2 + $0x63] ss:$8 sm:$0xf] %vm4_vm3, %v1973_v19   ;;  %607 = vrot.lane.b32.xlu0 %v606_v23, %s2250_s6  ;;  %s942_s19 = smov 12 }
  0x3b   :  { %69 = vst.msk [vmem:[#allocation2 + $0x63] ss:$8 sm:$0xf0] %vm4_vm3, %v1973_v19   ;;  %v670_v24 = vsel %vm146_vm0, %v2069_v22, %v2068_v21  ;;  %v2070_v25 = vld [vmem:[%s3447_s0 - $0x12a] ss:$80 sm:%s672_s12]   ;;  %s727_s12 = smov 192 }
  0x3c   :  { %v2071_v26 = vld [vmem:[%s3447_s0 - $0x12a] ss:$80 sm:%s677_s13]   ;;  %v675_v27 = vsel %vm151_vm1, %v2070_v25, %v670_v24  ;;  %v2064_v28 = vld [vmem:[%s3447_s0 + $0x2] ss:$80 sm:%s640_s16]   ;;  %s2251_s13 = smov 64   ;;  %s689_s16 = smov 3 }
  0x3d   :  { %v1974_v29 = vld [vmem:[%s3447_s0 + $0x140] ss:$4 sm:$0xff]   ;;  %v680_v30 = vsel %vm156_vm2, %v2071_v26, %v675_v27  ;;  %v2065_v31 = vld [vmem:[%s3447_s0 + $0x2] ss:$80 sm:%s643_s23]   ;;  %s692_s23 = smov 12  ;;  %s947_s20 = smov 48 }
  0x3e   :  { %v2066_v32 = vld [vmem:[%s3447_s0 - $0x13a] ss:$80 sm:%s648_s24]   ;;  %74 = vst.msk [vmem:[#allocation2 + $0xa0] ss:$8 sm:$0xf] %vm4_vm3, %v1974_v29   ;;  %681 = vrot.lane.b32.xlu1 %v680_v30, %s2251_s13  ;;  %v646_v33 = vsel %vm146_vm0, %v2065_v31, %v2064_v28  ;;  %s697_s24 = smov 48 }
  0x3f   :  { %76 = vst.msk [vmem:[#allocation2 + $0xa0] ss:$8 sm:$0xf0] %vm4_vm3, %v1974_v29   ;;  %v2067_v34 = vld [vmem:[%s3447_s0 - $0x13a] ss:$80 sm:%s653_s29]   ;;  %v651_v36 = vsel %vm151_vm1, %v2066_v32, %v646_v33  ;;  %s702_s29 = smov 192 }
  0x40   :  { %v1976_v35 = vld [vmem:[%s3447_s0 + $0x180] ss:$4 sm:$0xff]   ;;  %v2076_v37 = vld [vmem:[%s3447_s0 + $0x32] ss:$80 sm:%s714_s2]   ;;  %v656_v39 = vsel %vm156_vm2, %v2067_v34, %v651_v36  ;;  %s764_s2 = smov 3  ;;  %s952_s25 = smov 192 }
  0x41   :  { %v2077_v38 = vld [vmem:[%s3447_s0 + $0x32] ss:$80 sm:%s717_s3]   ;;  %90 = vst.msk [vmem:[#allocation2 + $0x81] ss:$8 sm:$0xf0] %vm4_vm3, %v1976_v35   ;;  %657 = vrot.lane.b32.xlu0 %v656_v39, %s2251_s13  ;;  %s767_s3 = smov 12 }
  0x42   :  { %88 = vst.msk [vmem:[#allocation2 + $0x120] ss:$8 sm:$0xf] %vm4_vm3, %v1976_v35   ;;  %v720_v40 = vsel %vm146_vm0, %v2077_v38, %v2076_v37  ;;  %v2078_v41 = vld [vmem:[%s3447_s0 - $0x10a] ss:$80 sm:%s722_s11]   ;;  %s772_s11 = smov 48 }
  0x43   :  { %v2079_v42 = vld [vmem:[%s3447_s0 - $0x10a] ss:$80 sm:%s727_s12]   ;;  %v725_v43 = vsel %vm151_vm1, %v2078_v41, %v720_v40  ;;  %v2072_v44 = vld [vmem:[%s3447_s0 + $0x22] ss:$80 sm:%s689_s16]   ;;  %s777_s12 = smov 192  ;;  %s739_s16 = smov 3 }
  0x44   :  { %v1979_v45 = vld [vmem:[%s3447_s0 + $0x1e0] ss:$4 sm:$0xff]   ;;  %v730_v46 = vsel %vm156_vm2, %v2079_v42, %v725_v43  ;;  %v2073_v47 = vld [vmem:[%s3447_s0 + $0x22] ss:$80 sm:%s692_s23]   ;;  %s742_s23 = smov 12  ;;  %s1014_s28 = smov 3 }
  0x45   :  { %v2074_v48 = vld [vmem:[%s3447_s0 - $0x11a] ss:$80 sm:%s697_s24]   ;;  %109 = vst.msk [vmem:[#allocation2 + $0xa2] ss:$8 sm:$0xf] %vm4_vm3, %v1979_v45   ;;  %731 = vrot.lane.b32.xlu1 %v730_v46, %s2251_s13  ;;  %v695_v49 = vsel %vm146_vm0, %v2073_v47, %v2072_v44  ;;  %s747_s24 = smov 48 }
  0x46   :  { %111 = vst.msk [vmem:[#allocation2 + $0xa2] ss:$8 sm:$0xf0] %vm4_vm3, %v1979_v45   ;;  %v2075_v50 = vld [vmem:[%s3447_s0 - $0x11a] ss:$80 sm:%s702_s29]   ;;  %v700_v52 = vsel %vm151_vm1, %v2074_v48, %v695_v49  ;;  %s752_s29 = smov 192 }
  0x47   :  { %v1981_v51 = vld [vmem:[%s3447_s0 + $0x220] ss:$4 sm:$0xff]   ;;  %v2084_v53 = vld [vmem:[%s3447_s0 + $0x142] ss:$80 sm:%s764_s2]   ;;  %v705_v55 = vsel %vm156_vm2, %v2075_v50, %v700_v52  ;;  %s814_s2 = smov 3  ;;  %s1022_s4 = smov 48 }
  0x48   :  { %v2085_v54 = vld [vmem:[%s3447_s0 + $0x142] ss:$80 sm:%s767_s3]   ;;  %125 = vst.msk [vmem:[#allocation2 + $0x83] ss:$8 sm:$0xf0] %vm4_vm3, %v1981_v51   ;;  %706 = vrot.lane.b32.xlu0 %v705_v55, %s2251_s13  ;;  %s817_s3 = smov 12 }
  0x49   :  { %123 = vst.msk [vmem:[#allocation2 + $0x122] ss:$8 sm:$0xf] %vm4_vm3, %v1981_v51   ;;  %v770_v56 = vsel %vm146_vm0, %v2085_v54, %v2084_v53  ;;  %v2086_v57 = vld [vmem:[%s3447_s0 + $0x6] ss:$80 sm:%s772_s11]   ;;  %s822_s11 = smov 48 }
  0x4a   :  { %v2087_v58 = vld [vmem:[%s3447_s0 + $0x6] ss:$80 sm:%s777_s12]   ;;  %v775_v59 = vsel %vm151_vm1, %v2086_v57, %v770_v56  ;;  %v2080_v60 = vld [vmem:[%s3447_s0 + $0x42] ss:$80 sm:%s739_s16]   ;;  %s827_s12 = smov 192  ;;  %s789_s16 = smov 3 }
  0x4b   :  { %v1975_v61 = vld [vmem:[%s3447_s0 + $0x160] ss:$4 sm:$0xff]   ;;  %v780_v62 = vsel %vm156_vm2, %v2087_v58, %v775_v59  ;;  %v2081_v63 = vld [vmem:[%s3447_s0 + $0x42] ss:$80 sm:%s742_s23]   ;;  %s792_s23 = smov 12  ;;  %s1027_s5 = smov 192 }
  0x4c   :  { %v2082_v0 = vld [vmem:[%s3447_s0 - $0xfa] ss:$80 sm:%s747_s24]   ;;  %81 = vst.msk [vmem:[#allocation2 + $0xe0] ss:$8 sm:$0xf] %vm4_vm3, %v1975_v61   ;;  %781 = vrot.lane.b32.xlu1 %v780_v62, %s2251_s13  ;;  %v745_v1 = vsel %vm146_vm0, %v2081_v63, %v2080_v60  ;;  %s797_s24 = smov 48 }
  0x4d   :  { %83 = vst.msk [vmem:[#allocation2 + $0xe0] ss:$8 sm:$0xf0] %vm4_vm3, %v1975_v61   ;;  %v2083_v2 = vld [vmem:[%s3447_s0 - $0xfa] ss:$80 sm:%s752_s29]   ;;  %v750_v4 = vsel %vm151_vm1, %v2082_v0, %v745_v1  ;;  %s802_s29 = smov 192 }
  0x4e   :  { %v1977_v3 = vld [vmem:[%s3447_s0 + $0x1a0] ss:$4 sm:$0xff]   ;;  %v2092_v5 = vld [vmem:[%s3447_s0 + $0x162] ss:$80 sm:%s814_s2]   ;;  %v755_v7 = vsel %vm156_vm2, %v2083_v2, %v750_v4  ;;  %s864_s2 = smov 3  ;;  %s992_s15 = smov 12 }
  0x4f   :  { %v2093_v6 = vld [vmem:[%s3447_s0 + $0x162] ss:$80 sm:%s817_s3]   ;;  %97 = vst.msk [vmem:[#allocation2 + $0xc1] ss:$8 sm:$0xf0] %vm4_vm3, %v1977_v3   ;;  %756 = vrot.lane.b32.xlu0 %v755_v7, %s2251_s13  ;;  %s867_s3 = smov 12 }
  0x50   :  { %95 = vst.msk [vmem:[#allocation2 + $0xc1] ss:$8 sm:$0xf] %vm4_vm3, %v1977_v3   ;;  %v820_v8 = vsel %vm146_vm0, %v2093_v6, %v2092_v5  ;;  %v2094_v9 = vld [vmem:[%s3447_s0 + $0x26] ss:$80 sm:%s822_s11]   ;;  %s872_s11 = smov 48 }
  0x51   :  { %v2095_v10 = vld [vmem:[%s3447_s0 + $0x26] ss:$80 sm:%s827_s12]   ;;  %v825_v11 = vsel %vm151_vm1, %v2094_v9, %v820_v8  ;;  %v2088_v12 = vld [vmem:[%s3447_s0 + $0x152] ss:$80 sm:%s789_s16]   ;;  %s877_s12 = smov 192  ;;  %s839_s16 = smov 3 }
  0x52   :  { %v1980_v13 = vld [vmem:[%s3447_s0 + $0x200] ss:$4 sm:$0xff]   ;;  %v830_v14 = vsel %vm156_vm2, %v2095_v10, %v825_v11  ;;  %v2089_v15 = vld [vmem:[%s3447_s0 + $0x152] ss:$80 sm:%s792_s23]   ;;  %s842_s23 = smov 12  ;;  %s1002_s21 = smov 192 }
  0x53   :  { %v2090_v16 = vld [vmem:[%s3447_s0 + $0x16] ss:$80 sm:%s797_s24]   ;;  %116 = vst.msk [vmem:[#allocation2 + $0xe2] ss:$8 sm:$0xf] %vm4_vm3, %v1980_v13   ;;  %831 = vrot.lane.b32.xlu1 %v830_v14, %s2251_s13  ;;  %v795_v17 = vsel %vm146_vm0, %v2089_v15, %v2088_v12  ;;  %s847_s24 = smov 48 }
  0x54   :  { %118 = vst.msk [vmem:[#allocation2 + $0xe2] ss:$8 sm:$0xf0] %vm4_vm3, %v1980_v13   ;;  %v2091_v18 = vld [vmem:[%s3447_s0 + $0x16] ss:$80 sm:%s802_s29]   ;;  %v800_v20 = vsel %vm151_vm1, %v2090_v16, %v795_v17  ;;  %s852_s29 = smov 192 }
  0x55   :  { %v1982_v19 = vld [vmem:[%s3447_s0 + $0x240] ss:$4 sm:$0xff]   ;;  %v2100_v21 = vld [vmem:[%s3447_s0 + $0x182] ss:$80 sm:%s864_s2]   ;;  %v805_v23 = vsel %vm156_vm2, %v2091_v18, %v800_v20  ;;  %s914_s2 = smov 3  ;;  %s1072_s6 = smov 48 }
  0x56   :  { %v2101_v22 = vld [vmem:[%s3447_s0 + $0x182] ss:$80 sm:%s867_s3]   ;;  %132 = vst.msk [vmem:[#allocation2 + $0xc3] ss:$8 sm:$0xf0] %vm4_vm3, %v1982_v19   ;;  %806 = vrot.lane.b32.xlu0 %v805_v23, %s2251_s13  ;;  %s917_s3 = smov 12 }
  0x57   :  { %130 = vst.msk [vmem:[#allocation2 + $0xc3] ss:$8 sm:$0xf] %vm4_vm3, %v1982_v19   ;;  %v870_v24 = vsel %vm146_vm0, %v2101_v22, %v2100_v21  ;;  %v2102_v25 = vld [vmem:[%s3447_s0 + $0x46] ss:$80 sm:%s872_s11]   ;;  %s922_s11 = smov 48 }
  0x58   :  { %v2103_v26 = vld [vmem:[%s3447_s0 + $0x46] ss:$80 sm:%s877_s12]   ;;  %v875_v27 = vsel %vm151_vm1, %v2102_v25, %v870_v24  ;;  %v2096_v28 = vld [vmem:[%s3447_s0 + $0x172] ss:$80 sm:%s839_s16]   ;;  %s927_s12 = smov 192  ;;  %s889_s16 = smov 3 }
  0x59   :  { %v1978_v29 = vld [vmem:[%s3447_s0 + $0x1c0] ss:$4 sm:$0xff]   ;;  %v880_v30 = vsel %vm156_vm2, %v2103_v26, %v875_v27  ;;  %v2097_v31 = vld [vmem:[%s3447_s0 + $0x172] ss:$80 sm:%s842_s23]   ;;  %s892_s23 = smov 12  ;;  %s1077_s30 = smov 192 }
  0x5a   :  { %v2098_v32 = vld [vmem:[%s3447_s0 + $0x36] ss:$80 sm:%s847_s24]   ;;  %104 = vst.msk [vmem:[#allocation2 + $0x101] ss:$8 sm:$0xf0] %vm4_vm3, %v1978_v29   ;;  %881 = vrot.lane.b32.xlu1 %v880_v30, %s2251_s13  ;;  %v845_v33 = vsel %vm146_vm0, %v2097_v31, %v2096_v28  ;;  %s897_s24 = smov 48 }
  0x5b   :  { %102 = vst.msk [vmem:[#allocation2 + $0x101] ss:$8 sm:$0xf] %vm4_vm3, %v1978_v29   ;;  %v2099_v34 = vld [vmem:[%s3447_s0 + $0x36] ss:$80 sm:%s852_s29]   ;;  %v850_v36 = vsel %vm151_vm1, %v2098_v32, %v845_v33  ;;  %s902_s29 = smov 192 }
  0x5c   :  { %v1983_v35 = vld [vmem:[%s3447_s0 + $0x260] ss:$4 sm:$0xff]   ;;  %v2108_v37 = vld [vmem:[%s3447_s0 + $0x1a] ss:$80 sm:%s914_s2]   ;;  %v855_v39 = vsel %vm156_vm2, %v2099_v34, %v850_v36  ;;  %s964_s2 = smov 3  ;;  %s1052_s17 = smov 192 }
  0x5d   :  { %v2109_v38 = vld [vmem:[%s3447_s0 + $0x1a] ss:$80 sm:%s917_s3]   ;;  %139 = vst.msk [vmem:[#allocation2 + $0x103] ss:$8 sm:$0xf0] %vm4_vm3, %v1983_v35   ;;  %856 = vrot.lane.b32.xlu0 %v855_v39, %s2251_s13  ;;  %s967_s3 = smov 12 }
  0x5e   :  { %137 = vst.msk [vmem:[#allocation2 + $0x103] ss:$8 sm:$0xf] %vm4_vm3, %v1983_v35   ;;  %v920_v40 = vsel %vm146_vm0, %v2109_v38, %v2108_v37  ;;  %v2110_v41 = vld [vmem:[%s3447_s0 - $0x122] ss:$80 sm:%s922_s11]   ;;  %s1047_s11 = smov 48 }
  0x5f   :  { %v2111_v42 = vld [vmem:[%s3447_s0 - $0x122] ss:$80 sm:%s927_s12]   ;;  %v925_v43 = vsel %vm151_vm1, %v2110_v41, %v920_v40  ;;  %v2104_v44 = vld [vmem:[%s3447_s0 + $0xa] ss:$80 sm:%s889_s16]   ;;  %s997_s16 = smov 48  ;;  %s1122_s26 = smov 48 }
  0x60   :  { %v930_v45 = vsel %vm156_vm2, %v2111_v42, %v925_v43  ;;  %v2105_v46 = vld [vmem:[%s3447_s0 + $0xa] ss:$80 sm:%s892_s23]   ;;  %v2106_v47 = vld [vmem:[%s3447_s0 - $0x132] ss:$80 sm:%s897_s24]   ;;  %s1064_s24 = smov 3  ;;  %s1127_s27 = smov 192 }
  0x61   :  { %931 = vrot.lane.b32.xlu1 %v930_v45, %s2251_s13  ;;  %v895_v48 = vsel %vm146_vm0, %v2105_v46, %v2104_v44  ;;  %v2107_v49 = vld [vmem:[%s3447_s0 - $0x132] ss:$80 sm:%s902_s29]   ;;  %s1017_s29 = smov 12  ;;  %s1097_s7 = smov 48 }
  0x62   :  { %v900_v50 = vsel %vm151_vm1, %v2106_v47, %v895_v48  ;;  %v2116_v51 = vld [vmem:[%s3447_s0 + $0x3a] ss:$80 sm:%s964_s2]   ;;  %v2118_v55 = vld [vmem:[%s3447_s0 - $0x102] ss:$80 sm:%s972_s9]   ;;  %s989_s9 = smov 3  ;;  %s1102_s12 = smov 192 }
  0x63   :  { %v2117_v52 = vld [vmem:[%s3447_s0 + $0x3a] ss:$80 sm:%s967_s3]   ;;  %v905_v53 = vsel %vm156_vm2, %v2107_v49, %v900_v50  ;;  %v2119_v56 = vld [vmem:[%s3447_s0 - $0x102] ss:$80 sm:%s977_s10]   ;;  %s1042_s10 = smov 12  ;;  %s1171_s22 = smov 48 }
  0x64   :  { %v970_v54 = vsel %vm146_vm0, %v2117_v52, %v2116_v51  ;;  %906 = vrot.lane.b32.xlu0 %v905_v53, %s2251_s13  ;;  %v2112_v58 = vld [vmem:[%s3447_s0 + $0x2a] ss:$80 sm:%s939_s14]   ;;  %s1176_s23 = smov 192  ;;  %s1147_s2 = smov 48 }
  0x65   :  { %v975_v57 = vsel %vm151_vm1, %v2118_v55, %v970_v54  ;;  %v2113_v60 = vld [vmem:[%s3447_s0 + $0x2a] ss:$80 sm:%s942_s19]   ;;  %v2114_v61 = vld [vmem:[%s3447_s0 - $0x112] ss:$80 sm:%s947_s20]   ;;  %s1114_s20 = smov 3  ;;  %s1152_s8 = smov 192 }
  0x66   :  { %v980_v59 = vsel %vm156_vm2, %v2119_v56, %v975_v57  ;;  %v945_v62 = vsel %vm146_vm0, %v2113_v60, %v2112_v58  ;;  %v2115_v63 = vld [vmem:[%s3447_s0 - $0x112] ss:$80 sm:%s952_s25]   ;;  %v2124_v1 = vld [vmem:[%s3447_s0 + $0x14a] ss:$80 sm:%s1014_s28]   ;;  %s1067_s25 = smov 12  ;;  %s1226_s18 = smov 192 }
  0x67   :  { %981 = vrot.lane.b32.xlu1 %v980_v59, %s2251_s13  ;;  %v950_v0 = vsel %vm151_vm1, %v2114_v61, %v945_v62  ;;  %v2125_v2 = vld [vmem:[%s3447_s0 + $0x14a] ss:$80 sm:%s1017_s29]   ;;  %s2252_s19 = smov 32   ;;  %s1196_s28 = smov 48 }
  0x68   :  { %v955_v3 = vsel %vm156_vm2, %v2115_v63, %v950_v0  ;;  %v1020_v4 = vsel %vm146_vm0, %v2125_v2, %v2124_v1  ;;  %v2126_v5 = vld [vmem:[%s3447_s0 + $0xe] ss:$80 sm:%s1022_s4]   ;;  %v2120_v8 = vld [vmem:[%s3447_s0 + $0x4a] ss:$80 sm:%s989_s9]   ;;  %s1039_s4 = smov 3  ;;  %s1201_s3 = smov 192 }
  0x69   :  { %v2127_v6 = vld [vmem:[%s3447_s0 + $0xe] ss:$80 sm:%s1027_s5]   ;;  %956 = vrot.lane.b32.xlu0 %v955_v3, %s2251_s13  ;;  %v1025_v7 = vsel %vm151_vm1, %v2126_v5, %v1020_v4  ;;  %s1092_s5 = smov 12  ;;  %s1276_s14 = smov 192 }
  0x6a   :  { %v1030_v9 = vsel %vm156_vm2, %v2127_v6, %v1025_v7  ;;  %v2121_v10 = vld [vmem:[%s3447_s0 + $0x4a] ss:$80 sm:%s992_s15]   ;;  %v2122_v11 = vld [vmem:[%s3447_s0 - $0xf2] ss:$80 sm:%s997_s16]   ;;  %s1163_s16 = smov 3  ;;  %s1251_s29 = smov 192 }
  0x6b   :  { %1031 = vrot.lane.b32.xlu1 %v1030_v9, %s2251_s13  ;;  %v995_v12 = vsel %vm146_vm0, %v2121_v10, %v2120_v8  ;;  %v2123_v13 = vld [vmem:[%s3447_s0 - $0xf2] ss:$80 sm:%s1002_s21]   ;;  %s1117_s21 = smov 12  ;;  %s1326_s9 = smov 192 }
  0x6c   :  { %v1000_v14 = vsel %vm151_vm1, %v2122_v11, %v995_v12  ;;  %v2132_v15 = vld [vmem:[%s3447_s0 + $0x16a] ss:$80 sm:%s1064_s24]   ;;  %v2134_v19 = vld [vmem:[%s3447_s0 + $0x2e] ss:$80 sm:%s1072_s6]   ;;  %s1089_s6 = smov 3  ;;  %s1246_s24 = smov 48 }
  0x6d   :  { %v2133_v16 = vld [vmem:[%s3447_s0 + $0x16a] ss:$80 sm:%s1067_s25]   ;;  %v1005_v17 = vsel %vm156_vm2, %v2123_v13, %v1000_v14  ;;  %v2135_v20 = vld [vmem:[%s3447_s0 + $0x2e] ss:$80 sm:%s1077_s30]   ;;  %s1142_s30 = smov 12  ;;  %s1301_s25 = smov 192 }
  0x6e   :  { %v1070_v18 = vsel %vm146_vm0, %v2133_v16, %v2132_v15  ;;  %1006 = vrot.lane.b32.xlu0 %v1005_v17, %s2251_s13  ;;  %v2128_v22 = vld [vmem:[%s3447_s0 + $0x15a] ss:$80 sm:%s1039_s4]   ;;  %s1371_s4 = smov 48  ;;  %s1346_s15 = smov 48 }
  0x6f   :  { %v1075_v21 = vsel %vm151_vm1, %v2134_v19, %v1070_v18  ;;  %v2129_v24 = vld [vmem:[%s3447_s0 + $0x15a] ss:$80 sm:%s1042_s10]   ;;  %v2130_v25 = vld [vmem:[%s3447_s0 + $0x1e] ss:$80 sm:%s1047_s11]   ;;  %s1213_s10 = smov 3  ;;  %s1216_s11 = smov 12 }
  0x70   :  { %v1080_v23 = vsel %vm156_vm2, %v2135_v20, %v1075_v21  ;;  %v1045_v26 = vsel %vm146_vm0, %v2129_v24, %v2128_v22  ;;  %v2131_v27 = vld [vmem:[%s3447_s0 + $0x1e] ss:$80 sm:%s1052_s17]   ;;  %v2140_v29 = vld [vmem:[%s3447_s0 + $0x18a] ss:$80 sm:%s1114_s20]   ;;  %s1166_s17 = smov 12  ;;  %s1296_s20 = smov 48 }
  0x71   :  { %1081 = vrot.lane.b32.xlu1 %v1080_v23, %s2251_s13  ;;  %v1050_v28 = vsel %vm151_vm1, %v2130_v25, %v1045_v26  ;;  %v2141_v30 = vld [vmem:[%s3447_s0 + $0x18a] ss:$80 sm:%s1117_s21]   ;;  %s1351_s21 = smov 192 }
  0x72   :  { %v1055_v31 = vsel %vm156_vm2, %v2131_v27, %v1050_v28  ;;  %v1120_v32 = vsel %vm146_vm0, %v2141_v30, %v2140_v29  ;;  %v2142_v33 = vld [vmem:[%s3447_s0 + $0x4e] ss:$80 sm:%s1122_s26]   ;;  %v2136_v36 = vld [vmem:[%s3447_s0 + $0x17a] ss:$80 sm:%s1089_s6]   ;;  %s1139_s26 = smov 3  ;;  %s1421_s6 = smov 48 }
  0x73   :  { %v2143_v34 = vld [vmem:[%s3447_s0 + $0x4e] ss:$80 sm:%s1127_s27]   ;;  %1056 = vrot.lane.b32.xlu0 %v1055_v31, %s2251_s13  ;;  %v1125_v35 = vsel %vm151_vm1, %v2142_v33, %v1120_v32  ;;  %s1191_s27 = smov 12 }
  0x74   :  { %v1130_v37 = vsel %vm156_vm2, %v2143_v34, %v1125_v35  ;;  %v2137_v38 = vld [vmem:[%s3447_s0 + $0x17a] ss:$80 sm:%s1092_s5]   ;;  %v2138_v39 = vld [vmem:[%s3447_s0 + $0x3e] ss:$80 sm:%s1097_s7]   ;;  %s1263_s7 = smov 3  ;;  %s1376_s5 = smov 192 }
  0x75   :  { %1131 = vrot.lane.b32.xlu1 %v1130_v37, %s2251_s13  ;;  %v1095_v40 = vsel %vm146_vm0, %v2137_v38, %v2136_v36  ;;  %v2139_v41 = vld [vmem:[%s3447_s0 + $0x3e] ss:$80 sm:%s1102_s12]   ;;  %s1271_s12 = smov 48 }
  0x76   :  { %v1100_v42 = vsel %vm151_vm1, %v2138_v39, %v1095_v40  ;;  %v2148_v43 = vld [vmem:[%s3447_s0 + $0x11] ss:$80 sm:%s1163_s16]   ;;  %v2150_v47 = vld [vmem:[%s3447_s0 - $0x12b] ss:$80 sm:%s1171_s22]   ;;  %s1188_s22 = smov 3  ;;  %s1401_s16 = smov 192 }
  0x77   :  { %v2149_v44 = vld [vmem:[%s3447_s0 + $0x11] ss:$80 sm:%s1166_s17]   ;;  %v1105_v45 = vsel %vm156_vm2, %v2139_v41, %v1100_v42  ;;  %v2151_v48 = vld [vmem:[%s3447_s0 - $0x12b] ss:$80 sm:%s1176_s23]   ;;  %s1221_s17 = smov 48  ;;  %s1241_s23 = smov 12 }
  0x78   :  { %v1169_v46 = vsel %vm146_vm0, %v2149_v44, %v2148_v43  ;;  %1106 = vrot.lane.b32.xlu0 %v1105_v45, %s2251_s13  ;;  %v2144_v50 = vld [vmem:[%s3447_s0 + $0x1] ss:$80 sm:%s1139_s26]   ;;  %s1321_s13 = smov 48  ;;  %s1471_s26 = smov 48 }
  0x79   :  { %v1174_v49 = vsel %vm151_vm1, %v2150_v47, %v1169_v46  ;;  %v2145_v52 = vld [vmem:[%s3447_s0 + $0x1] ss:$80 sm:%s1142_s30]   ;;  %v2146_v53 = vld [vmem:[%s3447_s0 - $0x13b] ss:$80 sm:%s1147_s2]   ;;  %s1313_s2 = smov 3  ;;  %s1426_s30 = smov 192 }
  0x7a   :  { %v1179_v51 = vsel %vm156_vm2, %v2151_v48, %v1174_v49  ;;  %v1145_v54 = vsel %vm146_vm0, %v2145_v52, %v2144_v50  ;;  %v2147_v55 = vld [vmem:[%s3447_s0 - $0x13b] ss:$80 sm:%s1152_s8]   ;;  %v2156_v57 = vld [vmem:[%s3447_s0 + $0x31] ss:$80 sm:%s1213_s10]   ;;  %s1266_s8 = smov 12  ;;  %v208_v34 = vpop.permute.xlu1 %207   ;;  %s1396_s10 = smov 48 }
  0x7b   :  { %1180 = vrot.lane.b32.xlu1 %v1179_v51, %s2252_s19  ;;  %v1150_v56 = vsel %vm151_vm1, %v2146_v53, %v1145_v54  ;;  %v2157_v58 = vld [vmem:[%s3447_s0 + $0x31] ss:$80 sm:%s1216_s11]   ;;  %211 = vst.msk [vmem:[#allocation2 + $0x40] sm:$0xf] %vm160_vm4, %v208_v34   ;;  %213 = vst.msk [vmem:[#allocation2 + $0x44] sm:$0xf0] %vm160_vm4, %v208_v34   ;;  %v159_v42 = vpop.permute.xlu0 %158  }
  0x7c   :  { %v1155_v59 = vsel %vm156_vm2, %v2147_v55, %v1150_v56  ;;  %v1219_v60 = vsel %vm146_vm0, %v2157_v58, %v2156_v57  ;;  %v2158_v61 = vld [vmem:[%s3447_s0 - $0x10b] ss:$80 sm:%s1221_s17]   ;;  %v2152_v0 = vld [vmem:[%s3447_s0 + $0x21] ss:$80 sm:%s1188_s22]   ;;  %s1238_s17 = smov 3  ;;  %s1451_s11 = smov 192 }
  0x7d   :  { %v2159_v62 = vld [vmem:[%s3447_s0 - $0x10b] ss:$80 sm:%s1226_s18]   ;;  %1156 = vrot.lane.b32.xlu0 %v1155_v59, %s2252_s19  ;;  %v1224_v63 = vsel %vm151_vm1, %v2158_v61, %v1219_v60  ;;  %s1291_s18 = smov 12  ;;  %161 = vst.msk [vmem:[#allocation2] sm:$0xf] %vm160_vm4, %v159_v42   ;;  %s1521_s22 = smov 48 }
  0x7e   :  { %v1229_v1 = vsel %vm156_vm2, %v2159_v62, %v1224_v63  ;;  %v2153_v2 = vld [vmem:[%s3447_s0 + $0x21] ss:$80 sm:%s1191_s27]   ;;  %v2154_v3 = vld [vmem:[%s3447_s0 - $0x11b] ss:$80 sm:%s1196_s28]   ;;  %s1363_s28 = smov 3  ;;  %v233_v48 = vpop.permute.xlu1 %232   ;;  %s1476_s27 = smov 192 }
  0x7f   :  { %1230 = vrot.lane.b32.xlu1 %v1229_v1, %s2252_s19  ;;  %v1194_v4 = vsel %vm146_vm0, %v2153_v2, %v2152_v0  ;;  %v2155_v5 = vld [vmem:[%s3447_s0 - $0x11b] ss:$80 sm:%s1201_s3]   ;;  %s1316_s3 = smov 12  ;;  %163 = vst.msk [vmem:[#allocation2 + $0x4] sm:$0xf0] %vm160_vm4, %v159_v42  }
  0x80   :  { %v1199_v6 = vsel %vm151_vm1, %v2154_v3, %v1194_v4  ;;  %v2164_v7 = vld [vmem:[%s3447_s0 + $0x141] ss:$80 sm:%s1263_s7]   ;;  %v2166_v11 = vld [vmem:[%s3447_s0 + $0x5] ss:$80 sm:%s1271_s12]   ;;  %s1288_s12 = smov 3  ;;  %v183_v58 = vpop.permute.xlu0 %182   ;;  %s1446_s7 = smov 48 }
  0x81   :  { %v2165_v8 = vld [vmem:[%s3447_s0 + $0x141] ss:$80 sm:%s1266_s8]   ;;  %v1204_v9 = vsel %vm156_vm2, %v2155_v5, %v1199_v6  ;;  %v2167_v12 = vld [vmem:[%s3447_s0 + $0x5] ss:$80 sm:%s1276_s14]   ;;  %s1341_s14 = smov 12  ;;  %s1501_s8 = smov 192 }
  0x82   :  { %v1269_v10 = vsel %vm146_vm0, %v2165_v8, %v2164_v7  ;;  %1205 = vrot.lane.b32.xlu0 %v1204_v9, %s2252_s19  ;;  %v2160_v14 = vld [vmem:[%s3447_s0 + $0x41] ss:$80 sm:%s1238_s17]   ;;  %236 = vst.msk [vmem:[#allocation2 + $0x60] sm:$0xf] %vm160_vm4, %v233_v48   ;;  %238 = vst.msk [vmem:[#allocation2 + $0x64] sm:$0xf0] %vm160_vm4, %v233_v48   ;;  %v283_v0 = vpop.permute.xlu1 %282  }
  0x83   :  { %v1274_v13 = vsel %vm151_vm1, %v2166_v11, %v1269_v10  ;;  %v2161_v16 = vld [vmem:[%s3447_s0 + $0x41] ss:$80 sm:%s1241_s23]   ;;  %v2162_v17 = vld [vmem:[%s3447_s0 - $0xfb] ss:$80 sm:%s1246_s24]   ;;  %s1413_s24 = smov 3  ;;  %s1526_s23 = smov 192 }
  0x84   :  { %v1279_v15 = vsel %vm156_vm2, %v2167_v12, %v1274_v13  ;;  %v1244_v18 = vsel %vm146_vm0, %v2161_v16, %v2160_v14  ;;  %v2163_v19 = vld [vmem:[%s3447_s0 - $0xfb] ss:$80 sm:%s1251_s29]   ;;  %v2172_v21 = vld [vmem:[%s3447_s0 + $0x161] ss:$80 sm:%s1313_s2]   ;;  %s1366_s29 = smov 12  ;;  %s1496_s2 = smov 48 }
  0x85   :  { %1280 = vrot.lane.b32.xlu1 %v1279_v15, %s2252_s19  ;;  %v1249_v20 = vsel %vm151_vm1, %v2162_v17, %v1244_v18  ;;  %v2173_v22 = vld [vmem:[%s3447_s0 + $0x161] ss:$80 sm:%s1316_s3]   ;;  %186 = vst.msk [vmem:[#allocation2 + $0x20] sm:$0xf] %vm160_vm4, %v183_v58   ;;  %188 = vst.msk [vmem:[#allocation2 + $0x24] sm:$0xf0] %vm160_vm4, %v183_v58   ;;  %v258_v10 = vpop.permute.xlu0 %257  }
  0x86   :  { %v1254_v23 = vsel %vm156_vm2, %v2163_v19, %v1249_v20  ;;  %v1319_v24 = vsel %vm146_vm0, %v2173_v22, %v2172_v21  ;;  %v2174_v25 = vld [vmem:[%s3447_s0 + $0x25] ss:$80 sm:%s1321_s13]   ;;  %v2168_v28 = vld [vmem:[%s3447_s0 + $0x151] ss:$80 sm:%s1288_s12]   ;;  %s1338_s13 = smov 3  ;;  %s1571_s17 = smov 48 }
  0x87   :  { %v2175_v26 = vld [vmem:[%s3447_s0 + $0x25] ss:$80 sm:%s1326_s9]   ;;  %1255 = vrot.lane.b32.xlu0 %v1254_v23, %s2252_s19  ;;  %v1324_v27 = vsel %vm151_vm1, %v2174_v25, %v1319_v24  ;;  %s1391_s9 = smov 12  ;;  %286 = vst.msk [vmem:[#allocation2 + $0xa0] sm:$0xf] %vm160_vm4, %v283_v0   ;;  %s1551_s3 = smov 192 }
  0x88   :  { %v1329_v29 = vsel %vm156_vm2, %v2175_v26, %v1324_v27  ;;  %v2169_v30 = vld [vmem:[%s3447_s0 + $0x151] ss:$80 sm:%s1291_s18]   ;;  %v2170_v31 = vld [vmem:[%s3447_s0 + $0x15] ss:$80 sm:%s1296_s20]   ;;  %s1463_s20 = smov 3  ;;  %v333_v16 = vpop.permute.xlu1 %332   ;;  %s1576_s18 = smov 192 }
  0x89   :  { %1330 = vrot.lane.b32.xlu1 %v1329_v29, %s2252_s19  ;;  %v1294_v32 = vsel %vm146_vm0, %v2169_v30, %v2168_v28  ;;  %v2171_v33 = vld [vmem:[%s3447_s0 + $0x15] ss:$80 sm:%s1301_s25]   ;;  %s1416_s25 = smov 12  ;;  %288 = vst.msk [vmem:[#allocation2 + $0xa4] sm:$0xf0] %vm160_vm4, %v283_v0   ;;  %s1621_s12 = smov 48 }
  0x8a   :  { %v1299_v35 = vsel %vm151_vm1, %v2170_v31, %v1294_v32  ;;  %v2180_v36 = vld [vmem:[%s3447_s0 + $0x181] ss:$80 sm:%s1363_s28]   ;;  %v2182_v40 = vld [vmem:[%s3447_s0 + $0x45] ss:$80 sm:%s1371_s4]   ;;  %s1388_s4 = smov 3  ;;  %v308_v26 = vpop.permute.xlu0 %307   ;;  %s1546_s28 = smov 48 }
  0x8b   :  { %v2181_v37 = vld [vmem:[%s3447_s0 + $0x181] ss:$80 sm:%s1366_s29]   ;;  %v1304_v38 = vsel %vm156_vm2, %v2171_v33, %v1299_v35  ;;  %v2183_v41 = vld [vmem:[%s3447_s0 + $0x45] ss:$80 sm:%s1376_s5]   ;;  %s1441_s5 = smov 12  ;;  %s1601_s29 = smov 192 }
  0x8c   :  { %v1369_v39 = vsel %vm146_vm0, %v2181_v37, %v2180_v36  ;;  %1305 = vrot.lane.b32.xlu0 %v1304_v38, %s2252_s19  ;;  %v2176_v44 = vld [vmem:[%s3447_s0 + $0x171] ss:$80 sm:%s1338_s13]   ;;  %261 = vst.msk [vmem:[#allocation2 + $0x80] sm:$0xf] %vm160_vm4, %v258_v10   ;;  %263 = vst.msk [vmem:[#allocation2 + $0x84] sm:$0xf0] %vm160_vm4, %v258_v10   ;;  %v383_v32 = vpop.permute.xlu1 %382  }
  0x8d   :  { %v1374_v43 = vsel %vm151_vm1, %v2182_v40, %v1369_v39  ;;  %v2177_v46 = vld [vmem:[%s3447_s0 + $0x171] ss:$80 sm:%s1341_s14]   ;;  %v2178_v47 = vld [vmem:[%s3447_s0 + $0x35] ss:$80 sm:%s1346_s15]   ;;  %s1513_s15 = smov 3  ;;  %s1626_s14 = smov 192 }
  0x8e   :  { %v1379_v45 = vsel %vm156_vm2, %v2183_v41, %v1374_v43  ;;  %v1344_v49 = vsel %vm146_vm0, %v2177_v46, %v2176_v44  ;;  %v2179_v50 = vld [vmem:[%s3447_s0 + $0x35] ss:$80 sm:%s1351_s21]   ;;  %v2188_v52 = vld [vmem:[%s3447_s0 + $0x19] ss:$80 sm:%s1413_s24]   ;;  %s1466_s21 = smov 12  ;;  %s1596_s24 = smov 48 }
  0x8f   :  { %1380 = vrot.lane.b32.xlu1 %v1379_v45, %s2252_s19  ;;  %v1349_v51 = vsel %vm151_vm1, %v2178_v47, %v1344_v49  ;;  %v2189_v53 = vld [vmem:[%s3447_s0 + $0x19] ss:$80 sm:%s1416_s25]   ;;  %336 = vst.msk [vmem:[#allocation2 + $0xe0] sm:$0xf] %vm160_vm4, %v333_v16   ;;  %338 = vst.msk [vmem:[#allocation2 + $0xe4] sm:$0xf0] %vm160_vm4, %v333_v16   ;;  %v358_v42 = vpop.permute.xlu0 %357  }
  0x90   :  { %v1354_v54 = vsel %vm156_vm2, %v2179_v50, %v1349_v51  ;;  %v1419_v55 = vsel %vm146_vm0, %v2189_v53, %v2188_v52  ;;  %v2190_v56 = vld [vmem:[%s3447_s0 - $0x123] ss:$80 sm:%s1421_s6]   ;;  %v2184_v60 = vld [vmem:[%s3447_s0 + $0x9] ss:$80 sm:%s1388_s4]   ;;  %s1438_s6 = smov 3 }
  0x91   :  { %v2191_v57 = vld [vmem:[%s3447_s0 - $0x123] ss:$80 sm:%s1426_s30]   ;;  %1355 = vrot.lane.b32.xlu0 %v1354_v54, %s2252_s19  ;;  %v1424_v59 = vsel %vm151_vm1, %v2190_v56, %v1419_v55  ;;  %s1491_s30 = smov 12  ;;  %311 = vst.msk [vmem:[#allocation2 + $0xc0] sm:$0xf] %vm160_vm4, %v308_v26  }
  0x92   :  { %v1429_v61 = vsel %vm156_vm2, %v2191_v57, %v1424_v59  ;;  %v2185_v62 = vld [vmem:[%s3447_s0 + $0x9] ss:$80 sm:%s1391_s9]   ;;  %v2186_v63 = vld [vmem:[%s3447_s0 - $0x133] ss:$80 sm:%s1396_s10]   ;;  %s1563_s10 = smov 3  ;;  %v433_v48 = vpop.permute.xlu1 %432  }
  0x93   :  { %1430 = vrot.lane.b32.xlu1 %v1429_v61, %s2252_s19  ;;  %v1394_v1 = vsel %vm146_vm0, %v2185_v62, %v2184_v60  ;;  %v2187_v2 = vld [vmem:[%s3447_s0 - $0x133] ss:$80 sm:%s1401_s16]   ;;  %s1516_s16 = smov 12  ;;  %313 = vst.msk [vmem:[#allocation2 + $0xc4] sm:$0xf0] %vm160_vm4, %v308_v26  }
  0x94   :  { %v1399_v3 = vsel %vm151_vm1, %v2186_v63, %v1394_v1  ;;  %v2196_v4 = vld [vmem:[%s3447_s0 + $0x39] ss:$80 sm:%s1463_s20]   ;;  %v2198_v8 = vld [vmem:[%s3447_s0 - $0x103] ss:$80 sm:%s1471_s26]   ;;  %s1488_s26 = smov 3 }
  0x95   :  { %v2197_v5 = vld [vmem:[%s3447_s0 + $0x39] ss:$80 sm:%s1466_s21]   ;;  %v1404_v6 = vsel %vm156_vm2, %v2187_v2, %v1399_v3  ;;  %v2199_v9 = vld [vmem:[%s3447_s0 - $0x103] ss:$80 sm:%s1476_s27]   ;;  %386 = vst.msk [vmem:[#allocation2 + $0x120] sm:$0xf] %vm160_vm4, %v383_v32   ;;  %v408_v58 = vpop.permute.xlu0 %407  }
  0x96   :  { %v1469_v7 = vsel %vm146_vm0, %v2197_v5, %v2196_v4  ;;  %1405 = vrot.lane.b32.xlu0 %v1404_v6, %s2252_s19  ;;  %v2192_v12 = vld [vmem:[%s3447_s0 + $0x29] ss:$80 sm:%s1438_s6]   ;;  %388 = vst.msk [vmem:[#allocation2 + $0x124] sm:$0xf0] %vm160_vm4, %v383_v32   ;;  %s1541_s27 = smov 12 }
  0x97   :  { %v1474_v11 = vsel %vm151_vm1, %v2198_v8, %v1469_v7  ;;  %v2193_v14 = vld [vmem:[%s3447_s0 + $0x29] ss:$80 sm:%s1441_s5]   ;;  %v2194_v15 = vld [vmem:[%s3447_s0 - $0x113] ss:$80 sm:%s1446_s7]   ;;  %s1613_s7 = smov 3 }
  0x98   :  { %v1479_v13 = vsel %vm156_vm2, %v2199_v9, %v1474_v11  ;;  %v1444_v17 = vsel %vm146_vm0, %v2193_v14, %v2192_v12  ;;  %v2195_v18 = vld [vmem:[%s3447_s0 - $0x113] ss:$80 sm:%s1451_s11]   ;;  %v2204_v20 = vld [vmem:[%s3447_s0 + $0x149] ss:$80 sm:%s1513_s15]   ;;  %s1566_s11 = smov 12  ;;  %v483_v0 = vpop.permute.xlu1 %482  }
  0x99   :  { %1480 = vrot.lane.b32.xlu1 %v1479_v13, %s2252_s19  ;;  %v1449_v19 = vsel %vm151_vm1, %v2194_v15, %v1444_v17  ;;  %v2205_v21 = vld [vmem:[%s3447_s0 + $0x149] ss:$80 sm:%s1516_s16]   ;;  %361 = vst.msk [vmem:[#allocation2 + $0x100] sm:$0xf] %vm160_vm4, %v358_v42   ;;  %363 = vst.msk [vmem:[#allocation2 + $0x104] sm:$0xf0] %vm160_vm4, %v358_v42  }
  0x9a   :  { %v1454_v22 = vsel %vm156_vm2, %v2195_v18, %v1449_v19  ;;  %v1519_v23 = vsel %vm146_vm0, %v2205_v21, %v2204_v20  ;;  %v2206_v24 = vld [vmem:[%s3447_s0 + $0xd] ss:$80 sm:%s1521_s22]   ;;  %v2200_v28 = vld [vmem:[%s3447_s0 + $0x49] ss:$80 sm:%s1488_s26]   ;;  %s1538_s22 = smov 3 }
  0x9b   :  { %v2207_v25 = vld [vmem:[%s3447_s0 + $0xd] ss:$80 sm:%s1526_s23]   ;;  %1455 = vrot.lane.b32.xlu0 %v1454_v22, %s2252_s19  ;;  %v1524_v27 = vsel %vm151_vm1, %v2206_v24, %v1519_v23  ;;  %436 = vst.msk [vmem:[#allocation2 + $0x30] sm:$0xf] %vm160_vm4, %v433_v48   ;;  %438 = vst.msk [vmem:[#allocation2 + $0x34] sm:$0xf0] %vm160_vm4, %v433_v48   ;;  %v458_v5 = vpop.permute.xlu0 %457  }
  0x9c   :  { %v1529_v29 = vsel %vm156_vm2, %v2207_v25, %v1524_v27  ;;  %v2201_v30 = vld [vmem:[%s3447_s0 + $0x49] ss:$80 sm:%s1491_s30]   ;;  %v2202_v31 = vld [vmem:[%s3447_s0 - $0xf3] ss:$80 sm:%s1496_s2]   ;;  %s1591_s23 = smov 12 }
  0x9d   :  { %1530 = vrot.lane.b32.xlu1 %v1529_v29, %s2252_s19  ;;  %v1494_v33 = vsel %vm146_vm0, %v2201_v30, %v2200_v28  ;;  %v2203_v34 = vld [vmem:[%s3447_s0 - $0xf3] ss:$80 sm:%s1501_s8]   ;;  %s1616_s8 = smov 12  ;;  %411 = vst.msk [vmem:[#allocation2 + $0x10] sm:$0xf] %vm160_vm4, %v408_v58  }
  0x9e   :  { %v1499_v35 = vsel %vm151_vm1, %v2202_v31, %v1494_v33  ;;  %v2212_v36 = vld [vmem:[%s3447_s0 + $0x169] ss:$80 sm:%s1563_s10]   ;;  %v2214_v40 = vld [vmem:[%s3447_s0 + $0x2d] ss:$80 sm:%s1571_s17]   ;;  %s1588_s17 = smov 3  ;;  %v533_v6 = vpop.permute.xlu1 %532  }
  0x9f   :  { %v2213_v37 = vld [vmem:[%s3447_s0 + $0x169] ss:$80 sm:%s1566_s11]   ;;  %v1504_v38 = vsel %vm156_vm2, %v2203_v34, %v1499_v35  ;;  %v2215_v41 = vld [vmem:[%s3447_s0 + $0x2d] ss:$80 sm:%s1576_s18]   ;;  %413 = vst.msk [vmem:[#allocation2 + $0x14] sm:$0xf0] %vm160_vm4, %v408_v58  }
  0xa0   :  { %v1569_v39 = vsel %vm146_vm0, %v2213_v37, %v2212_v36  ;;  %1505 = vrot.lane.b32.xlu0 %v1504_v38, %s2252_s19  ;;  %v2208_v44 = vld [vmem:[%s3447_s0 + $0x159] ss:$80 sm:%s1538_s22]   ;;  %486 = vst.msk [vmem:[#allocation2 + $0x70] sm:$0xf] %vm160_vm4, %v483_v0   ;;  %488 = vst.msk [vmem:[#allocation2 + $0x74] sm:$0xf0] %vm160_vm4, %v483_v0  }
  0xa1   :  { %v1574_v43 = vsel %vm151_vm1, %v2214_v40, %v1569_v39  ;;  %v2209_v46 = vld [vmem:[%s3447_s0 + $0x159] ss:$80 sm:%s1541_s27]   ;;  %v2210_v47 = vld [vmem:[%s3447_s0 + $0x1d] ss:$80 sm:%s1546_s28]   ;;  %461 = vst.msk [vmem:[#allocation2 + $0x50] sm:$0xf] %vm160_vm4, %v458_v5   ;;  %v508_v7 = vpop.permute.xlu0 %507  }
  0xa2   :  { %v1579_v45 = vsel %vm156_vm2, %v2215_v41, %v1574_v43  ;;  %v1544_v49 = vsel %vm146_vm0, %v2209_v46, %v2208_v44  ;;  %v2211_v50 = vld [vmem:[%s3447_s0 + $0x1d] ss:$80 sm:%s1551_s3]   ;;  %v2220_v52 = vld [vmem:[%s3447_s0 + $0x189] ss:$80 sm:%s1613_s7]   ;;  %463 = vst.msk [vmem:[#allocation2 + $0x54] sm:$0xf0] %vm160_vm4, %v458_v5  }
  0xa3   :  { %1580 = vrot.lane.b32.xlu1 %v1579_v45, %s2252_s19  ;;  %v1549_v51 = vsel %vm151_vm1, %v2210_v47, %v1544_v49  ;;  %v2221_v53 = vld [vmem:[%s3447_s0 + $0x189] ss:$80 sm:%s1616_s8]   ;;  %536 = vst.msk [vmem:[#allocation2 + $0xb0] sm:$0xf] %vm160_vm4, %v533_v6   ;;  %538 = vst.msk [vmem:[#allocation2 + $0xb4] sm:$0xf0] %vm160_vm4, %v533_v6  }
  0xa4   :  { %v1554_v54 = vsel %vm156_vm2, %v2211_v50, %v1549_v51  ;;  %v1619_v55 = vsel %vm146_vm0, %v2221_v53, %v2220_v52  ;;  %v2222_v56 = vld [vmem:[%s3447_s0 + $0x4d] ss:$80 sm:%s1621_s12]   ;;  %v2216_v60 = vld [vmem:[%s3447_s0 + $0x179] ss:$80 sm:%s1588_s17]   ;;  %511 = vst.msk [vmem:[#allocation2 + $0x90] sm:$0xf] %vm160_vm4, %v508_v7   ;;  %v583_v8 = vpop.permute.xlu1 %582  }
  0xa5   :  { %v2223_v57 = vld [vmem:[%s3447_s0 + $0x4d] ss:$80 sm:%s1626_s14]   ;;  %1555 = vrot.lane.b32.xlu0 %v1554_v54, %s2252_s19  ;;  %v1624_v59 = vsel %vm151_vm1, %v2222_v56, %v1619_v55  ;;  %513 = vst.msk [vmem:[#allocation2 + $0x94] sm:$0xf0] %vm160_vm4, %v508_v7   ;;  %586 = vst.msk [vmem:[#allocation2 + $0xf0] sm:$0xf] %vm160_vm4, %v583_v8  }
  0xa6   :  { %v1629_v61 = vsel %vm156_vm2, %v2223_v57, %v1624_v59  ;;  %v2217_v62 = vld [vmem:[%s3447_s0 + $0x179] ss:$80 sm:%s1591_s23]   ;;  %v2218_v63 = vld [vmem:[%s3447_s0 + $0x3d] ss:$80 sm:%s1596_s24]   ;;  %588 = vst.msk [vmem:[#allocation2 + $0xf4] sm:$0xf0] %vm160_vm4, %v583_v8   ;;  %v558_v9 = vpop.permute.xlu0 %557  }
  0xa7   :  { %1630 = vrot.lane.b32.xlu1 %v1629_v61, %s2252_s19  ;;  %v1594_v1 = vsel %vm146_vm0, %v2217_v62, %v2216_v60  ;;  %v2219_v2 = vld [vmem:[%s3447_s0 + $0x3d] ss:$80 sm:%s1601_s29]   ;;  %561 = vst.msk [vmem:[#allocation2 + $0xd0] sm:$0xf] %vm160_vm4, %v558_v9   ;;  %563 = vst.msk [vmem:[#allocation2 + $0xd4] sm:$0xf0] %vm160_vm4, %v558_v9  }
  0xa8   :  { %v1599_v3 = vsel %vm151_vm1, %v2218_v63, %v1594_v1  ;;  %s2253_s0 = smov [#allocation0]  }
  0xa9   :  { %v1604_v4 = vsel %vm156_vm2, %v2219_v2, %v1599_v3  ;;  %v633_v10 = vpop.permute.xlu1 %632  }
  0xaa   :  { %1605 = vrot.lane.b32.xlu0 %v1604_v4, %s2252_s19  ;;  %636 = vst.msk [vmem:[#allocation2 + $0x130] sm:$0xf] %vm160_vm4, %v633_v10   ;;  %638 = vst.msk [vmem:[#allocation2 + $0x134] sm:$0xf0] %vm160_vm4, %v633_v10   ;;  %s1921_s19 = sshll.u32 %s2253_s0, 4  ;;  %s1922_s19 = int_to_ptr.vmem [resolvable:$true] %s1921_s19 }
  0xab   :  { %s2228_s13 = scalar_lea.vmem %s1922_s19, 2560  ;;  %p2233_p1 = scmp.lt.s32.totalorder %s1922_s19, %s1922_s19 }
  0xac   :  { %v608_v11 = vpop.permute.xlu0 %607   ;;  %p2229_p0 = scmp.ne.s32.totalorder %s1922_s19, %s2228_s13  ;;  %p2234_p2 = scmp.lt.s32.totalorder %s2228_s13, %s2228_s13 }
  0xad   :  { %611 = vst.msk [vmem:[#allocation2 + $0x110] sm:$0xf] %vm160_vm4, %v608_v11   ;;  %613 = vst.msk [vmem:[#allocation2 + $0x114] sm:$0xf0] %vm160_vm4, %v608_v11  }
  0xae   :  { %p2235_p3 = por %p2234_p2, %p2233_p1 }
  0xb0   :  { %v682_v12 = vpop.permute.xlu1 %681   ;;  %p2236_p4 = pnand %p2235_p3, %p2229_p0 }
  0xb1   :  { %685 = vst.msk [vmem:[#allocation2 + $0x20] sm:$0xf] %vm659_vm5, %v682_v12   ;;  %687 = vst.msk [vmem:[#allocation2 + $0x24] sm:$0xf0] %vm659_vm5, %v682_v12  }
  0xb3   :  { %v658_v13 = vpop.permute.xlu0 %657  }
  0xb4   :  { %660 = vst.msk [vmem:[#allocation2] sm:$0xf] %vm659_vm5, %v658_v13   ;;  %662 = vst.msk [vmem:[#allocation2 + $0x4] sm:$0xf0] %vm659_vm5, %v658_v13  }
  0xb7   :  { %v732_v14 = vpop.permute.xlu1 %731  }
  0xb8   :  { %735 = vst.msk [vmem:[#allocation2 + $0x60] sm:$0xf] %vm659_vm5, %v732_v14   ;;  %737 = vst.msk [vmem:[#allocation2 + $0x64] sm:$0xf0] %vm659_vm5, %v732_v14  }
  0xba   :  { %v707_v15 = vpop.permute.xlu0 %706  }
  0xbb   :  { %710 = vst.msk [vmem:[#allocation2 + $0x40] sm:$0xf] %vm659_vm5, %v707_v15   ;;  %712 = vst.msk [vmem:[#allocation2 + $0x44] sm:$0xf0] %vm659_vm5, %v707_v15  }
  0xbe   :  { %v782_v16 = vpop.permute.xlu1 %781  }
  0xbf   :  { %785 = vst.msk [vmem:[#allocation2 + $0xa0] sm:$0xf] %vm659_vm5, %v782_v16   ;;  %787 = vst.msk [vmem:[#allocation2 + $0xa4] sm:$0xf0] %vm659_vm5, %v782_v16  }
  0xc1   :  { %v757_v17 = vpop.permute.xlu0 %756  }
  0xc2   :  { %760 = vst.msk [vmem:[#allocation2 + $0x80] sm:$0xf] %vm659_vm5, %v757_v17   ;;  %762 = vst.msk [vmem:[#allocation2 + $0x84] sm:$0xf0] %vm659_vm5, %v757_v17  }
  0xc5   :  { %v832_v18 = vpop.permute.xlu1 %831  }
  0xc6   :  { %835 = vst.msk [vmem:[#allocation2 + $0xe0] sm:$0xf] %vm659_vm5, %v832_v18   ;;  %837 = vst.msk [vmem:[#allocation2 + $0xe4] sm:$0xf0] %vm659_vm5, %v832_v18  }
  0xc8   :  { %v807_v19 = vpop.permute.xlu0 %806  }
  0xc9   :  { %810 = vst.msk [vmem:[#allocation2 + $0xc0] sm:$0xf] %vm659_vm5, %v807_v19   ;;  %812 = vst.msk [vmem:[#allocation2 + $0xc4] sm:$0xf0] %vm659_vm5, %v807_v19  }
  0xcc   :  { %v882_v20 = vpop.permute.xlu1 %881  }
  0xcd   :  { %885 = vst.msk [vmem:[#allocation2 + $0x120] sm:$0xf] %vm659_vm5, %v882_v20   ;;  %887 = vst.msk [vmem:[#allocation2 + $0x124] sm:$0xf0] %vm659_vm5, %v882_v20  }
  0xcf   :  { %v857_v21 = vpop.permute.xlu0 %856  }
  0xd0   :  { %860 = vst.msk [vmem:[#allocation2 + $0x100] sm:$0xf] %vm659_vm5, %v857_v21   ;;  %862 = vst.msk [vmem:[#allocation2 + $0x104] sm:$0xf0] %vm659_vm5, %v857_v21  }
  0xd3   :  { %v932_v22 = vpop.permute.xlu1 %931  }
  0xd4   :  { %935 = vst.msk [vmem:[#allocation2 + $0x30] sm:$0xf] %vm659_vm5, %v932_v22   ;;  %937 = vst.msk [vmem:[#allocation2 + $0x34] sm:$0xf0] %vm659_vm5, %v932_v22  }
  0xd6   :  { %v907_v23 = vpop.permute.xlu0 %906  }
  0xd7   :  { %910 = vst.msk [vmem:[#allocation2 + $0x10] sm:$0xf] %vm659_vm5, %v907_v23   ;;  %912 = vst.msk [vmem:[#allocation2 + $0x14] sm:$0xf0] %vm659_vm5, %v907_v23  }
  0xd9   :  { %v982_v24 = vpop.permute.xlu1 %981  }
  0xda   :  { %985 = vst.msk [vmem:[#allocation2 + $0x70] sm:$0xf] %vm659_vm5, %v982_v24   ;;  %987 = vst.msk [vmem:[#allocation2 + $0x74] sm:$0xf0] %vm659_vm5, %v982_v24  }
  0xdb   :  { %v957_v25 = vpop.permute.xlu0 %956  }
  0xdc   :  { %960 = vst.msk [vmem:[#allocation2 + $0x50] sm:$0xf] %vm659_vm5, %v957_v25   ;;  %962 = vst.msk [vmem:[#allocation2 + $0x54] sm:$0xf0] %vm659_vm5, %v957_v25  }
  0xdd   :  { %v1032_v26 = vpop.permute.xlu1 %1031  }
  0xde   :  { %1035 = vst.msk [vmem:[#allocation2 + $0xb0] sm:$0xf] %vm659_vm5, %v1032_v26   ;;  %1037 = vst.msk [vmem:[#allocation2 + $0xb4] sm:$0xf0] %vm659_vm5, %v1032_v26  }
  0xe0   :  { %v1007_v27 = vpop.permute.xlu0 %1006  }
  0xe1   :  { %1010 = vst.msk [vmem:[#allocation2 + $0x90] sm:$0xf] %vm659_vm5, %v1007_v27   ;;  %1012 = vst.msk [vmem:[#allocation2 + $0x94] sm:$0xf0] %vm659_vm5, %v1007_v27  }
  0xe3   :  { %v1082_v28 = vpop.permute.xlu1 %1081  }
  0xe4   :  { %1085 = vst.msk [vmem:[#allocation2 + $0xf0] sm:$0xf] %vm659_vm5, %v1082_v28   ;;  %1087 = vst.msk [vmem:[#allocation2 + $0xf4] sm:$0xf0] %vm659_vm5, %v1082_v28  }
  0xe5   :  { %v1057_v29 = vpop.permute.xlu0 %1056  }
  0xe6   :  { %1060 = vst.msk [vmem:[#allocation2 + $0xd0] sm:$0xf] %vm659_vm5, %v1057_v29   ;;  %1062 = vst.msk [vmem:[#allocation2 + $0xd4] sm:$0xf0] %vm659_vm5, %v1057_v29  }
  0xe7   :  { %v1132_v30 = vpop.permute.xlu1 %1131  }
  0xe8   :  { %1135 = vst.msk [vmem:[#allocation2 + $0x130] sm:$0xf] %vm659_vm5, %v1132_v30   ;;  %1137 = vst.msk [vmem:[#allocation2 + $0x134] sm:$0xf0] %vm659_vm5, %v1132_v30  }
  0xea   :  { %v1107_v31 = vpop.permute.xlu0 %1106  }
  0xeb   :  { %1110 = vst.msk [vmem:[#allocation2 + $0x110] sm:$0xf] %vm659_vm5, %v1107_v31   ;;  %1112 = vst.msk [vmem:[#allocation2 + $0x114] sm:$0xf0] %vm659_vm5, %v1107_v31  }
  0xed   :  { %v1181_v32 = vpop.permute.xlu1 %1180  }
  0xee   :  { %1184 = vst.msk [vmem:[#allocation2 + $0x20] sm:$0xf] %vm1158_vm6, %v1181_v32   ;;  %1186 = vst.msk [vmem:[#allocation2 + $0x24] sm:$0xf0] %vm1158_vm6, %v1181_v32  }
  0xef   :  { %v1157_v33 = vpop.permute.xlu0 %1156  }
  0xf0   :  { %1159 = vst.msk [vmem:[#allocation2] sm:$0xf] %vm1158_vm6, %v1157_v33   ;;  %1161 = vst.msk [vmem:[#allocation2 + $0x4] sm:$0xf0] %vm1158_vm6, %v1157_v33  }
  0xf1   :  { %v1231_v34 = vpop.permute.xlu1 %1230  }
  0xf2   :  { %1234 = vst.msk [vmem:[#allocation2 + $0x60] sm:$0xf] %vm1158_vm6, %v1231_v34   ;;  %1236 = vst.msk [vmem:[#allocation2 + $0x64] sm:$0xf0] %vm1158_vm6, %v1231_v34  }
  0xf4   :  { %v1206_v37 = vpop.permute.xlu0 %1205  }
  0xf5   :  { %v1666_v35 = vld [vmem:[#allocation2 + $0x20] sm:$0xf]  ;;  %v1673_v36 = vld [vmem:[#allocation2 + $0x28] sm:$0xf]  ;;  %1209 = vst.msk [vmem:[#allocation2 + $0x40] sm:$0xf] %vm1158_vm6, %v1206_v37  }
  0xf6   :  { %1671 = vst [vmem:[#allocation0 + $0x10] sm:$0xf] %v1666_v35  ;;  %1678 = vst [vmem:[#allocation0 + $0x14] sm:$0xf] %v1673_v36 }
  0xf7   :  { %1211 = vst.msk [vmem:[#allocation2 + $0x44] sm:$0xf0] %vm1158_vm6, %v1206_v37   ;;  %v1281_v38 = vpop.permute.xlu1 %1280   ;;  %v1641_v39 = vld [vmem:[#allocation2] sm:$0xf]  ;;  %v1646_v40 = vld [vmem:[#allocation2 + $0x8] sm:$0xf] }
  0xf8   :  { %1284 = vst.msk [vmem:[#allocation2 + $0xa0] sm:$0xf] %vm1158_vm6, %v1281_v38   ;;  %1286 = vst.msk [vmem:[#allocation2 + $0xa4] sm:$0xf0] %vm1158_vm6, %v1281_v38  }
  0xf9   :  { %1644 = vst [vmem:[#allocation0] sm:$0xf] %v1641_v39  ;;  %1650 = vst [vmem:[#allocation0 + $0x4] sm:$0xf] %v1646_v40  ;;  %v1722_v41 = vld [vmem:[#allocation2 + $0x60] sm:$0xf]  ;;  %v1256_v43 = vpop.permute.xlu0 %1255  }
  0xfa   :  { %v1729_v42 = vld [vmem:[#allocation2 + $0x68] sm:$0xf]  ;;  %1727 = vst [vmem:[#allocation0 + $0x30] sm:$0xf] %v1722_v41  ;;  %1259 = vst.msk [vmem:[#allocation2 + $0x80] sm:$0xf] %vm1158_vm6, %v1256_v43  }
  0xfb   :  { %1734 = vst [vmem:[#allocation0 + $0x34] sm:$0xf] %v1729_v42  ;;  %1261 = vst.msk [vmem:[#allocation2 + $0x84] sm:$0xf0] %vm1158_vm6, %v1256_v43   ;;  %v1331_v44 = vpop.permute.xlu1 %1330  }
  0xfc   :  { %v1694_v45 = vld [vmem:[#allocation2 + $0x40] sm:$0xf]  ;;  %1334 = vst.msk [vmem:[#allocation2 + $0xe0] sm:$0xf] %vm1158_vm6, %v1331_v44   ;;  %1336 = vst.msk [vmem:[#allocation2 + $0xe4] sm:$0xf0] %vm1158_vm6, %v1331_v44  }
  0xfd   :  { %1699 = vst [vmem:[#allocation0 + $0x20] sm:$0xf] %v1694_v45 }
  0xfe   :  { %v1701_v46 = vld [vmem:[#allocation2 + $0x48] sm:$0xf]  ;;  %v1306_v49 = vpop.permute.xlu0 %1305  }
  0xff   :  { %1706 = vst [vmem:[#allocation0 + $0x24] sm:$0xf] %v1701_v46  ;;  %v1778_v47 = vld [vmem:[#allocation2 + $0xa0] sm:$0xf]  ;;  %v1785_v48 = vld [vmem:[#allocation2 + $0xa8] sm:$0xf] }
 0x100   :  { %1783 = vst [vmem:[#allocation0 + $0x50] sm:$0xf] %v1778_v47  ;;  %1790 = vst [vmem:[#allocation0 + $0x54] sm:$0xf] %v1785_v48 }
 0x101   :  { %1309 = vst.msk [vmem:[#allocation2 + $0xc0] sm:$0xf] %vm1158_vm6, %v1306_v49   ;;  %1311 = vst.msk [vmem:[#allocation2 + $0xc4] sm:$0xf0] %vm1158_vm6, %v1306_v49   ;;  %v1381_v50 = vpop.permute.xlu1 %1380   ;;  %v1750_v51 = vld [vmem:[#allocation2 + $0x80] sm:$0xf] }
 0x102   :  { %v1757_v52 = vld [vmem:[#allocation2 + $0x88] sm:$0xf]  ;;  %1384 = vst.msk [vmem:[#allocation2 + $0x120] sm:$0xf] %vm1158_vm6, %v1381_v50   ;;  %1386 = vst.msk [vmem:[#allocation2 + $0x124] sm:$0xf0] %vm1158_vm6, %v1381_v50  }
 0x103   :  { %1755 = vst [vmem:[#allocation0 + $0x40] sm:$0xf] %v1750_v51  ;;  %1762 = vst [vmem:[#allocation0 + $0x44] sm:$0xf] %v1757_v52  ;;  %v1834_v53 = vld [vmem:[#allocation2 + $0xe0] sm:$0xf]  ;;  %v1356_v55 = vpop.permute.xlu0 %1355  }
 0x104   :  { %v1841_v54 = vld [vmem:[#allocation2 + $0xe8] sm:$0xf]  ;;  %1839 = vst [vmem:[#allocation0 + $0x70] sm:$0xf] %v1834_v53  ;;  %1359 = vst.msk [vmem:[#allocation2 + $0x100] sm:$0xf] %vm1158_vm6, %v1356_v55  }
 0x105   :  { %1846 = vst [vmem:[#allocation0 + $0x74] sm:$0xf] %v1841_v54  ;;  %1361 = vst.msk [vmem:[#allocation2 + $0x104] sm:$0xf0] %vm1158_vm6, %v1356_v55   ;;  %v1431_v56 = vpop.permute.xlu1 %1430  }
 0x106   :  { %1434 = vst.msk [vmem:[#allocation2 + $0x30] sm:$0xf] %vm1158_vm6, %v1431_v56   ;;  %1436 = vst.msk [vmem:[#allocation2 + $0x34] sm:$0xf0] %vm1158_vm6, %v1431_v56  }
 0x108   :  { %v1806_v57 = vld [vmem:[#allocation2 + $0xc0] sm:$0xf]  ;;  %v1813_v58 = vld [vmem:[#allocation2 + $0xc8] sm:$0xf]  ;;  %v1406_v61 = vpop.permute.xlu0 %1405  }
 0x109   :  { %1811 = vst [vmem:[#allocation0 + $0x60] sm:$0xf] %v1806_v57  ;;  %1818 = vst [vmem:[#allocation0 + $0x64] sm:$0xf] %v1813_v58  ;;  %v1890_v59 = vld [vmem:[#allocation2 + $0x120] sm:$0xf] }
 0x10a   :  { %v1897_v60 = vld [vmem:[#allocation2 + $0x128] sm:$0xf]  ;;  %1895 = vst [vmem:[#allocation0 + $0x90] sm:$0xf] %v1890_v59  ;;  %1409 = vst.msk [vmem:[#allocation2 + $0x10] sm:$0xf] %vm1158_vm6, %v1406_v61  }
 0x10b   :  { %1902 = vst [vmem:[#allocation0 + $0x94] sm:$0xf] %v1897_v60  ;;  %1411 = vst.msk [vmem:[#allocation2 + $0x14] sm:$0xf0] %vm1158_vm6, %v1406_v61   ;;  %v1481_v62 = vpop.permute.xlu1 %1480   ;;  %v1862_v63 = vld [vmem:[#allocation2 + $0x100] sm:$0xf] }
 0x10c   :  { %v1869_v0 = vld [vmem:[#allocation2 + $0x108] sm:$0xf]  ;;  %1484 = vst.msk [vmem:[#allocation2 + $0x70] sm:$0xf] %vm1158_vm6, %v1481_v62   ;;  %1486 = vst.msk [vmem:[#allocation2 + $0x74] sm:$0xf0] %vm1158_vm6, %v1481_v62  }
 0x10d   :  { %1867 = vst [vmem:[#allocation0 + $0x80] sm:$0xf] %v1862_v63  ;;  %1874 = vst [vmem:[#allocation0 + $0x84] sm:$0xf] %v1869_v0  ;;  %v1680_v1 = vld [vmem:[#allocation2 + $0x30] sm:$0xf]  ;;  %v1456_v3 = vpop.permute.xlu0 %1455  }
 0x10e   :  { %v1687_v2 = vld [vmem:[#allocation2 + $0x38] sm:$0xf]  ;;  %1685 = vst [vmem:[#allocation0 + $0x18] sm:$0xf] %v1680_v1  ;;  %1459 = vst.msk [vmem:[#allocation2 + $0x50] sm:$0xf] %vm1158_vm6, %v1456_v3  }
 0x10f   :  { %1692 = vst [vmem:[#allocation0 + $0x1c] sm:$0xf] %v1687_v2  ;;  %1461 = vst.msk [vmem:[#allocation2 + $0x54] sm:$0xf0] %vm1158_vm6, %v1456_v3   ;;  %v1531_v4 = vpop.permute.xlu1 %1530  }
 0x110   :  { %1534 = vst.msk [vmem:[#allocation2 + $0xb0] sm:$0xf] %vm1158_vm6, %v1531_v4   ;;  %1536 = vst.msk [vmem:[#allocation2 + $0xb4] sm:$0xf0] %vm1158_vm6, %v1531_v4  }
 0x111   :  { %v1652_v5 = vld [vmem:[#allocation2 + $0x10] sm:$0xf] }
 0x112   :  { %v1659_v6 = vld [vmem:[#allocation2 + $0x18] sm:$0xf]  ;;  %1657 = vst [vmem:[#allocation0 + $0x8] sm:$0xf] %v1652_v5  ;;  %v1506_v9 = vpop.permute.xlu0 %1505  }
 0x113   :  { %1664 = vst [vmem:[#allocation0 + $0xc] sm:$0xf] %v1659_v6  ;;  %v1736_v7 = vld [vmem:[#allocation2 + $0x70] sm:$0xf]  ;;  %v1743_v8 = vld [vmem:[#allocation2 + $0x78] sm:$0xf] }
 0x114   :  { %1741 = vst [vmem:[#allocation0 + $0x38] sm:$0xf] %v1736_v7  ;;  %1748 = vst [vmem:[#allocation0 + $0x3c] sm:$0xf] %v1743_v8 }
 0x115   :  { %1509 = vst.msk [vmem:[#allocation2 + $0x90] sm:$0xf] %vm1158_vm6, %v1506_v9   ;;  %1511 = vst.msk [vmem:[#allocation2 + $0x94] sm:$0xf0] %vm1158_vm6, %v1506_v9   ;;  %v1581_v10 = vpop.permute.xlu1 %1580   ;;  %v1708_v11 = vld [vmem:[#allocation2 + $0x50] sm:$0xf] }
 0x116   :  { %v1715_v12 = vld [vmem:[#allocation2 + $0x58] sm:$0xf]  ;;  %1584 = vst.msk [vmem:[#allocation2 + $0xf0] sm:$0xf] %vm1158_vm6, %v1581_v10   ;;  %1586 = vst.msk [vmem:[#allocation2 + $0xf4] sm:$0xf0] %vm1158_vm6, %v1581_v10  }
 0x117   :  { %1713 = vst [vmem:[#allocation0 + $0x28] sm:$0xf] %v1708_v11  ;;  %1720 = vst [vmem:[#allocation0 + $0x2c] sm:$0xf] %v1715_v12  ;;  %v1792_v13 = vld [vmem:[#allocation2 + $0xb0] sm:$0xf]  ;;  %v1556_v15 = vpop.permute.xlu0 %1555  }
 0x118   :  { %v1799_v14 = vld [vmem:[#allocation2 + $0xb8] sm:$0xf]  ;;  %1797 = vst [vmem:[#allocation0 + $0x58] sm:$0xf] %v1792_v13  ;;  %1559 = vst.msk [vmem:[#allocation2 + $0xd0] sm:$0xf] %vm1158_vm6, %v1556_v15  }
 0x119   :  { %1804 = vst [vmem:[#allocation0 + $0x5c] sm:$0xf] %v1799_v14  ;;  %1561 = vst.msk [vmem:[#allocation2 + $0xd4] sm:$0xf0] %vm1158_vm6, %v1556_v15   ;;  %v1631_v16 = vpop.permute.xlu1 %1630  }
 0x11a   :  { %1634 = vst.msk [vmem:[#allocation2 + $0x130] sm:$0xf] %vm1158_vm6, %v1631_v16   ;;  %1636 = vst.msk [vmem:[#allocation2 + $0x134] sm:$0xf0] %vm1158_vm6, %v1631_v16  }
 0x11c   :  { %v1764_v17 = vld [vmem:[#allocation2 + $0x90] sm:$0xf]  ;;  %v1771_v18 = vld [vmem:[#allocation2 + $0x98] sm:$0xf]  ;;  %v1606_v21 = vpop.permute.xlu0 %1605  }
 0x11d   :  { %1769 = vst [vmem:[#allocation0 + $0x48] sm:$0xf] %v1764_v17  ;;  %1776 = vst [vmem:[#allocation0 + $0x4c] sm:$0xf] %v1771_v18  ;;  %v1848_v19 = vld [vmem:[#allocation2 + $0xf0] sm:$0xf] }
 0x11e   :  { %v1855_v20 = vld [vmem:[#allocation2 + $0xf8] sm:$0xf]  ;;  %1853 = vst [vmem:[#allocation0 + $0x78] sm:$0xf] %v1848_v19  ;;  %1609 = vst.msk [vmem:[#allocation2 + $0x110] sm:$0xf] %vm1158_vm6, %v1606_v21  }
 0x11f   :  { %1860 = vst [vmem:[#allocation0 + $0x7c] sm:$0xf] %v1855_v20  ;;  %1611 = vst.msk [vmem:[#allocation2 + $0x114] sm:$0xf0] %vm1158_vm6, %v1606_v21   ;;  %v1820_v22 = vld [vmem:[#allocation2 + $0xd0] sm:$0xf] }
 0x120   :  { %v1827_v23 = vld [vmem:[#allocation2 + $0xd8] sm:$0xf]  ;;  %1825 = vst [vmem:[#allocation0 + $0x68] sm:$0xf] %v1820_v22 }
 0x121   :  { %1832 = vst [vmem:[#allocation0 + $0x6c] sm:$0xf] %v1827_v23  ;;  %v1904_v24 = vld [vmem:[#allocation2 + $0x130] sm:$0xf]  ;;  %v1911_v25 = vld [vmem:[#allocation2 + $0x138] sm:$0xf] }
 0x122   :  { %1909 = vst [vmem:[#allocation0 + $0x98] sm:$0xf] %v1904_v24  ;;  %1916 = vst [vmem:[#allocation0 + $0x9c] sm:$0xf] %v1911_v25 }
 0x125   :  { %v1876_v26 = vld [vmem:[#allocation2 + $0x110] sm:$0xf] }
 0x126   :  { %v1883_v27 = vld [vmem:[#allocation2 + $0x118] sm:$0xf]  ;;  %1881 = vst [vmem:[#allocation0 + $0x88] sm:$0xf] %v1876_v26 }
 0x127   :  { %1888 = vst [vmem:[#allocation0 + $0x8c] sm:$0xf] %v1883_v27 }
 0x128   :  { %2239 = shalt.err (!%p2236_p4)
}
 0x129   :  { %1924 = dma.vmem_to_hbm [thread:$0]  %s1922_s19, 2560, %s3448_s1, [#allocation1]  }
 0x12a   :  { %2248 = dma.done.wait [#allocation1], 2560  }
 0x12b   :  { %2249 = vsyncadd [#allocation1], 4294964736 }
 0x12c   :  { %1926 = vsyncpa [#allocation1], 1 }

</bundles_post_ra>
